<compile_context>
chip_gen: v7x
topology: tpu7x:2x2x1
jax: 0.10.0
libtpu: 0.0.40
codegen_flags: <defaults>
</compile_context>

<pallas_src>
import functools

import jax
import jax.numpy as jnp
from jax import lax
from jax.experimental import pallas as pl
from jax.experimental.pallas import tpu as pltpu


# ----------------------------------------------------------------------------
# Fused decoder kernel builder.
# ----------------------------------------------------------------------------
def _build_decoder_kernel(H, W, in_ch, out_ch, hidden, res_ch, n_resblocks, stride):
    c_pad = max(in_ch, hidden)
    taps3 = tuple((kh, kw) for kh in range(3) for kw in range(3))

    def im2col_conv(src_ref, patch_ref, Hc, Wc, taps, cin, wg, bias):
        """Single-GEMM VALID conv reading a zero-padded VMEM scratch."""
        K = len(taps) * cin
        for t, (dy, dx) in enumerate(taps):
            patch_ref[:, :, t * cin:(t + 1) * cin] = \
                src_ref[dy:dy + Hc, dx:dx + Wc, 0:cin]
        patches = patch_ref[:, :, 0:K].reshape(Hc * Wc, K)
        acc = jnp.dot(patches, wg, preferred_element_type=jnp.float32) + bias
        return acc.reshape(Hc, Wc, wg.shape[1])

    def kernel(*refs):
        if stride == 4:
            (x_ref, w_in, b_in, w_r1, b_r1, w_r2, b_r2, wp1, bp1, wp2, bp2,
             o_ref, pad_ref, patch1, x2p_ref, patch2, ilv_ref) = refs
            c1 = hidden // 2
        else:
            (x_ref, w_in, b_in, w_r1, b_r1, w_r2, b_r2, wp1, bp1,
             o_ref, pad_ref, patch1) = refs

        # Zero the halo scratch(es); interiors are always rewritten before reads.
        pad_ref[...] = jnp.zeros_like(pad_ref)
        if stride == 4:
            x2p_ref[...] = jnp.zeros_like(x2p_ref)

        # ---- conv_in: 3x3, pad=1 --------------------------------------------
        pad_ref[1:1 + H, 1:1 + W, 0:in_ch] = x_ref[0]
        x = im2col_conv(pad_ref, patch1, H, W, taps3, in_ch, w_in[...], b_in[...])

        # ---- n_resblocks applications of the (shared-weight) ResBlock --------
        for _ in range(n_resblocks):
            pad_ref[1:1 + H, 1:1 + W, 0:hidden] = jnp.maximum(x, 0.0)
            h = im2col_conv(pad_ref, patch1, H, W, taps3, hidden,
                            w_r1[...], b_r1[...])
            hflat = jnp.maximum(h, 0.0).reshape(H * W, res_ch)
            d = jnp.dot(hflat, w_r2[...], preferred_element_type=jnp.float32) \
                + b_r2[...]
            x = x + d.reshape(H, W, hidden)

        # ---- trunk ReLU, fused into the halo store ----------------------------
        pad_ref[1:1 + H, 1:1 + W, 0:hidden] = jnp.maximum(x, 0.0)

        # ---- first ConvTranspose2d(4, s=2, p=1): 4 sub-pixel phases -----------
        wp1_all = wp1[...]
        phases = {}
        for rh in range(2):
            for rw in range(2):
                taps = tuple((rh + dh, rw + dw)
                             for dh in range(2) for dw in range(2))
                phases[(rh, rw)] = im2col_conv(pad_ref, patch1, H, W, taps,
                                               hidden, wp1_all[rh, rw], bp1[...])

        if stride == 2:
            # These phases ARE the decoder output (no trailing ReLU).
            for rh in range(2):
                for rw in range(2):
                    o_ref[0:1, rh:rh + 1, rw:rw + 1, :, :, :] = (
                        phases[(rh, rw)].reshape(1, 1, 1, H, W, out_ch)
                        .astype(o_ref.dtype))
            return

        # ---- stride == 4: ReLU + interleave phases into padded 2Hx2W map ------
        for rw in range(2):
            ilv_ref[:, 0:1, :, :] = \
                jnp.maximum(phases[(0, rw)], 0.0).reshape(H, 1, W, c1)
            ilv_ref[:, 1:2, :, :] = \
                jnp.maximum(phases[(1, rw)], 0.0).reshape(H, 1, W, c1)
            colp = ilv_ref[...].reshape(2 * H, W, c1)        # rows interleaved
            for j in range(W):
                c = 1 + 2 * j + rw
                x2p_ref[1:1 + 2 * H, c:c + 1, :] = colp[:, j:j + 1, :]

        # ---- second ConvTranspose2d: 4 sub-pixel phases on the 2Hx2W map ------
        wp2_all = wp2[...]
        for sh in range(2):
            for sw in range(2):
                taps = tuple((sh + dh, sw + dw)
                             for dh in range(2) for dw in range(2))
                y = im2col_conv(x2p_ref, patch2, 2 * H, 2 * W, taps, c1,
                                wp2_all[sh, sw], bp2[...])
                o_ref[0:1, sh:sh + 1, sw:sw + 1, :, :, :] = (
                    y.reshape(1, 1, 1, 2 * H, 2 * W, out_ch).astype(o_ref.dtype))

    scratch = [
        pltpu.VMEM((H + 2, W + 2, c_pad), jnp.float32),        # zero-padded act.
        pltpu.VMEM((H, W, 9 * c_pad), jnp.float32),            # im2col patches
    ]
    out_hw = H
    if stride == 4:
        c1 = hidden // 2
        out_hw = 2 * H
        scratch += [
            pltpu.VMEM((2 * H + 2, 2 * W + 2, c1), jnp.float32),   # padded 2Hx2W
            pltpu.VMEM((2 * H, 2 * W, 4 * c1), jnp.float32),       # up2 patches
            pltpu.VMEM((H, 2, W, c1), jnp.float32),                # row interleave
        ]
    return kernel, scratch, out_hw


def _phase_weights(wt):
    """(Cin, Cout, 4, 4) torch ConvTranspose2d weight -> (2, 2, 4*Cin, Cout).

    Phase (rh, rw) is a 2x2 VALID conv whose tap (dh, dw) uses
    wt[..., 3 - rh - 2*dh, 3 - rw - 2*dw]; GEMM rows are ordered (dh, dw, ci)."""
    blocks = []
    for rh in range(2):
        for rw in range(2):
            taps = [wt[:, :, 3 - rh - 2 * dh, 3 - rw - 2 * dw]
                    for dh in range(2) for dw in range(2)]
            blocks.append(jnp.concatenate(taps, axis=0))       # (4*Cin, Cout)
    w = jnp.stack(blocks, axis=0)                              # (4, 4*Cin, Cout)
    return w.reshape(2, 2, 4 * wt.shape[0], wt.shape[1])


# ----------------------------------------------------------------------------
# Public forward: NCHW in, NCHW out (matches the PyTorch module).
# ----------------------------------------------------------------------------
@functools.partial(jax.jit, static_argnames=("n_resblocks", "stride"))
def vqvae_decoder_forward(x_nchw, params, *, n_resblocks, stride):
    # TODO(synk): stride values other than 2/4 (decoder ending at the trunk ReLU)
    # are not implemented.
    assert stride in (2, 4)
    B, in_ch, H, W = x_nchw.shape
    hidden = params["conv_in_w"].shape[3]
    res_ch = params["res1_w"].shape[3]
    out_ch = params["up2_wt"].shape[1] if stride == 4 else params["up1_wt"].shape[1]

    kernel, scratch, out_hw = _build_decoder_kernel(
        H, W, in_ch, out_ch, hidden, res_ch, n_resblocks, stride)

    args = [
        jnp.transpose(x_nchw, (0, 2, 3, 1)),                     # NHWC input
        params["conv_in_w"].reshape(9 * in_ch, hidden),
        params["conv_in_b"].reshape(1, hidden),
        params["res1_w"].reshape(9 * hidden, res_ch),
        params["res1_b"].reshape(1, res_ch),
        params["res2_w"].reshape(res_ch, hidden),
        params["res2_b"].reshape(1, hidden),
        _phase_weights(params["up1_wt"]),
        params["up1_b"].reshape(1, -1),
    ]
    if stride == 4:
        args += [_phase_weights(params["up2_wt"]),
                 params["up2_b"].reshape(1, out_ch)]

    def _rep_spec(a):
        n = a.ndim
        return pl.BlockSpec(a.shape, lambda b, _n=n: (0,) * _n)

    in_specs = [pl.BlockSpec((1, H, W, in_ch), lambda b: (b, 0, 0, 0))]
    in_specs += [_rep_spec(a) for a in args[1:]]

    phased = pl.pallas_call(
        kernel,
        out_shape=jax.ShapeDtypeStruct((B, 2, 2, out_hw, out_hw, out_ch),
                                       jnp.float32),
        grid=(B,),
        in_specs=in_specs,
        out_specs=pl.BlockSpec((1, 2, 2, out_hw, out_hw, out_ch),
                               lambda b: (b, 0, 0, 0, 0, 0)),
        scratch_shapes=scratch,
        compiler_params=pltpu.CompilerParams(
            dimension_semantics=("parallel",)),
    )(*args)

    # out[b, c, 2p+rh, 2q+rw] = phased[b, rh, rw, p, q, c]  (tiny XLA reassembly)
    out = jnp.transpose(phased, (0, 5, 3, 1, 4, 2))
    return out.reshape(B, out_ch, 2 * out_hw, 2 * out_hw)


# ----------------------------------------------------------------------------
# Parameters (deterministic, synthetic). Conv weights in HWIO, ConvTranspose
# weights kept in the PyTorch (Cin, Cout, KH, KW) layout.
# ----------------------------------------------------------------------------
def init_params(key, in_ch, out_ch, hidden, n_res_ch, stride):
    ks = jax.random.split(key, 10)
    w = lambda k, s: 0.1 * jax.random.normal(k, s, jnp.float32)
    p = {
        "conv_in_w": w(ks[0], (3, 3, in_ch, hidden)),
        "conv_in_b": w(ks[1], (hidden,)),
        # single shared ResBlock (PyTorch repeats the same module object)
        "res1_w": w(ks[2], (3, 3, hidden, n_res_ch)),
        "res1_b": w(ks[3], (n_res_ch,)),
        "res2_w": w(ks[4], (1, 1, n_res_ch, hidden)),
        "res2_b": w(ks[5], (hidden,)),
    }
    if stride == 4:
        p["up1_wt"] = w(ks[6], (hidden, hidden // 2, 4, 4))
        p["up1_b"] = w(ks[7], (hidden // 2,))
        p["up2_wt"] = w(ks[8], (hidden // 2, out_ch, 4, 4))
        p["up2_b"] = w(ks[9], (out_ch,))
    elif stride == 2:
        p["up1_wt"] = w(ks[6], (hidden, out_ch, 4, 4))
        p["up1_b"] = w(ks[7], (out_ch,))
    return p


# ----------------------------------------------------------------------------
# Pure-XLA reference (numeric verification only).
# ----------------------------------------------------------------------------
def _ref_conv(x, w, b, padding, lhs_dilation=1):
    return lax.conv_general_dilated(
        x, w, window_strides=(1, 1),
        padding=[(padding, padding), (padding, padding)],
        lhs_dilation=(lhs_dilation, lhs_dilation),
        dimension_numbers=("NHWC", "HWIO", "NHWC")) + b.reshape(1, 1, 1, -1)


def reference_forward(x_nchw, p, *, n_resblocks, stride):
    t2conv = lambda wt: jnp.transpose(wt[:, :, ::-1, ::-1], (2, 3, 0, 1))
    x = jnp.transpose(x_nchw, (0, 2, 3, 1))
    x = _ref_conv(x, p["conv_in_w"], p["conv_in_b"], 1)
    for _ in range(n_resblocks):
        h = _ref_conv(jax.nn.relu(x), p["res1_w"], p["res1_b"], 1)
        x = x + _ref_conv(jax.nn.relu(h), p["res2_w"], p["res2_b"], 0)
    x = jax.nn.relu(x)
    if stride == 4:
        x = jax.nn.relu(_ref_conv(x, t2conv(p["up1_wt"]), p["up1_b"], 2,
                                  lhs_dilation=2))
        x = _ref_conv(x, t2conv(p["up2_wt"]), p["up2_b"], 2, lhs_dilation=2)
    elif stride == 2:
        x = _ref_conv(x, t2conv(p["up1_wt"]), p["up1_b"], 2, lhs_dilation=2)
    return jnp.transpose(x, (0, 3, 1, 2))


if __name__ == "__main__":
    # VQVAEDecoder(in_channels=4, out_channels=3, hidden_channels=8,
    #              n_resblocks=2, n_res_channels=8, stride=4)
    in_ch, out_ch, hidden, n_res, n_res_ch, stride = 4, 3, 8, 2, 8, 4
    B, H, W = 2, 8, 8

    key = jax.random.PRNGKey(0)
    kx, kp = jax.random.split(key)
    x = jax.random.normal(kx, (B, in_ch, H, W), jnp.float32)     # NCHW input
    params = init_params(kp, in_ch, out_ch, hidden, n_res_ch, stride)

    out = jax.block_until_ready(
        vqvae_decoder_forward(x, params, n_resblocks=n_res, stride=stride))
    ref = jax.block_until_ready(
        reference_forward(x, params, n_resblocks=n_res, stride=stride))
    assert out.shape == (B, out_ch, H * stride, W * stride), out.shape
    assert jnp.allclose(out, ref, atol=2e-4, rtol=2e-4), \
        f"max abs diff {float(jnp.max(jnp.abs(out - ref)))}"

    # also exercise the stride=2 variant of the decoder
    params2 = init_params(kp, in_ch, out_ch, hidden, n_res_ch, 2)
    out2 = jax.block_until_ready(
        vqvae_decoder_forward(x, params2, n_resblocks=n_res, stride=2))
    ref2 = reference_forward(x, params2, n_resblocks=n_res, stride=2)
    assert out2.shape == (B, out_ch, H * 2, W * 2), out2.shape
    assert jnp.allclose(out2, ref2, atol=2e-4, rtol=2e-4), \
        f"max abs diff {float(jnp.max(jnp.abs(out2 - ref2)))}"

    print("KERNEL_OK")
</pallas_src>

<mosaic_0001>
module attributes {stable_mosaic.version = 11 : i64} {
  func.func @kernel(%arg0: i32, %arg1: memref<1x8x8x4xf32, #tpu.memory_space<vmem>>, %arg2: memref<36x8xf32, #tpu.memory_space<vmem>>, %arg3: memref<1x8xf32, #tpu.memory_space<vmem>>, %arg4: memref<72x8xf32, #tpu.memory_space<vmem>>, %arg5: memref<1x8xf32, #tpu.memory_space<vmem>>, %arg6: memref<8x8xf32, #tpu.memory_space<vmem>>, %arg7: memref<1x8xf32, #tpu.memory_space<vmem>>, %arg8: memref<2x2x32x4xf32, #tpu.memory_space<vmem>>, %arg9: memref<1x4xf32, #tpu.memory_space<vmem>>, %arg10: memref<2x2x16x3xf32, #tpu.memory_space<vmem>>, %arg11: memref<1x3xf32, #tpu.memory_space<vmem>>, %arg12: memref<1x2x2x16x16x3xf32, #tpu.memory_space<vmem>>, %arg13: memref<10x10x8xf32, #tpu.memory_space<vmem>>, %arg14: memref<8x8x72xf32, #tpu.memory_space<vmem>>, %arg15: memref<18x18x4xf32, #tpu.memory_space<vmem>>, %arg16: memref<16x16x16xf32, #tpu.memory_space<vmem>>, %arg17: memref<8x2x8x4xf32, #tpu.memory_space<vmem>>) attributes {dimension_semantics = [#tpu.dimension_semantics<parallel>], iteration_bounds = array<i64: 2>, scalar_prefetch = 0 : i64, scratch_operands = 5 : i64, tpu.core_type = #tpu.core_type<tc>, window_params = [{transform_indices = @transform_0, window_bounds = array<i64: 1, 8, 8, 4>}, {pipeline_mode = #tpu.pipeline_mode<synchronous>, transform_indices = @transform_1, window_bounds = array<i64: 36, 8>}, {pipeline_mode = #tpu.pipeline_mode<synchronous>, transform_indices = @transform_2, window_bounds = array<i64: 1, 8>}, {pipeline_mode = #tpu.pipeline_mode<synchronous>, transform_indices = @transform_3, window_bounds = array<i64: 72, 8>}, {pipeline_mode = #tpu.pipeline_mode<synchronous>, transform_indices = @transform_4, window_bounds = array<i64: 1, 8>}, {pipeline_mode = #tpu.pipeline_mode<synchronous>, transform_indices = @transform_5, window_bounds = array<i64: 8, 8>}, {pipeline_mode = #tpu.pipeline_mode<synchronous>, transform_indices = @transform_6, window_bounds = array<i64: 1, 8>}, {pipeline_mode = #tpu.pipeline_mode<synchronous>, transform_indices = @transform_7, window_bounds = array<i64: 2, 2, 32, 4>}, {pipeline_mode = #tpu.pipeline_mode<synchronous>, transform_indices = @transform_8, window_bounds = array<i64: 1, 4>}, {pipeline_mode = #tpu.pipeline_mode<synchronous>, transform_indices = @transform_9, window_bounds = array<i64: 2, 2, 16, 3>}, {pipeline_mode = #tpu.pipeline_mode<synchronous>, transform_indices = @transform_10, window_bounds = array<i64: 1, 3>}, {transform_indices = @transform_11, window_bounds = array<i64: 1, 2, 2, 16, 16, 3>}]} {
    %cst = arith.constant 0.000000e+00 : f32
    %0 = vector.broadcast %cst : f32 to vector<10x10x8xf32>
    %c0 = arith.constant 0 : index
    %c0_0 = arith.constant 0 : index
    %c0_1 = arith.constant 0 : index
    %1 = vector.load %arg13[%c0, %c0_0, %c0_1] : memref<10x10x8xf32, #tpu.memory_space<vmem>>, vector<10x10x8xf32>
    tpu.vector_store %arg13[%c0, %c0_0, %c0_1], %0 {strides = array<i32>} : memref<10x10x8xf32, #tpu.memory_space<vmem>>, vector<10x10x8xf32>,
    %cst_2 = arith.constant 0.000000e+00 : f32
    %2 = vector.broadcast %cst_2 : f32 to vector<18x18x4xf32>
    %c0_3 = arith.constant 0 : index
    %c0_4 = arith.constant 0 : index
    %c0_5 = arith.constant 0 : index
    %3 = vector.load %arg15[%c0_3, %c0_4, %c0_5] : memref<18x18x4xf32, #tpu.memory_space<vmem>>, vector<18x18x4xf32>
    tpu.vector_store %arg15[%c0_3, %c0_4, %c0_5], %2 {strides = array<i32>} : memref<18x18x4xf32, #tpu.memory_space<vmem>>, vector<18x18x4xf32>,
    %c0_6 = arith.constant 0 : index
    %c0_7 = arith.constant 0 : index
    %c0_8 = arith.constant 0 : index
    %c0_9 = arith.constant 0 : index
    %4 = vector.load %arg1[%c0_6, %c0_7, %c0_8, %c0_9] : memref<1x8x8x4xf32, #tpu.memory_space<vmem>>, vector<1x8x8x4xf32>
    %5 = vector.shape_cast %4 : vector<1x8x8x4xf32> to vector<8x8x4xf32>
    %c1 = arith.constant 1 : index
    %c1_10 = arith.constant 1 : index
    %c0_11 = arith.constant 0 : index
    %6 = vector.load %arg13[%c1, %c1_10, %c0_11] : memref<10x10x8xf32, #tpu.memory_space<vmem>>, vector<8x8x4xf32>
    tpu.vector_store %arg13[%c1, %c1_10, %c0_11], %5 {strides = array<i32>} : memref<10x10x8xf32, #tpu.memory_space<vmem>>, vector<8x8x4xf32>,
    %c0_12 = arith.constant 0 : index
    %c0_13 = arith.constant 0 : index
    %7 = vector.load %arg2[%c0_12, %c0_13] : memref<36x8xf32, #tpu.memory_space<vmem>>, vector<36x8xf32>
    %c0_14 = arith.constant 0 : index
    %c0_15 = arith.constant 0 : index
    %8 = vector.load %arg3[%c0_14, %c0_15] : memref<1x8xf32, #tpu.memory_space<vmem>>, vector<1x8xf32>
    %c0_16 = arith.constant 0 : index
    %c0_17 = arith.constant 0 : index
    %c0_18 = arith.constant 0 : index
    %9 = vector.load %arg13[%c0_16, %c0_17, %c0_18] : memref<10x10x8xf32, #tpu.memory_space<vmem>>, vector<8x8x4xf32>
    %c0_19 = arith.constant 0 : index
    %c0_20 = arith.constant 0 : index
    %c0_21 = arith.constant 0 : index
    %10 = vector.load %arg14[%c0_19, %c0_20, %c0_21] : memref<8x8x72xf32, #tpu.memory_space<vmem>>, vector<8x8x4xf32>
    tpu.vector_store %arg14[%c0_19, %c0_20, %c0_21], %9 {strides = array<i32>} : memref<8x8x72xf32, #tpu.memory_space<vmem>>, vector<8x8x4xf32>,
    %c0_22 = arith.constant 0 : index
    %c1_23 = arith.constant 1 : index
    %c0_24 = arith.constant 0 : index
    %11 = vector.load %arg13[%c0_22, %c1_23, %c0_24] : memref<10x10x8xf32, #tpu.memory_space<vmem>>, vector<8x8x4xf32>
    %c0_25 = arith.constant 0 : index
    %c0_26 = arith.constant 0 : index
    %c4 = arith.constant 4 : index
    %12 = vector.load %arg14[%c0_25, %c0_26, %c4] : memref<8x8x72xf32, #tpu.memory_space<vmem>>, vector<8x8x4xf32>
    tpu.vector_store %arg14[%c0_25, %c0_26, %c4], %11 {strides = array<i32>} : memref<8x8x72xf32, #tpu.memory_space<vmem>>, vector<8x8x4xf32>,
    %c0_27 = arith.constant 0 : index
    %c2 = arith.constant 2 : index
    %c0_28 = arith.constant 0 : index
    %13 = vector.load %arg13[%c0_27, %c2, %c0_28] : memref<10x10x8xf32, #tpu.memory_space<vmem>>, vector<8x8x4xf32>
    %c0_29 = arith.constant 0 : index
    %c0_30 = arith.constant 0 : index
    %c8 = arith.constant 8 : index
    %14 = vector.load %arg14[%c0_29, %c0_30, %c8] : memref<8x8x72xf32, #tpu.memory_space<vmem>>, vector<8x8x4xf32>
    tpu.vector_store %arg14[%c0_29, %c0_30, %c8], %13 {strides = array<i32>} : memref<8x8x72xf32, #tpu.memory_space<vmem>>, vector<8x8x4xf32>,
    %c1_31 = arith.constant 1 : index
    %c0_32 = arith.constant 0 : index
    %c0_33 = arith.constant 0 : index
    %15 = vector.load %arg13[%c1_31, %c0_32, %c0_33] : memref<10x10x8xf32, #tpu.memory_space<vmem>>, vector<8x8x4xf32>
    %c0_34 = arith.constant 0 : index
    %c0_35 = arith.constant 0 : index
    %c12 = arith.constant 12 : index
    %16 = vector.load %arg14[%c0_34, %c0_35, %c12] : memref<8x8x72xf32, #tpu.memory_space<vmem>>, vector<8x8x4xf32>
    tpu.vector_store %arg14[%c0_34, %c0_35, %c12], %15 {strides = array<i32>} : memref<8x8x72xf32, #tpu.memory_space<vmem>>, vector<8x8x4xf32>,
    %c1_36 = arith.constant 1 : index
    %c1_37 = arith.constant 1 : index
    %c0_38 = arith.constant 0 : index
    %17 = vector.load %arg13[%c1_36, %c1_37, %c0_38] : memref<10x10x8xf32, #tpu.memory_space<vmem>>, vector<8x8x4xf32>
    %c0_39 = arith.constant 0 : index
    %c0_40 = arith.constant 0 : index
    %c16 = arith.constant 16 : index
    %18 = vector.load %arg14[%c0_39, %c0_40, %c16] : memref<8x8x72xf32, #tpu.memory_space<vmem>>, vector<8x8x4xf32>
    tpu.vector_store %arg14[%c0_39, %c0_40, %c16], %17 {strides = array<i32>} : memref<8x8x72xf32, #tpu.memory_space<vmem>>, vector<8x8x4xf32>,
    %c1_41 = arith.constant 1 : index
    %c2_42 = arith.constant 2 : index
    %c0_43 = arith.constant 0 : index
    %19 = vector.load %arg13[%c1_41, %c2_42, %c0_43] : memref<10x10x8xf32, #tpu.memory_space<vmem>>, vector<8x8x4xf32>
    %c0_44 = arith.constant 0 : index
    %c0_45 = arith.constant 0 : index
    %c20 = arith.constant 20 : index
    %20 = vector.load %arg14[%c0_44, %c0_45, %c20] : memref<8x8x72xf32, #tpu.memory_space<vmem>>, vector<8x8x4xf32>
    tpu.vector_store %arg14[%c0_44, %c0_45, %c20], %19 {strides = array<i32>} : memref<8x8x72xf32, #tpu.memory_space<vmem>>, vector<8x8x4xf32>,
    %c2_46 = arith.constant 2 : index
    %c0_47 = arith.constant 0 : index
    %c0_48 = arith.constant 0 : index
    %21 = vector.load %arg13[%c2_46, %c0_47, %c0_48] : memref<10x10x8xf32, #tpu.memory_space<vmem>>, vector<8x8x4xf32>
    %c0_49 = arith.constant 0 : index
    %c0_50 = arith.constant 0 : index
    %c24 = arith.constant 24 : index
    %22 = vector.load %arg14[%c0_49, %c0_50, %c24] : memref<8x8x72xf32, #tpu.memory_space<vmem>>, vector<8x8x4xf32>
    tpu.vector_store %arg14[%c0_49, %c0_50, %c24], %21 {strides = array<i32>} : memref<8x8x72xf32, #tpu.memory_space<vmem>>, vector<8x8x4xf32>,
    %c2_51 = arith.constant 2 : index
    %c1_52 = arith.constant 1 : index
    %c0_53 = arith.constant 0 : index
    %23 = vector.load %arg13[%c2_51, %c1_52, %c0_53] : memref<10x10x8xf32, #tpu.memory_space<vmem>>, vector<8x8x4xf32>
    %c0_54 = arith.constant 0 : index
    %c0_55 = arith.constant 0 : index
    %c28 = arith.constant 28 : index
    %24 = vector.load %arg14[%c0_54, %c0_55, %c28] : memref<8x8x72xf32, #tpu.memory_space<vmem>>, vector<8x8x4xf32>
    tpu.vector_store %arg14[%c0_54, %c0_55, %c28], %23 {strides = array<i32>} : memref<8x8x72xf32, #tpu.memory_space<vmem>>, vector<8x8x4xf32>,
    %c2_56 = arith.constant 2 : index
    %c2_57 = arith.constant 2 : index
    %c0_58 = arith.constant 0 : index
    %25 = vector.load %arg13[%c2_56, %c2_57, %c0_58] : memref<10x10x8xf32, #tpu.memory_space<vmem>>, vector<8x8x4xf32>
    %c0_59 = arith.constant 0 : index
    %c0_60 = arith.constant 0 : index
    %c32 = arith.constant 32 : index
    %26 = vector.load %arg14[%c0_59, %c0_60, %c32] : memref<8x8x72xf32, #tpu.memory_space<vmem>>, vector<8x8x4xf32>
    tpu.vector_store %arg14[%c0_59, %c0_60, %c32], %25 {strides = array<i32>} : memref<8x8x72xf32, #tpu.memory_space<vmem>>, vector<8x8x4xf32>,
    %c0_61 = arith.constant 0 : index
    %c0_62 = arith.constant 0 : index
    %c0_63 = arith.constant 0 : index
    %27 = vector.load %arg14[%c0_61, %c0_62, %c0_63] : memref<8x8x72xf32, #tpu.memory_space<vmem>>, vector<8x8x36xf32>
    %28 = vector.shape_cast %27 : vector<8x8x36xf32> to vector<64x36xf32>
    %cst_64 = arith.constant dense<0.000000e+00> : vector<64x8xf32>
    %29 = tpu.matmul %28, %7, %cst_64 {dimension_numbers = #tpu.dot_dimension_numbers<[1], [0], [0], [1], [0, 0, 1, 1], [], []>} : vector<64x36xf32>, vector<36x8xf32>, vector<64x8xf32> -> vector<64x8xf32>
    %30 = vector.broadcast %8 : vector<1x8xf32> to vector<64x8xf32>
    %31 = arith.addf %29, %30 : vector<64x8xf32>
    %32 = vector.shape_cast %31 : vector<64x8xf32> to vector<8x8x8xf32>
    %cst_65 = arith.constant 0.000000e+00 : f32
    %33 = vector.broadcast %cst_65 : f32 to vector<8x8x8xf32>
    %34 = arith.maximumf %32, %33 : vector<8x8x8xf32>
    %c1_66 = arith.constant 1 : index
    %c1_67 = arith.constant 1 : index
    %c0_68 = arith.constant 0 : index
    %35 = vector.load %arg13[%c1_66, %c1_67, %c0_68] : memref<10x10x8xf32, #tpu.memory_space<vmem>>, vector<8x8x8xf32>
    tpu.vector_store %arg13[%c1_66, %c1_67, %c0_68], %34 {strides = array<i32>} : memref<10x10x8xf32, #tpu.memory_space<vmem>>, vector<8x8x8xf32>,
    %c0_69 = arith.constant 0 : index
    %c0_70 = arith.constant 0 : index
    %36 = vector.load %arg4[%c0_69, %c0_70] : memref<72x8xf32, #tpu.memory_space<vmem>>, vector<72x8xf32>
    %c0_71 = arith.constant 0 : index
    %c0_72 = arith.constant 0 : index
    %37 = vector.load %arg5[%c0_71, %c0_72] : memref<1x8xf32, #tpu.memory_space<vmem>>, vector<1x8xf32>
    %c0_73 = arith.constant 0 : index
    %c0_74 = arith.constant 0 : index
    %c0_75 = arith.constant 0 : index
    %38 = vector.load %arg13[%c0_73, %c0_74, %c0_75] : memref<10x10x8xf32, #tpu.memory_space<vmem>>, vector<8x8x8xf32>
    %c0_76 = arith.constant 0 : index
    %c0_77 = arith.constant 0 : index
    %c0_78 = arith.constant 0 : index
    %39 = vector.load %arg14[%c0_76, %c0_77, %c0_78] : memref<8x8x72xf32, #tpu.memory_space<vmem>>, vector<8x8x8xf32>
    tpu.vector_store %arg14[%c0_76, %c0_77, %c0_78], %38 {strides = array<i32>} : memref<8x8x72xf32, #tpu.memory_space<vmem>>, vector<8x8x8xf32>,
    %c0_79 = arith.constant 0 : index
    %c1_80 = arith.constant 1 : index
    %c0_81 = arith.constant 0 : index
    %40 = vector.load %arg13[%c0_79, %c1_80, %c0_81] : memref<10x10x8xf32, #tpu.memory_space<vmem>>, vector<8x8x8xf32>
    %c0_82 = arith.constant 0 : index
    %c0_83 = arith.constant 0 : index
    %c8_84 = arith.constant 8 : index
    %41 = vector.load %arg14[%c0_82, %c0_83, %c8_84] : memref<8x8x72xf32, #tpu.memory_space<vmem>>, vector<8x8x8xf32>
    tpu.vector_store %arg14[%c0_82, %c0_83, %c8_84], %40 {strides = array<i32>} : memref<8x8x72xf32, #tpu.memory_space<vmem>>, vector<8x8x8xf32>,
    %c0_85 = arith.constant 0 : index
    %c2_86 = arith.constant 2 : index
    %c0_87 = arith.constant 0 : index
    %42 = vector.load %arg13[%c0_85, %c2_86, %c0_87] : memref<10x10x8xf32, #tpu.memory_space<vmem>>, vector<8x8x8xf32>
    %c0_88 = arith.constant 0 : index
    %c0_89 = arith.constant 0 : index
    %c16_90 = arith.constant 16 : index
    %43 = vector.load %arg14[%c0_88, %c0_89, %c16_90] : memref<8x8x72xf32, #tpu.memory_space<vmem>>, vector<8x8x8xf32>
    tpu.vector_store %arg14[%c0_88, %c0_89, %c16_90], %42 {strides = array<i32>} : memref<8x8x72xf32, #tpu.memory_space<vmem>>, vector<8x8x8xf32>,
    %c1_91 = arith.constant 1 : index
    %c0_92 = arith.constant 0 : index
    %c0_93 = arith.constant 0 : index
    %44 = vector.load %arg13[%c1_91, %c0_92, %c0_93] : memref<10x10x8xf32, #tpu.memory_space<vmem>>, vector<8x8x8xf32>
    %c0_94 = arith.constant 0 : index
    %c0_95 = arith.constant 0 : index
    %c24_96 = arith.constant 24 : index
    %45 = vector.load %arg14[%c0_94, %c0_95, %c24_96] : memref<8x8x72xf32, #tpu.memory_space<vmem>>, vector<8x8x8xf32>
    tpu.vector_store %arg14[%c0_94, %c0_95, %c24_96], %44 {strides = array<i32>} : memref<8x8x72xf32, #tpu.memory_space<vmem>>, vector<8x8x8xf32>,
    %c1_97 = arith.constant 1 : index
    %c1_98 = arith.constant 1 : index
    %c0_99 = arith.constant 0 : index
    %46 = vector.load %arg13[%c1_97, %c1_98, %c0_99] : memref<10x10x8xf32, #tpu.memory_space<vmem>>, vector<8x8x8xf32>
    %c0_100 = arith.constant 0 : index
    %c0_101 = arith.constant 0 : index
    %c32_102 = arith.constant 32 : index
    %47 = vector.load %arg14[%c0_100, %c0_101, %c32_102] : memref<8x8x72xf32, #tpu.memory_space<vmem>>, vector<8x8x8xf32>
    tpu.vector_store %arg14[%c0_100, %c0_101, %c32_102], %46 {strides = array<i32>} : memref<8x8x72xf32, #tpu.memory_space<vmem>>, vector<8x8x8xf32>,
    %c1_103 = arith.constant 1 : index
    %c2_104 = arith.constant 2 : index
    %c0_105 = arith.constant 0 : index
    %48 = vector.load %arg13[%c1_103, %c2_104, %c0_105] : memref<10x10x8xf32, #tpu.memory_space<vmem>>, vector<8x8x8xf32>
    %c0_106 = arith.constant 0 : index
    %c0_107 = arith.constant 0 : index
    %c40 = arith.constant 40 : index
    %49 = vector.load %arg14[%c0_106, %c0_107, %c40] : memref<8x8x72xf32, #tpu.memory_space<vmem>>, vector<8x8x8xf32>
    tpu.vector_store %arg14[%c0_106, %c0_107, %c40], %48 {strides = array<i32>} : memref<8x8x72xf32, #tpu.memory_space<vmem>>, vector<8x8x8xf32>,
    %c2_108 = arith.constant 2 : index
    %c0_109 = arith.constant 0 : index
    %c0_110 = arith.constant 0 : index
    %50 = vector.load %arg13[%c2_108, %c0_109, %c0_110] : memref<10x10x8xf32, #tpu.memory_space<vmem>>, vector<8x8x8xf32>
    %c0_111 = arith.constant 0 : index
    %c0_112 = arith.constant 0 : index
    %c48 = arith.constant 48 : index
    %51 = vector.load %arg14[%c0_111, %c0_112, %c48] : memref<8x8x72xf32, #tpu.memory_space<vmem>>, vector<8x8x8xf32>
    tpu.vector_store %arg14[%c0_111, %c0_112, %c48], %50 {strides = array<i32>} : memref<8x8x72xf32, #tpu.memory_space<vmem>>, vector<8x8x8xf32>,
    %c2_113 = arith.constant 2 : index
    %c1_114 = arith.constant 1 : index
    %c0_115 = arith.constant 0 : index
    %52 = vector.load %arg13[%c2_113, %c1_114, %c0_115] : memref<10x10x8xf32, #tpu.memory_space<vmem>>, vector<8x8x8xf32>
    %c0_116 = arith.constant 0 : index
    %c0_117 = arith.constant 0 : index
    %c56 = arith.constant 56 : index
    %53 = vector.load %arg14[%c0_116, %c0_117, %c56] : memref<8x8x72xf32, #tpu.memory_space<vmem>>, vector<8x8x8xf32>
    tpu.vector_store %arg14[%c0_116, %c0_117, %c56], %52 {strides = array<i32>} : memref<8x8x72xf32, #tpu.memory_space<vmem>>, vector<8x8x8xf32>,
    %c2_118 = arith.constant 2 : index
    %c2_119 = arith.constant 2 : index
    %c0_120 = arith.constant 0 : index
    %54 = vector.load %arg13[%c2_118, %c2_119, %c0_120] : memref<10x10x8xf32, #tpu.memory_space<vmem>>, vector<8x8x8xf32>
    %c0_121 = arith.constant 0 : index
    %c0_122 = arith.constant 0 : index
    %c64 = arith.constant 64 : index
    %55 = vector.load %arg14[%c0_121, %c0_122, %c64] : memref<8x8x72xf32, #tpu.memory_space<vmem>>, vector<8x8x8xf32>
    tpu.vector_store %arg14[%c0_121, %c0_122, %c64], %54 {strides = array<i32>} : memref<8x8x72xf32, #tpu.memory_space<vmem>>, vector<8x8x8xf32>,
    %c0_123 = arith.constant 0 : index
    %c0_124 = arith.constant 0 : index
    %c0_125 = arith.constant 0 : index
    %56 = vector.load %arg14[%c0_123, %c0_124, %c0_125] : memref<8x8x72xf32, #tpu.memory_space<vmem>>, vector<8x8x72xf32>
    %57 = vector.shape_cast %56 : vector<8x8x72xf32> to vector<64x72xf32>
    %cst_126 = arith.constant dense<0.000000e+00> : vector<64x8xf32>
    %58 = tpu.matmul %57, %36, %cst_126 {dimension_numbers = #tpu.dot_dimension_numbers<[1], [0], [0], [1], [0, 0, 1, 1], [], []>} : vector<64x72xf32>, vector<72x8xf32>, vector<64x8xf32> -> vector<64x8xf32>
    %59 = vector.broadcast %37 : vector<1x8xf32> to vector<64x8xf32>
    %60 = arith.addf %58, %59 : vector<64x8xf32>
    %61 = vector.shape_cast %60 : vector<64x8xf32> to vector<8x8x8xf32>
    %cst_127 = arith.constant 0.000000e+00 : f32
    %62 = vector.broadcast %cst_127 : f32 to vector<8x8x8xf32>
    %63 = arith.maximumf %61, %62 : vector<8x8x8xf32>
    %64 = vector.shape_cast %63 : vector<8x8x8xf32> to vector<64x8xf32>
    %c0_128 = arith.constant 0 : index
    %c0_129 = arith.constant 0 : index
    %65 = vector.load %arg6[%c0_128, %c0_129] : memref<8x8xf32, #tpu.memory_space<vmem>>, vector<8x8xf32>
    %cst_130 = arith.constant dense<0.000000e+00> : vector<64x8xf32>
    %66 = tpu.matmul %64, %65, %cst_130 {dimension_numbers = #tpu.dot_dimension_numbers<[1], [0], [0], [1], [0, 0, 1, 1], [], []>} : vector<64x8xf32>, vector<8x8xf32>, vector<64x8xf32> -> vector<64x8xf32>
    %c0_131 = arith.constant 0 : index
    %c0_132 = arith.constant 0 : index
    %67 = vector.load %arg7[%c0_131, %c0_132] : memref<1x8xf32, #tpu.memory_space<vmem>>, vector<1x8xf32>
    %68 = vector.broadcast %67 : vector<1x8xf32> to vector<64x8xf32>
    %69 = arith.addf %66, %68 : vector<64x8xf32>
    %70 = vector.shape_cast %69 : vector<64x8xf32> to vector<8x8x8xf32>
    %71 = arith.addf %32, %70 : vector<8x8x8xf32>
    %cst_133 = arith.constant 0.000000e+00 : f32
    %72 = vector.broadcast %cst_133 : f32 to vector<8x8x8xf32>
    %73 = arith.maximumf %71, %72 : vector<8x8x8xf32>
    %c1_134 = arith.constant 1 : index
    %c1_135 = arith.constant 1 : index
    %c0_136 = arith.constant 0 : index
    %74 = vector.load %arg13[%c1_134, %c1_135, %c0_136] : memref<10x10x8xf32, #tpu.memory_space<vmem>>, vector<8x8x8xf32>
    tpu.vector_store %arg13[%c1_134, %c1_135, %c0_136], %73 {strides = array<i32>} : memref<10x10x8xf32, #tpu.memory_space<vmem>>, vector<8x8x8xf32>,
    %c0_137 = arith.constant 0 : index
    %c0_138 = arith.constant 0 : index
    %75 = vector.load %arg4[%c0_137, %c0_138] : memref<72x8xf32, #tpu.memory_space<vmem>>, vector<72x8xf32>
    %c0_139 = arith.constant 0 : index
    %c0_140 = arith.constant 0 : index
    %76 = vector.load %arg5[%c0_139, %c0_140] : memref<1x8xf32, #tpu.memory_space<vmem>>, vector<1x8xf32>
    %c0_141 = arith.constant 0 : index
    %c0_142 = arith.constant 0 : index
    %c0_143 = arith.constant 0 : index
    %77 = vector.load %arg13[%c0_141, %c0_142, %c0_143] : memref<10x10x8xf32, #tpu.memory_space<vmem>>, vector<8x8x8xf32>
    %c0_144 = arith.constant 0 : index
    %c0_145 = arith.constant 0 : index
    %c0_146 = arith.constant 0 : index
    %78 = vector.load %arg14[%c0_144, %c0_145, %c0_146] : memref<8x8x72xf32, #tpu.memory_space<vmem>>, vector<8x8x8xf32>
    tpu.vector_store %arg14[%c0_144, %c0_145, %c0_146], %77 {strides = array<i32>} : memref<8x8x72xf32, #tpu.memory_space<vmem>>, vector<8x8x8xf32>,
    %c0_147 = arith.constant 0 : index
    %c1_148 = arith.constant 1 : index
    %c0_149 = arith.constant 0 : index
    %79 = vector.load %arg13[%c0_147, %c1_148, %c0_149] : memref<10x10x8xf32, #tpu.memory_space<vmem>>, vector<8x8x8xf32>
    %c0_150 = arith.constant 0 : index
    %c0_151 = arith.constant 0 : index
    %c8_152 = arith.constant 8 : index
    %80 = vector.load %arg14[%c0_150, %c0_151, %c8_152] : memref<8x8x72xf32, #tpu.memory_space<vmem>>, vector<8x8x8xf32>
    tpu.vector_store %arg14[%c0_150, %c0_151, %c8_152], %79 {strides = array<i32>} : memref<8x8x72xf32, #tpu.memory_space<vmem>>, vector<8x8x8xf32>,
    %c0_153 = arith.constant 0 : index
    %c2_154 = arith.constant 2 : index
    %c0_155 = arith.constant 0 : index
    %81 = vector.load %arg13[%c0_153, %c2_154, %c0_155] : memref<10x10x8xf32, #tpu.memory_space<vmem>>, vector<8x8x8xf32>
    %c0_156 = arith.constant 0 : index
    %c0_157 = arith.constant 0 : index
    %c16_158 = arith.constant 16 : index
    %82 = vector.load %arg14[%c0_156, %c0_157, %c16_158] : memref<8x8x72xf32, #tpu.memory_space<vmem>>, vector<8x8x8xf32>
    tpu.vector_store %arg14[%c0_156, %c0_157, %c16_158], %81 {strides = array<i32>} : memref<8x8x72xf32, #tpu.memory_space<vmem>>, vector<8x8x8xf32>,
    %c1_159 = arith.constant 1 : index
    %c0_160 = arith.constant 0 : index
    %c0_161 = arith.constant 0 : index
    %83 = vector.load %arg13[%c1_159, %c0_160, %c0_161] : memref<10x10x8xf32, #tpu.memory_space<vmem>>, vector<8x8x8xf32>
    %c0_162 = arith.constant 0 : index
    %c0_163 = arith.constant 0 : index
    %c24_164 = arith.constant 24 : index
    %84 = vector.load %arg14[%c0_162, %c0_163, %c24_164] : memref<8x8x72xf32, #tpu.memory_space<vmem>>, vector<8x8x8xf32>
    tpu.vector_store %arg14[%c0_162, %c0_163, %c24_164], %83 {strides = array<i32>} : memref<8x8x72xf32, #tpu.memory_space<vmem>>, vector<8x8x8xf32>,
    %c1_165 = arith.constant 1 : index
    %c1_166 = arith.constant 1 : index
    %c0_167 = arith.constant 0 : index
    %85 = vector.load %arg13[%c1_165, %c1_166, %c0_167] : memref<10x10x8xf32, #tpu.memory_space<vmem>>, vector<8x8x8xf32>
    %c0_168 = arith.constant 0 : index
    %c0_169 = arith.constant 0 : index
    %c32_170 = arith.constant 32 : index
    %86 = vector.load %arg14[%c0_168, %c0_169, %c32_170] : memref<8x8x72xf32, #tpu.memory_space<vmem>>, vector<8x8x8xf32>
    tpu.vector_store %arg14[%c0_168, %c0_169, %c32_170], %85 {strides = array<i32>} : memref<8x8x72xf32, #tpu.memory_space<vmem>>, vector<8x8x8xf32>,
    %c1_171 = arith.constant 1 : index
    %c2_172 = arith.constant 2 : index
    %c0_173 = arith.constant 0 : index
    %87 = vector.load %arg13[%c1_171, %c2_172, %c0_173] : memref<10x10x8xf32, #tpu.memory_space<vmem>>, vector<8x8x8xf32>
    %c0_174 = arith.constant 0 : index
    %c0_175 = arith.constant 0 : index
    %c40_176 = arith.constant 40 : index
    %88 = vector.load %arg14[%c0_174, %c0_175, %c40_176] : memref<8x8x72xf32, #tpu.memory_space<vmem>>, vector<8x8x8xf32>
    tpu.vector_store %arg14[%c0_174, %c0_175, %c40_176], %87 {strides = array<i32>} : memref<8x8x72xf32, #tpu.memory_space<vmem>>, vector<8x8x8xf32>,
    %c2_177 = arith.constant 2 : index
    %c0_178 = arith.constant 0 : index
    %c0_179 = arith.constant 0 : index
    %89 = vector.load %arg13[%c2_177, %c0_178, %c0_179] : memref<10x10x8xf32, #tpu.memory_space<vmem>>, vector<8x8x8xf32>
    %c0_180 = arith.constant 0 : index
    %c0_181 = arith.constant 0 : index
    %c48_182 = arith.constant 48 : index
    %90 = vector.load %arg14[%c0_180, %c0_181, %c48_182] : memref<8x8x72xf32, #tpu.memory_space<vmem>>, vector<8x8x8xf32>
    tpu.vector_store %arg14[%c0_180, %c0_181, %c48_182], %89 {strides = array<i32>} : memref<8x8x72xf32, #tpu.memory_space<vmem>>, vector<8x8x8xf32>,
    %c2_183 = arith.constant 2 : index
    %c1_184 = arith.constant 1 : index
    %c0_185 = arith.constant 0 : index
    %91 = vector.load %arg13[%c2_183, %c1_184, %c0_185] : memref<10x10x8xf32, #tpu.memory_space<vmem>>, vector<8x8x8xf32>
    %c0_186 = arith.constant 0 : index
    %c0_187 = arith.constant 0 : index
    %c56_188 = arith.constant 56 : index
    %92 = vector.load %arg14[%c0_186, %c0_187, %c56_188] : memref<8x8x72xf32, #tpu.memory_space<vmem>>, vector<8x8x8xf32>
    tpu.vector_store %arg14[%c0_186, %c0_187, %c56_188], %91 {strides = array<i32>} : memref<8x8x72xf32, #tpu.memory_space<vmem>>, vector<8x8x8xf32>,
    %c2_189 = arith.constant 2 : index
    %c2_190 = arith.constant 2 : index
    %c0_191 = arith.constant 0 : index
    %93 = vector.load %arg13[%c2_189, %c2_190, %c0_191] : memref<10x10x8xf32, #tpu.memory_space<vmem>>, vector<8x8x8xf32>
    %c0_192 = arith.constant 0 : index
    %c0_193 = arith.constant 0 : index
    %c64_194 = arith.constant 64 : index
    %94 = vector.load %arg14[%c0_192, %c0_193, %c64_194] : memref<8x8x72xf32, #tpu.memory_space<vmem>>, vector<8x8x8xf32>
    tpu.vector_store %arg14[%c0_192, %c0_193, %c64_194], %93 {strides = array<i32>} : memref<8x8x72xf32, #tpu.memory_space<vmem>>, vector<8x8x8xf32>,
    %c0_195 = arith.constant 0 : index
    %c0_196 = arith.constant 0 : index
    %c0_197 = arith.constant 0 : index
    %95 = vector.load %arg14[%c0_195, %c0_196, %c0_197] : memref<8x8x72xf32, #tpu.memory_space<vmem>>, vector<8x8x72xf32>
    %96 = vector.shape_cast %95 : vector<8x8x72xf32> to vector<64x72xf32>
    %cst_198 = arith.constant dense<0.000000e+00> : vector<64x8xf32>
    %97 = tpu.matmul %96, %75, %cst_198 {dimension_numbers = #tpu.dot_dimension_numbers<[1], [0], [0], [1], [0, 0, 1, 1], [], []>} : vector<64x72xf32>, vector<72x8xf32>, vector<64x8xf32> -> vector<64x8xf32>
    %98 = vector.broadcast %76 : vector<1x8xf32> to vector<64x8xf32>
    %99 = arith.addf %97, %98 : vector<64x8xf32>
    %100 = vector.shape_cast %99 : vector<64x8xf32> to vector<8x8x8xf32>
    %cst_199 = arith.constant 0.000000e+00 : f32
    %101 = vector.broadcast %cst_199 : f32 to vector<8x8x8xf32>
    %102 = arith.maximumf %100, %101 : vector<8x8x8xf32>
    %103 = vector.shape_cast %102 : vector<8x8x8xf32> to vector<64x8xf32>
    %c0_200 = arith.constant 0 : index
    %c0_201 = arith.constant 0 : index
    %104 = vector.load %arg6[%c0_200, %c0_201] : memref<8x8xf32, #tpu.memory_space<vmem>>, vector<8x8xf32>
    %cst_202 = arith.constant dense<0.000000e+00> : vector<64x8xf32>
    %105 = tpu.matmul %103, %104, %cst_202 {dimension_numbers = #tpu.dot_dimension_numbers<[1], [0], [0], [1], [0, 0, 1, 1], [], []>} : vector<64x8xf32>, vector<8x8xf32>, vector<64x8xf32> -> vector<64x8xf32>
    %c0_203 = arith.constant 0 : index
    %c0_204 = arith.constant 0 : index
    %106 = vector.load %arg7[%c0_203, %c0_204] : memref<1x8xf32, #tpu.memory_space<vmem>>, vector<1x8xf32>
    %107 = vector.broadcast %106 : vector<1x8xf32> to vector<64x8xf32>
    %108 = arith.addf %105, %107 : vector<64x8xf32>
    %109 = vector.shape_cast %108 : vector<64x8xf32> to vector<8x8x8xf32>
    %110 = arith.addf %71, %109 : vector<8x8x8xf32>
    %cst_205 = arith.constant 0.000000e+00 : f32
    %111 = vector.broadcast %cst_205 : f32 to vector<8x8x8xf32>
    %112 = arith.maximumf %110, %111 : vector<8x8x8xf32>
    %c1_206 = arith.constant 1 : index
    %c1_207 = arith.constant 1 : index
    %c0_208 = arith.constant 0 : index
    %113 = vector.load %arg13[%c1_206, %c1_207, %c0_208] : memref<10x10x8xf32, #tpu.memory_space<vmem>>, vector<8x8x8xf32>
    tpu.vector_store %arg13[%c1_206, %c1_207, %c0_208], %112 {strides = array<i32>} : memref<10x10x8xf32, #tpu.memory_space<vmem>>, vector<8x8x8xf32>,
    %c0_209 = arith.constant 0 : index
    %c0_210 = arith.constant 0 : index
    %c0_211 = arith.constant 0 : index
    %c0_212 = arith.constant 0 : index
    %114 = vector.load %arg8[%c0_209, %c0_210, %c0_211, %c0_212] : memref<2x2x32x4xf32, #tpu.memory_space<vmem>>, vector<2x2x32x4xf32>
    %115 = vector.extract_strided_slice %114 {offsets = [0, 0, 0, 0], sizes = [1, 1, 32, 4], strides = [1, 1, 1, 1]} : vector<2x2x32x4xf32> to vector<1x1x32x4xf32>
    %116 = vector.shape_cast %115 : vector<1x1x32x4xf32> to vector<32x4xf32>
    %c0_213 = arith.constant 0 : index
    %c0_214 = arith.constant 0 : index
    %117 = vector.load %arg9[%c0_213, %c0_214] : memref<1x4xf32, #tpu.memory_space<vmem>>, vector<1x4xf32>
    %c0_215 = arith.constant 0 : index
    %c0_216 = arith.constant 0 : index
    %c0_217 = arith.constant 0 : index
    %118 = vector.load %arg13[%c0_215, %c0_216, %c0_217] : memref<10x10x8xf32, #tpu.memory_space<vmem>>, vector<8x8x8xf32>
    %c0_218 = arith.constant 0 : index
    %c0_219 = arith.constant 0 : index
    %c0_220 = arith.constant 0 : index
    %119 = vector.load %arg14[%c0_218, %c0_219, %c0_220] : memref<8x8x72xf32, #tpu.memory_space<vmem>>, vector<8x8x8xf32>
    tpu.vector_store %arg14[%c0_218, %c0_219, %c0_220], %118 {strides = array<i32>} : memref<8x8x72xf32, #tpu.memory_space<vmem>>, vector<8x8x8xf32>,
    %c0_221 = arith.constant 0 : index
    %c1_222 = arith.constant 1 : index
    %c0_223 = arith.constant 0 : index
    %120 = vector.load %arg13[%c0_221, %c1_222, %c0_223] : memref<10x10x8xf32, #tpu.memory_space<vmem>>, vector<8x8x8xf32>
    %c0_224 = arith.constant 0 : index
    %c0_225 = arith.constant 0 : index
    %c8_226 = arith.constant 8 : index
    %121 = vector.load %arg14[%c0_224, %c0_225, %c8_226] : memref<8x8x72xf32, #tpu.memory_space<vmem>>, vector<8x8x8xf32>
    tpu.vector_store %arg14[%c0_224, %c0_225, %c8_226], %120 {strides = array<i32>} : memref<8x8x72xf32, #tpu.memory_space<vmem>>, vector<8x8x8xf32>,
    %c1_227 = arith.constant 1 : index
    %c0_228 = arith.constant 0 : index
    %c0_229 = arith.constant 0 : index
    %122 = vector.load %arg13[%c1_227, %c0_228, %c0_229] : memref<10x10x8xf32, #tpu.memory_space<vmem>>, vector<8x8x8xf32>
    %c0_230 = arith.constant 0 : index
    %c0_231 = arith.constant 0 : index
    %c16_232 = arith.constant 16 : index
    %123 = vector.load %arg14[%c0_230, %c0_231, %c16_232] : memref<8x8x72xf32, #tpu.memory_space<vmem>>, vector<8x8x8xf32>
    tpu.vector_store %arg14[%c0_230, %c0_231, %c16_232], %122 {strides = array<i32>} : memref<8x8x72xf32, #tpu.memory_space<vmem>>, vector<8x8x8xf32>,
    %c1_233 = arith.constant 1 : index
    %c1_234 = arith.constant 1 : index
    %c0_235 = arith.constant 0 : index
    %124 = vector.load %arg13[%c1_233, %c1_234, %c0_235] : memref<10x10x8xf32, #tpu.memory_space<vmem>>, vector<8x8x8xf32>
    %c0_236 = arith.constant 0 : index
    %c0_237 = arith.constant 0 : index
    %c24_238 = arith.constant 24 : index
    %125 = vector.load %arg14[%c0_236, %c0_237, %c24_238] : memref<8x8x72xf32, #tpu.memory_space<vmem>>, vector<8x8x8xf32>
    tpu.vector_store %arg14[%c0_236, %c0_237, %c24_238], %124 {strides = array<i32>} : memref<8x8x72xf32, #tpu.memory_space<vmem>>, vector<8x8x8xf32>,
    %c0_239 = arith.constant 0 : index
    %c0_240 = arith.constant 0 : index
    %c0_241 = arith.constant 0 : index
    %126 = vector.load %arg14[%c0_239, %c0_240, %c0_241] : memref<8x8x72xf32, #tpu.memory_space<vmem>>, vector<8x8x32xf32>
    %127 = vector.shape_cast %126 : vector<8x8x32xf32> to vector<64x32xf32>
    %cst_242 = arith.constant dense<0.000000e+00> : vector<64x4xf32>
    %128 = tpu.matmul %127, %116, %cst_242 {dimension_numbers = #tpu.dot_dimension_numbers<[1], [0], [0], [1], [0, 0, 1, 1], [], []>} : vector<64x32xf32>, vector<32x4xf32>, vector<64x4xf32> -> vector<64x4xf32>
    %129 = vector.broadcast %117 : vector<1x4xf32> to vector<64x4xf32>
    %130 = arith.addf %128, %129 : vector<64x4xf32>
    %131 = vector.shape_cast %130 : vector<64x4xf32> to vector<8x8x4xf32>
    %132 = vector.extract_strided_slice %114 {offsets = [0, 1, 0, 0], sizes = [1, 1, 32, 4], strides = [1, 1, 1, 1]} : vector<2x2x32x4xf32> to vector<1x1x32x4xf32>
    %133 = vector.shape_cast %132 : vector<1x1x32x4xf32> to vector<32x4xf32>
    %c0_243 = arith.constant 0 : index
    %c0_244 = arith.constant 0 : index
    %134 = vector.load %arg9[%c0_243, %c0_244] : memref<1x4xf32, #tpu.memory_space<vmem>>, vector<1x4xf32>
    %c0_245 = arith.constant 0 : index
    %c1_246 = arith.constant 1 : index
    %c0_247 = arith.constant 0 : index
    %135 = vector.load %arg13[%c0_245, %c1_246, %c0_247] : memref<10x10x8xf32, #tpu.memory_space<vmem>>, vector<8x8x8xf32>
    %c0_248 = arith.constant 0 : index
    %c0_249 = arith.constant 0 : index
    %c0_250 = arith.constant 0 : index
    %136 = vector.load %arg14[%c0_248, %c0_249, %c0_250] : memref<8x8x72xf32, #tpu.memory_space<vmem>>, vector<8x8x8xf32>
    tpu.vector_store %arg14[%c0_248, %c0_249, %c0_250], %135 {strides = array<i32>} : memref<8x8x72xf32, #tpu.memory_space<vmem>>, vector<8x8x8xf32>,
    %c0_251 = arith.constant 0 : index
    %c2_252 = arith.constant 2 : index
    %c0_253 = arith.constant 0 : index
    %137 = vector.load %arg13[%c0_251, %c2_252, %c0_253] : memref<10x10x8xf32, #tpu.memory_space<vmem>>, vector<8x8x8xf32>
    %c0_254 = arith.constant 0 : index
    %c0_255 = arith.constant 0 : index
    %c8_256 = arith.constant 8 : index
    %138 = vector.load %arg14[%c0_254, %c0_255, %c8_256] : memref<8x8x72xf32, #tpu.memory_space<vmem>>, vector<8x8x8xf32>
    tpu.vector_store %arg14[%c0_254, %c0_255, %c8_256], %137 {strides = array<i32>} : memref<8x8x72xf32, #tpu.memory_space<vmem>>, vector<8x8x8xf32>,
    %c1_257 = arith.constant 1 : index
    %c1_258 = arith.constant 1 : index
    %c0_259 = arith.constant 0 : index
    %139 = vector.load %arg13[%c1_257, %c1_258, %c0_259] : memref<10x10x8xf32, #tpu.memory_space<vmem>>, vector<8x8x8xf32>
    %c0_260 = arith.constant 0 : index
    %c0_261 = arith.constant 0 : index
    %c16_262 = arith.constant 16 : index
    %140 = vector.load %arg14[%c0_260, %c0_261, %c16_262] : memref<8x8x72xf32, #tpu.memory_space<vmem>>, vector<8x8x8xf32>
    tpu.vector_store %arg14[%c0_260, %c0_261, %c16_262], %139 {strides = array<i32>} : memref<8x8x72xf32, #tpu.memory_space<vmem>>, vector<8x8x8xf32>,
    %c1_263 = arith.constant 1 : index
    %c2_264 = arith.constant 2 : index
    %c0_265 = arith.constant 0 : index
    %141 = vector.load %arg13[%c1_263, %c2_264, %c0_265] : memref<10x10x8xf32, #tpu.memory_space<vmem>>, vector<8x8x8xf32>
    %c0_266 = arith.constant 0 : index
    %c0_267 = arith.constant 0 : index
    %c24_268 = arith.constant 24 : index
    %142 = vector.load %arg14[%c0_266, %c0_267, %c24_268] : memref<8x8x72xf32, #tpu.memory_space<vmem>>, vector<8x8x8xf32>
    tpu.vector_store %arg14[%c0_266, %c0_267, %c24_268], %141 {strides = array<i32>} : memref<8x8x72xf32, #tpu.memory_space<vmem>>, vector<8x8x8xf32>,
    %c0_269 = arith.constant 0 : index
    %c0_270 = arith.constant 0 : index
    %c0_271 = arith.constant 0 : index
    %143 = vector.load %arg14[%c0_269, %c0_270, %c0_271] : memref<8x8x72xf32, #tpu.memory_space<vmem>>, vector<8x8x32xf32>
    %144 = vector.shape_cast %143 : vector<8x8x32xf32> to vector<64x32xf32>
    %cst_272 = arith.constant dense<0.000000e+00> : vector<64x4xf32>
    %145 = tpu.matmul %144, %133, %cst_272 {dimension_numbers = #tpu.dot_dimension_numbers<[1], [0], [0], [1], [0, 0, 1, 1], [], []>} : vector<64x32xf32>, vector<32x4xf32>, vector<64x4xf32> -> vector<64x4xf32>
    %146 = vector.broadcast %134 : vector<1x4xf32> to vector<64x4xf32>
    %147 = arith.addf %145, %146 : vector<64x4xf32>
    %148 = vector.shape_cast %147 : vector<64x4xf32> to vector<8x8x4xf32>
    %149 = vector.extract_strided_slice %114 {offsets = [1, 0, 0, 0], sizes = [1, 1, 32, 4], strides = [1, 1, 1, 1]} : vector<2x2x32x4xf32> to vector<1x1x32x4xf32>
    %150 = vector.shape_cast %149 : vector<1x1x32x4xf32> to vector<32x4xf32>
    %c0_273 = arith.constant 0 : index
    %c0_274 = arith.constant 0 : index
    %151 = vector.load %arg9[%c0_273, %c0_274] : memref<1x4xf32, #tpu.memory_space<vmem>>, vector<1x4xf32>
    %c1_275 = arith.constant 1 : index
    %c0_276 = arith.constant 0 : index
    %c0_277 = arith.constant 0 : index
    %152 = vector.load %arg13[%c1_275, %c0_276, %c0_277] : memref<10x10x8xf32, #tpu.memory_space<vmem>>, vector<8x8x8xf32>
    %c0_278 = arith.constant 0 : index
    %c0_279 = arith.constant 0 : index
    %c0_280 = arith.constant 0 : index
    %153 = vector.load %arg14[%c0_278, %c0_279, %c0_280] : memref<8x8x72xf32, #tpu.memory_space<vmem>>, vector<8x8x8xf32>
    tpu.vector_store %arg14[%c0_278, %c0_279, %c0_280], %152 {strides = array<i32>} : memref<8x8x72xf32, #tpu.memory_space<vmem>>, vector<8x8x8xf32>,
    %c1_281 = arith.constant 1 : index
    %c1_282 = arith.constant 1 : index
    %c0_283 = arith.constant 0 : index
    %154 = vector.load %arg13[%c1_281, %c1_282, %c0_283] : memref<10x10x8xf32, #tpu.memory_space<vmem>>, vector<8x8x8xf32>
    %c0_284 = arith.constant 0 : index
    %c0_285 = arith.constant 0 : index
    %c8_286 = arith.constant 8 : index
    %155 = vector.load %arg14[%c0_284, %c0_285, %c8_286] : memref<8x8x72xf32, #tpu.memory_space<vmem>>, vector<8x8x8xf32>
    tpu.vector_store %arg14[%c0_284, %c0_285, %c8_286], %154 {strides = array<i32>} : memref<8x8x72xf32, #tpu.memory_space<vmem>>, vector<8x8x8xf32>,
    %c2_287 = arith.constant 2 : index
    %c0_288 = arith.constant 0 : index
    %c0_289 = arith.constant 0 : index
    %156 = vector.load %arg13[%c2_287, %c0_288, %c0_289] : memref<10x10x8xf32, #tpu.memory_space<vmem>>, vector<8x8x8xf32>
    %c0_290 = arith.constant 0 : index
    %c0_291 = arith.constant 0 : index
    %c16_292 = arith.constant 16 : index
    %157 = vector.load %arg14[%c0_290, %c0_291, %c16_292] : memref<8x8x72xf32, #tpu.memory_space<vmem>>, vector<8x8x8xf32>
    tpu.vector_store %arg14[%c0_290, %c0_291, %c16_292], %156 {strides = array<i32>} : memref<8x8x72xf32, #tpu.memory_space<vmem>>, vector<8x8x8xf32>,
    %c2_293 = arith.constant 2 : index
    %c1_294 = arith.constant 1 : index
    %c0_295 = arith.constant 0 : index
    %158 = vector.load %arg13[%c2_293, %c1_294, %c0_295] : memref<10x10x8xf32, #tpu.memory_space<vmem>>, vector<8x8x8xf32>
    %c0_296 = arith.constant 0 : index
    %c0_297 = arith.constant 0 : index
    %c24_298 = arith.constant 24 : index
    %159 = vector.load %arg14[%c0_296, %c0_297, %c24_298] : memref<8x8x72xf32, #tpu.memory_space<vmem>>, vector<8x8x8xf32>
    tpu.vector_store %arg14[%c0_296, %c0_297, %c24_298], %158 {strides = array<i32>} : memref<8x8x72xf32, #tpu.memory_space<vmem>>, vector<8x8x8xf32>,
    %c0_299 = arith.constant 0 : index
    %c0_300 = arith.constant 0 : index
    %c0_301 = arith.constant 0 : index
    %160 = vector.load %arg14[%c0_299, %c0_300, %c0_301] : memref<8x8x72xf32, #tpu.memory_space<vmem>>, vector<8x8x32xf32>
    %161 = vector.shape_cast %160 : vector<8x8x32xf32> to vector<64x32xf32>
    %cst_302 = arith.constant dense<0.000000e+00> : vector<64x4xf32>
    %162 = tpu.matmul %161, %150, %cst_302 {dimension_numbers = #tpu.dot_dimension_numbers<[1], [0], [0], [1], [0, 0, 1, 1], [], []>} : vector<64x32xf32>, vector<32x4xf32>, vector<64x4xf32> -> vector<64x4xf32>
    %163 = vector.broadcast %151 : vector<1x4xf32> to vector<64x4xf32>
    %164 = arith.addf %162, %163 : vector<64x4xf32>
    %165 = vector.shape_cast %164 : vector<64x4xf32> to vector<8x8x4xf32>
    %166 = vector.extract_strided_slice %114 {offsets = [1, 1, 0, 0], sizes = [1, 1, 32, 4], strides = [1, 1, 1, 1]} : vector<2x2x32x4xf32> to vector<1x1x32x4xf32>
    %167 = vector.shape_cast %166 : vector<1x1x32x4xf32> to vector<32x4xf32>
    %c0_303 = arith.constant 0 : index
    %c0_304 = arith.constant 0 : index
    %168 = vector.load %arg9[%c0_303, %c0_304] : memref<1x4xf32, #tpu.memory_space<vmem>>, vector<1x4xf32>
    %c1_305 = arith.constant 1 : index
    %c1_306 = arith.constant 1 : index
    %c0_307 = arith.constant 0 : index
    %169 = vector.load %arg13[%c1_305, %c1_306, %c0_307] : memref<10x10x8xf32, #tpu.memory_space<vmem>>, vector<8x8x8xf32>
    %c0_308 = arith.constant 0 : index
    %c0_309 = arith.constant 0 : index
    %c0_310 = arith.constant 0 : index
    %170 = vector.load %arg14[%c0_308, %c0_309, %c0_310] : memref<8x8x72xf32, #tpu.memory_space<vmem>>, vector<8x8x8xf32>
    tpu.vector_store %arg14[%c0_308, %c0_309, %c0_310], %169 {strides = array<i32>} : memref<8x8x72xf32, #tpu.memory_space<vmem>>, vector<8x8x8xf32>,
    %c1_311 = arith.constant 1 : index
    %c2_312 = arith.constant 2 : index
    %c0_313 = arith.constant 0 : index
    %171 = vector.load %arg13[%c1_311, %c2_312, %c0_313] : memref<10x10x8xf32, #tpu.memory_space<vmem>>, vector<8x8x8xf32>
    %c0_314 = arith.constant 0 : index
    %c0_315 = arith.constant 0 : index
    %c8_316 = arith.constant 8 : index
    %172 = vector.load %arg14[%c0_314, %c0_315, %c8_316] : memref<8x8x72xf32, #tpu.memory_space<vmem>>, vector<8x8x8xf32>
    tpu.vector_store %arg14[%c0_314, %c0_315, %c8_316], %171 {strides = array<i32>} : memref<8x8x72xf32, #tpu.memory_space<vmem>>, vector<8x8x8xf32>,
    %c2_317 = arith.constant 2 : index
    %c1_318 = arith.constant 1 : index
    %c0_319 = arith.constant 0 : index
    %173 = vector.load %arg13[%c2_317, %c1_318, %c0_319] : memref<10x10x8xf32, #tpu.memory_space<vmem>>, vector<8x8x8xf32>
    %c0_320 = arith.constant 0 : index
    %c0_321 = arith.constant 0 : index
    %c16_322 = arith.constant 16 : index
    %174 = vector.load %arg14[%c0_320, %c0_321, %c16_322] : memref<8x8x72xf32, #tpu.memory_space<vmem>>, vector<8x8x8xf32>
    tpu.vector_store %arg14[%c0_320, %c0_321, %c16_322], %173 {strides = array<i32>} : memref<8x8x72xf32, #tpu.memory_space<vmem>>, vector<8x8x8xf32>,
    %c2_323 = arith.constant 2 : index
    %c2_324 = arith.constant 2 : index
    %c0_325 = arith.constant 0 : index
    %175 = vector.load %arg13[%c2_323, %c2_324, %c0_325] : memref<10x10x8xf32, #tpu.memory_space<vmem>>, vector<8x8x8xf32>
    %c0_326 = arith.constant 0 : index
    %c0_327 = arith.constant 0 : index
    %c24_328 = arith.constant 24 : index
    %176 = vector.load %arg14[%c0_326, %c0_327, %c24_328] : memref<8x8x72xf32, #tpu.memory_space<vmem>>, vector<8x8x8xf32>
    tpu.vector_store %arg14[%c0_326, %c0_327, %c24_328], %175 {strides = array<i32>} : memref<8x8x72xf32, #tpu.memory_space<vmem>>, vector<8x8x8xf32>,
    %c0_329 = arith.constant 0 : index
    %c0_330 = arith.constant 0 : index
    %c0_331 = arith.constant 0 : index
    %177 = vector.load %arg14[%c0_329, %c0_330, %c0_331] : memref<8x8x72xf32, #tpu.memory_space<vmem>>, vector<8x8x32xf32>
    %178 = vector.shape_cast %177 : vector<8x8x32xf32> to vector<64x32xf32>
    %cst_332 = arith.constant dense<0.000000e+00> : vector<64x4xf32>
    %179 = tpu.matmul %178, %167, %cst_332 {dimension_numbers = #tpu.dot_dimension_numbers<[1], [0], [0], [1], [0, 0, 1, 1], [], []>} : vector<64x32xf32>, vector<32x4xf32>, vector<64x4xf32> -> vector<64x4xf32>
    %180 = vector.broadcast %168 : vector<1x4xf32> to vector<64x4xf32>
    %181 = arith.addf %179, %180 : vector<64x4xf32>
    %182 = vector.shape_cast %181 : vector<64x4xf32> to vector<8x8x4xf32>
    %cst_333 = arith.constant 0.000000e+00 : f32
    %183 = vector.broadcast %cst_333 : f32 to vector<8x8x4xf32>
    %184 = arith.maximumf %131, %183 : vector<8x8x4xf32>
    %185 = vector.shape_cast %184 : vector<8x8x4xf32> to vector<8x1x8x4xf32>
    %c0_334 = arith.constant 0 : index
    %c0_335 = arith.constant 0 : index
    %c0_336 = arith.constant 0 : index
    %c0_337 = arith.constant 0 : index
    %186 = vector.load %arg17[%c0_334, %c0_335, %c0_336, %c0_337] : memref<8x2x8x4xf32, #tpu.memory_space<vmem>>, vector<8x1x8x4xf32>
    tpu.vector_store %arg17[%c0_334, %c0_335, %c0_336, %c0_337], %185 {strides = array<i32>} : memref<8x2x8x4xf32, #tpu.memory_space<vmem>>, vector<8x1x8x4xf32>,
    %cst_338 = arith.constant 0.000000e+00 : f32
    %187 = vector.broadcast %cst_338 : f32 to vector<8x8x4xf32>
    %188 = arith.maximumf %165, %187 : vector<8x8x4xf32>
    %189 = vector.shape_cast %188 : vector<8x8x4xf32> to vector<8x1x8x4xf32>
    %c0_339 = arith.constant 0 : index
    %c1_340 = arith.constant 1 : index
    %c0_341 = arith.constant 0 : index
    %c0_342 = arith.constant 0 : index
    %190 = vector.load %arg17[%c0_339, %c1_340, %c0_341, %c0_342] : memref<8x2x8x4xf32, #tpu.memory_space<vmem>>, vector<8x1x8x4xf32>
    tpu.vector_store %arg17[%c0_339, %c1_340, %c0_341, %c0_342], %189 {strides = array<i32>} : memref<8x2x8x4xf32, #tpu.memory_space<vmem>>, vector<8x1x8x4xf32>,
    %c0_343 = arith.constant 0 : index
    %c0_344 = arith.constant 0 : index
    %c0_345 = arith.constant 0 : index
    %c0_346 = arith.constant 0 : index
    %191 = vector.load %arg17[%c0_343, %c0_344, %c0_345, %c0_346] : memref<8x2x8x4xf32, #tpu.memory_space<vmem>>, vector<8x2x8x4xf32>
    %192 = vector.shape_cast %191 : vector<8x2x8x4xf32> to vector<16x8x4xf32>
    %193 = vector.extract_strided_slice %192 {offsets = [0, 0, 0], sizes = [16, 1, 4], strides = [1, 1, 1]} : vector<16x8x4xf32> to vector<16x1x4xf32>
    %c1_347 = arith.constant 1 : index
    %c1_348 = arith.constant 1 : index
    %c0_349 = arith.constant 0 : index
    %194 = vector.load %arg15[%c1_347, %c1_348, %c0_349] : memref<18x18x4xf32, #tpu.memory_space<vmem>>, vector<16x1x4xf32>
    tpu.vector_store %arg15[%c1_347, %c1_348, %c0_349], %193 {strides = array<i32>} : memref<18x18x4xf32, #tpu.memory_space<vmem>>, vector<16x1x4xf32>,
    %195 = vector.extract_strided_slice %192 {offsets = [0, 1, 0], sizes = [16, 1, 4], strides = [1, 1, 1]} : vector<16x8x4xf32> to vector<16x1x4xf32>
    %c1_350 = arith.constant 1 : index
    %c3 = arith.constant 3 : index
    %c0_351 = arith.constant 0 : index
    %196 = vector.load %arg15[%c1_350, %c3, %c0_351] : memref<18x18x4xf32, #tpu.memory_space<vmem>>, vector<16x1x4xf32>
    tpu.vector_store %arg15[%c1_350, %c3, %c0_351], %195 {strides = array<i32>} : memref<18x18x4xf32, #tpu.memory_space<vmem>>, vector<16x1x4xf32>,
    %197 = vector.extract_strided_slice %192 {offsets = [0, 2, 0], sizes = [16, 1, 4], strides = [1, 1, 1]} : vector<16x8x4xf32> to vector<16x1x4xf32>
    %c1_352 = arith.constant 1 : index
    %c5 = arith.constant 5 : index
    %c0_353 = arith.constant 0 : index
    %198 = vector.load %arg15[%c1_352, %c5, %c0_353] : memref<18x18x4xf32, #tpu.memory_space<vmem>>, vector<16x1x4xf32>
    tpu.vector_store %arg15[%c1_352, %c5, %c0_353], %197 {strides = array<i32>} : memref<18x18x4xf32, #tpu.memory_space<vmem>>, vector<16x1x4xf32>,
    %199 = vector.extract_strided_slice %192 {offsets = [0, 3, 0], sizes = [16, 1, 4], strides = [1, 1, 1]} : vector<16x8x4xf32> to vector<16x1x4xf32>
    %c1_354 = arith.constant 1 : index
    %c7 = arith.constant 7 : index
    %c0_355 = arith.constant 0 : index
    %200 = vector.load %arg15[%c1_354, %c7, %c0_355] : memref<18x18x4xf32, #tpu.memory_space<vmem>>, vector<16x1x4xf32>
    tpu.vector_store %arg15[%c1_354, %c7, %c0_355], %199 {strides = array<i32>} : memref<18x18x4xf32, #tpu.memory_space<vmem>>, vector<16x1x4xf32>,
    %201 = vector.extract_strided_slice %192 {offsets = [0, 4, 0], sizes = [16, 1, 4], strides = [1, 1, 1]} : vector<16x8x4xf32> to vector<16x1x4xf32>
    %c1_356 = arith.constant 1 : index
    %c9 = arith.constant 9 : index
    %c0_357 = arith.constant 0 : index
    %202 = vector.load %arg15[%c1_356, %c9, %c0_357] : memref<18x18x4xf32, #tpu.memory_space<vmem>>, vector<16x1x4xf32>
    tpu.vector_store %arg15[%c1_356, %c9, %c0_357], %201 {strides = array<i32>} : memref<18x18x4xf32, #tpu.memory_space<vmem>>, vector<16x1x4xf32>,
    %203 = vector.extract_strided_slice %192 {offsets = [0, 5, 0], sizes = [16, 1, 4], strides = [1, 1, 1]} : vector<16x8x4xf32> to vector<16x1x4xf32>
    %c1_358 = arith.constant 1 : index
    %c11 = arith.constant 11 : index
    %c0_359 = arith.constant 0 : index
    %204 = vector.load %arg15[%c1_358, %c11, %c0_359] : memref<18x18x4xf32, #tpu.memory_space<vmem>>, vector<16x1x4xf32>
    tpu.vector_store %arg15[%c1_358, %c11, %c0_359], %203 {strides = array<i32>} : memref<18x18x4xf32, #tpu.memory_space<vmem>>, vector<16x1x4xf32>,
    %205 = vector.extract_strided_slice %192 {offsets = [0, 6, 0], sizes = [16, 1, 4], strides = [1, 1, 1]} : vector<16x8x4xf32> to vector<16x1x4xf32>
    %c1_360 = arith.constant 1 : index
    %c13 = arith.constant 13 : index
    %c0_361 = arith.constant 0 : index
    %206 = vector.load %arg15[%c1_360, %c13, %c0_361] : memref<18x18x4xf32, #tpu.memory_space<vmem>>, vector<16x1x4xf32>
    tpu.vector_store %arg15[%c1_360, %c13, %c0_361], %205 {strides = array<i32>} : memref<18x18x4xf32, #tpu.memory_space<vmem>>, vector<16x1x4xf32>,
    %207 = vector.extract_strided_slice %192 {offsets = [0, 7, 0], sizes = [16, 1, 4], strides = [1, 1, 1]} : vector<16x8x4xf32> to vector<16x1x4xf32>
    %c1_362 = arith.constant 1 : index
    %c15 = arith.constant 15 : index
    %c0_363 = arith.constant 0 : index
    %208 = vector.load %arg15[%c1_362, %c15, %c0_363] : memref<18x18x4xf32, #tpu.memory_space<vmem>>, vector<16x1x4xf32>
    tpu.vector_store %arg15[%c1_362, %c15, %c0_363], %207 {strides = array<i32>} : memref<18x18x4xf32, #tpu.memory_space<vmem>>, vector<16x1x4xf32>,
    %cst_364 = arith.constant 0.000000e+00 : f32
    %209 = vector.broadcast %cst_364 : f32 to vector<8x8x4xf32>
    %210 = arith.maximumf %148, %209 : vector<8x8x4xf32>
    %211 = vector.shape_cast %210 : vector<8x8x4xf32> to vector<8x1x8x4xf32>
    %c0_365 = arith.constant 0 : index
    %c0_366 = arith.constant 0 : index
    %c0_367 = arith.constant 0 : index
    %c0_368 = arith.constant 0 : index
    %212 = vector.load %arg17[%c0_365, %c0_366, %c0_367, %c0_368] : memref<8x2x8x4xf32, #tpu.memory_space<vmem>>, vector<8x1x8x4xf32>
    tpu.vector_store %arg17[%c0_365, %c0_366, %c0_367, %c0_368], %211 {strides = array<i32>} : memref<8x2x8x4xf32, #tpu.memory_space<vmem>>, vector<8x1x8x4xf32>,
    %cst_369 = arith.constant 0.000000e+00 : f32
    %213 = vector.broadcast %cst_369 : f32 to vector<8x8x4xf32>
    %214 = arith.maximumf %182, %213 : vector<8x8x4xf32>
    %215 = vector.shape_cast %214 : vector<8x8x4xf32> to vector<8x1x8x4xf32>
    %c0_370 = arith.constant 0 : index
    %c1_371 = arith.constant 1 : index
    %c0_372 = arith.constant 0 : index
    %c0_373 = arith.constant 0 : index
    %216 = vector.load %arg17[%c0_370, %c1_371, %c0_372, %c0_373] : memref<8x2x8x4xf32, #tpu.memory_space<vmem>>, vector<8x1x8x4xf32>
    tpu.vector_store %arg17[%c0_370, %c1_371, %c0_372, %c0_373], %215 {strides = array<i32>} : memref<8x2x8x4xf32, #tpu.memory_space<vmem>>, vector<8x1x8x4xf32>,
    %c0_374 = arith.constant 0 : index
    %c0_375 = arith.constant 0 : index
    %c0_376 = arith.constant 0 : index
    %c0_377 = arith.constant 0 : index
    %217 = vector.load %arg17[%c0_374, %c0_375, %c0_376, %c0_377] : memref<8x2x8x4xf32, #tpu.memory_space<vmem>>, vector<8x2x8x4xf32>
    %218 = vector.shape_cast %217 : vector<8x2x8x4xf32> to vector<16x8x4xf32>
    %219 = vector.extract_strided_slice %218 {offsets = [0, 0, 0], sizes = [16, 1, 4], strides = [1, 1, 1]} : vector<16x8x4xf32> to vector<16x1x4xf32>
    %c1_378 = arith.constant 1 : index
    %c2_379 = arith.constant 2 : index
    %c0_380 = arith.constant 0 : index
    %220 = vector.load %arg15[%c1_378, %c2_379, %c0_380] : memref<18x18x4xf32, #tpu.memory_space<vmem>>, vector<16x1x4xf32>
    tpu.vector_store %arg15[%c1_378, %c2_379, %c0_380], %219 {strides = array<i32>} : memref<18x18x4xf32, #tpu.memory_space<vmem>>, vector<16x1x4xf32>,
    %221 = vector.extract_strided_slice %218 {offsets = [0, 1, 0], sizes = [16, 1, 4], strides = [1, 1, 1]} : vector<16x8x4xf32> to vector<16x1x4xf32>
    %c1_381 = arith.constant 1 : index
    %c4_382 = arith.constant 4 : index
    %c0_383 = arith.constant 0 : index
    %222 = vector.load %arg15[%c1_381, %c4_382, %c0_383] : memref<18x18x4xf32, #tpu.memory_space<vmem>>, vector<16x1x4xf32>
    tpu.vector_store %arg15[%c1_381, %c4_382, %c0_383], %221 {strides = array<i32>} : memref<18x18x4xf32, #tpu.memory_space<vmem>>, vector<16x1x4xf32>,
    %223 = vector.extract_strided_slice %218 {offsets = [0, 2, 0], sizes = [16, 1, 4], strides = [1, 1, 1]} : vector<16x8x4xf32> to vector<16x1x4xf32>
    %c1_384 = arith.constant 1 : index
    %c6 = arith.constant 6 : index
    %c0_385 = arith.constant 0 : index
    %224 = vector.load %arg15[%c1_384, %c6, %c0_385] : memref<18x18x4xf32, #tpu.memory_space<vmem>>, vector<16x1x4xf32>
    tpu.vector_store %arg15[%c1_384, %c6, %c0_385], %223 {strides = array<i32>} : memref<18x18x4xf32, #tpu.memory_space<vmem>>, vector<16x1x4xf32>,
    %225 = vector.extract_strided_slice %218 {offsets = [0, 3, 0], sizes = [16, 1, 4], strides = [1, 1, 1]} : vector<16x8x4xf32> to vector<16x1x4xf32>
    %c1_386 = arith.constant 1 : index
    %c8_387 = arith.constant 8 : index
    %c0_388 = arith.constant 0 : index
    %226 = vector.load %arg15[%c1_386, %c8_387, %c0_388] : memref<18x18x4xf32, #tpu.memory_space<vmem>>, vector<16x1x4xf32>
    tpu.vector_store %arg15[%c1_386, %c8_387, %c0_388], %225 {strides = array<i32>} : memref<18x18x4xf32, #tpu.memory_space<vmem>>, vector<16x1x4xf32>,
    %227 = vector.extract_strided_slice %218 {offsets = [0, 4, 0], sizes = [16, 1, 4], strides = [1, 1, 1]} : vector<16x8x4xf32> to vector<16x1x4xf32>
    %c1_389 = arith.constant 1 : index
    %c10 = arith.constant 10 : index
    %c0_390 = arith.constant 0 : index
    %228 = vector.load %arg15[%c1_389, %c10, %c0_390] : memref<18x18x4xf32, #tpu.memory_space<vmem>>, vector<16x1x4xf32>
    tpu.vector_store %arg15[%c1_389, %c10, %c0_390], %227 {strides = array<i32>} : memref<18x18x4xf32, #tpu.memory_space<vmem>>, vector<16x1x4xf32>,
    %229 = vector.extract_strided_slice %218 {offsets = [0, 5, 0], sizes = [16, 1, 4], strides = [1, 1, 1]} : vector<16x8x4xf32> to vector<16x1x4xf32>
    %c1_391 = arith.constant 1 : index
    %c12_392 = arith.constant 12 : index
    %c0_393 = arith.constant 0 : index
    %230 = vector.load %arg15[%c1_391, %c12_392, %c0_393] : memref<18x18x4xf32, #tpu.memory_space<vmem>>, vector<16x1x4xf32>
    tpu.vector_store %arg15[%c1_391, %c12_392, %c0_393], %229 {strides = array<i32>} : memref<18x18x4xf32, #tpu.memory_space<vmem>>, vector<16x1x4xf32>,
    %231 = vector.extract_strided_slice %218 {offsets = [0, 6, 0], sizes = [16, 1, 4], strides = [1, 1, 1]} : vector<16x8x4xf32> to vector<16x1x4xf32>
    %c1_394 = arith.constant 1 : index
    %c14 = arith.constant 14 : index
    %c0_395 = arith.constant 0 : index
    %232 = vector.load %arg15[%c1_394, %c14, %c0_395] : memref<18x18x4xf32, #tpu.memory_space<vmem>>, vector<16x1x4xf32>
    tpu.vector_store %arg15[%c1_394, %c14, %c0_395], %231 {strides = array<i32>} : memref<18x18x4xf32, #tpu.memory_space<vmem>>, vector<16x1x4xf32>,
    %233 = vector.extract_strided_slice %218 {offsets = [0, 7, 0], sizes = [16, 1, 4], strides = [1, 1, 1]} : vector<16x8x4xf32> to vector<16x1x4xf32>
    %c1_396 = arith.constant 1 : index
    %c16_397 = arith.constant 16 : index
    %c0_398 = arith.constant 0 : index
    %234 = vector.load %arg15[%c1_396, %c16_397, %c0_398] : memref<18x18x4xf32, #tpu.memory_space<vmem>>, vector<16x1x4xf32>
    tpu.vector_store %arg15[%c1_396, %c16_397, %c0_398], %233 {strides = array<i32>} : memref<18x18x4xf32, #tpu.memory_space<vmem>>, vector<16x1x4xf32>,
    %c0_399 = arith.constant 0 : index
    %c0_400 = arith.constant 0 : index
    %c0_401 = arith.constant 0 : index
    %c0_402 = arith.constant 0 : index
    %235 = vector.load %arg10[%c0_399, %c0_400, %c0_401, %c0_402] : memref<2x2x16x3xf32, #tpu.memory_space<vmem>>, vector<2x2x16x3xf32>
    %236 = vector.extract_strided_slice %235 {offsets = [0, 0, 0, 0], sizes = [1, 1, 16, 3], strides = [1, 1, 1, 1]} : vector<2x2x16x3xf32> to vector<1x1x16x3xf32>
    %237 = vector.shape_cast %236 : vector<1x1x16x3xf32> to vector<16x3xf32>
    %c0_403 = arith.constant 0 : index
    %c0_404 = arith.constant 0 : index
    %238 = vector.load %arg11[%c0_403, %c0_404] : memref<1x3xf32, #tpu.memory_space<vmem>>, vector<1x3xf32>
    %c0_405 = arith.constant 0 : index
    %c0_406 = arith.constant 0 : index
    %c0_407 = arith.constant 0 : index
    %239 = vector.load %arg15[%c0_405, %c0_406, %c0_407] : memref<18x18x4xf32, #tpu.memory_space<vmem>>, vector<16x16x4xf32>
    %c0_408 = arith.constant 0 : index
    %c0_409 = arith.constant 0 : index
    %c0_410 = arith.constant 0 : index
    %240 = vector.load %arg16[%c0_408, %c0_409, %c0_410] : memref<16x16x16xf32, #tpu.memory_space<vmem>>, vector<16x16x4xf32>
    tpu.vector_store %arg16[%c0_408, %c0_409, %c0_410], %239 {strides = array<i32>} : memref<16x16x16xf32, #tpu.memory_space<vmem>>, vector<16x16x4xf32>,
    %c0_411 = arith.constant 0 : index
    %c1_412 = arith.constant 1 : index
    %c0_413 = arith.constant 0 : index
    %241 = vector.load %arg15[%c0_411, %c1_412, %c0_413] : memref<18x18x4xf32, #tpu.memory_space<vmem>>, vector<16x16x4xf32>
    %c0_414 = arith.constant 0 : index
    %c0_415 = arith.constant 0 : index
    %c4_416 = arith.constant 4 : index
    %242 = vector.load %arg16[%c0_414, %c0_415, %c4_416] : memref<16x16x16xf32, #tpu.memory_space<vmem>>, vector<16x16x4xf32>
    tpu.vector_store %arg16[%c0_414, %c0_415, %c4_416], %241 {strides = array<i32>} : memref<16x16x16xf32, #tpu.memory_space<vmem>>, vector<16x16x4xf32>,
    %c1_417 = arith.constant 1 : index
    %c0_418 = arith.constant 0 : index
    %c0_419 = arith.constant 0 : index
    %243 = vector.load %arg15[%c1_417, %c0_418, %c0_419] : memref<18x18x4xf32, #tpu.memory_space<vmem>>, vector<16x16x4xf32>
    %c0_420 = arith.constant 0 : index
    %c0_421 = arith.constant 0 : index
    %c8_422 = arith.constant 8 : index
    %244 = vector.load %arg16[%c0_420, %c0_421, %c8_422] : memref<16x16x16xf32, #tpu.memory_space<vmem>>, vector<16x16x4xf32>
    tpu.vector_store %arg16[%c0_420, %c0_421, %c8_422], %243 {strides = array<i32>} : memref<16x16x16xf32, #tpu.memory_space<vmem>>, vector<16x16x4xf32>,
    %c1_423 = arith.constant 1 : index
    %c1_424 = arith.constant 1 : index
    %c0_425 = arith.constant 0 : index
    %245 = vector.load %arg15[%c1_423, %c1_424, %c0_425] : memref<18x18x4xf32, #tpu.memory_space<vmem>>, vector<16x16x4xf32>
    %c0_426 = arith.constant 0 : index
    %c0_427 = arith.constant 0 : index
    %c12_428 = arith.constant 12 : index
    %246 = vector.load %arg16[%c0_426, %c0_427, %c12_428] : memref<16x16x16xf32, #tpu.memory_space<vmem>>, vector<16x16x4xf32>
    tpu.vector_store %arg16[%c0_426, %c0_427, %c12_428], %245 {strides = array<i32>} : memref<16x16x16xf32, #tpu.memory_space<vmem>>, vector<16x16x4xf32>,
    %c0_429 = arith.constant 0 : index
    %c0_430 = arith.constant 0 : index
    %c0_431 = arith.constant 0 : index
    %247 = vector.load %arg16[%c0_429, %c0_430, %c0_431] : memref<16x16x16xf32, #tpu.memory_space<vmem>>, vector<16x16x16xf32>
    %248 = vector.shape_cast %247 : vector<16x16x16xf32> to vector<256x16xf32>
    %cst_432 = arith.constant dense<0.000000e+00> : vector<256x3xf32>
    %249 = tpu.matmul %248, %237, %cst_432 {dimension_numbers = #tpu.dot_dimension_numbers<[1], [0], [0], [1], [0, 0, 1, 1], [], []>} : vector<256x16xf32>, vector<16x3xf32>, vector<256x3xf32> -> vector<256x3xf32>
    %250 = vector.broadcast %238 : vector<1x3xf32> to vector<256x3xf32>
    %251 = arith.addf %249, %250 : vector<256x3xf32>
    %252 = vector.shape_cast %251 : vector<256x3xf32> to vector<16x16x3xf32>
    %253 = vector.shape_cast %252 : vector<16x16x3xf32> to vector<1x1x1x16x16x3xf32>
    %c0_433 = arith.constant 0 : index
    %c0_434 = arith.constant 0 : index
    %c0_435 = arith.constant 0 : index
    %c0_436 = arith.constant 0 : index
    %c0_437 = arith.constant 0 : index
    %c0_438 = arith.constant 0 : index
    %254 = vector.load %arg12[%c0_433, %c0_434, %c0_435, %c0_436, %c0_437, %c0_438] : memref<1x2x2x16x16x3xf32, #tpu.memory_space<vmem>>, vector<1x1x1x16x16x3xf32>
    tpu.vector_store %arg12[%c0_433, %c0_434, %c0_435, %c0_436, %c0_437, %c0_438], %253 {strides = array<i32>} : memref<1x2x2x16x16x3xf32, #tpu.memory_space<vmem>>, vector<1x1x1x16x16x3xf32>,
    %255 = vector.extract_strided_slice %235 {offsets = [0, 1, 0, 0], sizes = [1, 1, 16, 3], strides = [1, 1, 1, 1]} : vector<2x2x16x3xf32> to vector<1x1x16x3xf32>
    %256 = vector.shape_cast %255 : vector<1x1x16x3xf32> to vector<16x3xf32>
    %c0_439 = arith.constant 0 : index
    %c0_440 = arith.constant 0 : index
    %257 = vector.load %arg11[%c0_439, %c0_440] : memref<1x3xf32, #tpu.memory_space<vmem>>, vector<1x3xf32>
    %c0_441 = arith.constant 0 : index
    %c1_442 = arith.constant 1 : index
    %c0_443 = arith.constant 0 : index
    %258 = vector.load %arg15[%c0_441, %c1_442, %c0_443] : memref<18x18x4xf32, #tpu.memory_space<vmem>>, vector<16x16x4xf32>
    %c0_444 = arith.constant 0 : index
    %c0_445 = arith.constant 0 : index
    %c0_446 = arith.constant 0 : index
    %259 = vector.load %arg16[%c0_444, %c0_445, %c0_446] : memref<16x16x16xf32, #tpu.memory_space<vmem>>, vector<16x16x4xf32>
    tpu.vector_store %arg16[%c0_444, %c0_445, %c0_446], %258 {strides = array<i32>} : memref<16x16x16xf32, #tpu.memory_space<vmem>>, vector<16x16x4xf32>,
    %c0_447 = arith.constant 0 : index
    %c2_448 = arith.constant 2 : index
    %c0_449 = arith.constant 0 : index
    %260 = vector.load %arg15[%c0_447, %c2_448, %c0_449] : memref<18x18x4xf32, #tpu.memory_space<vmem>>, vector<16x16x4xf32>
    %c0_450 = arith.constant 0 : index
    %c0_451 = arith.constant 0 : index
    %c4_452 = arith.constant 4 : index
    %261 = vector.load %arg16[%c0_450, %c0_451, %c4_452] : memref<16x16x16xf32, #tpu.memory_space<vmem>>, vector<16x16x4xf32>
    tpu.vector_store %arg16[%c0_450, %c0_451, %c4_452], %260 {strides = array<i32>} : memref<16x16x16xf32, #tpu.memory_space<vmem>>, vector<16x16x4xf32>,
    %c1_453 = arith.constant 1 : index
    %c1_454 = arith.constant 1 : index
    %c0_455 = arith.constant 0 : index
    %262 = vector.load %arg15[%c1_453, %c1_454, %c0_455] : memref<18x18x4xf32, #tpu.memory_space<vmem>>, vector<16x16x4xf32>
    %c0_456 = arith.constant 0 : index
    %c0_457 = arith.constant 0 : index
    %c8_458 = arith.constant 8 : index
    %263 = vector.load %arg16[%c0_456, %c0_457, %c8_458] : memref<16x16x16xf32, #tpu.memory_space<vmem>>, vector<16x16x4xf32>
    tpu.vector_store %arg16[%c0_456, %c0_457, %c8_458], %262 {strides = array<i32>} : memref<16x16x16xf32, #tpu.memory_space<vmem>>, vector<16x16x4xf32>,
    %c1_459 = arith.constant 1 : index
    %c2_460 = arith.constant 2 : index
    %c0_461 = arith.constant 0 : index
    %264 = vector.load %arg15[%c1_459, %c2_460, %c0_461] : memref<18x18x4xf32, #tpu.memory_space<vmem>>, vector<16x16x4xf32>
    %c0_462 = arith.constant 0 : index
    %c0_463 = arith.constant 0 : index
    %c12_464 = arith.constant 12 : index
    %265 = vector.load %arg16[%c0_462, %c0_463, %c12_464] : memref<16x16x16xf32, #tpu.memory_space<vmem>>, vector<16x16x4xf32>
    tpu.vector_store %arg16[%c0_462, %c0_463, %c12_464], %264 {strides = array<i32>} : memref<16x16x16xf32, #tpu.memory_space<vmem>>, vector<16x16x4xf32>,
    %c0_465 = arith.constant 0 : index
    %c0_466 = arith.constant 0 : index
    %c0_467 = arith.constant 0 : index
    %266 = vector.load %arg16[%c0_465, %c0_466, %c0_467] : memref<16x16x16xf32, #tpu.memory_space<vmem>>, vector<16x16x16xf32>
    %267 = vector.shape_cast %266 : vector<16x16x16xf32> to vector<256x16xf32>
    %cst_468 = arith.constant dense<0.000000e+00> : vector<256x3xf32>
    %268 = tpu.matmul %267, %256, %cst_468 {dimension_numbers = #tpu.dot_dimension_numbers<[1], [0], [0], [1], [0, 0, 1, 1], [], []>} : vector<256x16xf32>, vector<16x3xf32>, vector<256x3xf32> -> vector<256x3xf32>
    %269 = vector.broadcast %257 : vector<1x3xf32> to vector<256x3xf32>
    %270 = arith.addf %268, %269 : vector<256x3xf32>
    %271 = vector.shape_cast %270 : vector<256x3xf32> to vector<16x16x3xf32>
    %272 = vector.shape_cast %271 : vector<16x16x3xf32> to vector<1x1x1x16x16x3xf32>
    %c0_469 = arith.constant 0 : index
    %c0_470 = arith.constant 0 : index
    %c1_471 = arith.constant 1 : index
    %c0_472 = arith.constant 0 : index
    %c0_473 = arith.constant 0 : index
    %c0_474 = arith.constant 0 : index
    %273 = vector.load %arg12[%c0_469, %c0_470, %c1_471, %c0_472, %c0_473, %c0_474] : memref<1x2x2x16x16x3xf32, #tpu.memory_space<vmem>>, vector<1x1x1x16x16x3xf32>
    tpu.vector_store %arg12[%c0_469, %c0_470, %c1_471, %c0_472, %c0_473, %c0_474], %272 {strides = array<i32>} : memref<1x2x2x16x16x3xf32, #tpu.memory_space<vmem>>, vector<1x1x1x16x16x3xf32>,
    %274 = vector.extract_strided_slice %235 {offsets = [1, 0, 0, 0], sizes = [1, 1, 16, 3], strides = [1, 1, 1, 1]} : vector<2x2x16x3xf32> to vector<1x1x16x3xf32>
    %275 = vector.shape_cast %274 : vector<1x1x16x3xf32> to vector<16x3xf32>
    %c0_475 = arith.constant 0 : index
    %c0_476 = arith.constant 0 : index
    %276 = vector.load %arg11[%c0_475, %c0_476] : memref<1x3xf32, #tpu.memory_space<vmem>>, vector<1x3xf32>
    %c1_477 = arith.constant 1 : index
    %c0_478 = arith.constant 0 : index
    %c0_479 = arith.constant 0 : index
    %277 = vector.load %arg15[%c1_477, %c0_478, %c0_479] : memref<18x18x4xf32, #tpu.memory_space<vmem>>, vector<16x16x4xf32>
    %c0_480 = arith.constant 0 : index
    %c0_481 = arith.constant 0 : index
    %c0_482 = arith.constant 0 : index
    %278 = vector.load %arg16[%c0_480, %c0_481, %c0_482] : memref<16x16x16xf32, #tpu.memory_space<vmem>>, vector<16x16x4xf32>
    tpu.vector_store %arg16[%c0_480, %c0_481, %c0_482], %277 {strides = array<i32>} : memref<16x16x16xf32, #tpu.memory_space<vmem>>, vector<16x16x4xf32>,
    %c1_483 = arith.constant 1 : index
    %c1_484 = arith.constant 1 : index
    %c0_485 = arith.constant 0 : index
    %279 = vector.load %arg15[%c1_483, %c1_484, %c0_485] : memref<18x18x4xf32, #tpu.memory_space<vmem>>, vector<16x16x4xf32>
    %c0_486 = arith.constant 0 : index
    %c0_487 = arith.constant 0 : index
    %c4_488 = arith.constant 4 : index
    %280 = vector.load %arg16[%c0_486, %c0_487, %c4_488] : memref<16x16x16xf32, #tpu.memory_space<vmem>>, vector<16x16x4xf32>
    tpu.vector_store %arg16[%c0_486, %c0_487, %c4_488], %279 {strides = array<i32>} : memref<16x16x16xf32, #tpu.memory_space<vmem>>, vector<16x16x4xf32>,
    %c2_489 = arith.constant 2 : index
    %c0_490 = arith.constant 0 : index
    %c0_491 = arith.constant 0 : index
    %281 = vector.load %arg15[%c2_489, %c0_490, %c0_491] : memref<18x18x4xf32, #tpu.memory_space<vmem>>, vector<16x16x4xf32>
    %c0_492 = arith.constant 0 : index
    %c0_493 = arith.constant 0 : index
    %c8_494 = arith.constant 8 : index
    %282 = vector.load %arg16[%c0_492, %c0_493, %c8_494] : memref<16x16x16xf32, #tpu.memory_space<vmem>>, vector<16x16x4xf32>
    tpu.vector_store %arg16[%c0_492, %c0_493, %c8_494], %281 {strides = array<i32>} : memref<16x16x16xf32, #tpu.memory_space<vmem>>, vector<16x16x4xf32>,
    %c2_495 = arith.constant 2 : index
    %c1_496 = arith.constant 1 : index
    %c0_497 = arith.constant 0 : index
    %283 = vector.load %arg15[%c2_495, %c1_496, %c0_497] : memref<18x18x4xf32, #tpu.memory_space<vmem>>, vector<16x16x4xf32>
    %c0_498 = arith.constant 0 : index
    %c0_499 = arith.constant 0 : index
    %c12_500 = arith.constant 12 : index
    %284 = vector.load %arg16[%c0_498, %c0_499, %c12_500] : memref<16x16x16xf32, #tpu.memory_space<vmem>>, vector<16x16x4xf32>
    tpu.vector_store %arg16[%c0_498, %c0_499, %c12_500], %283 {strides = array<i32>} : memref<16x16x16xf32, #tpu.memory_space<vmem>>, vector<16x16x4xf32>,
    %c0_501 = arith.constant 0 : index
    %c0_502 = arith.constant 0 : index
    %c0_503 = arith.constant 0 : index
    %285 = vector.load %arg16[%c0_501, %c0_502, %c0_503] : memref<16x16x16xf32, #tpu.memory_space<vmem>>, vector<16x16x16xf32>
    %286 = vector.shape_cast %285 : vector<16x16x16xf32> to vector<256x16xf32>
    %cst_504 = arith.constant dense<0.000000e+00> : vector<256x3xf32>
    %287 = tpu.matmul %286, %275, %cst_504 {dimension_numbers = #tpu.dot_dimension_numbers<[1], [0], [0], [1], [0, 0, 1, 1], [], []>} : vector<256x16xf32>, vector<16x3xf32>, vector<256x3xf32> -> vector<256x3xf32>
    %288 = vector.broadcast %276 : vector<1x3xf32> to vector<256x3xf32>
    %289 = arith.addf %287, %288 : vector<256x3xf32>
    %290 = vector.shape_cast %289 : vector<256x3xf32> to vector<16x16x3xf32>
    %291 = vector.shape_cast %290 : vector<16x16x3xf32> to vector<1x1x1x16x16x3xf32>
    %c0_505 = arith.constant 0 : index
    %c1_506 = arith.constant 1 : index
    %c0_507 = arith.constant 0 : index
    %c0_508 = arith.constant 0 : index
    %c0_509 = arith.constant 0 : index
    %c0_510 = arith.constant 0 : index
    %292 = vector.load %arg12[%c0_505, %c1_506, %c0_507, %c0_508, %c0_509, %c0_510] : memref<1x2x2x16x16x3xf32, #tpu.memory_space<vmem>>, vector<1x1x1x16x16x3xf32>
    tpu.vector_store %arg12[%c0_505, %c1_506, %c0_507, %c0_508, %c0_509, %c0_510], %291 {strides = array<i32>} : memref<1x2x2x16x16x3xf32, #tpu.memory_space<vmem>>, vector<1x1x1x16x16x3xf32>,
    %293 = vector.extract_strided_slice %235 {offsets = [1, 1, 0, 0], sizes = [1, 1, 16, 3], strides = [1, 1, 1, 1]} : vector<2x2x16x3xf32> to vector<1x1x16x3xf32>
    %294 = vector.shape_cast %293 : vector<1x1x16x3xf32> to vector<16x3xf32>
    %c0_511 = arith.constant 0 : index
    %c0_512 = arith.constant 0 : index
    %295 = vector.load %arg11[%c0_511, %c0_512] : memref<1x3xf32, #tpu.memory_space<vmem>>, vector<1x3xf32>
    %c1_513 = arith.constant 1 : index
    %c1_514 = arith.constant 1 : index
    %c0_515 = arith.constant 0 : index
    %296 = vector.load %arg15[%c1_513, %c1_514, %c0_515] : memref<18x18x4xf32, #tpu.memory_space<vmem>>, vector<16x16x4xf32>
    %c0_516 = arith.constant 0 : index
    %c0_517 = arith.constant 0 : index
    %c0_518 = arith.constant 0 : index
    %297 = vector.load %arg16[%c0_516, %c0_517, %c0_518] : memref<16x16x16xf32, #tpu.memory_space<vmem>>, vector<16x16x4xf32>
    tpu.vector_store %arg16[%c0_516, %c0_517, %c0_518], %296 {strides = array<i32>} : memref<16x16x16xf32, #tpu.memory_space<vmem>>, vector<16x16x4xf32>,
    %c1_519 = arith.constant 1 : index
    %c2_520 = arith.constant 2 : index
    %c0_521 = arith.constant 0 : index
    %298 = vector.load %arg15[%c1_519, %c2_520, %c0_521] : memref<18x18x4xf32, #tpu.memory_space<vmem>>, vector<16x16x4xf32>
    %c0_522 = arith.constant 0 : index
    %c0_523 = arith.constant 0 : index
    %c4_524 = arith.constant 4 : index
    %299 = vector.load %arg16[%c0_522, %c0_523, %c4_524] : memref<16x16x16xf32, #tpu.memory_space<vmem>>, vector<16x16x4xf32>
    tpu.vector_store %arg16[%c0_522, %c0_523, %c4_524], %298 {strides = array<i32>} : memref<16x16x16xf32, #tpu.memory_space<vmem>>, vector<16x16x4xf32>,
    %c2_525 = arith.constant 2 : index
    %c1_526 = arith.constant 1 : index
    %c0_527 = arith.constant 0 : index
    %300 = vector.load %arg15[%c2_525, %c1_526, %c0_527] : memref<18x18x4xf32, #tpu.memory_space<vmem>>, vector<16x16x4xf32>
    %c0_528 = arith.constant 0 : index
    %c0_529 = arith.constant 0 : index
    %c8_530 = arith.constant 8 : index
    %301 = vector.load %arg16[%c0_528, %c0_529, %c8_530] : memref<16x16x16xf32, #tpu.memory_space<vmem>>, vector<16x16x4xf32>
    tpu.vector_store %arg16[%c0_528, %c0_529, %c8_530], %300 {strides = array<i32>} : memref<16x16x16xf32, #tpu.memory_space<vmem>>, vector<16x16x4xf32>,
    %c2_531 = arith.constant 2 : index
    %c2_532 = arith.constant 2 : index
    %c0_533 = arith.constant 0 : index
    %302 = vector.load %arg15[%c2_531, %c2_532, %c0_533] : memref<18x18x4xf32, #tpu.memory_space<vmem>>, vector<16x16x4xf32>
    %c0_534 = arith.constant 0 : index
    %c0_535 = arith.constant 0 : index
    %c12_536 = arith.constant 12 : index
    %303 = vector.load %arg16[%c0_534, %c0_535, %c12_536] : memref<16x16x16xf32, #tpu.memory_space<vmem>>, vector<16x16x4xf32>
    tpu.vector_store %arg16[%c0_534, %c0_535, %c12_536], %302 {strides = array<i32>} : memref<16x16x16xf32, #tpu.memory_space<vmem>>, vector<16x16x4xf32>,
    %c0_537 = arith.constant 0 : index
    %c0_538 = arith.constant 0 : index
    %c0_539 = arith.constant 0 : index
    %304 = vector.load %arg16[%c0_537, %c0_538, %c0_539] : memref<16x16x16xf32, #tpu.memory_space<vmem>>, vector<16x16x16xf32>
    %305 = vector.shape_cast %304 : vector<16x16x16xf32> to vector<256x16xf32>
    %cst_540 = arith.constant dense<0.000000e+00> : vector<256x3xf32>
    %306 = tpu.matmul %305, %294, %cst_540 {dimension_numbers = #tpu.dot_dimension_numbers<[1], [0], [0], [1], [0, 0, 1, 1], [], []>} : vector<256x16xf32>, vector<16x3xf32>, vector<256x3xf32> -> vector<256x3xf32>
    %307 = vector.broadcast %295 : vector<1x3xf32> to vector<256x3xf32>
    %308 = arith.addf %306, %307 : vector<256x3xf32>
    %309 = vector.shape_cast %308 : vector<256x3xf32> to vector<16x16x3xf32>
    %310 = vector.shape_cast %309 : vector<16x16x3xf32> to vector<1x1x1x16x16x3xf32>
    %c0_541 = arith.constant 0 : index
    %c1_542 = arith.constant 1 : index
    %c1_543 = arith.constant 1 : index
    %c0_544 = arith.constant 0 : index
    %c0_545 = arith.constant 0 : index
    %c0_546 = arith.constant 0 : index
    %311 = vector.load %arg12[%c0_541, %c1_542, %c1_543, %c0_544, %c0_545, %c0_546] : memref<1x2x2x16x16x3xf32, #tpu.memory_space<vmem>>, vector<1x1x1x16x16x3xf32>
    tpu.vector_store %arg12[%c0_541, %c1_542, %c1_543, %c0_544, %c0_545, %c0_546], %310 {strides = array<i32>} : memref<1x2x2x16x16x3xf32, #tpu.memory_space<vmem>>, vector<1x1x1x16x16x3xf32>,
    return
  }
  func.func @transform_0(%arg0: i32) -> (i32, i32, i32, i32) {
    %c0_i32 = arith.constant 0 : i32
    %c0_i32_0 = arith.constant 0 : i32
    %c0_i32_1 = arith.constant 0 : i32
    %c0_i32_2 = arith.constant 0 : i32
    return %arg0, %c0_i32, %c0_i32_0, %c0_i32_1 : i32, i32, i32, i32
  }
  func.func @transform_1(%arg0: i32) -> (i32, i32) {
    %c0_i32 = arith.constant 0 : i32
    %c0_i32_0 = arith.constant 0 : i32
    %c0_i32_1 = arith.constant 0 : i32
    return %c0_i32, %c0_i32_0 : i32, i32
  }
  func.func @transform_2(%arg0: i32) -> (i32, i32) {
    %c0_i32 = arith.constant 0 : i32
    %c0_i32_0 = arith.constant 0 : i32
    %c0_i32_1 = arith.constant 0 : i32
    return %c0_i32, %c0_i32_0 : i32, i32
  }
  func.func @transform_3(%arg0: i32) -> (i32, i32) {
    %c0_i32 = arith.constant 0 : i32
    %c0_i32_0 = arith.constant 0 : i32
    %c0_i32_1 = arith.constant 0 : i32
    return %c0_i32, %c0_i32_0 : i32, i32
  }
  func.func @transform_4(%arg0: i32) -> (i32, i32) {
    %c0_i32 = arith.constant 0 : i32
    %c0_i32_0 = arith.constant 0 : i32
    %c0_i32_1 = arith.constant 0 : i32
    return %c0_i32, %c0_i32_0 : i32, i32
  }
  func.func @transform_5(%arg0: i32) -> (i32, i32) {
    %c0_i32 = arith.constant 0 : i32
    %c0_i32_0 = arith.constant 0 : i32
    %c0_i32_1 = arith.constant 0 : i32
    return %c0_i32, %c0_i32_0 : i32, i32
  }
  func.func @transform_6(%arg0: i32) -> (i32, i32) {
    %c0_i32 = arith.constant 0 : i32
    %c0_i32_0 = arith.constant 0 : i32
    %c0_i32_1 = arith.constant 0 : i32
    return %c0_i32, %c0_i32_0 : i32, i32
  }
  func.func @transform_7(%arg0: i32) -> (i32, i32, i32, i32) {
    %c0_i32 = arith.constant 0 : i32
    %c0_i32_0 = arith.constant 0 : i32
    %c0_i32_1 = arith.constant 0 : i32
    %c0_i32_2 = arith.constant 0 : i32
    %c0_i32_3 = arith.constant 0 : i32
    return %c0_i32, %c0_i32_0, %c0_i32_1, %c0_i32_2 : i32, i32, i32, i32
  }
  func.func @transform_8(%arg0: i32) -> (i32, i32) {
    %c0_i32 = arith.constant 0 : i32
    %c0_i32_0 = arith.constant 0 : i32
    %c0_i32_1 = arith.constant 0 : i32
    return %c0_i32, %c0_i32_0 : i32, i32
  }
  func.func @transform_9(%arg0: i32) -> (i32, i32, i32, i32) {
    %c0_i32 = arith.constant 0 : i32
    %c0_i32_0 = arith.constant 0 : i32
    %c0_i32_1 = arith.constant 0 : i32
    %c0_i32_2 = arith.constant 0 : i32
    %c0_i32_3 = arith.constant 0 : i32
    return %c0_i32, %c0_i32_0, %c0_i32_1, %c0_i32_2 : i32, i32, i32, i32
  }
  func.func @transform_10(%arg0: i32) -> (i32, i32) {
    %c0_i32 = arith.constant 0 : i32
    %c0_i32_0 = arith.constant 0 : i32
    %c0_i32_1 = arith.constant 0 : i32
    return %c0_i32, %c0_i32_0 : i32, i32
  }
  func.func @transform_11(%arg0: i32) -> (i32, i32, i32, i32, i32, i32) {
    %c0_i32 = arith.constant 0 : i32
    %c0_i32_0 = arith.constant 0 : i32
    %c0_i32_1 = arith.constant 0 : i32
    %c0_i32_2 = arith.constant 0 : i32
    %c0_i32_3 = arith.constant 0 : i32
    %c0_i32_4 = arith.constant 0 : i32
    return %arg0, %c0_i32, %c0_i32_0, %c0_i32_1, %c0_i32_2, %c0_i32_3 : i32, i32, i32, i32, i32, i32
  }
}

</mosaic_0001>

<bundles_post_ra>
// kernel: vqvae_decoder_forward.1
= control target key start
LH: loop header
LB: loop body
LE: loop exit
PB: predicated region body
PF: predicated region fallthrough
CT: control target
= control target key end

     0   :  { %16 = vsyncpa [#allocation8], 0  ;;  %s14505_s0 = inlined_call_operand.vmem [shape: f32[2,8,8,4], index: 0, kind: input, shape index: {}]   ;;  %s14506_s1 = inlined_call_operand.vmem [shape: f32[36,8], index: 1, kind: input, shape index: {}]   ;;  %s14507_s2 = inlined_call_operand.hbm [shape: f32[1,8], index: 2, kind: input, shape index: {}]   ;;  %s14508_s3 = inlined_call_operand.hbm [shape: f32[72,8], index: 3, kind: input, shape index: {}]   ;;  %s14509_s4 = inlined_call_operand.hbm [shape: f32[1,8], index: 4, kind: input, shape index: {}]   ;;  %s14510_s5 = inlined_call_operand.hbm [shape: f32[8,8], index: 5, kind: input, shape index: {}]   ;;  %s14511_s6 = inlined_call_operand.hbm [shape: f32[1,8], index: 6, kind: input, shape index: {}]   ;;  %s14512_s7 = inlined_call_operand.vmem [shape: f32[2,2,32,4], index: 7, kind: input, shape index: {}]   ;;  %s14513_s8 = inlined_call_operand.hbm [shape: f32[1,4], index: 8, kind: input, shape index: {}]   ;;  %s14514_s9 = inlined_call_operand.vmem [shape: f32[2,2,16,3], index: 9, kind: input, shape index: {}]   ;;  %s14515_s10 = inlined_call_operand.hbm [shape: f32[1,3], index: 10, kind: input, shape index: {}]   ;;  %s14516_s11 = inlined_call_operand.vmem [shape: f32[2,2,2,16,16,3], index: 11, kind: output, shape index: {}]  }
   0x1   :  { %17 = vsyncpa [#allocation10], 0 }
   0x2   :  { %18 = vsyncpa [#allocation13], 0 }
   0x3   :  { %19 = vsyncpa [#allocation16], 0  ;;  %s9935_s17 = smov 0  }
   0x4 LB: > { %14528 = sst [smem:[#allocation22_spill]] %s9851_s17  ;;  %s9853_s18 = smov [#allocation9]   ;;  %s9851_s17 = sphi %s9935_s17, %s25_s17  }
   0x5   : > { %s318_s19 = sshll.u32 %s9853_s18, 4  ;;  %s9941_s20 = sadd.s32 4294967295, %s9851_s17   ;;  %s9946_s19 = int_to_ptr.vmem [resolvable:$true] %s318_s19 }
   0x6   : > { %p8467_p0 = scmp.ge.s32.totalorder %s9851_s17, 1  ;;  %p292_p1 = scmp.lt.s32.totalorder %s9851_s17, 3 }
   0x7   : > { %p14518_p2 = scmp.eq.s32.totalorder %s9941_s20, 0  ;;  %s9854_s22 = smov [#allocation12]  }
   0x8   : > { %p9948_p3 = pnand %p8467_p0, %p292_p1  ;;  %s343_s23 = sshll.u32 %s9854_s22, 4  ;;  %s9954_s23 = int_to_ptr.vmem [resolvable:$true] %s343_s23 }
   0x9   : > { %s9855_s25 = smov [#allocation15]   ;;  %s9856_s27 = smov [#allocation7]  }
   0xa   : > { %s14529_s21 = scalar_select %p9948_p3, 1, 0 }
   0xb   : > { %p9565_p4 = pneg %p9948_p3  ;;  %s368_s26 = sshll.u32 %s9855_s25, 4  ;;  %s9962_s26 = int_to_ptr.vmem [resolvable:$true] %s368_s26 }
   0xc   : > { %s9964_s28 = sshll.u32 %s9856_s27, 4  ;;  %s9633_s12 = scalar_lea.hbm %s14508_s3, 1152  ;;  %s309_s28 = int_to_ptr.vmem [resolvable:$true] %s9964_s28 }
   0xd   : > { %p9958_p5 = pnand %p14518_p2, %p9565_p4  ;;  %p9634_p6 = scmp.ne.s32.totalorder %s14508_s3, %s9633_s12 }
   0xe   : > { %p9640_p10 = scmp.lt.u32.totalorder %s9633_s12, %s14508_s3 }
   0xf   : > { %p9974_p7 = pneg %p9958_p5 }
  0x11   : > { %p9636_p8 = pnand %p9974_p7, %p9634_p6 }
  0x13   : > { %p9637_p9 = pneg %p9636_p8 }
  0x15   : > { %p9642_p11 = pnand %p9640_p10, %p9637_p9 }
  0x17   : > { %9645 = shalt.err (!%p9642_p11)
}
  0x18   : > { %s9646_s22 = scalar_lea.vmem %s9946_s19, 1152  ;;  %p9654_p1 = scmp.lt.s32.totalorder %s9946_s19, %s9946_s19 }
  0x19   : > { %p9647_p12 = scmp.ne.s32.totalorder %s9946_s19, %s9646_s22  ;;  %p9655_p4 = scmp.lt.s32.totalorder %s9646_s22, %s9646_s22 }
  0x1b   : > { %p9649_p13 = pnand %p9647_p12, %p9974_p7  ;;  %p9656_p6 = por %p9655_p4, %p9654_p1 }
  0x1d   : > { %p9650_p0 = pneg %p9649_p13 }
  0x1f   : > { %p9657_p8 = pnand %p9656_p6, %p9650_p0 }
  0x21   : > { %9660 = shalt.err (!%p9657_p8)
}
  0x22   : > { %s9857_s25 = smov 128   ;;  %s9858_s27 = smov 8  }
  0x23   : > { %9571 = dma.hbm_to_vmem [thread:$0]  (!%p9958_p5), %s14508_s3, 1152, %s9946_s19, [#allocation10], %s9857_s25, %s9857_s25, %s9858_s27  }
  0x24   : > { %s9661_s14 = scalar_lea.hbm %s14510_s5, 128 }
  0x25   : > { %p9662_p9 = scmp.ne.s32.totalorder %s14510_s5, %s9661_s14  ;;  %p9668_p12 = scmp.lt.u32.totalorder %s9661_s14, %s14510_s5 }
  0x27   : > { %p9664_p10 = pnand %p9662_p9, %p9974_p7 }
  0x29   : > { %p9665_p11 = pneg %p9664_p10 }
  0x2b   : > { %p9670_p13 = pnand %p9668_p12, %p9665_p11 }
  0x2d   : > { %9673 = shalt.err (!%p9670_p13)
}
  0x2e   : > { %s9674_s19 = scalar_lea.vmem %s9954_s23, 128  ;;  %p9682_p6 = scmp.lt.s32.totalorder %s9954_s23, %s9954_s23 }
  0x2f   : > { %p9675_p0 = scmp.ne.s32.totalorder %s9954_s23, %s9674_s19  ;;  %p9683_p8 = scmp.lt.s32.totalorder %s9674_s19, %s9674_s19 }
  0x31   : > { %p9677_p1 = pnand %p9675_p0, %p9974_p7  ;;  %p9684_p9 = por %p9683_p8, %p9682_p6 }
  0x33   : > { %p9678_p4 = pneg %p9677_p1 }
  0x35   : > { %p9685_p10 = pnand %p9684_p9, %p9678_p4 }
  0x37   : > { %9688 = shalt.err (!%p9685_p10)
}
  0x38   : > { %9577 = dma.hbm_to_vmem [thread:$0]  (!%p9958_p5), %s14510_s5, 128, %s9954_s23, [#allocation13]  }
  0x39   : > { %s9689_s30 = scalar_lea.hbm %s14513_s8, 16 }
  0x3a   : > { %p9690_p11 = scmp.ne.s32.totalorder %s14513_s8, %s9689_s30  ;;  %p9696_p0 = scmp.lt.u32.totalorder %s9689_s30, %s14513_s8 }
  0x3c   : > { %p9692_p12 = pnand %p9690_p11, %p9974_p7 }
  0x3e   : > { %p9693_p13 = pneg %p9692_p12 }
  0x40   : > { %p9698_p1 = pnand %p9696_p0, %p9693_p13 }
  0x42   : > { %9701 = shalt.err (!%p9698_p1)
}
  0x43   : > { %s9702_s23 = scalar_lea.vmem %s9962_s26, 16  ;;  %s9709_s18 = scalar_lea.vmem %s9962_s26, 32 }
  0x44   : > { %p9703_p4 = scmp.ne.s32.totalorder %s9962_s26, %s9702_s23  ;;  %p9710_p9 = scmp.lt.s32.totalorder %s9962_s26, %s9962_s26 }
  0x45   : > { %p9711_p10 = scmp.lt.s32.totalorder %s9709_s18, %s9702_s23 }
  0x46   : > { %p9705_p6 = pnand %p9703_p4, %p9974_p7 }
  0x47   : > { %p9712_p11 = por %p9711_p10, %p9710_p9 }
  0x48   : > { %p9706_p8 = pneg %p9705_p6 }
  0x4a   : > { %p9713_p12 = pnand %p9712_p11, %p9706_p8 }
  0x4c   : > { %9716 = shalt.err (!%p9713_p12)
}
  0x4d   : > { %9583 = dma.hbm_to_vmem [thread:$0]  (!%p9958_p5), %s14513_s8, 16, %s9962_s26, [#allocation16]  }
  0x4e   : > { %s9717_s27 = scalar_lea.hbm %s14507_s2, 16 }
  0x4f   : > { %p9718_p13 = scmp.ne.s32.totalorder %s14507_s2, %s9717_s27  ;;  %p9724_p4 = scmp.lt.u32.totalorder %s9717_s27, %s14507_s2 }
  0x51   : > { %p9720_p0 = pnand %p9718_p13, %p9974_p7 }
  0x53   : > { %p9721_p1 = pneg %p9720_p0 }
  0x55   : > { %p9726_p6 = pnand %p9724_p4, %p9721_p1 }
  0x57   : > { %9729 = shalt.err (!%p9726_p6)
}
  0x58   : > { %s9730_s14 = scalar_lea.vmem %s309_s28, 16  ;;  %s9737_s26 = scalar_lea.vmem %s309_s28, 32 }
  0x59   : > { %p9731_p8 = scmp.ne.s32.totalorder %s309_s28, %s9730_s14  ;;  %p9738_p11 = scmp.lt.s32.totalorder %s309_s28, %s309_s28 }
  0x5a   : > { %p9739_p12 = scmp.lt.s32.totalorder %s9737_s26, %s9730_s14 }
  0x5b   : > { %p9733_p9 = pnand %p9731_p8, %p9974_p7 }
  0x5c   : > { %p9740_p2 = por %p9739_p12, %p9738_p11 }
  0x5d   : > { %p9734_p10 = pneg %p9733_p9 }
  0x5f   : > { %p9741_p3 = pnand %p9740_p2, %p9734_p10 }
  0x61   : > { %9744 = shalt.err (!%p9741_p3)
}
  0x62   : > { %9568 = dma.hbm_to_vmem [thread:$0]  (!%p9958_p5), %s14507_s2, 16, %s309_s28, [#allocation8]  }
  0x63   : > { %s9859_s18 = smov [#allocation11]   ;;  %s9860_s19 = smov [#allocation14]  }
  0x64   : > { %s332_s22 = sshll.u32 %s9859_s18, 4  ;;  %s354_s17 = sshll.u32 %s9860_s19, 4  ;;  %s333_s22 = int_to_ptr.vmem [resolvable:$true] %s332_s22  ;;  %s355_s17 = int_to_ptr.vmem [resolvable:$true] %s354_s17 }
  0x65   : > { %s9745_s29 = scalar_lea.hbm %s14509_s4, 16 }
  0x66   : > { %p9746_p2 = scmp.ne.s32.totalorder %s14509_s4, %s9745_s29  ;;  %p9752_p0 = scmp.lt.u32.totalorder %s9745_s29, %s14509_s4 }
  0x68   : > { %p9748_p3 = pnand %p9746_p2, %p9974_p7 }
  0x6a   : > { %p9749_p13 = pneg %p9748_p3 }
  0x6c   : > { %p9754_p1 = pnand %p9752_p0, %p9749_p13 }
  0x6e   : > { %9757 = shalt.err (!%p9754_p1)
}
  0x6f   : > { %s9758_s28 = scalar_lea.vmem %s333_s22, 16  ;;  %s9765_s26 = scalar_lea.vmem %s333_s22, 32 }
  0x70   : > { %p9759_p4 = scmp.ne.s32.totalorder %s333_s22, %s9758_s28  ;;  %p9766_p9 = scmp.lt.s32.totalorder %s333_s22, %s333_s22 }
  0x71   : > { %p9767_p10 = scmp.lt.s32.totalorder %s9765_s26, %s9758_s28 }
  0x72   : > { %p9761_p6 = pnand %p9759_p4, %p9974_p7 }
  0x73   : > { %p9768_p11 = por %p9767_p10, %p9766_p9 }
  0x74   : > { %p9762_p8 = pneg %p9761_p6 }
  0x76   : > { %p9769_p12 = pnand %p9768_p11, %p9762_p8 }
  0x78   : > { %9772 = shalt.err (!%p9769_p12)
}
  0x79   : > { %9574 = dma.hbm_to_vmem [thread:$0]  (!%p9958_p5), %s14509_s4, 16, %s333_s22, [#allocation10]  }
  0x7a   : > { %s9773_s25 = scalar_lea.hbm %s14511_s6, 16 }
  0x7b   : > { %p9774_p2 = scmp.ne.s32.totalorder %s14511_s6, %s9773_s25  ;;  %p9780_p0 = scmp.lt.u32.totalorder %s9773_s25, %s14511_s6 }
  0x7d   : > { %p9776_p3 = pnand %p9774_p2, %p9974_p7 }
  0x7f   : > { %p9777_p13 = pneg %p9776_p3 }
  0x81   : > { %p9782_p1 = pnand %p9780_p0, %p9777_p13 }
  0x83   : > { %9785 = shalt.err (!%p9782_p1)
}
  0x84   : > { %s9786_s13 = scalar_lea.vmem %s355_s17, 16  ;;  %s9793_s22 = scalar_lea.vmem %s355_s17, 32 }
  0x85   : > { %p9787_p4 = scmp.ne.s32.totalorder %s355_s17, %s9786_s13  ;;  %p9794_p9 = scmp.lt.s32.totalorder %s355_s17, %s355_s17 }
  0x86   : > { %p9795_p10 = scmp.lt.s32.totalorder %s9793_s22, %s9786_s13 }
  0x87   : > { %p9789_p6 = pnand %p9787_p4, %p9974_p7 }
  0x88   : > { %p9796_p11 = por %p9795_p10, %p9794_p9 }
  0x89   : > { %p9790_p8 = pneg %p9789_p6 }
  0x8b   : > { %p9797_p12 = pnand %p9796_p11, %p9790_p8 }
  0x8d   : > { %9800 = shalt.err (!%p9797_p12)
}
  0x8e   : > { %9580 = dma.hbm_to_vmem [thread:$0]  (!%p9958_p5), %s14511_s6, 16, %s355_s17, [#allocation13]  }
  0x8f   : > { %s9861_s26 = smov [#allocation17]   ;;  %s9801_s19 = scalar_lea.hbm %s14515_s10, 16 }
  0x90   : > { %s382_s16 = sshll.u32 %s9861_s26, 4  ;;  %p9802_p2 = scmp.ne.s32.totalorder %s14515_s10, %s9801_s19  ;;  %s383_s16 = int_to_ptr.vmem [resolvable:$true] %s382_s16 }
  0x91   : > { %p9808_p0 = scmp.lt.u32.totalorder %s9801_s19, %s14515_s10 }
  0x92   : > { %p9804_p3 = pnand %p9802_p2, %p9974_p7 }
  0x94   : > { %p9805_p13 = pneg %p9804_p3 }
  0x96   : > { %p9810_p1 = pnand %p9808_p0, %p9805_p13 }
  0x98   : > { %9813 = shalt.err (!%p9810_p1)
}
  0x99   : > { %s9814_s17 = scalar_lea.vmem %s383_s16, 16  ;;  %s9821_s12 = scalar_lea.vmem %s383_s16, 32 }
  0x9a   : > { %p9815_p4 = scmp.ne.s32.totalorder %s383_s16, %s9814_s17  ;;  %p9822_p9 = scmp.lt.s32.totalorder %s383_s16, %s383_s16 }
  0x9b   : > { %p9823_p10 = scmp.lt.s32.totalorder %s9821_s12, %s9814_s17 }
  0x9c   : > { %p9817_p6 = pnand %p9815_p4, %p9974_p7 }
  0x9d   : > { %p9824_p11 = por %p9823_p10, %p9822_p9 }
  0x9e   : > { %p9818_p8 = pneg %p9817_p6 }
  0xa0   : > { %p9825_p12 = pnand %p9824_p11, %p9818_p8 }
  0xa2   : > { %9828 = shalt.err (!%p9825_p12)
}
  0xa3   : > { %9586 = dma.hbm_to_vmem [thread:$0]  (!%p9958_p5), %s14515_s10, 16, %s383_s16, [#allocation16]  }
  0xa4   : > { %p14532_p2 = scmp.ne.s32.totalorder %s14529_s21, 0 }
  0xa6   : > { %403 = sbr.rel (%p14532_p2) target bundleno = 3415 (0xd57), region = 64 }
  0xad   : > { %p14533_p3 = scmp.eq.s32.totalorder %s9941_s20, 0 }
  0xaf   : > { %9834 = dma.done.wait (%p14533_p3), [#allocation8], 16   ;;  %p14534_p7 = pmov %p14533_p3 }
  0xb0   : > { %p14535_p13 = pmov %p14533_p3 }
  0xb1   : > { %9836 = vsyncadd (%p14534_p7), [#allocation8], 4294967280 }
  0xb2   : > { %9838 = dma.done.wait (%p14535_p13), [#allocation10], 1168   ;;  %p14536_p0 = pmov %p14533_p3 }
  0xb4   : > { %9840 = vsyncadd (%p14536_p0), [#allocation10], 4294966128  ;;  %p14537_p1 = pmov %p14536_p0 }
  0xb5   : > { %p14538_p5 = pmov %p14536_p0 }
  0xb6   : > { %9842 = dma.done.wait (%p14537_p1), [#allocation13], 144  }
  0xb7   : > { %9844 = vsyncadd (%p14538_p5), [#allocation13], 4294967152  ;;  %p14539_p4 = pmov %p14536_p0 }
  0xb8   : > { %p14540_p6 = pmov %p14536_p0 }
  0xb9   : > { %9846 = dma.done.wait (%p14539_p4), [#allocation16], 32  }
  0xba   : > { %9848 = vsyncadd (%p14540_p6), [#allocation16], 4294967264  ;;  %vm477_vm0 = vcmask 64512   ;;  %vm479_vm1 = vcmask 58368   ;;  %v9862_v0 = vmov 0.0   ;;  %p467_p8 = scmp.lt.s32.totalorder %s9941_s20, 1 }
  0xbb   : > { %478 = vst.msk [vmem:[#allocation2] sm:$0xff] %vm477_vm0, %v9862_v0  ;;  %481 = vst.msk [vmem:[#allocation2 + $0x10] sm:$0xff] %vm477_vm0, %v9862_v0  ;;  %vm499_vm2 = vcmask 31744   ;;  %s9863_s28 = smov 4   ;;  %s9864_s26 = smov 8   ;;  %v572_v24 = vld [vmem:[%s14506_s1] sm:$0xff] }
  0xbc   : > { %480 = vst.msk [vmem:[#allocation2 + $0x8] sm:$0x3] %vm479_vm1, %v9862_v0  ;;  %484 = vst.msk [vmem:[#allocation2 + $0x28] sm:$0x3] %vm479_vm1, %v9862_v0  ;;  %s14761_s20 = smov (!%p467_p8, %s9941_s20), 1  ;;  %s9865_s16 = smov 12  }
  0xbd   : > { %486 = vst.msk [vmem:[#allocation2 + $0x38] sm:$0x3] %vm479_vm1, %v9862_v0  ;;  %488 = vst.msk [vmem:[#allocation2 + $0x48] sm:$0x3] %vm479_vm1, %v9862_v0  ;;  %s8800_s21 = sshll.u32 %s14761_s20, 6  ;;  %s9866_s23 = smov 16  }
  0xbe   : > { %490 = vst.msk [vmem:[#allocation2 + $0x58] sm:$0x3] %vm479_vm1, %v9862_v0  ;;  %492 = vst.msk [vmem:[#allocation2 + $0x68] sm:$0x3] %vm479_vm1, %v9862_v0  ;;  %s471_s14 = scalar_lea.vmem %s14505_s0, %s8800_s21  ;;  %s9867_s18 = smov 20   ;;  %v573_v25 = vld [vmem:[%s14506_s1 + $0x8] sm:$0xff] }
  0xbf   : > { %494 = vst.msk [vmem:[#allocation2 + $0x78] sm:$0x3] %vm479_vm1, %v9862_v0  ;;  %482 = vst.msk [vmem:[#allocation2 + $0x18] sm:$0x3] %vm479_vm1, %v9862_v0  ;;  %v555_v1 = vld [vmem:[%s471_s14] sm:$0xff]  ;;  %v556_v2 = vld [vmem:[%s471_s14 + $0x8] sm:$0xff]  ;;  %v9449_v26 = vpack.c.bf16 %v573_v25, %v572_v24 }
  0xc0   : > { %483 = vst.msk [vmem:[#allocation2 + $0x20] sm:$0xff] %vm477_vm0, %v9862_v0  ;;  %485 = vst.msk [vmem:[#allocation2 + $0x30] sm:$0xff] %vm477_vm0, %v9862_v0  ;;  %v557_v3 = vld [vmem:[%s471_s14 + $0x10] sm:$0xff]  ;;  %v558_v6 = vld [vmem:[%s471_s14 + $0x18] sm:$0xff]  ;;  %s9868_s19 = smov 24   ;;  %s9869_s17 = smov 28  }
  0xc1   : > { %487 = vst.msk [vmem:[#allocation2 + $0x40] sm:$0xff] %vm477_vm0, %v9862_v0  ;;  %489 = vst.msk [vmem:[#allocation2 + $0x50] sm:$0xff] %vm477_vm0, %v9862_v0  ;;  %v559_v7 = vld [vmem:[%s471_s14 + $0x20] sm:$0xff]  ;;  %v560_v8 = vld [vmem:[%s471_s14 + $0x28] sm:$0xff]  ;;  %9450 = vmatprep.subr.bf16.mxu0 %v9449_v26  ;;  %vm1026_vm3 = vcmask 1043456   ;;  %vm634_vm4 = vcmask 64544  }
  0xc2   : > { %491 = vst.msk [vmem:[#allocation2 + $0x60] sm:$0xff] %vm477_vm0, %v9862_v0  ;;  %493 = vst.msk [vmem:[#allocation2 + $0x70] sm:$0xff] %vm477_vm0, %v9862_v0  ;;  %v10267_v9 = vld [vmem:[#allocation2] sm:$0xff]  ;;  %v561_v10 = vld [vmem:[%s471_s14 + $0x30] sm:$0xff]  ;;  %9452 = vmatpush3.bf16.msra.mxu0 %v9449_v26  ;;  %vm683_vm5 = vcmask 97344   ;;  %vm732_vm6 = vcmask 130144  }
  0xc3   : > { %495 = vst.msk [vmem:[#allocation2 + $0x80] sm:$0xff] %vm477_vm0, %v9862_v0  ;;  %497 = vst.msk [vmem:[#allocation2 + $0x90] sm:$0xff] %vm477_vm0, %v9862_v0  ;;  %v10255_v4 = vld [vmem:[#allocation2 + $0x1] sm:$0xff]  ;;  %v562_v11 = vld [vmem:[%s471_s14 + $0x38] sm:$0xff]  ;;  %s9870_s14 = smov 32   ;;  %vm781_vm7 = vcmask 162944  }
  0xc4   : > { %496 = vst.msk [vmem:[#allocation2 + $0x88] sm:$0x3] %vm479_vm1, %v9862_v0  ;;  %498 = vst.msk [vmem:[#allocation2 + $0x98] sm:$0x3] %vm479_vm1, %v9862_v0  ;;  %v10258_v5 = vld [vmem:[#allocation2 + $0x2] sm:$0xff]  ;;  %610 = vrot.lane.b32.xlu0 %v10255_v4, %s9863_s28  ;;  %v574_v28 = vld [vmem:[%s14506_s1 + $0x10] sm:$0xff] }
  0xc5   : > { %500 = vst.msk [vmem:[#allocation4] sm:$0xff] %vm499_vm2, %v9862_v0  ;;  %501 = vst.msk [vmem:[#allocation4 + $0x8] sm:$0xff] %vm499_vm2, %v9862_v0  ;;  %659 = vrot.lane.b32.xlu1 %v10258_v5, %s9864_s26  ;;  %v575_v29 = vld [vmem:[%s14506_s1 + $0x18] sm:$0xff]  ;;  %v576_v31 = vld [vmem:[%s14506_s1 + $0x20] sm:$0xf]  ;;  %vm830_vm8 = vcmask 195744  }
  0xc6   : > { %504 = vst.msk [vmem:[#allocation4 + $0x18] sm:$0xff] %vm499_vm2, %v9862_v0  ;;  %505 = vst.msk [vmem:[#allocation4 + $0x20] sm:$0xff] %vm499_vm2, %v9862_v0  ;;  %v9453_v30 = vpack.c.bf16 %v575_v29, %v574_v28  ;;  %vm880_vm9 = vcmask 228544   ;;  %vm929_vm10 = vcmask 261344   ;;  %vm978_vm11 = vcmask 294144   ;;  %s9872_s25 = smov 56  }
  0xc7   : > { %507 = vst.msk [vmem:[#allocation4 + $0x30] sm:$0xff] %vm499_vm2, %v9862_v0  ;;  %508 = vst.msk [vmem:[#allocation4 + $0x38] sm:$0xff] %vm499_vm2, %v9862_v0  ;;  %vm1001_vm12 = vcmask 293888   ;;  %vm1217_vm13 = vcmask 130112   ;;  %vm1266_vm14 = vcmask 195712   ;;  %s9873_s27 = smov 40  }
  0xc8   : > { %510 = vst.msk [vmem:[#allocation4 + $0x48] sm:$0xff] %vm499_vm2, %v9862_v0  ;;  %511 = vst.msk [vmem:[#allocation4 + $0x50] sm:$0xff] %vm499_vm2, %v9862_v0  ;;  %9454 = vmatprep.subr.bf16.mxu0 %v9453_v30  ;;  %s9874_s29 = smov 64   ;;  %vm1315_vm15 = vcmask 261312   ;;  %vm1364_vm1 = vcmask 326912  }
  0xc9   : > { %513 = vst.msk [vmem:[#allocation4 + $0x60] sm:$0xff] %vm499_vm2, %v9862_v0  ;;  %514 = vst.msk [vmem:[#allocation4 + $0x68] sm:$0xff] %vm499_vm2, %v9862_v0  ;;  %9456 = vmatpush3.bf16.msra.mxu0 %v9453_v30 }
  0xca   : > { %516 = vst.msk [vmem:[#allocation4 + $0x78] sm:$0xff] %vm499_vm2, %v9862_v0  ;;  %517 = vst.msk [vmem:[#allocation4 + $0x80] sm:$0xff] %vm499_vm2, %v9862_v0  ;;  %9059 = vmatprep.subr.msk.mxu0 %vm1026_vm3, %v576_v31  ;;  %v10370_v45 = vld [vmem:[#allocation2 + $0x90] sm:$0xff] }
  0xcb   : > { %519 = vst.msk [vmem:[#allocation4 + $0x90] sm:$0xff] %vm499_vm2, %v9862_v0  ;;  %520 = vst.msk [vmem:[#allocation4 + $0x98] sm:$0xff] %vm499_vm2, %v9862_v0  ;;  %v10375_v46 = vld [vmem:[#allocation2 + $0x91] sm:$0xff] }
  0xcc   : > { %522 = vst.msk [vmem:[#allocation4 + $0xa8] sm:$0xff] %vm499_vm2, %v9862_v0  ;;  %523 = vst.msk [vmem:[#allocation4 + $0xb0] sm:$0xff] %vm499_vm2, %v9862_v0  ;;  %v10382_v49 = vld [vmem:[#allocation2 + $0x92] sm:$0xff] }
  0xcd   : > { %525 = vst.msk [vmem:[#allocation4 + $0xc0] sm:$0xff] %vm499_vm2, %v9862_v0  ;;  %526 = vst.msk [vmem:[#allocation4 + $0xc8] sm:$0xff] %vm499_vm2, %v9862_v0  ;;  %9060 = vmatpush3.msk.msra.mxu0 %vm1026_vm3, %v576_v31  ;;  %vm1413_vm3 = vcmask 392512  }
  0xce   : > { %528 = vst.msk [vmem:[#allocation4 + $0xd8] sm:$0xff] %vm499_vm2, %v9862_v0  ;;  %529 = vst.msk [vmem:[#allocation4 + $0xe0] sm:$0xff] %vm499_vm2, %v9862_v0 }
  0xcf   : > { %531 = vst.msk [vmem:[#allocation4 + $0xf0] sm:$0xff] %vm499_vm2, %v9862_v0  ;;  %532 = vst.msk [vmem:[#allocation4 + $0xf8] sm:$0xff] %vm499_vm2, %v9862_v0 }
  0xd0   : > { %534 = vst.msk [vmem:[#allocation4 + $0x108] sm:$0xff] %vm499_vm2, %v9862_v0  ;;  %535 = vst.msk [vmem:[#allocation4 + $0x110] sm:$0xff] %vm499_vm2, %v9862_v0 }
  0xd1   : > { %537 = vst.msk [vmem:[#allocation4 + $0x120] sm:$0xff] %vm499_vm2, %v9862_v0  ;;  %538 = vst.msk [vmem:[#allocation4 + $0x128] sm:$0xff] %vm499_vm2, %v9862_v0 }
  0xd2   : > { %540 = vst.msk [vmem:[#allocation4 + $0x138] sm:$0xff] %vm499_vm2, %v9862_v0  ;;  %541 = vst.msk [vmem:[#allocation4 + $0x140] sm:$0xff] %vm499_vm2, %v9862_v0 }
  0xd3   : > { %543 = vst.msk [vmem:[#allocation4 + $0x150] sm:$0xff] %vm499_vm2, %v9862_v0  ;;  %544 = vst.msk [vmem:[#allocation4 + $0x158] sm:$0xff] %vm499_vm2, %v9862_v0 }
  0xd4   : > { %546 = vst.msk [vmem:[#allocation4 + $0x168] sm:$0xff] %vm499_vm2, %v9862_v0  ;;  %547 = vst.msk [vmem:[#allocation4 + $0x170] sm:$0xff] %vm499_vm2, %v9862_v0 }
  0xd5   : > { %549 = vst.msk [vmem:[#allocation4 + $0x180] sm:$0xff] %vm499_vm2, %v9862_v0  ;;  %550 = vst.msk [vmem:[#allocation4 + $0x188] sm:$0xff] %vm499_vm2, %v9862_v0 }
  0xd6   : > { %552 = vst.msk [vmem:[#allocation4 + $0x198] sm:$0xff] %vm499_vm2, %v9862_v0  ;;  %553 = vst.msk [vmem:[#allocation4 + $0x1a0] sm:$0xff] %vm499_vm2, %v9862_v0 }
  0xd7   : > { %564 = vst.msk [vmem:[#allocation2 + $0x11] sm:$0xff] %vm499_vm2, %v555_v1  ;;  %565 = vst.msk [vmem:[#allocation2 + $0x21] sm:$0xff] %vm499_vm2, %v556_v2 }
  0xd8   : > { %566 = vst.msk [vmem:[#allocation2 + $0x31] sm:$0xff] %vm499_vm2, %v557_v3  ;;  %567 = vst.msk [vmem:[#allocation2 + $0x41] sm:$0xff] %vm499_vm2, %v558_v6 }
  0xd9   : > { %568 = vst.msk [vmem:[#allocation2 + $0x51] sm:$0xff] %vm499_vm2, %v559_v7  ;;  %569 = vst.msk [vmem:[#allocation2 + $0x61] sm:$0xff] %vm499_vm2, %v560_v8 }
  0xda   : > { %586 = vst.msk [vmem:[#allocation3] sm:$0xff] %vm499_vm2, %v10267_v9  ;;  %570 = vst.msk [vmem:[#allocation2 + $0x71] sm:$0xff] %vm499_vm2, %v561_v10 }
  0xdb   : > { %571 = vst.msk [vmem:[#allocation2 + $0x81] sm:$0xff] %vm499_vm2, %v562_v11 }
  0xde   : > { %v595_v12 = vld [vmem:[#allocation2 + $0x11] sm:$0xff]  ;;  %v693_v15 = vld [vmem:[#allocation2 + $0x20] sm:$0xff] }
  0xdf   : > { %v692_v13 = vld [vmem:[#allocation2 + $0x10] sm:$0xff]  ;;  %612 = vrot.lane.b32.xlu0 %v595_v12, %s9863_s28  ;;  %588 = vst.msk [vmem:[#allocation3 + $0x10] sm:$0xff] %vm499_vm2, %v693_v15  ;;  %v695_v17 = vld [vmem:[#allocation2 + $0x40] sm:$0xff] }
  0xe0   : > { %v644_v14 = vld [vmem:[#allocation2 + $0x12] sm:$0xff]  ;;  %587 = vst.msk [vmem:[#allocation3 + $0x8] sm:$0xff] %vm499_vm2, %v692_v13  ;;  %590 = vst.msk [vmem:[#allocation3 + $0x20] sm:$0xff] %vm499_vm2, %v695_v17  ;;  %v10285_v19 = vld [vmem:[#allocation2 + $0x60] sm:$0xff] }
  0xe1   : > { %661 = vrot.lane.b32.xlu1 %v644_v14, %s9864_s26  ;;  %v841_v16 = vld [vmem:[#allocation2 + $0x30] sm:$0xff]  ;;  %v742_v20 = vld [vmem:[#allocation2 + $0x21] sm:$0xff]  ;;  %592 = vst.msk [vmem:[#allocation3 + $0x30] sm:$0xff] %vm499_vm2, %v10285_v19 }
  0xe2   : > { %589 = vst.msk [vmem:[#allocation3 + $0x18] sm:$0xff] %vm499_vm2, %v841_v16  ;;  %v10280_v18 = vld [vmem:[#allocation2 + $0x50] sm:$0xff]  ;;  %v791_v22 = vld [vmem:[#allocation2 + $0x22] sm:$0xff] }
  0xe3   : > { %708 = vrot.lane.b32.xlu0 %v692_v13, %s9865_s16  ;;  %591 = vst.msk [vmem:[#allocation3 + $0x28] sm:$0xff] %vm499_vm2, %v10280_v18  ;;  %v10289_v21 = vld [vmem:[#allocation2 + $0x70] sm:$0xff]  ;;  %v744_v32 = vld [vmem:[#allocation2 + $0x41] sm:$0xff] }
  0xe4   : > { %593 = vst.msk [vmem:[#allocation3 + $0x38] sm:$0xff] %vm499_vm2, %v10289_v21  ;;  %v597_v23 = vld [vmem:[#allocation2 + $0x31] sm:$0xff]  ;;  %v793_v33 = vld [vmem:[#allocation2 + $0x42] sm:$0xff] }
  0xe5   : > { %710 = vrot.lane.b32.xlu1 %v693_v15, %s9865_s16  ;;  %v646_v27 = vld [vmem:[#allocation2 + $0x32] sm:$0xff]  ;;  %v746_v36 = vld [vmem:[#allocation2 + $0x61] sm:$0xff] }
  0xe6   : > { %v599_v34 = vld [vmem:[#allocation2 + $0x51] sm:$0xff]  ;;  %v795_v37 = vld [vmem:[#allocation2 + $0x62] sm:$0xff] }
  0xe7   : > { %757 = vrot.lane.b32.xlu0 %v595_v12, %s9866_s23  ;;  %v648_v35 = vld [vmem:[#allocation2 + $0x52] sm:$0xff]  ;;  %v699_v40 = vld [vmem:[#allocation2 + $0x80] sm:$0xff] }
  0xe8   : > { %v894_v38 = vld [vmem:[#allocation2 + $0x71] sm:$0xff]  ;;  %v748_v41 = vld [vmem:[#allocation2 + $0x81] sm:$0xff] }
  0xe9   : > { %759 = vrot.lane.b32.xlu1 %v742_v20, %s9866_s23  ;;  %v943_v39 = vld [vmem:[#allocation2 + $0x72] sm:$0xff]  ;;  %v797_v42 = vld [vmem:[#allocation2 + $0x82] sm:$0xff] }
  0xeb   : > { %806 = vrot.lane.b32.xlu0 %v644_v14, %s9867_s18 }
  0xed   : > { %614 = vrot.lane.b32.xlu1 %v742_v20, %s9863_s28 }
  0xef   : > { %808 = vrot.lane.b32.xlu0 %v791_v22, %s9867_s18 }
  0xf1   : > { %856 = vrot.lane.b32.xlu1 %v693_v15, %s9868_s19 }
  0xf3   : > { %616 = vrot.lane.b32.xlu0 %v597_v23, %s9863_s28 }
  0xf5   : > { %663 = vrot.lane.b32.xlu1 %v791_v22, %s9864_s26 }
  0xf7   : > { %858 = vrot.lane.b32.xlu0 %v841_v16, %s9868_s19 }
  0xf9   : > { %905 = vrot.lane.b32.xlu1 %v742_v20, %s9869_s17 }
  0xfb   : > { %665 = vrot.lane.b32.xlu0 %v646_v27, %s9864_s26 }
  0xfd   : > { %712 = vrot.lane.b32.xlu1 %v841_v16, %s9865_s16 }
  0xff   : > { %907 = vrot.lane.b32.xlu0 %v597_v23, %s9869_s17 }
 0x101   : > { %954 = vrot.lane.b32.xlu1 %v791_v22, %s9870_s14 }
 0x103   : > { %714 = vrot.lane.b32.xlu0 %v695_v17, %s9865_s16 }
 0x105   : > { %761 = vrot.lane.b32.xlu1 %v597_v23, %s9866_s23 }
 0x107   : > { %956 = vrot.lane.b32.xlu0 %v646_v27, %s9870_s14 }
 0x109   : > { %763 = vrot.lane.b32.xlu1 %v744_v32, %s9866_s23 }
 0x10b   : > { %810 = vrot.lane.b32.xlu0 %v646_v27, %s9867_s18 }
 0x10d   : > { %618 = vrot.lane.b32.xlu1 %v744_v32, %s9863_s28 }
 0x10f   : > { %812 = vrot.lane.b32.xlu0 %v793_v33, %s9867_s18 }
 0x111   : > { %860 = vrot.lane.b32.xlu1 %v695_v17, %s9868_s19 }
 0x113   : > { %620 = vrot.lane.b32.xlu0 %v599_v34, %s9863_s28 }
 0x115   : > { %667 = vrot.lane.b32.xlu1 %v793_v33, %s9864_s26 }
 0x117   : > { %862 = vrot.lane.b32.xlu0 %v10280_v18, %s9868_s19 }
 0x119   : > { %909 = vrot.lane.b32.xlu1 %v744_v32, %s9869_s17 }
 0x11b   : > { %669 = vrot.lane.b32.xlu0 %v648_v35, %s9864_s26 }
 0x11d   : > { %716 = vrot.lane.b32.xlu1 %v10280_v18, %s9865_s16 }
 0x11f   : > { %911 = vrot.lane.b32.xlu0 %v599_v34, %s9869_s17 }
 0x121   : > { %958 = vrot.lane.b32.xlu1 %v793_v33, %s9870_s14 }
 0x123   : > { %718 = vrot.lane.b32.xlu0 %v10285_v19, %s9865_s16 }
 0x125   : > { %765 = vrot.lane.b32.xlu1 %v599_v34, %s9866_s23 }
 0x127   : > { %960 = vrot.lane.b32.xlu0 %v648_v35, %s9870_s14 }
 0x129   : > { %767 = vrot.lane.b32.xlu1 %v746_v36, %s9866_s23 }
 0x12b   : > { %814 = vrot.lane.b32.xlu0 %v648_v35, %s9867_s18 }
 0x12d   : > { %816 = vrot.lane.b32.xlu1 %v795_v37, %s9867_s18 }
 0x12f   : > { %864 = vrot.lane.b32.xlu0 %v10285_v19, %s9868_s19 }
 0x131   : > { %866 = vrot.lane.b32.xlu1 %v10289_v21, %s9868_s19 }
 0x133   : > { %913 = vrot.lane.b32.xlu0 %v746_v36, %s9869_s17 }
 0x135   : > { %915 = vrot.lane.b32.xlu1 %v894_v38, %s9869_s17 }
 0x136   : > { %v611_v43 = vpop.permute.xlu0 %610 }
 0x137   : > { %962 = vrot.lane.b32.xlu0 %v795_v37, %s9870_s14  ;;  %v660_v44 = vpop.permute.xlu1 %659  ;;  %635 = vst.msk [vmem:[#allocation3] sm:$0xff] %vm634_vm4, %v611_v43 }
 0x138   : > { %684 = vst.msk [vmem:[#allocation3] sm:$0xff] %vm683_vm5, %v660_v44 }
 0x139   : > { %622 = vrot.lane.b32.xlu1 %v746_v36, %s9863_s28 }
 0x13b   : > { %964 = vrot.lane.b32.xlu0 %v943_v39, %s9870_s14 }
 0x13d   : > { %624 = vrot.lane.b32.xlu1 %v894_v38, %s9863_s28 }
 0x13f   : > { %671 = vrot.lane.b32.xlu0 %v795_v37, %s9864_s26 }
 0x141   : > { %673 = vrot.lane.b32.xlu1 %v943_v39, %s9864_s26 }
 0x143   : > { %720 = vrot.lane.b32.xlu0 %v10289_v21, %s9865_s16 }
 0x145   : > { %722 = vrot.lane.b32.xlu1 %v699_v40, %s9865_s16 }
 0x147   : > { %769 = vrot.lane.b32.xlu0 %v894_v38, %s9866_s23 }
 0x149   : > { %771 = vrot.lane.b32.xlu1 %v748_v41, %s9866_s23 }
 0x14b   : > { %818 = vrot.lane.b32.xlu0 %v943_v39, %s9867_s18 }
 0x14d   : > { %820 = vrot.lane.b32.xlu1 %v797_v42, %s9867_s18  ;;  %s9871_s18 = smov 48  }
 0x14f   : > { %868 = vrot.lane.b32.xlu0 %v699_v40, %s9868_s19 }
 0x151   : > { %870 = vrot.lane.b32.xlu1 %v10370_v45, %s9868_s19  ;;  %v613_v47 = vpop.permute.xlu0 %612 }
 0x152   : > { %636 = vst.msk [vmem:[#allocation3 + $0x8] sm:$0xff] %vm634_vm4, %v613_v47 }
 0x153   : > { %v662_v48 = vpop.permute.xlu1 %661  ;;  %917 = vrot.lane.b32.xlu0 %v748_v41, %s9869_s17 }
 0x154   : > { %685 = vst.msk [vmem:[#allocation3 + $0x8] sm:$0xff] %vm683_vm5, %v662_v48 }
 0x155   : > { %919 = vrot.lane.b32.xlu1 %v10375_v46, %s9869_s17  ;;  %v709_v50 = vpop.permute.xlu0 %708 }
 0x156   : > { %733 = vst.msk [vmem:[#allocation3] sm:$0xff] %vm732_vm6, %v709_v50 }
 0x157   : > { %v711_v51 = vpop.permute.xlu1 %710  ;;  %966 = vrot.lane.b32.xlu0 %v797_v42, %s9870_s14 }
 0x158   : > { %734 = vst.msk [vmem:[#allocation3 + $0x8] sm:$0xff] %vm732_vm6, %v711_v51 }
 0x159   : > { %968 = vrot.lane.b32.xlu1 %v10382_v49, %s9870_s14  ;;  %v758_v52 = vpop.permute.xlu0 %757 }
 0x15a   : > { %782 = vst.msk [vmem:[#allocation3] sm:$0xff] %vm781_vm7, %v758_v52 }
 0x15b   : > { %v760_v53 = vpop.permute.xlu1 %759  ;;  %1193 = vrot.lane.b32.xlu0 %v10255_v4, %s9864_s26 }
 0x15c   : > { %783 = vst.msk [vmem:[#allocation3 + $0x8] sm:$0xff] %vm781_vm7, %v760_v53 }
 0x15d   : > { %v807_v54 = vpop.permute.xlu0 %806  ;;  %1452 = vrot.lane.b32.xlu1 %v10370_v45, %s9871_s18 }
 0x15e   : > { %831 = vst.msk [vmem:[#allocation3] sm:$0xff] %vm830_vm8, %v807_v54 }
 0x15f   : > { %v615_v55 = vpop.permute.xlu1 %614  ;;  %1242 = vrot.lane.b32.xlu0 %v10258_v5, %s9866_s23 }
 0x160   : > { %637 = vst.msk [vmem:[#allocation3 + $0x10] sm:$0xff] %vm634_vm4, %v615_v55 }
 0x161   : > { %v809_v56 = vpop.permute.xlu0 %808  ;;  %1501 = vrot.lane.b32.xlu1 %v10375_v46, %s9872_s25 }
 0x162   : > { %832 = vst.msk [vmem:[#allocation3 + $0x8] sm:$0xff] %vm830_vm8, %v809_v56 }
 0x163   : > { %v857_v57 = vpop.permute.xlu1 %856 }
 0x164   : > { %881 = vst.msk [vmem:[#allocation3] sm:$0xff] %vm880_vm9, %v857_v57 }
 0x165   : > { %v617_v58 = vpop.permute.xlu0 %616 }
 0x166   : > { %638 = vst.msk [vmem:[#allocation3 + $0x18] sm:$0xff] %vm634_vm4, %v617_v58 }
 0x167   : > { %v664_v59 = vpop.permute.xlu1 %663 }
 0x168   : > { %686 = vst.msk [vmem:[#allocation3 + $0x10] sm:$0xff] %vm683_vm5, %v664_v59 }
 0x169   : > { %v859_v60 = vpop.permute.xlu0 %858 }
 0x16a   : > { %882 = vst.msk [vmem:[#allocation3 + $0x8] sm:$0xff] %vm880_vm9, %v859_v60 }
 0x16b   : > { %v906_v61 = vpop.permute.xlu1 %905 }
 0x16c   : > { %930 = vst.msk [vmem:[#allocation3] sm:$0xff] %vm929_vm10, %v906_v61  ;;  %v10467_v61 = vld [vmem:[#allocation7] ss:$0 sm:$0xff] }
 0x16d   : > { %v666_v62 = vpop.permute.xlu0 %665 }
 0x16e   : > { %687 = vst.msk [vmem:[#allocation3 + $0x18] sm:$0xff] %vm683_vm5, %v666_v62 }
 0x16f   : > { %v713_v63 = vpop.permute.xlu1 %712 }
 0x170   : > { %735 = vst.msk [vmem:[#allocation3 + $0x10] sm:$0xff] %vm732_vm6, %v713_v63 }
 0x171   : > { %v908_v1 = vpop.permute.xlu0 %907 }
 0x172   : > { %931 = vst.msk [vmem:[#allocation3 + $0x8] sm:$0xff] %vm929_vm10, %v908_v1 }
 0x173   : > { %v955_v2 = vpop.permute.xlu1 %954 }
 0x174   : > { %979 = vst.msk [vmem:[#allocation3] sm:$0xff] %vm978_vm11, %v955_v2 }
 0x175   : > { %v715_v3 = vpop.permute.xlu0 %714 }
 0x176   : > { %736 = vst.msk [vmem:[#allocation3 + $0x18] sm:$0xff] %vm732_vm6, %v715_v3 }
 0x177   : > { %v762_v4 = vpop.permute.xlu1 %761 }
 0x178   : > { %784 = vst.msk [vmem:[#allocation3 + $0x10] sm:$0xff] %vm781_vm7, %v762_v4 }
 0x179   : > { %v957_v5 = vpop.permute.xlu0 %956 }
 0x17a   : > { %980 = vst.msk [vmem:[#allocation3 + $0x8] sm:$0xff] %vm978_vm11, %v957_v5 }
 0x17b   : > { %v764_v6 = vpop.permute.xlu1 %763  ;;  %v987_v7 = vld [vmem:[#allocation3] sm:$0xff] }
 0x17c   : > { %785 = vst.msk [vmem:[#allocation3 + $0x18] sm:$0xff] %vm781_vm7, %v764_v6  ;;  %9061 = vmatprep.mubr.msk.f32.mxu0 %vm1001_vm12, %v987_v7 }
 0x17d   : > { %1169 = vst.msk [vmem:[#allocation3] sm:$0xff] %vm477_vm0, %v10267_v9  ;;  %v811_v8 = vpop.permute.xlu0 %810 }
 0x17e   : > { %833 = vst.msk [vmem:[#allocation3 + $0x10] sm:$0xff] %vm830_vm8, %v811_v8 }
 0x17f   : > { %v619_v10 = vpop.permute.xlu1 %618 }
 0x180   : > { %639 = vst.msk [vmem:[#allocation3 + $0x20] sm:$0xff] %vm634_vm4, %v619_v10 }
 0x181   : > { %v813_v11 = vpop.permute.xlu0 %812  ;;  %v988_v12 = vld [vmem:[#allocation3 + $0x8] sm:$0xff] }
 0x182   : > { %834 = vst.msk [vmem:[#allocation3 + $0x18] sm:$0xff] %vm830_vm8, %v813_v11  ;;  %9062 = vmatmul.mubr.msk.f32.vlgmr.msra.gmra.mrb[0].mxu0 %vm1001_vm12, %v988_v12 }
 0x183   : > { %v861_v13 = vpop.permute.xlu1 %860 }
 0x184   : > { %883 = vst.msk [vmem:[#allocation3 + $0x10] sm:$0xff] %vm880_vm9, %v861_v13 }
 0x185   : > { %v621_v14 = vpop.permute.xlu0 %620 }
 0x186   : > { %640 = vst.msk [vmem:[#allocation3 + $0x28] sm:$0xff] %vm634_vm4, %v621_v14 }
 0x187   : > { %v668_v15 = vpop.permute.xlu1 %667 }
 0x188   : > { %688 = vst.msk [vmem:[#allocation3 + $0x20] sm:$0xff] %vm683_vm5, %v668_v15 }
 0x189   : > { %v863_v16 = vpop.permute.xlu0 %862 }
 0x18a   : > { %884 = vst.msk [vmem:[#allocation3 + $0x18] sm:$0xff] %vm880_vm9, %v863_v16 }
 0x18b   : > { %v910_v17 = vpop.permute.xlu1 %909 }
 0x18c   : > { %932 = vst.msk [vmem:[#allocation3 + $0x10] sm:$0xff] %vm929_vm10, %v910_v17 }
 0x18d   : > { %v670_v18 = vpop.permute.xlu0 %669 }
 0x18e   : > { %689 = vst.msk [vmem:[#allocation3 + $0x28] sm:$0xff] %vm683_vm5, %v670_v18 }
 0x18f   : > { %v717_v19 = vpop.permute.xlu1 %716 }
 0x190   : > { %737 = vst.msk [vmem:[#allocation3 + $0x20] sm:$0xff] %vm732_vm6, %v717_v19 }
 0x191   : > { %v912_v20 = vpop.permute.xlu0 %911 }
 0x192   : > { %933 = vst.msk [vmem:[#allocation3 + $0x18] sm:$0xff] %vm929_vm10, %v912_v20 }
 0x193   : > { %v959_v21 = vpop.permute.xlu1 %958 }
 0x194   : > { %981 = vst.msk [vmem:[#allocation3 + $0x10] sm:$0xff] %vm978_vm11, %v959_v21 }
 0x195   : > { %v719_v22 = vpop.permute.xlu0 %718 }
 0x196   : > { %738 = vst.msk [vmem:[#allocation3 + $0x28] sm:$0xff] %vm732_vm6, %v719_v22 }
 0x197   : > { %v766_v23 = vpop.permute.xlu1 %765 }
 0x198   : > { %786 = vst.msk [vmem:[#allocation3 + $0x20] sm:$0xff] %vm781_vm7, %v766_v23 }
 0x199   : > { %v961_v24 = vpop.permute.xlu0 %960 }
 0x19a   : > { %982 = vst.msk [vmem:[#allocation3 + $0x18] sm:$0xff] %vm978_vm11, %v961_v24 }
 0x19b   : > { %v768_v25 = vpop.permute.xlu1 %767  ;;  %v989_v26 = vld [vmem:[#allocation3 + $0x10] sm:$0xff] }
 0x19c   : > { %787 = vst.msk [vmem:[#allocation3 + $0x28] sm:$0xff] %vm781_vm7, %v768_v25  ;;  %9064 = vmatprep.mubr.msk.f32.mxu0 %vm1001_vm12, %v989_v26  ;;  %v1151_v26 = vld [vmem:[#allocation9] sm:$0xff] }
 0x19d   : > { %v815_v27 = vpop.permute.xlu0 %814 }
 0x19e   : > { %835 = vst.msk [vmem:[#allocation3 + $0x20] sm:$0xff] %vm830_vm8, %v815_v27  ;;  %v1152_v27 = vld [vmem:[#allocation9 + $0x8] sm:$0xff] }
 0x19f   : > { %v817_v28 = vpop.permute.xlu1 %816 }
 0x1a0   : > { %836 = vst.msk [vmem:[#allocation3 + $0x28] sm:$0xff] %vm830_vm8, %v817_v28 }
 0x1a1   : > { %v865_v29 = vpop.permute.xlu0 %864  ;;  %v990_v30 = vld [vmem:[#allocation3 + $0x18] sm:$0xff] }
 0x1a2   : > { %885 = vst.msk [vmem:[#allocation3 + $0x20] sm:$0xff] %vm880_vm9, %v865_v29  ;;  %9065 = vmatmul.mubr.msk.f32.gmra.mrb[2].mxu0 %vm1001_vm12, %v990_v30  ;;  %v10523_v29 = vpack.c.bf16 %v1152_v27, %v1151_v26  ;;  %v1153_v30 = vld [vmem:[#allocation9 + $0x10] sm:$0xff] }
 0x1a3   : > { %v867_v31 = vpop.permute.xlu1 %866 }
 0x1a4   : > { %886 = vst.msk [vmem:[#allocation3 + $0x28] sm:$0xff] %vm880_vm9, %v867_v31  ;;  %9458 = vmatprep.subr.bf16.mxu1 %v10523_v29  ;;  %v1154_v31 = vld [vmem:[#allocation9 + $0x18] sm:$0xff] }
 0x1a5   : > { %v914_v32 = vpop.permute.xlu0 %913  ;;  %9460 = vmatpush3.bf16.msra.mxu1 %v10523_v29 }
 0x1a6   : > { %934 = vst.msk [vmem:[#allocation3 + $0x20] sm:$0xff] %vm929_vm10, %v914_v32 }
 0x1a7   : > { %v916_v33 = vpop.permute.xlu1 %915 }
 0x1a8   : > { %935 = vst.msk [vmem:[#allocation3 + $0x28] sm:$0xff] %vm929_vm10, %v916_v33  ;;  %v10529_v33 = vpack.c.bf16 %v1154_v31, %v1153_v30 }
 0x1a9   : > { %v963_v34 = vpop.permute.xlu0 %962 }
 0x1aa   : > { %983 = vst.msk [vmem:[#allocation3 + $0x20] sm:$0xff] %vm978_vm11, %v963_v34  ;;  %9462 = vmatprep.subr.bf16.mxu1 %v10529_v33 }
 0x1ab   : > { %v623_v35 = vpop.permute.xlu1 %622  ;;  %9464 = vmatpush3.bf16.msra.mxu1 %v10529_v33 }
 0x1ac   : > { %641 = vst.msk [vmem:[#allocation3 + $0x30] sm:$0xff] %vm634_vm4, %v623_v35 }
 0x1ad   : > { %v965_v36 = vpop.permute.xlu0 %964 }
 0x1ae   : > { %984 = vst.msk [vmem:[#allocation3 + $0x28] sm:$0xff] %vm978_vm11, %v965_v36  ;;  %v1155_v36 = vld [vmem:[#allocation9 + $0x20] sm:$0xff] }
 0x1af   : > { %v625_v37 = vpop.permute.xlu1 %624 }
 0x1b0   : > { %642 = vst.msk [vmem:[#allocation3 + $0x38] sm:$0xff] %vm634_vm4, %v625_v37  ;;  %v1156_v37 = vld [vmem:[#allocation9 + $0x28] sm:$0xff] }
 0x1b1   : > { %v991_v38 = vld [vmem:[#allocation3 + $0x20] sm:$0xff]  ;;  %v672_v39 = vpop.permute.xlu0 %671 }
 0x1b2   : > { %9067 = vmatprep.mubr.msk.f32.mxu0 %vm1001_vm12, %v991_v38  ;;  %690 = vst.msk [vmem:[#allocation3 + $0x30] sm:$0xff] %vm683_vm5, %v672_v39  ;;  %v10537_v38 = vpack.c.bf16 %v1156_v37, %v1155_v36 }
 0x1b3   : > { %v674_v40 = vpop.permute.xlu1 %673 }
 0x1b4   : > { %691 = vst.msk [vmem:[#allocation3 + $0x38] sm:$0xff] %vm683_vm5, %v674_v40  ;;  %9466 = vmatprep.subr.bf16.mxu1 %v10537_v38  ;;  %v1157_v40 = vld [vmem:[#allocation9 + $0x30] sm:$0xff] }
 0x1b5   : > { %v992_v41 = vld [vmem:[#allocation3 + $0x28] sm:$0xff]  ;;  %v721_v42 = vpop.permute.xlu0 %720  ;;  %9468 = vmatpush3.bf16.msra.mxu1 %v10537_v38 }
 0x1b6   : > { %9068 = vmatmul.mubr.msk.f32.gmra.mrb[4].mxu0 %vm1001_vm12, %v992_v41  ;;  %739 = vst.msk [vmem:[#allocation3 + $0x30] sm:$0xff] %vm732_vm6, %v721_v42  ;;  %v1158_v41 = vld [vmem:[#allocation9 + $0x38] sm:$0xff] }
 0x1b7   : > { %v723_v43 = vpop.permute.xlu1 %722  ;;  %v10543_v42 = vpack.c.bf16 %v1158_v41, %v1157_v40 }
 0x1b8   : > { %740 = vst.msk [vmem:[#allocation3 + $0x38] sm:$0xff] %vm732_vm6, %v723_v43 }
 0x1b9   : > { %v770_v44 = vpop.permute.xlu0 %769  ;;  %9470 = vmatprep.subr.bf16.mxu1 %v10543_v42 }
 0x1ba   : > { %788 = vst.msk [vmem:[#allocation3 + $0x30] sm:$0xff] %vm781_vm7, %v770_v44  ;;  %9472 = vmatpush3.bf16.msra.mxu1 %v10543_v42  ;;  %v10551_v44 = vld [vmem:[#allocation9 + $0x40] sm:$0xff] }
 0x1bb   : > { %v772_v47 = vpop.permute.xlu1 %771  ;;  %9089 = vmatprep.subr.mxu1 %v10551_v44 }
 0x1bc   : > { %789 = vst.msk [vmem:[#allocation3 + $0x38] sm:$0xff] %vm781_vm7, %v772_v47  ;;  %vm1462_vm7 = vcmask 458112  }
 0x1bd   : > { %v819_v48 = vpop.permute.xlu0 %818 }
 0x1be   : > { %837 = vst.msk [vmem:[#allocation3 + $0x30] sm:$0xff] %vm830_vm8, %v819_v48  ;;  %9090 = vmatpush3.msra.mxu1 %v10551_v44 }
 0x1bf   : > { %v821_v50 = vpop.permute.xlu1 %820  ;;  %9474 = vmatprep.subr.bf16.mxu1 %v10523_v29 }
 0x1c0   : > { %838 = vst.msk [vmem:[#allocation3 + $0x38] sm:$0xff] %vm830_vm8, %v821_v50  ;;  %vm1511_vm8 = vcmask 523712  }
 0x1c1   : > { %v869_v51 = vpop.permute.xlu0 %868 }
 0x1c2   : > { %887 = vst.msk [vmem:[#allocation3 + $0x30] sm:$0xff] %vm880_vm9, %v869_v51 }
 0x1c3   : > { %v871_v52 = vpop.permute.xlu1 %870 }
 0x1c4   : > { %888 = vst.msk [vmem:[#allocation3 + $0x38] sm:$0xff] %vm880_vm9, %v871_v52  ;;  %vm1560_vm9 = vcmask 589312  }
 0x1c5   : > { %v918_v53 = vpop.permute.xlu0 %917 }
 0x1c6   : > { %936 = vst.msk [vmem:[#allocation3 + $0x30] sm:$0xff] %vm929_vm10, %v918_v53 }
 0x1c7   : > { %v920_v54 = vpop.permute.xlu1 %919 }
 0x1c8   : > { %937 = vst.msk [vmem:[#allocation3 + $0x38] sm:$0xff] %vm929_vm10, %v920_v54  ;;  %vm1583_vm10 = vcmask 588800  }
 0x1c9   : > { %v967_v55 = vpop.permute.xlu0 %966 }
 0x1ca   : > { %985 = vst.msk [vmem:[#allocation3 + $0x30] sm:$0xff] %vm978_vm11, %v967_v55 }
 0x1cb   : > { %v969_v56 = vpop.permute.xlu1 %968 }
 0x1cc   : > { %986 = vst.msk [vmem:[#allocation3 + $0x38] sm:$0xff] %vm978_vm11, %v969_v56  ;;  %vm502_vm11 = vcmask 25600  }
 0x1cd   : > { %v1194_v59 = vpop.permute.xlu0 %1193  ;;  %503 = vst.msk [vmem:[#allocation4 + $0x10] sm:$0x3] %vm502_vm11, %v9862_v0  ;;  %506 = vst.msk [vmem:[#allocation4 + $0x28] sm:$0x3] %vm502_vm11, %v9862_v0 }
 0x1ce   : > { %1218 = vst.msk [vmem:[#allocation3] sm:$0xff] %vm1217_vm13, %v1194_v59 }
 0x1cf   : > { %509 = vst.msk [vmem:[#allocation4 + $0x40] sm:$0x3] %vm502_vm11, %v9862_v0  ;;  %512 = vst.msk [vmem:[#allocation4 + $0x58] sm:$0x3] %vm502_vm11, %v9862_v0 }
 0x1d0   : > { %515 = vst.msk [vmem:[#allocation4 + $0x70] sm:$0x3] %vm502_vm11, %v9862_v0  ;;  %518 = vst.msk [vmem:[#allocation4 + $0x88] sm:$0x3] %vm502_vm11, %v9862_v0 }
 0x1d1   : > { %v993_v57 = vld [vmem:[#allocation3 + $0x30] sm:$0xff]  ;;  %v1243_v60 = vpop.permute.xlu0 %1242  ;;  %521 = vst.msk [vmem:[#allocation4 + $0xa0] sm:$0x3] %vm502_vm11, %v9862_v0  ;;  %524 = vst.msk [vmem:[#allocation4 + $0xb8] sm:$0x3] %vm502_vm11, %v9862_v0 }
 0x1d2   : > { %9070 = vmatprep.mubr.msk.f32.mxu0 %vm1001_vm12, %v993_v57  ;;  %1267 = vst.msk [vmem:[#allocation3] sm:$0xff] %vm1266_vm14, %v1243_v60  ;;  %v10585_v60 = vpop.permute.xlu1 %1452 }
 0x1d3   : > { %v994_v58 = vld [vmem:[#allocation3 + $0x38] sm:$0xff]  ;;  %527 = vst.msk [vmem:[#allocation4 + $0xd0] sm:$0x3] %vm502_vm11, %v9862_v0  ;;  %530 = vst.msk [vmem:[#allocation4 + $0xe8] sm:$0x3] %vm502_vm11, %v9862_v0 }
 0x1d4   : > { %9071 = vmatmul.mubr.msk.f32.gmra.mrb[6].mxu0 %vm1001_vm12, %v994_v58  ;;  %533 = vst.msk [vmem:[#allocation4 + $0x100] sm:$0x3] %vm502_vm11, %v9862_v0  ;;  %536 = vst.msk [vmem:[#allocation4 + $0x118] sm:$0x3] %vm502_vm11, %v9862_v0  ;;  %vm2795_vm12 = vcmask 261120  }
 0x1d5   : > { %539 = vst.msk [vmem:[#allocation4 + $0x130] sm:$0x3] %vm502_vm11, %v9862_v0  ;;  %542 = vst.msk [vmem:[#allocation4 + $0x148] sm:$0x3] %vm502_vm11, %v9862_v0 }
 0x1d6   : > { %545 = vst.msk [vmem:[#allocation4 + $0x160] sm:$0x3] %vm502_vm11, %v9862_v0  ;;  %548 = vst.msk [vmem:[#allocation4 + $0x178] sm:$0x3] %vm502_vm11, %v9862_v0 }
 0x1d7   : > { %551 = vst.msk [vmem:[#allocation4 + $0x190] sm:$0x3] %vm502_vm11, %v9862_v0  ;;  %554 = vst.msk [vmem:[#allocation4 + $0x1a8] sm:$0x3] %vm502_vm11, %v9862_v0 }
 0x255   : > { %v9063_v62 = vpop.f32.mrb[0].mxu0 }
 0x256   : > { %v10470_v63 = vadd.f32 %v9063_v62, %v10467_v61  ;;  %v1096_v1 = vpop.f32.mrb[1].mxu0  ;;  %v10590_v62 = vpop.permute.xlu1 %1501 }
 0x257   : > { %v10473_v45 = vadd.f32 %v10467_v61, %v1096_v1 }
 0x258   : > { %v1136_v46 = vmax.f32 %v10470_v63, 0.0 }
 0x259   : > { %v1135_v2 = vmax.f32 %v10473_v45, 0.0 }
 0x25a   : > { %1144 = vst.msk [vmem:[#allocation2 + $0x21] sm:$0xff] %vm477_vm0, %v1136_v46 }
 0x25b   : > { %1143 = vst.msk [vmem:[#allocation2 + $0x11] sm:$0xff] %vm477_vm0, %v1135_v2 }
 0x261   : > { %v1374_v3 = vld [vmem:[#allocation2 + $0x22] sm:$0xff] }
 0x262   : > { %v1276_v4 = vld [vmem:[#allocation2 + $0x20] sm:$0xff]  ;;  %1391 = vrot.lane.b32.xlu0 %v1374_v3, %s9873_s27  ;;  %v1275_v5 = vld [vmem:[#allocation2 + $0x10] sm:$0xff] }
 0x263   : > { %1293 = vrot.lane.b32.xlu1 %v1276_v4, %s9868_s19  ;;  %1171 = vst.msk [vmem:[#allocation3 + $0x10] sm:$0xff] %vm477_vm0, %v1276_v4  ;;  %1170 = vst.msk [vmem:[#allocation3 + $0x8] sm:$0xff] %vm477_vm0, %v1275_v5  ;;  %v1325_v6 = vld [vmem:[#allocation2 + $0x21] sm:$0xff]  ;;  %v1324_v7 = vld [vmem:[#allocation2 + $0x11] sm:$0xff] }
 0x264   : > { %v1373_v8 = vld [vmem:[#allocation2 + $0x12] sm:$0xff] }
 0x266   : > { %1291 = vrot.lane.b32.xlu0 %v1275_v5, %s9868_s19 }
 0x267   : > { %1342 = vrot.lane.b32.xlu1 %v1325_v6, %s9870_s14 }
 0x26a   : > { %1340 = vrot.lane.b32.xlu0 %v1324_v7, %s9870_s14 }
 0x26b   : > { %1197 = vrot.lane.b32.xlu1 %v1325_v6, %s9864_s26 }
 0x26e   : > { %1389 = vrot.lane.b32.xlu0 %v1373_v8, %s9873_s27 }
 0x26f   : > { %1438 = vrot.lane.b32.xlu1 %v1276_v4, %s9871_s18 }
 0x273   : > { %1246 = vrot.lane.b32.xlu1 %v1374_v3, %s9866_s23 }
 0x275   : > { %v9066_v10 = vpop.f32.mrb[2].mxu0 }
 0x276   : > { %v10491_v11 = vadd.f32 %v9066_v10, %v10467_v61  ;;  %v1106_v12 = vpop.f32.mrb[3].mxu0 }
 0x277   : > { %1487 = vrot.lane.b32.xlu1 %v1325_v6, %s9872_s25  ;;  %v10495_v13 = vadd.f32 %v10467_v61, %v1106_v12 }
 0x278   : > { %v1138_v14 = vmax.f32 %v10491_v11, 0.0 }
 0x279   : > { %v1137_v15 = vmax.f32 %v10495_v13, 0.0 }
 0x27a   : > { %1146 = vst.msk [vmem:[#allocation2 + $0x41] sm:$0xff] %vm477_vm0, %v1138_v14 }
 0x27b   : > { %1536 = vrot.lane.b32.xlu1 %v1374_v3, %s9874_s29  ;;  %1145 = vst.msk [vmem:[#allocation2 + $0x31] sm:$0xff] %vm477_vm0, %v1137_v15 }
 0x27f   : > { %1195 = vrot.lane.b32.xlu1 %v1324_v7, %s9864_s26 }
 0x281   : > { %v1278_v16 = vld [vmem:[#allocation2 + $0x40] sm:$0xff] }
 0x282   : > { %1297 = vrot.lane.b32.xlu0 %v1278_v16, %s9868_s19  ;;  %v1277_v17 = vld [vmem:[#allocation2 + $0x30] sm:$0xff]  ;;  %1173 = vst.msk [vmem:[#allocation3 + $0x20] sm:$0xff] %vm477_vm0, %v1278_v16  ;;  %v1327_v18 = vld [vmem:[#allocation2 + $0x41] sm:$0xff] }
 0x283   : > { %1244 = vrot.lane.b32.xlu1 %v1373_v8, %s9866_s23  ;;  %1172 = vst.msk [vmem:[#allocation3 + $0x18] sm:$0xff] %vm477_vm0, %v1277_v17  ;;  %v1376_v20 = vld [vmem:[#allocation2 + $0x42] sm:$0xff]  ;;  %v1326_v28 = vld [vmem:[#allocation2 + $0x31] sm:$0xff] }
 0x284   : > { %v1229_v43 = vld [vmem:[#allocation2 + $0x32] sm:$0xff] }
 0x286   : > { %1442 = vrot.lane.b32.xlu0 %v1278_v16, %s9871_s18 }
 0x287   : > { %1346 = vrot.lane.b32.xlu1 %v1327_v18, %s9870_s14 }
 0x289   : > { %v9069_v19 = vpop.f32.mrb[4].mxu0 }
 0x28a   : > { %v10510_v21 = vadd.f32 %v9069_v19, %v10467_v61  ;;  %1491 = vrot.lane.b32.xlu0 %v1327_v18, %s9872_s25  ;;  %v1116_v22 = vpop.f32.mrb[5].mxu0 }
 0x28b   : > { %1395 = vrot.lane.b32.xlu1 %v1376_v20, %s9873_s27  ;;  %v10515_v23 = vadd.f32 %v10467_v61, %v1116_v22 }
 0x28c   : > { %v1140_v24 = vmax.f32 %v10510_v21, 0.0 }
 0x28d   : > { %v1139_v25 = vmax.f32 %v10515_v23, 0.0 }
 0x28e   : > { %1148 = vst.msk [vmem:[#allocation2 + $0x61] sm:$0xff] %vm477_vm0, %v1140_v24  ;;  %1540 = vrot.lane.b32.xlu0 %v1376_v20, %s9874_s29 }
 0x28f   : > { %1295 = vrot.lane.b32.xlu1 %v1277_v17, %s9868_s19  ;;  %1147 = vst.msk [vmem:[#allocation2 + $0x51] sm:$0xff] %vm477_vm0, %v1139_v25 }
 0x292   : > { %1201 = vrot.lane.b32.xlu0 %v1327_v18, %s9864_s26 }
 0x293   : > { %1344 = vrot.lane.b32.xlu1 %v1326_v28, %s9870_s14 }
 0x295   : > { %v1280_v32 = vld [vmem:[#allocation2 + $0x60] sm:$0xff] }
 0x296   : > { %1250 = vrot.lane.b32.xlu0 %v1376_v20, %s9866_s23  ;;  %v1425_v34 = vld [vmem:[#allocation2 + $0x50] sm:$0xff]  ;;  %1175 = vst.msk [vmem:[#allocation3 + $0x30] sm:$0xff] %vm477_vm0, %v1280_v32  ;;  %v1183_v35 = vld [vmem:[#allocation2 + $0x61] sm:$0xff] }
 0x297   : > { %1301 = vrot.lane.b32.xlu1 %v1280_v32, %s9868_s19  ;;  %1174 = vst.msk [vmem:[#allocation3 + $0x28] sm:$0xff] %vm477_vm0, %v1425_v34  ;;  %v1232_v39 = vld [vmem:[#allocation2 + $0x62] sm:$0xff]  ;;  %v1474_v54 = vld [vmem:[#allocation2 + $0x51] sm:$0xff] }
 0x298   : > { %v1523_v56 = vld [vmem:[#allocation2 + $0x52] sm:$0xff] }
 0x29a   : > { %1199 = vrot.lane.b32.xlu0 %v1326_v28, %s9864_s26 }
 0x29b   : > { %1205 = vrot.lane.b32.xlu1 %v1183_v35, %s9864_s26 }
 0x29e   : > { %1440 = vrot.lane.b32.xlu0 %v1277_v17, %s9871_s18 }
 0x29f   : > { %1254 = vrot.lane.b32.xlu1 %v1232_v39, %s9866_s23 }
 0x2a2   : > { %1248 = vrot.lane.b32.xlu0 %v1229_v43, %s9866_s23 }
 0x2a3   : > { %1446 = vrot.lane.b32.xlu1 %v1280_v32, %s9871_s18 }
 0x2a6   : > { %1489 = vrot.lane.b32.xlu0 %v1326_v28, %s9872_s25 }
 0x2a7   : > { %1495 = vrot.lane.b32.xlu1 %v1183_v35, %s9872_s25  ;;  %v9072_v47 = vpop.f32.mrb[6].mxu0 }
 0x2a8   : > { %v10559_v48 = vadd.f32 %v9072_v47, %v10467_v61  ;;  %v1126_v50 = vpop.f32.mrb[7].mxu0 }
 0x2a9   : > { %v10562_v51 = vadd.f32 %v10467_v61, %v1126_v50 }
 0x2aa   : > { %v1142_v52 = vmax.f32 %v10559_v48, 0.0  ;;  %1538 = vrot.lane.b32.xlu0 %v1229_v43, %s9874_s29 }
 0x2ab   : > { %1544 = vrot.lane.b32.xlu1 %v1232_v39, %s9874_s29  ;;  %v1141_v53 = vmax.f32 %v10562_v51, 0.0 }
 0x2ac   : > { %1150 = vst.msk [vmem:[#allocation2 + $0x81] sm:$0xff] %vm477_vm0, %v1142_v52 }
 0x2ad   : > { %1149 = vst.msk [vmem:[#allocation2 + $0x71] sm:$0xff] %vm477_vm0, %v1141_v53 }
 0x2ae   : > { %1393 = vrot.lane.b32.xlu0 %v1229_v43, %s9873_s27 }
 0x2af   : > { %1444 = vrot.lane.b32.xlu1 %v1425_v34, %s9871_s18 }
 0x2b2   : > { %1350 = vrot.lane.b32.xlu0 %v1183_v35, %s9870_s14 }
 0x2b3   : > { %1493 = vrot.lane.b32.xlu1 %v1474_v54, %s9872_s25  ;;  %v1282_v57 = vld [vmem:[#allocation2 + $0x80] sm:$0xff] }
 0x2b4   : > { %v1427_v55 = vld [vmem:[#allocation2 + $0x70] sm:$0xff]  ;;  %v1331_v58 = vld [vmem:[#allocation2 + $0x81] sm:$0xff] }
 0x2b5   : > { %1176 = vst.msk [vmem:[#allocation3 + $0x38] sm:$0xff] %vm477_vm0, %v1427_v55  ;;  %v1380_v59 = vld [vmem:[#allocation2 + $0x82] sm:$0xff]  ;;  %v1184_v61 = vld [vmem:[#allocation2 + $0x71] sm:$0xff] }
 0x2b6   : > { %1399 = vrot.lane.b32.xlu0 %v1232_v39, %s9873_s27  ;;  %v1233_v1 = vld [vmem:[#allocation2 + $0x72] sm:$0xff] }
 0x2b7   : > { %1542 = vrot.lane.b32.xlu1 %v1523_v56, %s9874_s29 }
 0x2ba   : > { %1299 = vrot.lane.b32.xlu0 %v1425_v34, %s9868_s19 }
 0x2bb   : > { %1203 = vrot.lane.b32.xlu1 %v1474_v54, %s9864_s26 }
 0x2be   : > { %1348 = vrot.lane.b32.xlu0 %v1474_v54, %s9870_s14 }
 0x2bf   : > { %1252 = vrot.lane.b32.xlu1 %v1523_v56, %s9866_s23 }
 0x2c2   : > { %1305 = vrot.lane.b32.xlu0 %v1282_v57, %s9868_s19 }
 0x2c3   : > { %1397 = vrot.lane.b32.xlu1 %v1523_v56, %s9873_s27 }
 0x2c6   : > { %1354 = vrot.lane.b32.xlu0 %v1331_v58, %s9870_s14 }
 0x2c7   : > { %1403 = vrot.lane.b32.xlu1 %v1380_v59, %s9873_s27 }
 0x2ca   : > { %1450 = vrot.lane.b32.xlu0 %v1282_v57, %s9871_s18 }
 0x2cb   : > { %1303 = vrot.lane.b32.xlu1 %v1427_v55, %s9868_s19 }
 0x2ce   : > { %1499 = vrot.lane.b32.xlu0 %v1331_v58, %s9872_s25 }
 0x2cf   : > { %1352 = vrot.lane.b32.xlu1 %v1184_v61, %s9870_s14 }
 0x2d2   : > { %1207 = vrot.lane.b32.xlu0 %v1184_v61, %s9864_s26 }
 0x2d3   : > { %1401 = vrot.lane.b32.xlu1 %v1233_v1, %s9873_s27 }
 0x2d4   : > { %v1392_v46 = vpop.permute.xlu0 %1391 }
 0x2d5   : > { %v1294_v2 = vpop.permute.xlu1 %1293 }
 0x2d6   : > { %1256 = vrot.lane.b32.xlu0 %v1233_v1, %s9866_s23 }
 0x2d7   : > { %1550 = vrot.lane.b32.xlu1 %v10382_v49, %s9874_s29  ;;  %v10606_v49 = vld [vmem:[#allocation12] sm:$0xff] }
 0x2d8   : > { %v1292_v4 = vpop.permute.xlu0 %1291  ;;  %9103 = vmatprep.subr.mxu0 %v10606_v49 }
 0x2d9   : > { %v1343_v3 = vpop.permute.xlu1 %1342  ;;  %1316 = vst.msk [vmem:[#allocation3] sm:$0xff] %vm1315_vm15, %v1292_v4  ;;  %9104 = vmatpush3.msra.mxu0 %v10606_v49 }
 0x2da   : > { %1448 = vrot.lane.b32.xlu0 %v1427_v55, %s9871_s18  ;;  %9147 = vmatprep.subr.mxu0 %v10606_v49 }
 0x2dc   : > { %v1341_v6 = vpop.permute.xlu0 %1340 }
 0x2dd   : > { %v1198_v5 = vpop.permute.xlu1 %1197  ;;  %1365 = vst.msk [vmem:[#allocation3] sm:$0xff] %vm1364_vm1, %v1341_v6 }
 0x2de   : > { %1220 = vst.msk [vmem:[#allocation3 + $0x10] sm:$0xff] %vm1217_vm13, %v1198_v5  ;;  %1497 = vrot.lane.b32.xlu0 %v1184_v61, %s9872_s25 }
 0x2e0   : > { %v1390_v8 = vpop.permute.xlu0 %1389 }
 0x2e1   : > { %v1439_v7 = vpop.permute.xlu1 %1438  ;;  %1414 = vst.msk [vmem:[#allocation3] sm:$0xff] %vm1413_vm3, %v1390_v8 }
 0x2e2   : > { %1546 = vrot.lane.b32.xlu0 %v1233_v1, %s9874_s29  ;;  %1463 = vst.msk [vmem:[#allocation3] sm:$0xff] %vm1462_vm7, %v1439_v7 }
 0x2e5   : > { %v1247_v10 = vpop.permute.xlu1 %1246 }
 0x2e6   : > { %1269 = vst.msk [vmem:[#allocation3 + $0x10] sm:$0xff] %vm1266_vm14, %v1247_v10  ;;  %1548 = vrot.lane.b32.xlu0 %v1380_v59, %s9874_s29 }
 0x2e9   : > { %v1488_v12 = vpop.permute.xlu1 %1487 }
 0x2ea   : > { %1512 = vst.msk [vmem:[#allocation3] sm:$0xff] %vm1511_vm8, %v1488_v12 }
 0x2ed   : > { %v1537_v14 = vpop.permute.xlu1 %1536 }
 0x2ee   : > { %1561 = vst.msk [vmem:[#allocation3] sm:$0xff] %vm1560_vm9, %v1537_v14 }
 0x2f1   : > { %v1196_v15 = vpop.permute.xlu1 %1195 }
 0x2f2   : > { %1219 = vst.msk [vmem:[#allocation3 + $0x8] sm:$0xff] %vm1217_vm13, %v1196_v15 }
 0x2f4   : > { %v1298_v16 = vpop.permute.xlu0 %1297 }
 0x2f5   : > { %v1245_v17 = vpop.permute.xlu1 %1244  ;;  %v1569_v18 = vld [vmem:[#allocation3] sm:$0xff] }
 0x2f6   : > { %1268 = vst.msk [vmem:[#allocation3 + $0x8] sm:$0xff] %vm1266_vm14, %v1245_v17  ;;  %9091 = vmatprep.mubr.msk.f32.mxu1 %vm1583_vm10, %v1569_v18 }
 0x2f7   : > { %1900 = vst.msk [vmem:[#allocation3] sm:$0xff] %vm477_vm0, %v10267_v9 }
 0x2f8   : > { %1317 = vst.msk [vmem:[#allocation3 + $0x8] sm:$0xff] %vm1315_vm15, %v1294_v2  ;;  %v1443_v19 = vpop.permute.xlu0 %1442 }
 0x2f9   : > { %1366 = vst.msk [vmem:[#allocation3 + $0x8] sm:$0xff] %vm1364_vm1, %v1343_v3  ;;  %v1347_v20 = vpop.permute.xlu1 %1346 }
 0x2fa   : > { %1415 = vst.msk [vmem:[#allocation3 + $0x8] sm:$0xff] %vm1413_vm3, %v1392_v46 }
 0x2fc   : > { %v1492_v22 = vpop.permute.xlu0 %1491 }
 0x2fd   : > { %v1396_v24 = vpop.permute.xlu1 %1395 }
 0x300   : > { %v1541_v25 = vpop.permute.xlu0 %1540 }
 0x301   : > { %v1296_v26 = vpop.permute.xlu1 %1295 }
 0x302   : > { %1318 = vst.msk [vmem:[#allocation3 + $0x10] sm:$0xff] %vm1315_vm15, %v1296_v26 }
 0x304   : > { %v1202_v27 = vpop.permute.xlu0 %1201 }
 0x305   : > { %v1345_v28 = vpop.permute.xlu1 %1344  ;;  %1222 = vst.msk [vmem:[#allocation3 + $0x20] sm:$0xff] %vm1217_vm13, %v1202_v27 }
 0x306   : > { %1367 = vst.msk [vmem:[#allocation3 + $0x10] sm:$0xff] %vm1364_vm1, %v1345_v28 }
 0x308   : > { %v1251_v9 = vpop.permute.xlu0 %1250 }
 0x309   : > { %v1302_v30 = vpop.permute.xlu1 %1301  ;;  %1271 = vst.msk [vmem:[#allocation3 + $0x20] sm:$0xff] %vm1266_vm14, %v1251_v9 }
 0x30c   : > { %v1200_v31 = vpop.permute.xlu0 %1199 }
 0x30d   : > { %v1206_v32 = vpop.permute.xlu1 %1205  ;;  %1221 = vst.msk [vmem:[#allocation3 + $0x18] sm:$0xff] %vm1217_vm13, %v1200_v31 }
 0x30e   : > { %1224 = vst.msk [vmem:[#allocation3 + $0x30] sm:$0xff] %vm1217_vm13, %v1206_v32 }
 0x310   : > { %v1441_v34 = vpop.permute.xlu0 %1440 }
 0x311   : > { %v1255_v35 = vpop.permute.xlu1 %1254  ;;  %1464 = vst.msk [vmem:[#allocation3 + $0x8] sm:$0xff] %vm1462_vm7, %v1441_v34 }
 0x312   : > { %1273 = vst.msk [vmem:[#allocation3 + $0x30] sm:$0xff] %vm1266_vm14, %v1255_v35 }
 0x314   : > { %v1249_v36 = vpop.permute.xlu0 %1248 }
 0x315   : > { %v1447_v37 = vpop.permute.xlu1 %1446  ;;  %1270 = vst.msk [vmem:[#allocation3 + $0x18] sm:$0xff] %vm1266_vm14, %v1249_v36 }
 0x316   : > { %1319 = vst.msk [vmem:[#allocation3 + $0x18] sm:$0xff] %vm1315_vm15, %v1298_v16 }
 0x317   : > { %1368 = vst.msk [vmem:[#allocation3 + $0x18] sm:$0xff] %vm1364_vm1, %v1347_v20 }
 0x318   : > { %1417 = vst.msk [vmem:[#allocation3 + $0x18] sm:$0xff] %vm1413_vm3, %v1396_v24  ;;  %v1490_v39 = vpop.permute.xlu0 %1489 }
 0x319   : > { %v1496_v40 = vpop.permute.xlu1 %1495  ;;  %1513 = vst.msk [vmem:[#allocation3 + $0x8] sm:$0xff] %vm1511_vm8, %v1490_v39 }
 0x31c   : > { %v1539_v41 = vpop.permute.xlu0 %1538 }
 0x31d   : > { %v1545_v43 = vpop.permute.xlu1 %1544  ;;  %1562 = vst.msk [vmem:[#allocation3 + $0x8] sm:$0xff] %vm1560_vm9, %v1539_v41 }
 0x320   : > { %v1394_v47 = vpop.permute.xlu0 %1393 }
 0x321   : > { %v1445_v50 = vpop.permute.xlu1 %1444  ;;  %1416 = vst.msk [vmem:[#allocation3 + $0x10] sm:$0xff] %vm1413_vm3, %v1394_v47 }
 0x322   : > { %1466 = vst.msk [vmem:[#allocation3 + $0x18] sm:$0xff] %vm1462_vm7, %v1445_v50  ;;  %1465 = vst.msk [vmem:[#allocation3 + $0x10] sm:$0xff] %vm1462_vm7, %v1443_v19 }
 0x323   : > { %1514 = vst.msk [vmem:[#allocation3 + $0x10] sm:$0xff] %vm1511_vm8, %v1492_v22 }
 0x324   : > { %1563 = vst.msk [vmem:[#allocation3 + $0x10] sm:$0xff] %vm1560_vm9, %v1541_v25  ;;  %v1351_v52 = vpop.permute.xlu0 %1350  ;;  %v1570_v54 = vld [vmem:[#allocation3 + $0x8] sm:$0xff] }
 0x325   : > { %v1494_v53 = vpop.permute.xlu1 %1493  ;;  %9092 = vmatmul.mubr.msk.f32.vlgmr.msra.gmra.mrb[0].mxu1 %vm1583_vm10, %v1570_v54  ;;  %v10711_v54 = vld [vmem:[#allocation2 + $0x90] sm:$0xff] }
 0x326   : > { %1515 = vst.msk [vmem:[#allocation3 + $0x18] sm:$0xff] %vm1511_vm8, %v1494_v53  ;;  %9476 = vmatpush3.bf16.msra.mxu1 %v10523_v29  ;;  %v10709_v53 = vld [vmem:[#allocation2 + $0x1] sm:$0xff]  ;;  %2178 = vrot.lane.b32.xlu1 %v10711_v54, %s9871_s18 }
 0x327   : > { %9478 = vmatprep.subr.bf16.mxu1 %v10529_v33  ;;  %1924 = vrot.lane.b32.xlu0 %v10709_v53, %s9864_s26 }
 0x328   : > { %v1400_v55 = vpop.permute.xlu0 %1399 }
 0x329   : > { %v1543_v56 = vpop.permute.xlu1 %1542 }
 0x32a   : > { %1564 = vst.msk [vmem:[#allocation3 + $0x18] sm:$0xff] %vm1560_vm9, %v1543_v56  ;;  %9480 = vmatpush3.bf16.msra.mxu1 %v10529_v33  ;;  %v10719_v56 = vld [vmem:[#allocation2 + $0x91] sm:$0xff] }
 0x32b   : > { %v1571_v57 = vld [vmem:[#allocation3 + $0x10] sm:$0xff]  ;;  %9482 = vmatprep.subr.bf16.mxu1 %v10537_v38  ;;  %2226 = vrot.lane.b32.xlu1 %v10719_v56, %s9872_s25 }
 0x32c   : > { %v1300_v58 = vpop.permute.xlu0 %1299  ;;  %9094 = vmatprep.mubr.msk.f32.mxu1 %vm1583_vm10, %v1571_v57 }
 0x32d   : > { %v1204_v59 = vpop.permute.xlu1 %1203  ;;  %1320 = vst.msk [vmem:[#allocation3 + $0x20] sm:$0xff] %vm1315_vm15, %v1300_v58 }
 0x32e   : > { %1223 = vst.msk [vmem:[#allocation3 + $0x28] sm:$0xff] %vm1217_vm13, %v1204_v59  ;;  %9484 = vmatpush3.bf16.msra.mxu1 %v10537_v38  ;;  %v10726_v59 = vld [vmem:[#allocation14] ss:$0 sm:$0xff] }
 0x32f   : > { %9486 = vmatprep.subr.bf16.mxu1 %v10543_v42 }
 0x330   : > { %v1349_v29 = vpop.permute.xlu0 %1348 }
 0x331   : > { %v1253_v61 = vpop.permute.xlu1 %1252  ;;  %v1572_v1 = vld [vmem:[#allocation3 + $0x18] sm:$0xff]  ;;  %1369 = vst.msk [vmem:[#allocation3 + $0x20] sm:$0xff] %vm1364_vm1, %v1349_v29 }
 0x332   : > { %1272 = vst.msk [vmem:[#allocation3 + $0x28] sm:$0xff] %vm1266_vm14, %v1253_v61  ;;  %9095 = vmatmul.mubr.msk.f32.gmra.mrb[2].mxu1 %vm1583_vm10, %v1572_v1 }
 0x333   : > { %1321 = vst.msk [vmem:[#allocation3 + $0x28] sm:$0xff] %vm1315_vm15, %v1302_v30  ;;  %9488 = vmatpush3.bf16.msra.mxu1 %v10543_v42 }
 0x334   : > { %1370 = vst.msk [vmem:[#allocation3 + $0x28] sm:$0xff] %vm1364_vm1, %v1351_v52  ;;  %9133 = vmatprep.subr.mxu1 %v10551_v44  ;;  %v1306_v33 = vpop.permute.xlu0 %1305 }
 0x335   : > { %1419 = vst.msk [vmem:[#allocation3 + $0x28] sm:$0xff] %vm1413_vm3, %v1400_v55  ;;  %v1398_v38 = vpop.permute.xlu1 %1397  ;;  %v10717_v55 = vld [vmem:[#allocation2 + $0x2] sm:$0xff] }
 0x336   : > { %1418 = vst.msk [vmem:[#allocation3 + $0x20] sm:$0xff] %vm1413_vm3, %v1398_v38  ;;  %1972 = vrot.lane.b32.xlu0 %v10717_v55, %s9866_s23 }
 0x337   : > { %1467 = vst.msk [vmem:[#allocation3 + $0x20] sm:$0xff] %vm1462_vm7, %v1447_v37  ;;  %9134 = vmatpush3.msra.mxu1 %v10551_v44 }
 0x338   : > { %1516 = vst.msk [vmem:[#allocation3 + $0x20] sm:$0xff] %vm1511_vm8, %v1496_v40  ;;  %v1355_v46 = vpop.permute.xlu0 %1354 }
 0x339   : > { %1565 = vst.msk [vmem:[#allocation3 + $0x20] sm:$0xff] %vm1560_vm9, %v1545_v43  ;;  %v1404_v42 = vpop.permute.xlu1 %1403 }
 0x33c   : > { %v1451_v2 = vpop.permute.xlu0 %1450 }
 0x33d   : > { %v1304_v3 = vpop.permute.xlu1 %1303 }
 0x33e   : > { %1322 = vst.msk [vmem:[#allocation3 + $0x30] sm:$0xff] %vm1315_vm15, %v1304_v3 }
 0x340   : > { %v1573_v4 = vld [vmem:[#allocation3 + $0x20] sm:$0xff]  ;;  %v1500_v5 = vpop.permute.xlu0 %1499 }
 0x341   : > { %9097 = vmatprep.mubr.msk.f32.mxu1 %vm1583_vm10, %v1573_v4  ;;  %v1353_v6 = vpop.permute.xlu1 %1352 }
 0x342   : > { %1371 = vst.msk [vmem:[#allocation3 + $0x30] sm:$0xff] %vm1364_vm1, %v1353_v6 }
 0x344   : > { %v1208_v7 = vpop.permute.xlu0 %1207 }
 0x345   : > { %v1402_v8 = vpop.permute.xlu1 %1401  ;;  %1225 = vst.msk [vmem:[#allocation3 + $0x38] sm:$0xff] %vm1217_vm13, %v1208_v7 }
 0x346   : > { %1420 = vst.msk [vmem:[#allocation3 + $0x30] sm:$0xff] %vm1413_vm3, %v1402_v8 }
 0x347   : > { %1469 = vst.msk [vmem:[#allocation3 + $0x30] sm:$0xff] %vm1462_vm7, %v1451_v2 }
 0x348   : > { %1518 = vst.msk [vmem:[#allocation3 + $0x30] sm:$0xff] %vm1511_vm8, %v1500_v5  ;;  %v1257_v44 = vpop.permute.xlu0 %1256 }
 0x349   : > { %1274 = vst.msk [vmem:[#allocation3 + $0x38] sm:$0xff] %vm1266_vm14, %v1257_v44  ;;  %v1551_v12 = vpop.permute.xlu1 %1550 }
 0x34a   : > { %1323 = vst.msk [vmem:[#allocation3 + $0x38] sm:$0xff] %vm1315_vm15, %v1306_v33 }
 0x34b   : > { %1372 = vst.msk [vmem:[#allocation3 + $0x38] sm:$0xff] %vm1364_vm1, %v1355_v46 }
 0x34c   : > { %1421 = vst.msk [vmem:[#allocation3 + $0x38] sm:$0xff] %vm1413_vm3, %v1404_v42  ;;  %v1449_v10 = vpop.permute.xlu0 %1448 }
 0x34d   : > { %1470 = vst.msk [vmem:[#allocation3 + $0x38] sm:$0xff] %vm1462_vm7, %v10585_v60  ;;  %1468 = vst.msk [vmem:[#allocation3 + $0x28] sm:$0xff] %vm1462_vm7, %v1449_v10 }
 0x34e   : > { %1519 = vst.msk [vmem:[#allocation3 + $0x38] sm:$0xff] %vm1511_vm8, %v10590_v62  ;;  %v10690_v62 = vld [vmem:[#allocation11] ss:$0 sm:$0xff] }
 0x34f   : > { %1568 = vst.msk [vmem:[#allocation3 + $0x38] sm:$0xff] %vm1560_vm9, %v1551_v12 }
 0x350   : > { %v1498_v14 = vpop.permute.xlu0 %1497 }
 0x351   : > { %1517 = vst.msk [vmem:[#allocation3 + $0x28] sm:$0xff] %vm1511_vm8, %v1498_v14 }
 0x354   : > { %v1547_v15 = vpop.permute.xlu0 %1546 }
 0x355   : > { %1566 = vst.msk [vmem:[#allocation3 + $0x28] sm:$0xff] %vm1560_vm9, %v1547_v15 }
 0x356   : > { %v1576_v60 = vld [vmem:[#allocation3 + $0x38] sm:$0xff] }
 0x358   : > { %v1549_v16 = vpop.permute.xlu0 %1548 }
 0x359   : > { %1567 = vst.msk [vmem:[#allocation3 + $0x30] sm:$0xff] %vm1560_vm9, %v1549_v16 }
 0x35c   : > { %v1574_v17 = vld [vmem:[#allocation3 + $0x28] sm:$0xff] }
 0x35d   : > { %9098 = vmatmul.mubr.msk.f32.gmra.mrb[4].mxu1 %vm1583_vm10, %v1574_v17 }
 0x360   : > { %v1575_v18 = vld [vmem:[#allocation3 + $0x30] sm:$0xff] }
 0x361   : > { %9100 = vmatprep.mubr.msk.f32.mxu1 %vm1583_vm10, %v1575_v18 }
 0x362   : > { %9101 = vmatmul.mubr.msk.f32.gmra.mrb[6].mxu1 %vm1583_vm10, %v1576_v60 }
 0x399   : > { %v1925_v57 = vpop.permute.xlu0 %1924 }
 0x39a   : > { %1948 = vst.msk [vmem:[#allocation3] sm:$0xff] %vm1217_vm13, %v1925_v57 }
 0x3a8   : > { %v1973_v58 = vpop.permute.xlu0 %1972 }
 0x3a9   : > { %1996 = vst.msk [vmem:[#allocation3] sm:$0xff] %vm1266_vm14, %v1973_v58 }
 0x3f8   : > { %v9093_v19 = vpop.f32.mrb[0].mxu1 }
 0x3f9   : > { %v1680_v20 = vadd.f32 %v9093_v19, %v10690_v62  ;;  %v1674_v22 = vpop.f32.mrb[1].mxu1 }
 0x3fa   : > { %v1675_v24 = vadd.f32 %v10690_v62, %v1674_v22 }
 0x3fb   : > { %v1714_v26 = vmax.f32 %v1680_v20, 0.0 }
 0x3fc   : > { %v1713_v25 = vmax.f32 %v1675_v24, 0.0 }
 0x3fe   : > { %9105 = vmatprep.mubr.msk.f32.mxu0 %vm477_vm0, %v1713_v25 }
 0x3ff   : > { %9106 = vmatmul.mubr.msk.f32.vlgmr.msra.gmra.mrb[8].mxu0 %vm477_vm0, %v1714_v26 }
 0x400   : > { %9148 = vmatpush3.msra.mxu0 %v10606_v49 }
 0x405   : > { %v9096_v27 = vpop.f32.mrb[2].mxu1 }
 0x406   : > { %v1690_v28 = vadd.f32 %v9096_v27, %v10690_v62  ;;  %v1684_v9 = vpop.f32.mrb[3].mxu1 }
 0x407   : > { %v1685_v30 = vadd.f32 %v10690_v62, %v1684_v9 }
 0x408   : > { %v1716_v32 = vmax.f32 %v1690_v28, 0.0 }
 0x409   : > { %v1715_v31 = vmax.f32 %v1685_v30, 0.0 }
 0x40b   : > { %9108 = vmatprep.mubr.msk.f32.mxu0 %vm477_vm0, %v1715_v31 }
 0x40c   : > { %9109 = vmatmul.mubr.msk.f32.gmra.mrb[10].mxu0 %vm477_vm0, %v1716_v32 }
 0x430   : > { %v9099_v34 = vpop.f32.mrb[4].mxu1 }
 0x431   : > { %v1700_v35 = vadd.f32 %v9099_v34, %v10690_v62  ;;  %v1694_v36 = vpop.f32.mrb[5].mxu1 }
 0x432   : > { %v1695_v37 = vadd.f32 %v10690_v62, %v1694_v36 }
 0x433   : > { %v1718_v39 = vmax.f32 %v1700_v35, 0.0 }
 0x434   : > { %v1717_v49 = vmax.f32 %v1695_v37, 0.0 }
 0x435   : > { %v9102_v40 = vpop.f32.mrb[6].mxu1 }
 0x436   : > { %v1710_v41 = vadd.f32 %v9102_v40, %v10690_v62  ;;  %v1704_v43 = vpop.f32.mrb[7].mxu1  ;;  %9111 = vmatprep.mubr.msk.f32.mxu0 %vm477_vm0, %v1717_v49 }
 0x437   : > { %v1705_v47 = vadd.f32 %v10690_v62, %v1704_v43  ;;  %9112 = vmatmul.mubr.msk.f32.gmra.mrb[12].mxu0 %vm477_vm0, %v1718_v39 }
 0x438   : > { %v1720_v50 = vmax.f32 %v1710_v41, 0.0 }
 0x439   : > { %v1719_v52 = vmax.f32 %v1705_v47, 0.0 }
 0x43b   : > { %9114 = vmatprep.mubr.msk.f32.mxu0 %vm477_vm0, %v1719_v52  ;;  %v10834_v52 = vpop.permute.xlu1 %2178 }
 0x43c   : > { %9115 = vmatmul.mubr.msk.f32.gmra.mrb[14].mxu0 %vm477_vm0, %v1720_v50 }
 0x4d2   : > { %v9107_v29 = vpop.f32.mrb[8].mxu0 }
 0x4d3   : > { %v1825_v61 = vadd.f32 %v9107_v29, %v10726_v59  ;;  %v1819_v1 = vpop.f32.mrb[9].mxu0  ;;  %v10840_v29 = vpop.permute.xlu1 %2226 }
 0x4d4   : > { %v1820_v33 = vadd.f32 %v10726_v59, %v1819_v1 }
 0x4d5   : > { %v10732_v38 = vadd.f32 %v1825_v61, %v10470_v63  ;;  %v2251_v61 = vld [vmem:[#allocation2 + $0x92] sm:$0xff] }
 0x4d6   : > { %v10735_v46 = vadd.f32 %v1820_v33, %v10473_v45 }
 0x4d7   : > { %v1867_v42 = vmax.f32 %v10732_v38, 0.0 }
 0x4d8   : > { %v1866_v2 = vmax.f32 %v10735_v46, 0.0 }
 0x4d9   : > { %1875 = vst.msk [vmem:[#allocation2 + $0x21] sm:$0xff] %vm477_vm0, %v1867_v42 }
 0x4da   : > { %1874 = vst.msk [vmem:[#allocation2 + $0x11] sm:$0xff] %vm477_vm0, %v1866_v2 }
 0x4df   : > { %v9110_v3 = vpop.f32.mrb[10].mxu0 }
 0x4e0   : > { %v1835_v4 = vadd.f32 %v9110_v3, %v10726_v59  ;;  %v1829_v5 = vpop.f32.mrb[11].mxu0  ;;  %v2148_v7 = vld [vmem:[#allocation2 + $0x20] sm:$0xff] }
 0x4e1   : > { %v1830_v6 = vadd.f32 %v10726_v59, %v1829_v5  ;;  %2164 = vrot.lane.b32.xlu0 %v2148_v7, %s9871_s18  ;;  %2022 = vrot.lane.b32.xlu1 %v2148_v7, %s9868_s19  ;;  %v2004_v45 = vld [vmem:[#allocation2 + $0x10] sm:$0xff]  ;;  %1902 = vst.msk [vmem:[#allocation3 + $0x10] sm:$0xff] %vm477_vm0, %v2148_v7  ;;  %v2196_v12 = vld [vmem:[#allocation2 + $0x21] sm:$0xff] }
 0x4e2   : > { %v10744_v63 = vadd.f32 %v1835_v4, %v10491_v11  ;;  %1901 = vst.msk [vmem:[#allocation3 + $0x8] sm:$0xff] %vm477_vm0, %v2004_v45  ;;  %v2244_v11 = vld [vmem:[#allocation2 + $0x22] sm:$0xff]  ;;  %v1957_v16 = vld [vmem:[#allocation2 + $0x12] sm:$0xff] }
 0x4e3   : > { %v10750_v8 = vadd.f32 %v1830_v6, %v10495_v13  ;;  %v1909_v13 = vld [vmem:[#allocation2 + $0x11] sm:$0xff] }
 0x4e4   : > { %v1869_v44 = vmax.f32 %v10744_v63, 0.0 }
 0x4e5   : > { %v1868_v10 = vmax.f32 %v10750_v8, 0.0  ;;  %2212 = vrot.lane.b32.xlu0 %v2196_v12, %s9872_s25  ;;  %2070 = vrot.lane.b32.xlu1 %v2196_v12, %s9870_s14 }
 0x4e6   : > { %1877 = vst.msk [vmem:[#allocation2 + $0x41] sm:$0xff] %vm477_vm0, %v1869_v44 }
 0x4e7   : > { %1876 = vst.msk [vmem:[#allocation2 + $0x31] sm:$0xff] %vm477_vm0, %v1868_v10 }
 0x4e9   : > { %2260 = vrot.lane.b32.xlu0 %v2244_v11, %s9874_s29  ;;  %2118 = vrot.lane.b32.xlu1 %v2244_v11, %s9873_s27 }
 0x4ed   : > { %v2007_v14 = vld [vmem:[#allocation2 + $0x40] sm:$0xff]  ;;  %1928 = vrot.lane.b32.xlu0 %v2196_v12, %s9864_s26  ;;  %1926 = vrot.lane.b32.xlu1 %v1909_v13, %s9864_s26 }
 0x4ee   : > { %v2006_v15 = vld [vmem:[#allocation2 + $0x30] sm:$0xff]  ;;  %1904 = vst.msk [vmem:[#allocation3 + $0x20] sm:$0xff] %vm477_vm0, %v2007_v14  ;;  %v1912_v17 = vld [vmem:[#allocation2 + $0x41] sm:$0xff] }
 0x4ef   : > { %1903 = vst.msk [vmem:[#allocation3 + $0x18] sm:$0xff] %vm477_vm0, %v2006_v15  ;;  %v1960_v60 = vld [vmem:[#allocation2 + $0x42] sm:$0xff]  ;;  %v2054_v24 = vld [vmem:[#allocation2 + $0x31] sm:$0xff] }
 0x4f0   : > { %v2245_v35 = vld [vmem:[#allocation2 + $0x32] sm:$0xff] }
 0x4f1   : > { %1976 = vrot.lane.b32.xlu0 %v2244_v11, %s9866_s23  ;;  %1974 = vrot.lane.b32.xlu1 %v1957_v16, %s9866_s23 }
 0x4f5   : > { %2020 = vrot.lane.b32.xlu0 %v2004_v45, %s9868_s19  ;;  %2026 = vrot.lane.b32.xlu1 %v2007_v14, %s9868_s19 }
 0x4f9   : > { %2068 = vrot.lane.b32.xlu0 %v1909_v13, %s9870_s14  ;;  %1932 = vrot.lane.b32.xlu1 %v1912_v17, %s9864_s26 }
 0x4fd   : > { %2116 = vrot.lane.b32.xlu0 %v1957_v16, %s9873_s27  ;;  %1980 = vrot.lane.b32.xlu1 %v1960_v60, %s9866_s23 }
 0x501   : > { %2074 = vrot.lane.b32.xlu0 %v1912_v17, %s9870_s14  ;;  %2168 = vrot.lane.b32.xlu1 %v2007_v14, %s9871_s18 }
 0x505   : > { %2122 = vrot.lane.b32.xlu0 %v1960_v60, %s9873_s27  ;;  %2216 = vrot.lane.b32.xlu1 %v1912_v17, %s9872_s25 }
 0x509   : > { %2024 = vrot.lane.b32.xlu0 %v2006_v15, %s9868_s19  ;;  %2264 = vrot.lane.b32.xlu1 %v1960_v60, %s9874_s29 }
 0x50a   : > { %v9113_v18 = vpop.f32.mrb[12].mxu0 }
 0x50b   : > { %v1845_v19 = vadd.f32 %v9113_v18, %v10726_v59  ;;  %v1839_v20 = vpop.f32.mrb[13].mxu0 }
 0x50c   : > { %v1840_v22 = vadd.f32 %v10726_v59, %v1839_v20 }
 0x50d   : > { %v10782_v25 = vadd.f32 %v1845_v19, %v10510_v21  ;;  %2072 = vrot.lane.b32.xlu0 %v2054_v24, %s9870_s14  ;;  %2166 = vrot.lane.b32.xlu1 %v2006_v15, %s9871_s18 }
 0x50e   : > { %v10787_v26 = vadd.f32 %v1840_v22, %v10515_v23 }
 0x50f   : > { %v1871_v27 = vmax.f32 %v10782_v25, 0.0  ;;  %v9116_v28 = vpop.f32.mrb[14].mxu0 }
 0x510   : > { %v1870_v9 = vmax.f32 %v10787_v26, 0.0  ;;  %v1855_v30 = vadd.f32 %v9116_v28, %v10726_v59  ;;  %v1849_v31 = vpop.f32.mrb[15].mxu0 }
 0x511   : > { %1879 = vst.msk [vmem:[#allocation2 + $0x61] sm:$0xff] %vm477_vm0, %v1871_v27  ;;  %v1850_v21 = vadd.f32 %v10726_v59, %v1849_v31  ;;  %2214 = vrot.lane.b32.xlu1 %v2054_v24, %s9872_s25 }
 0x512   : > { %1878 = vst.msk [vmem:[#allocation2 + $0x51] sm:$0xff] %vm477_vm0, %v1870_v9  ;;  %v10797_v32 = vadd.f32 %v1855_v30, %v10559_v48 }
 0x513   : > { %v10800_v23 = vadd.f32 %v1850_v21, %v10562_v51 }
 0x514   : > { %v1873_v34 = vmax.f32 %v10797_v32, 0.0 }
 0x515   : > { %v1872_v36 = vmax.f32 %v10800_v23, 0.0  ;;  %2262 = vrot.lane.b32.xlu1 %v2245_v35, %s9874_s29 }
 0x516   : > { %1881 = vst.msk [vmem:[#allocation2 + $0x81] sm:$0xff] %vm477_vm0, %v1873_v34 }
 0x517   : > { %1880 = vst.msk [vmem:[#allocation2 + $0x71] sm:$0xff] %vm477_vm0, %v1872_v36 }
 0x518   : > { %v2009_v37 = vld [vmem:[#allocation2 + $0x60] sm:$0xff] }
 0x519   : > { %2030 = vrot.lane.b32.xlu0 %v2009_v37, %s9868_s19  ;;  %1930 = vrot.lane.b32.xlu1 %v2054_v24, %s9864_s26  ;;  %v2151_v48 = vld [vmem:[#allocation2 + $0x50] sm:$0xff]  ;;  %1906 = vst.msk [vmem:[#allocation3 + $0x30] sm:$0xff] %vm477_vm0, %v2009_v37  ;;  %v1914_v51 = vld [vmem:[#allocation2 + $0x61] sm:$0xff] }
 0x51a   : > { %1905 = vst.msk [vmem:[#allocation3 + $0x28] sm:$0xff] %vm477_vm0, %v2151_v48  ;;  %v2105_v49 = vld [vmem:[#allocation2 + $0x62] sm:$0xff]  ;;  %v1913_v40 = vld [vmem:[#allocation2 + $0x51] sm:$0xff] }
 0x51b   : > { %v1961_v41 = vld [vmem:[#allocation2 + $0x52] sm:$0xff] }
 0x51d   : > { %1936 = vrot.lane.b32.xlu0 %v1914_v51, %s9864_s26  ;;  %1978 = vrot.lane.b32.xlu1 %v2245_v35, %s9866_s23  ;;  %v2011_v43 = vld [vmem:[#allocation2 + $0x80] sm:$0xff] }
 0x51e   : > { %v2010_v39 = vld [vmem:[#allocation2 + $0x70] sm:$0xff]  ;;  %v2059_v47 = vld [vmem:[#allocation2 + $0x81] sm:$0xff] }
 0x51f   : > { %1907 = vst.msk [vmem:[#allocation3 + $0x38] sm:$0xff] %vm477_vm0, %v2010_v39  ;;  %v2107_v50 = vld [vmem:[#allocation2 + $0x82] sm:$0xff]  ;;  %v1915_v57 = vld [vmem:[#allocation2 + $0x71] sm:$0xff] }
 0x520   : > { %v1963_v58 = vld [vmem:[#allocation2 + $0x72] sm:$0xff] }
 0x521   : > { %2126 = vrot.lane.b32.xlu0 %v2105_v49, %s9873_s27  ;;  %2120 = vrot.lane.b32.xlu1 %v2245_v35, %s9873_s27 }
 0x525   : > { %1934 = vrot.lane.b32.xlu0 %v1913_v40, %s9864_s26  ;;  %2078 = vrot.lane.b32.xlu1 %v1914_v51, %s9870_s14 }
 0x529   : > { %1982 = vrot.lane.b32.xlu0 %v1961_v41, %s9866_s23  ;;  %1984 = vrot.lane.b32.xlu1 %v2105_v49, %s9866_s23 }
 0x52d   : > { %2170 = vrot.lane.b32.xlu0 %v2151_v48, %s9871_s18  ;;  %2172 = vrot.lane.b32.xlu1 %v2009_v37, %s9871_s18 }
 0x531   : > { %2218 = vrot.lane.b32.xlu0 %v1913_v40, %s9872_s25  ;;  %2220 = vrot.lane.b32.xlu1 %v1914_v51, %s9872_s25 }
 0x535   : > { %2124 = vrot.lane.b32.xlu0 %v1961_v41, %s9873_s27  ;;  %2268 = vrot.lane.b32.xlu1 %v2105_v49, %s9874_s29 }
 0x539   : > { %2034 = vrot.lane.b32.xlu0 %v2011_v43, %s9868_s19  ;;  %2028 = vrot.lane.b32.xlu1 %v2151_v48, %s9868_s19 }
 0x53d   : > { %2082 = vrot.lane.b32.xlu0 %v2059_v47, %s9870_s14  ;;  %2076 = vrot.lane.b32.xlu1 %v1913_v40, %s9870_s14 }
 0x541   : > { %2176 = vrot.lane.b32.xlu0 %v2011_v43, %s9871_s18  ;;  %2266 = vrot.lane.b32.xlu1 %v1961_v41, %s9874_s29 }
 0x545   : > { %2224 = vrot.lane.b32.xlu0 %v2059_v47, %s9872_s25  ;;  %2130 = vrot.lane.b32.xlu1 %v2107_v50, %s9873_s27 }
 0x549   : > { %1938 = vrot.lane.b32.xlu0 %v1915_v57, %s9864_s26  ;;  %2032 = vrot.lane.b32.xlu1 %v2010_v39, %s9868_s19 }
 0x54d   : > { %1986 = vrot.lane.b32.xlu0 %v1963_v58, %s9866_s23  ;;  %2080 = vrot.lane.b32.xlu1 %v1915_v57, %s9870_s14 }
 0x551   : > { %2174 = vrot.lane.b32.xlu0 %v2010_v39, %s9871_s18  ;;  %2128 = vrot.lane.b32.xlu1 %v1963_v58, %s9873_s27 }
 0x553   : > { %v2165_v1 = vpop.permute.xlu0 %2164  ;;  %v2023_v33 = vpop.permute.xlu1 %2022 }
 0x555   : > { %2222 = vrot.lane.b32.xlu0 %v1915_v57, %s9872_s25  ;;  %2274 = vrot.lane.b32.xlu1 %v2251_v61, %s9874_s29 }
 0x557   : > { %v2213_v42 = vpop.permute.xlu0 %2212  ;;  %v2071_v2 = vpop.permute.xlu1 %2070 }
 0x559   : > { %2270 = vrot.lane.b32.xlu0 %v1963_v58, %s9874_s29  ;;  %3324 = vrot.lane.b32.xlu1 %v10711_v54, %s9866_s23 }
 0x55b   : > { %v2261_v3 = vpop.permute.xlu0 %2260  ;;  %v2119_v4 = vpop.permute.xlu1 %2118 }
 0x55d   : > { %2272 = vrot.lane.b32.xlu0 %v2107_v50, %s9874_s29  ;;  %3372 = vrot.lane.b32.xlu1 %v10719_v56, %s9868_s19  ;;  %s8801_s29 = sshll.u32 %s14761_s20, 10 }
 0x55e   : > { %s12569_s12 = scalar_lea.vmem %s14516_s11, %s8801_s29 }
 0x55f   : > { %v1929_v5 = vpop.permute.xlu0 %1928  ;;  %v1927_v6 = vpop.permute.xlu1 %1926 }
 0x560   : > { %1950 = vst.msk [vmem:[#allocation3 + $0x10] sm:$0xff] %vm1217_vm13, %v1929_v5  ;;  %1949 = vst.msk [vmem:[#allocation3 + $0x8] sm:$0xff] %vm1217_vm13, %v1927_v6 }
 0x561   : > { %2653 = vrot.lane.b32.xlu0 %v10709_v53, %s9864_s26  ;;  %3628 = vrot.lane.b32.xlu1 %v10719_v56, %s9866_s23 }
 0x563   : > { %v1977_v54 = vpop.permute.xlu0 %1976  ;;  %v1975_v7 = vpop.permute.xlu1 %1974 }
 0x564   : > { %1998 = vst.msk [vmem:[#allocation3 + $0x10] sm:$0xff] %vm1266_vm14, %v1977_v54  ;;  %1997 = vst.msk [vmem:[#allocation3 + $0x8] sm:$0xff] %vm1266_vm14, %v1975_v7 }
 0x565   : > { %2045 = vst.msk [vmem:[#allocation3 + $0x8] sm:$0xff] %vm1315_vm15, %v2023_v33  ;;  %2958 = vrot.lane.b32.xlu0 %v10717_v55, %s9864_s26  ;;  %3676 = vrot.lane.b32.xlu1 %v2251_v61, %s9868_s19 }
 0x566   : > { %2093 = vst.msk [vmem:[#allocation3 + $0x8] sm:$0xff] %vm1364_vm1, %v2071_v2 }
 0x567   : > { %v2021_v45 = vpop.permute.xlu0 %2020  ;;  %2141 = vst.msk [vmem:[#allocation3 + $0x8] sm:$0xff] %vm1413_vm3, %v2119_v4  ;;  %v2027_v53 = vpop.permute.xlu1 %2026 }
 0x568   : > { %2044 = vst.msk [vmem:[#allocation3] sm:$0xff] %vm1315_vm15, %v2021_v45 }
 0x56b   : > { %v2069_v56 = vpop.permute.xlu0 %2068  ;;  %v1933_v44 = vpop.permute.xlu1 %1932 }
 0x56c   : > { %2092 = vst.msk [vmem:[#allocation3] sm:$0xff] %vm1364_vm1, %v2069_v56 }
 0x56d   : > { %1952 = vst.msk [vmem:[#allocation3 + $0x20] sm:$0xff] %vm1217_vm13, %v1933_v44 }
 0x56f   : > { %v2117_v10 = vpop.permute.xlu0 %2116  ;;  %v1981_v12 = vpop.permute.xlu1 %1980 }
 0x570   : > { %2140 = vst.msk [vmem:[#allocation3] sm:$0xff] %vm1413_vm3, %v2117_v10 }
 0x571   : > { %2000 = vst.msk [vmem:[#allocation3 + $0x20] sm:$0xff] %vm1266_vm14, %v1981_v12 }
 0x572   : > { %2188 = vst.msk [vmem:[#allocation3] sm:$0xff] %vm1462_vm7, %v2165_v1 }
 0x573   : > { %2236 = vst.msk [vmem:[#allocation3] sm:$0xff] %vm1511_vm8, %v2213_v42  ;;  %v2075_v55 = vpop.permute.xlu0 %2074  ;;  %v2169_v11 = vpop.permute.xlu1 %2168 }
 0x574   : > { %2284 = vst.msk [vmem:[#allocation3] sm:$0xff] %vm1560_vm9, %v2261_v3 }
 0x577   : > { %v2123_v13 = vpop.permute.xlu0 %2122  ;;  %v2217_v14 = vpop.permute.xlu1 %2216 }
 0x57b   : > { %v2292_v15 = vld [vmem:[#allocation3] sm:$0xff]  ;;  %v2025_v16 = vpop.permute.xlu0 %2024  ;;  %v2265_v17 = vpop.permute.xlu1 %2264 }
 0x57c   : > { %9135 = vmatprep.mubr.msk.f32.mxu1 %vm1583_vm10, %v2292_v15  ;;  %2046 = vst.msk [vmem:[#allocation3 + $0x10] sm:$0xff] %vm1315_vm15, %v2025_v16 }
 0x57f   : > { %v2073_v60 = vpop.permute.xlu0 %2072  ;;  %v2167_v18 = vpop.permute.xlu1 %2166 }
 0x580   : > { %2094 = vst.msk [vmem:[#allocation3 + $0x10] sm:$0xff] %vm1364_vm1, %v2073_v60 }
 0x581   : > { %2189 = vst.msk [vmem:[#allocation3 + $0x8] sm:$0xff] %vm1462_vm7, %v2167_v18 }
 0x583   : > { %v2215_v19 = vpop.permute.xlu1 %2214 }
 0x584   : > { %2237 = vst.msk [vmem:[#allocation3 + $0x8] sm:$0xff] %vm1511_vm8, %v2215_v19 }
 0x587   : > { %v2263_v20 = vpop.permute.xlu1 %2262 }
 0x588   : > { %2285 = vst.msk [vmem:[#allocation3 + $0x8] sm:$0xff] %vm1560_vm9, %v2263_v20 }
 0x58b   : > { %v2031_v22 = vpop.permute.xlu0 %2030  ;;  %v1931_v24 = vpop.permute.xlu1 %1930 }
 0x58c   : > { %1951 = vst.msk [vmem:[#allocation3 + $0x18] sm:$0xff] %vm1217_vm13, %v1931_v24 }
 0x58f   : > { %v1937_v27 = vpop.permute.xlu0 %1936  ;;  %v1979_v28 = vpop.permute.xlu1 %1978  ;;  %v2293_v9 = vld [vmem:[#allocation3 + $0x8] sm:$0xff] }
 0x590   : > { %1954 = vst.msk [vmem:[#allocation3 + $0x30] sm:$0xff] %vm1217_vm13, %v1937_v27  ;;  %9136 = vmatmul.mubr.msk.f32.vlgmr.msra.gmra.mrb[8].mxu1 %vm1583_vm10, %v2293_v9 }
 0x591   : > { %1999 = vst.msk [vmem:[#allocation3 + $0x18] sm:$0xff] %vm1266_vm14, %v1979_v28 }
 0x592   : > { %2047 = vst.msk [vmem:[#allocation3 + $0x18] sm:$0xff] %vm1315_vm15, %v2027_v53 }
 0x593   : > { %2095 = vst.msk [vmem:[#allocation3 + $0x18] sm:$0xff] %vm1364_vm1, %v2075_v55  ;;  %v2127_v30 = vpop.permute.xlu0 %2126  ;;  %v2121_v31 = vpop.permute.xlu1 %2120 }
 0x594   : > { %2143 = vst.msk [vmem:[#allocation3 + $0x18] sm:$0xff] %vm1413_vm3, %v2123_v13  ;;  %2142 = vst.msk [vmem:[#allocation3 + $0x10] sm:$0xff] %vm1413_vm3, %v2121_v31 }
 0x595   : > { %2190 = vst.msk [vmem:[#allocation3 + $0x10] sm:$0xff] %vm1462_vm7, %v2169_v11 }
 0x596   : > { %2238 = vst.msk [vmem:[#allocation3 + $0x10] sm:$0xff] %vm1511_vm8, %v2217_v14 }
 0x597   : > { %2286 = vst.msk [vmem:[#allocation3 + $0x10] sm:$0xff] %vm1560_vm9, %v2265_v17  ;;  %v1935_v21 = vpop.permute.xlu0 %1934  ;;  %v2079_v34 = vpop.permute.xlu1 %2078 }
 0x598   : > { %1953 = vst.msk [vmem:[#allocation3 + $0x28] sm:$0xff] %vm1217_vm13, %v1935_v21 }
 0x59b   : > { %v1983_v35 = vpop.permute.xlu0 %1982  ;;  %v1985_v36 = vpop.permute.xlu1 %1984 }
 0x59c   : > { %2001 = vst.msk [vmem:[#allocation3 + $0x28] sm:$0xff] %vm1266_vm14, %v1983_v35  ;;  %2002 = vst.msk [vmem:[#allocation3 + $0x30] sm:$0xff] %vm1266_vm14, %v1985_v36 }
 0x59d   : > { %2049 = vst.msk [vmem:[#allocation3 + $0x28] sm:$0xff] %vm1315_vm15, %v2031_v22 }
 0x59e   : > { %2097 = vst.msk [vmem:[#allocation3 + $0x28] sm:$0xff] %vm1364_vm1, %v2079_v34  ;;  %v2294_v37 = vld [vmem:[#allocation3 + $0x10] sm:$0xff] }
 0x59f   : > { %2145 = vst.msk [vmem:[#allocation3 + $0x28] sm:$0xff] %vm1413_vm3, %v2127_v30  ;;  %v2171_v48 = vpop.permute.xlu0 %2170  ;;  %v2173_v51 = vpop.permute.xlu1 %2172  ;;  %9138 = vmatprep.mubr.msk.f32.mxu1 %vm1583_vm10, %v2294_v37 }
 0x5a0   : > { %2191 = vst.msk [vmem:[#allocation3 + $0x18] sm:$0xff] %vm1462_vm7, %v2171_v48  ;;  %v4273_v48 = vld [vmem:[#allocation4 + $0x9] sm:$0xff] }
 0x5a1   : > { %4338 = vrot.lane.b32.xlu1 %v4273_v48, %s9863_s28 }
 0x5a3   : > { %v2219_v39 = vpop.permute.xlu0 %2218  ;;  %v2221_v49 = vpop.permute.xlu1 %2220 }
 0x5a4   : > { %2239 = vst.msk [vmem:[#allocation3 + $0x18] sm:$0xff] %vm1511_vm8, %v2219_v39  ;;  %v5307_v39 = vld [vmem:[#allocation4 + $0xa] sm:$0xff] }
 0x5a5   : > { %5372 = vrot.lane.b32.xlu1 %v5307_v39, %s9863_s28 }
 0x5a7   : > { %v2125_v40 = vpop.permute.xlu0 %2124  ;;  %v2269_v41 = vpop.permute.xlu1 %2268 }
 0x5ab   : > { %v2035_v43 = vpop.permute.xlu0 %2034  ;;  %v2029_v47 = vpop.permute.xlu1 %2028 }
 0x5ac   : > { %2048 = vst.msk [vmem:[#allocation3 + $0x20] sm:$0xff] %vm1315_vm15, %v2029_v47 }
 0x5af   : > { %v2083_v50 = vpop.permute.xlu0 %2082  ;;  %v2077_v57 = vpop.permute.xlu1 %2076 }
 0x5b0   : > { %2096 = vst.msk [vmem:[#allocation3 + $0x20] sm:$0xff] %vm1364_vm1, %v2077_v57  ;;  %v4208_v57 = vld [vmem:[#allocation4] sm:$0xff] }
 0x5b1   : > { %2144 = vst.msk [vmem:[#allocation3 + $0x20] sm:$0xff] %vm1413_vm3, %v2125_v40 }
 0x5b2   : > { %2192 = vst.msk [vmem:[#allocation3 + $0x20] sm:$0xff] %vm1462_vm7, %v2173_v51  ;;  %v5306_v51 = vld [vmem:[#allocation4 + $0x2] sm:$0xff] }
 0x5b3   : > { %2240 = vst.msk [vmem:[#allocation3 + $0x20] sm:$0xff] %vm1511_vm8, %v2221_v49  ;;  %v2177_v58 = vpop.permute.xlu0 %2176  ;;  %v2267_v61 = vpop.permute.xlu1 %2266 }
 0x5b4   : > { %2288 = vst.msk [vmem:[#allocation3 + $0x20] sm:$0xff] %vm1560_vm9, %v2269_v41  ;;  %2287 = vst.msk [vmem:[#allocation3 + $0x18] sm:$0xff] %vm1560_vm9, %v2267_v61  ;;  %v2621_v41 = vld [vmem:[#allocation2] sm:$0xff] }
 0x5b5   : > { %2629 = vst.msk [vmem:[#allocation3] sm:$0xff] %vm477_vm0, %v2621_v41 }
 0x5b6   : > { %4240 = vst.msk [vmem:[#allocation5] sm:$0xff] %vm499_vm2, %v4208_v57 }
 0x5b7   : > { %v2225_v1 = vpop.permute.xlu0 %2224  ;;  %v2131_v33 = vpop.permute.xlu1 %2130 }
 0x5bb   : > { %v1939_v42 = vpop.permute.xlu0 %1938  ;;  %v2033_v2 = vpop.permute.xlu1 %2032  ;;  %v2295_v3 = vld [vmem:[#allocation3 + $0x18] sm:$0xff]  ;;  %v2296_v4 = vld [vmem:[#allocation3 + $0x20] sm:$0xff] }
 0x5bc   : > { %1955 = vst.msk [vmem:[#allocation3 + $0x38] sm:$0xff] %vm1217_vm13, %v1939_v42  ;;  %9139 = vmatmul.mubr.msk.f32.gmra.mrb[10].mxu1 %vm1583_vm10, %v2295_v3 }
 0x5bd   : > { %2050 = vst.msk [vmem:[#allocation3 + $0x30] sm:$0xff] %vm1315_vm15, %v2033_v2  ;;  %9141 = vmatprep.mubr.msk.f32.mxu1 %vm1583_vm10, %v2296_v4 }
 0x5bf   : > { %v1987_v5 = vpop.permute.xlu0 %1986  ;;  %v2081_v6 = vpop.permute.xlu1 %2080 }
 0x5c0   : > { %2003 = vst.msk [vmem:[#allocation3 + $0x38] sm:$0xff] %vm1266_vm14, %v1987_v5 }
 0x5c1   : > { %2098 = vst.msk [vmem:[#allocation3 + $0x30] sm:$0xff] %vm1364_vm1, %v2081_v6 }
 0x5c2   : > { %2051 = vst.msk [vmem:[#allocation3 + $0x38] sm:$0xff] %vm1315_vm15, %v2035_v43 }
 0x5c3   : > { %2099 = vst.msk [vmem:[#allocation3 + $0x38] sm:$0xff] %vm1364_vm1, %v2083_v50  ;;  %v2175_v54 = vpop.permute.xlu0 %2174  ;;  %v2129_v7 = vpop.permute.xlu1 %2128  ;;  %vm3887_vm1 = vcmask 24576  }
 0x5c4   : > { %2147 = vst.msk [vmem:[#allocation3 + $0x38] sm:$0xff] %vm1413_vm3, %v2131_v33  ;;  %2146 = vst.msk [vmem:[#allocation3 + $0x30] sm:$0xff] %vm1413_vm3, %v2129_v7  ;;  %vm3904_vm3 = vcmask 25601  }
 0x5c5   : > { %2195 = vst.msk [vmem:[#allocation3 + $0x38] sm:$0xff] %vm1462_vm7, %v10834_v52  ;;  %2193 = vst.msk [vmem:[#allocation3 + $0x28] sm:$0xff] %vm1462_vm7, %v2175_v54 }
 0x5c6   : > { %2243 = vst.msk [vmem:[#allocation3 + $0x38] sm:$0xff] %vm1511_vm8, %v10840_v29 }
 0x5c7   : > { %2194 = vst.msk [vmem:[#allocation3 + $0x30] sm:$0xff] %vm1462_vm7, %v2177_v58  ;;  %v2223_v45 = vpop.permute.xlu0 %2222  ;;  %v2275_v53 = vpop.permute.xlu1 %2274  ;;  %v4209_v58 = vld [vmem:[#allocation4 + $0x8] sm:$0xff]  ;;  %vm3921_vm7 = vcmask 26626  }
 0x5c8   : > { %2242 = vst.msk [vmem:[#allocation3 + $0x30] sm:$0xff] %vm1511_vm8, %v2225_v1  ;;  %2241 = vst.msk [vmem:[#allocation3 + $0x28] sm:$0xff] %vm1511_vm8, %v2223_v45  ;;  %vm3938_vm8 = vcmask 27651  }
 0x5c9   : > { %2291 = vst.msk [vmem:[#allocation3 + $0x38] sm:$0xff] %vm1560_vm9, %v2275_v53 }
 0x5ca   : > { %4241 = vst.msk [vmem:[#allocation5 + $0x8] sm:$0xff] %vm499_vm2, %v4209_v58 }
 0x5cb   : > { %v2271_v56 = vpop.permute.xlu0 %2270  ;;  %v10987_v49 = vpop.permute.xlu1 %3324 }
 0x5cc   : > { %2289 = vst.msk [vmem:[#allocation3 + $0x28] sm:$0xff] %vm1560_vm9, %v2271_v56  ;;  %v2605_v56 = vld [vmem:[%s14512_s7 + $0x8] sm:$0xff] }
 0x5cf   : > { %v2273_v52 = vpop.permute.xlu0 %2272  ;;  %v10989_v40 = vpop.permute.xlu1 %3372 }
 0x5d0   : > { %2290 = vst.msk [vmem:[#allocation3 + $0x30] sm:$0xff] %vm1560_vm9, %v2273_v52  ;;  %v2299_v29 = vld [vmem:[#allocation3 + $0x38] sm:$0xff]  ;;  %vm4886_vm9 = vcmask 130048  }
 0x5d3   : > { %v2297_v44 = vld [vmem:[#allocation3 + $0x28] sm:$0xff]  ;;  %v2654_v43 = vpop.permute.xlu0 %2653  ;;  %v10991_v47 = vpop.permute.xlu1 %3628 }
 0x5d4   : > { %9142 = vmatmul.mubr.msk.f32.gmra.mrb[12].mxu1 %vm1583_vm10, %v2297_v44  ;;  %2677 = vst.msk [vmem:[#allocation3] sm:$0xff] %vm1217_vm13, %v2654_v43  ;;  %v2606_v44 = vld [vmem:[%s14512_s7 + $0x10] sm:$0xff] }
 0x5d7   : > { %v2298_v10 = vld [vmem:[#allocation3 + $0x30] sm:$0xff]  ;;  %v10995_v0 = vpop.permute.xlu0 %2958  ;;  %v10997_v50 = vpop.permute.xlu1 %3676 }
 0x5d8   : > { %9144 = vmatprep.mubr.msk.f32.mxu1 %vm1583_vm10, %v2298_v10 }
 0x5d9   : > { %9145 = vmatmul.mubr.msk.f32.gmra.mrb[14].mxu1 %vm1583_vm10, %v2299_v29  ;;  %v2607_v29 = vld [vmem:[%s14512_s7 + $0x18] sm:$0xff]  ;;  %vm5208_vm10 = vcmask 23552  }
 0x5da   : > { %v9493_v10 = vpack.c.bf16 %v2607_v29, %v2606_v44 }
 0x613   : > { %v4339_v1 = vpop.permute.xlu1 %4338 }
 0x614   : > { %4433 = vst.msk [vmem:[#allocation5 + $0x8] sm:$0xff] %vm634_vm4, %v4339_v1 }
 0x663   : > { %v9137_v12 = vpop.f32.mrb[8].mxu1 }
 0x664   : > { %v2402_v55 = vadd.f32 %v9137_v12, %v10690_v62  ;;  %v2396_v11 = vpop.f32.mrb[9].mxu1 }
 0x665   : > { %v2397_v13 = vadd.f32 %v10690_v62, %v2396_v11  ;;  %v2609_v11 = vld [vmem:[%s14512_s7 + $0x28] sm:$0xff] }
 0x666   : > { %v2436_v15 = vmax.f32 %v2402_v55, 0.0  ;;  %v2608_v55 = vld [vmem:[%s14512_s7 + $0x20] sm:$0xff] }
 0x667   : > { %v2435_v14 = vmax.f32 %v2397_v13, 0.0  ;;  %v9497_v13 = vpack.c.bf16 %v2609_v11, %v2608_v55 }
 0x669   : > { %9149 = vmatprep.mubr.msk.f32.mxu0 %vm477_vm0, %v2435_v14  ;;  %v2610_v14 = vld [vmem:[%s14512_s7 + $0x30] sm:$0xff]  ;;  %9498 = vmatprep.subr.bf16.mxu0 %v9497_v13 }
 0x66a   : > { %9150 = vmatmul.mubr.msk.f32.vlgmr.msra.gmra.mrb[16].mxu0 %vm477_vm0, %v2436_v15  ;;  %v2611_v15 = vld [vmem:[%s14512_s7 + $0x38] sm:$0xff] }
 0x66b   : > { %9500 = vmatpush3.bf16.msra.mxu0 %v9497_v13 }
 0x68f   : > { %v9140_v16 = vpop.f32.mrb[10].mxu1 }
 0x690   : > { %v2412_v17 = vadd.f32 %v9140_v16, %v10690_v62  ;;  %v2406_v60 = vpop.f32.mrb[11].mxu1 }
 0x691   : > { %v2407_v18 = vadd.f32 %v10690_v62, %v2406_v60 }
 0x692   : > { %v2438_v20 = vmax.f32 %v2412_v17, 0.0  ;;  %v9501_v17 = vpack.c.bf16 %v2611_v15, %v2610_v14 }
 0x693   : > { %v2437_v19 = vmax.f32 %v2407_v18, 0.0 }
 0x694   : > { %9502 = vmatprep.subr.bf16.mxu0 %v9501_v17 }
 0x695   : > { %9152 = vmatprep.mubr.msk.f32.mxu0 %vm477_vm0, %v2437_v19  ;;  %9504 = vmatpush3.bf16.msra.mxu0 %v9501_v17 }
 0x696   : > { %9153 = vmatmul.mubr.msk.f32.gmra.mrb[18].mxu0 %vm477_vm0, %v2438_v20 }
 0x6a7   : > { %v9143_v22 = vpop.f32.mrb[12].mxu1 }
 0x6a8   : > { %v2422_v24 = vadd.f32 %v9143_v22, %v10690_v62  ;;  %v2416_v27 = vpop.f32.mrb[13].mxu1 }
 0x6a9   : > { %v2417_v28 = vadd.f32 %v10690_v62, %v2416_v27 }
 0x6aa   : > { %v2440_v30 = vmax.f32 %v2422_v24, 0.0 }
 0x6ab   : > { %v2439_v9 = vmax.f32 %v2417_v28, 0.0 }
 0x6ac   : > { %v9146_v31 = vpop.f32.mrb[14].mxu1 }
 0x6ad   : > { %v2432_v21 = vadd.f32 %v9146_v31, %v10690_v62  ;;  %v2426_v34 = vpop.f32.mrb[15].mxu1  ;;  %9155 = vmatprep.mubr.msk.f32.mxu0 %vm477_vm0, %v2439_v9 }
 0x6ae   : > { %v2427_v35 = vadd.f32 %v10690_v62, %v2426_v34  ;;  %9156 = vmatmul.mubr.msk.f32.gmra.mrb[20].mxu0 %vm477_vm0, %v2440_v30  ;;  %v4272_v62 = vld [vmem:[#allocation4 + $0x1] sm:$0xff] }
 0x6af   : > { %v2442_v36 = vmax.f32 %v2432_v21, 0.0  ;;  %4336 = vrot.lane.b32.xlu0 %v4272_v62, %s9863_s28 }
 0x6b0   : > { %v2441_v37 = vmax.f32 %v2427_v35, 0.0 }
 0x6b2   : > { %9158 = vmatprep.mubr.msk.f32.mxu0 %vm477_vm0, %v2441_v37 }
 0x6b3   : > { %9159 = vmatmul.mubr.msk.f32.gmra.mrb[22].mxu0 %vm477_vm0, %v2442_v36  ;;  %5370 = vrot.lane.b32.xlu0 %v5306_v51, %s9863_s28 }
 0x721   : > { %v4337_v61 = vpop.permute.xlu0 %4336 }
 0x722   : > { %4432 = vst.msk [vmem:[#allocation5] sm:$0xff] %vm634_vm4, %v4337_v61 }
 0x73d   : > { %v9151_v33 = vpop.f32.mrb[16].mxu0 }
 0x73e   : > { %v2547_v42 = vadd.f32 %v9151_v33, %v10726_v59  ;;  %v2541_v2 = vpop.f32.mrb[17].mxu0 }
 0x73f   : > { %v2542_v3 = vadd.f32 %v10726_v59, %v2541_v2  ;;  %v11178_v2 = vpop.permute.xlu0 %5370 }
 0x740   : > { %v2581_v4 = vadd.f32 %v2547_v42, %v10732_v38 }
 0x741   : > { %v2580_v5 = vadd.f32 %v2542_v3, %v10735_v46  ;;  %v2604_v46 = vld [vmem:[%s14512_s7] sm:$0xff]  ;;  %v11180_v3 = vpop.permute.xlu1 %5372 }
 0x742   : > { %v2589_v6 = vmax.f32 %v2581_v4, 0.0  ;;  %v9489_v52 = vpack.c.bf16 %v2605_v56, %v2604_v46 }
 0x743   : > { %v2588_v54 = vmax.f32 %v2580_v5, 0.0 }
 0x744   : > { %2597 = vst.msk [vmem:[#allocation2 + $0x21] sm:$0xff] %vm477_vm0, %v2589_v6  ;;  %9490 = vmatprep.subr.bf16.mxu1 %v9489_v52 }
 0x745   : > { %2596 = vst.msk [vmem:[#allocation2 + $0x11] sm:$0xff] %vm477_vm0, %v2588_v54  ;;  %9492 = vmatpush3.bf16.msra.mxu1 %v9489_v52 }
 0x746   : > { %9494 = vmatprep.subr.bf16.mxu1 %v9493_v10 }
 0x749   : > { %9496 = vmatpush3.bf16.msra.mxu1 %v9493_v10 }
 0x74b   : > { %v11009_v7 = vld [vmem:[#allocation2 + $0x20] sm:$0xff] }
 0x74c   : > { %v11011_v45 = vld [vmem:[#allocation2 + $0x21] sm:$0xff]  ;;  %2703 = vrot.lane.b32.xlu1 %v11009_v7, %s9866_s23  ;;  %v11017_v53 = vld [vmem:[#allocation2 + $0x10] sm:$0xff]  ;;  %2631 = vst.msk [vmem:[#allocation3 + $0x10] sm:$0xff] %vm477_vm0, %v11009_v7 }
 0x74d   : > { %2657 = vrot.lane.b32.xlu0 %v11011_v45, %s9864_s26  ;;  %2630 = vst.msk [vmem:[#allocation3 + $0x8] sm:$0xff] %vm477_vm0, %v11017_v53  ;;  %v2944_v38 = vld [vmem:[#allocation2 + $0x22] sm:$0xff]  ;;  %v11051_v12 = vld [vmem:[#allocation2 + $0x11] sm:$0xff] }
 0x74e   : > { %v2943_v16 = vld [vmem:[#allocation2 + $0x12] sm:$0xff] }
 0x750   : > { %2751 = vrot.lane.b32.xlu1 %v11011_v45, %s9868_s19 }
 0x751   : > { %2962 = vrot.lane.b32.xlu0 %v2944_v38, %s9864_s26 }
 0x754   : > { %3008 = vrot.lane.b32.xlu1 %v11011_v45, %s9866_s23 }
 0x755   : > { %3310 = vrot.lane.b32.xlu0 %v11009_v7, %s9866_s23 }
 0x758   : > { %3056 = vrot.lane.b32.xlu1 %v2944_v38, %s9868_s19 }
 0x759   : > { %3358 = vrot.lane.b32.xlu0 %v11011_v45, %s9868_s19 }
 0x75c   : > { %3264 = vrot.lane.b32.xlu1 %v11011_v45, %s9864_s26 }
 0x75d   : > { %3614 = vrot.lane.b32.xlu0 %v11011_v45, %s9866_s23 }
 0x760   : > { %3568 = vrot.lane.b32.xlu1 %v2944_v38, %s9864_s26 }
 0x761   : > { %3662 = vrot.lane.b32.xlu0 %v2944_v38, %s9868_s19 }
 0x764   : > { %2655 = vrot.lane.b32.xlu1 %v11051_v12, %s9864_s26 }
 0x765   : > { %2701 = vrot.lane.b32.xlu0 %v11017_v53, %s9866_s23 }
 0x768   : > { %2960 = vrot.lane.b32.xlu1 %v2943_v16, %s9864_s26 }
 0x769   : > { %2749 = vrot.lane.b32.xlu0 %v11051_v12, %s9868_s19  ;;  %v9154_v60 = vpop.f32.mrb[18].mxu0 }
 0x76a   : > { %v2557_v18 = vadd.f32 %v9154_v60, %v10726_v59  ;;  %v2551_v19 = vpop.f32.mrb[19].mxu0 }
 0x76b   : > { %v2552_v20 = vadd.f32 %v10726_v59, %v2551_v19 }
 0x76c   : > { %v2583_v22 = vadd.f32 %v2557_v18, %v10744_v63 }
 0x76d   : > { %3006 = vrot.lane.b32.xlu0 %v11051_v12, %s9866_s23  ;;  %v2582_v24 = vadd.f32 %v2552_v20, %v10750_v8  ;;  %v2926_v20 = vld [vmem:[#allocation2 + $0x1] sm:$0xff] }
 0x76e   : > { %v2591_v27 = vmax.f32 %v2583_v22, 0.0 }
 0x76f   : > { %v2590_v28 = vmax.f32 %v2582_v24, 0.0 }
 0x770   : > { %2599 = vst.msk [vmem:[#allocation2 + $0x41] sm:$0xff] %vm477_vm0, %v2591_v27 }
 0x771   : > { %3054 = vrot.lane.b32.xlu0 %v2943_v16, %s9868_s19  ;;  %2598 = vst.msk [vmem:[#allocation2 + $0x31] sm:$0xff] %vm477_vm0, %v2590_v28 }
 0x775   : > { %3262 = vrot.lane.b32.xlu0 %v11051_v12, %s9864_s26 }
 0x777   : > { %v11083_v9 = vld [vmem:[#allocation2 + $0x40] sm:$0xff] }
 0x778   : > { %2707 = vrot.lane.b32.xlu1 %v11083_v9, %s9866_s23  ;;  %v11088_v63 = vld [vmem:[#allocation2 + $0x30] sm:$0xff]  ;;  %2633 = vst.msk [vmem:[#allocation3 + $0x20] sm:$0xff] %vm477_vm0, %v11083_v9  ;;  %v11094_v8 = vld [vmem:[#allocation2 + $0x41] sm:$0xff] }
 0x779   : > { %3566 = vrot.lane.b32.xlu0 %v2943_v16, %s9864_s26  ;;  %2632 = vst.msk [vmem:[#allocation3 + $0x18] sm:$0xff] %vm477_vm0, %v11088_v63  ;;  %v2946_v30 = vld [vmem:[#allocation2 + $0x42] sm:$0xff] }
 0x77c   : > { %2755 = vrot.lane.b32.xlu1 %v11094_v8, %s9868_s19 }
 0x77d   : > { %2661 = vrot.lane.b32.xlu0 %v11094_v8, %s9864_s26 }
 0x780   : > { %3012 = vrot.lane.b32.xlu1 %v11094_v8, %s9866_s23 }
 0x781   : > { %2966 = vrot.lane.b32.xlu0 %v2946_v30, %s9864_s26  ;;  %v9157_v31 = vpop.f32.mrb[20].mxu0 }
 0x782   : > { %v2567_v21 = vadd.f32 %v9157_v31, %v10726_v59  ;;  %v2561_v34 = vpop.f32.mrb[21].mxu0  ;;  %v2612_v31 = vld [vmem:[%s14512_s7 + $0x40] sm:$0xff] }
 0x783   : > { %v2562_v35 = vadd.f32 %v10726_v59, %v2561_v34 }
 0x784   : > { %v2585_v36 = vadd.f32 %v2567_v21, %v10782_v25  ;;  %3060 = vrot.lane.b32.xlu1 %v2946_v30, %s9868_s19 }
 0x785   : > { %3314 = vrot.lane.b32.xlu0 %v11083_v9, %s9866_s23  ;;  %v2584_v37 = vadd.f32 %v2562_v35, %v10787_v26 }
 0x786   : > { %v2593_v62 = vmax.f32 %v2585_v36, 0.0  ;;  %v9160_v48 = vpop.f32.mrb[22].mxu0 }
 0x787   : > { %v2592_v51 = vmax.f32 %v2584_v37, 0.0  ;;  %v2577_v39 = vadd.f32 %v9160_v48, %v10726_v59  ;;  %v2571_v41 = vpop.f32.mrb[23].mxu0  ;;  %v2614_v37 = vld [vmem:[%s14512_s7 + $0x50] sm:$0xff] }
 0x788   : > { %2601 = vst.msk [vmem:[#allocation2 + $0x61] sm:$0xff] %vm477_vm0, %v2593_v62  ;;  %v2572_v43 = vadd.f32 %v10726_v59, %v2571_v41  ;;  %3268 = vrot.lane.b32.xlu1 %v11094_v8, %s9864_s26  ;;  %v11125_v59 = vld [vmem:[#allocation2 + $0x31] sm:$0xff] }
 0x789   : > { %3362 = vrot.lane.b32.xlu0 %v11094_v8, %s9868_s19  ;;  %2600 = vst.msk [vmem:[#allocation2 + $0x51] sm:$0xff] %vm477_vm0, %v2592_v51  ;;  %v2587_v25 = vadd.f32 %v2577_v39, %v10797_v32  ;;  %v2615_v62 = vld [vmem:[%s14512_s7 + $0x58] sm:$0xff] }
 0x78a   : > { %v2586_v26 = vadd.f32 %v2572_v43, %v10800_v23  ;;  %v2945_v23 = vld [vmem:[#allocation2 + $0x32] sm:$0xff]  ;;  %v9509_v48 = vpack.c.bf16 %v2615_v62, %v2614_v37 }
 0x78b   : > { %v2595_v57 = vmax.f32 %v2587_v25, 0.0  ;;  %v2616_v25 = vld [vmem:[%s14512_s7 + $0x60] sm:$0xff] }
 0x78c   : > { %v2594_v58 = vmax.f32 %v2586_v26, 0.0  ;;  %3572 = vrot.lane.b32.xlu1 %v2946_v30, %s9864_s26  ;;  %v2617_v26 = vld [vmem:[%s14512_s7 + $0x68] sm:$0xff] }
 0x78d   : > { %3618 = vrot.lane.b32.xlu0 %v11094_v8, %s9866_s23  ;;  %2603 = vst.msk [vmem:[#allocation2 + $0x81] sm:$0xff] %vm477_vm0, %v2595_v57 }
 0x78e   : > { %2602 = vst.msk [vmem:[#allocation2 + $0x71] sm:$0xff] %vm477_vm0, %v2594_v58  ;;  %v9513_v58 = vpack.c.bf16 %v2617_v26, %v2616_v25 }
 0x78f   : > { %v11127_v61 = vld [vmem:[#allocation2 + $0x60] sm:$0xff] }
 0x790   : > { %2659 = vrot.lane.b32.xlu1 %v11125_v59, %s9864_s26  ;;  %v11132_v32 = vld [vmem:[#allocation2 + $0x50] sm:$0xff]  ;;  %2635 = vst.msk [vmem:[#allocation3 + $0x30] sm:$0xff] %vm477_vm0, %v11127_v61  ;;  %v11162_v33 = vld [vmem:[#allocation2 + $0x61] sm:$0xff]  ;;  %9514 = vmatprep.subr.bf16.mxu0 %v9513_v58 }
 0x791   : > { %3666 = vrot.lane.b32.xlu0 %v2946_v30, %s9868_s19  ;;  %2634 = vst.msk [vmem:[#allocation3 + $0x28] sm:$0xff] %vm477_vm0, %v11132_v32  ;;  %v2948_v42 = vld [vmem:[#allocation2 + $0x62] sm:$0xff]  ;;  %v11186_v6 = vld [vmem:[#allocation2 + $0x51] sm:$0xff] }
 0x792   : > { %v2947_v46 = vld [vmem:[#allocation2 + $0x52] sm:$0xff] }
 0x794   : > { %2964 = vrot.lane.b32.xlu1 %v2945_v23, %s9864_s26  ;;  %v11222_v16 = vld [vmem:[#allocation2 + $0x80] sm:$0xff] }
 0x795   : > { %2705 = vrot.lane.b32.xlu0 %v11088_v63, %s9866_s23  ;;  %v11141_v1 = vld [vmem:[#allocation2 + $0x70] sm:$0xff]  ;;  %v11230_v60 = vld [vmem:[#allocation2 + $0x81] sm:$0xff] }
 0x796   : > { %2636 = vst.msk [vmem:[#allocation3 + $0x38] sm:$0xff] %vm477_vm0, %v11141_v1  ;;  %v3045_v28 = vld [vmem:[#allocation2 + $0x82] sm:$0xff]  ;;  %v11282_v43 = vld [vmem:[#allocation2 + $0x71] sm:$0xff] }
 0x797   : > { %v2949_v57 = vld [vmem:[#allocation2 + $0x72] sm:$0xff] }
 0x798   : > { %3312 = vrot.lane.b32.xlu1 %v11088_v63, %s9866_s23 }
 0x799   : > { %2753 = vrot.lane.b32.xlu0 %v11125_v59, %s9868_s19 }
 0x79c   : > { %3360 = vrot.lane.b32.xlu1 %v11125_v59, %s9868_s19 }
 0x79d   : > { %3010 = vrot.lane.b32.xlu0 %v11125_v59, %s9866_s23 }
 0x7a0   : > { %3616 = vrot.lane.b32.xlu1 %v11125_v59, %s9866_s23 }
 0x7a1   : > { %3058 = vrot.lane.b32.xlu0 %v2945_v23, %s9868_s19 }
 0x7a4   : > { %3664 = vrot.lane.b32.xlu1 %v2945_v23, %s9868_s19 }
 0x7a5   : > { %3266 = vrot.lane.b32.xlu0 %v11125_v59, %s9864_s26 }
 0x7a8   : > { %2711 = vrot.lane.b32.xlu1 %v11127_v61, %s9866_s23 }
 0x7a9   : > { %3570 = vrot.lane.b32.xlu0 %v2945_v23, %s9864_s26 }
 0x7ac   : > { %2759 = vrot.lane.b32.xlu1 %v11162_v33, %s9868_s19 }
 0x7ad   : > { %2665 = vrot.lane.b32.xlu0 %v11162_v33, %s9864_s26 }
 0x7b0   : > { %3016 = vrot.lane.b32.xlu1 %v11162_v33, %s9866_s23 }
 0x7b1   : > { %2970 = vrot.lane.b32.xlu0 %v2948_v42, %s9864_s26 }
 0x7b4   : > { %3064 = vrot.lane.b32.xlu1 %v2948_v42, %s9868_s19 }
 0x7b5   : > { %3318 = vrot.lane.b32.xlu0 %v11127_v61, %s9866_s23 }
 0x7b8   : > { %3272 = vrot.lane.b32.xlu1 %v11162_v33, %s9864_s26 }
 0x7b9   : > { %3366 = vrot.lane.b32.xlu0 %v11162_v33, %s9868_s19 }
 0x7bc   : > { %3576 = vrot.lane.b32.xlu1 %v2948_v42, %s9864_s26 }
 0x7bd   : > { %3622 = vrot.lane.b32.xlu0 %v11162_v33, %s9866_s23 }
 0x7be   : > { %v2704_v4 = vpop.permute.xlu1 %2703 }
 0x7bf   : > { %v2658_v5 = vpop.permute.xlu0 %2657 }
 0x7c0   : > { %2679 = vst.msk [vmem:[#allocation3 + $0x10] sm:$0xff] %vm1217_vm13, %v2658_v5  ;;  %2663 = vrot.lane.b32.xlu1 %v11186_v6, %s9864_s26  ;;  %v2619_v5 = vld [vmem:[%s14512_s7 + $0x78] sm:$0xff] }
 0x7c1   : > { %3670 = vrot.lane.b32.xlu0 %v2948_v42, %s9868_s19 }
 0x7c2   : > { %v2752_v54 = vpop.permute.xlu1 %2751 }
 0x7c3   : > { %v11191_v38 = vpop.permute.xlu0 %2962 }
 0x7c4   : > { %2968 = vrot.lane.b32.xlu1 %v2947_v46, %s9864_s26 }
 0x7c5   : > { %2709 = vrot.lane.b32.xlu0 %v11132_v32, %s9866_s23 }
 0x7c6   : > { %v3009_v56 = vpop.permute.xlu1 %3008 }
 0x7c7   : > { %v11196_v52 = vpop.permute.xlu0 %3310 }
 0x7c8   : > { %3316 = vrot.lane.b32.xlu1 %v11132_v32, %s9866_s23 }
 0x7c9   : > { %2757 = vrot.lane.b32.xlu0 %v11186_v6, %s9868_s19 }
 0x7ca   : > { %v3057_v44 = vpop.permute.xlu1 %3056 }
 0x7cb   : > { %v11202_v29 = vpop.permute.xlu0 %3358 }
 0x7cc   : > { %3364 = vrot.lane.b32.xlu1 %v11186_v6, %s9868_s19 }
 0x7cd   : > { %3014 = vrot.lane.b32.xlu0 %v11186_v6, %s9866_s23 }
 0x7ce   : > { %v3265_v10 = vpop.permute.xlu1 %3264 }
 0x7cf   : > { %v11208_v55 = vpop.permute.xlu0 %3614 }
 0x7d0   : > { %3620 = vrot.lane.b32.xlu1 %v11186_v6, %s9866_s23 }
 0x7d1   : > { %3062 = vrot.lane.b32.xlu0 %v2947_v46, %s9868_s19 }
 0x7d2   : > { %v11213_v11 = vpop.permute.xlu1 %3568 }
 0x7d3   : > { %v11215_v13 = vpop.permute.xlu0 %3662 }
 0x7d4   : > { %3668 = vrot.lane.b32.xlu1 %v2947_v46, %s9868_s19 }
 0x7d5   : > { %3270 = vrot.lane.b32.xlu0 %v11186_v6, %s9864_s26 }
 0x7d6   : > { %v2656_v15 = vpop.permute.xlu1 %2655 }
 0x7d7   : > { %v2702_v14 = vpop.permute.xlu0 %2701  ;;  %2678 = vst.msk [vmem:[#allocation3 + $0x8] sm:$0xff] %vm1217_vm13, %v2656_v15 }
 0x7d8   : > { %2725 = vst.msk [vmem:[#allocation3] sm:$0xff] %vm1266_vm14, %v2702_v14  ;;  %2726 = vst.msk [vmem:[#allocation3 + $0x8] sm:$0xff] %vm1266_vm14, %v2704_v4  ;;  %2715 = vrot.lane.b32.xlu1 %v11222_v16, %s9866_s23  ;;  %v2618_v4 = vld [vmem:[%s14512_s7 + $0x70] sm:$0xff] }
 0x7d9   : > { %3574 = vrot.lane.b32.xlu0 %v2947_v46, %s9864_s26  ;;  %2774 = vst.msk [vmem:[#allocation3 + $0x8] sm:$0xff] %vm1315_vm15, %v2752_v54  ;;  %v9517_v54 = vpack.c.bf16 %v2619_v5, %v2618_v4 }
 0x7da   : > { %v2961_v22 = vpop.permute.xlu1 %2960 }
 0x7db   : > { %v2750_v17 = vpop.permute.xlu0 %2749 }
 0x7dc   : > { %2773 = vst.msk [vmem:[#allocation3] sm:$0xff] %vm1315_vm15, %v2750_v17  ;;  %2763 = vrot.lane.b32.xlu1 %v11230_v60, %s9868_s19 }
 0x7dd   : > { %3322 = vrot.lane.b32.xlu0 %v11222_v16, %s9866_s23 }
 0x7df   : > { %v3007_v18 = vpop.permute.xlu0 %3006 }
 0x7e0   : > { %v2782_v19 = vld [vmem:[#allocation3 + $0x8] sm:$0xff]  ;;  %3020 = vrot.lane.b32.xlu1 %v11230_v60, %s9866_s23 }
 0x7e1   : > { %3370 = vrot.lane.b32.xlu0 %v11230_v60, %s9868_s19  ;;  %2935 = vst.msk [vmem:[#allocation3 + $0x8] sm:$0xff] %vm477_vm0, %v11051_v12 }
 0x7e2   : > { %2983 = vst.msk [vmem:[#allocation3 + $0x8] sm:$0xff] %vm1217_vm13, %v2961_v22 }
 0x7e3   : > { %v2781_v24 = vld [vmem:[#allocation3] sm:$0xff]  ;;  %v3055_v27 = vpop.permute.xlu0 %3054  ;;  %3031 = vst.msk [vmem:[#allocation3 + $0x8] sm:$0xff] %vm1266_vm14, %v3009_v56 }
 0x7e4   : > { %2934 = vst.msk [vmem:[#allocation3] sm:$0xff] %vm477_vm0, %v2926_v20  ;;  %9169 = vmatprep.mubr.msk.f32.mxu1 %vm2795_vm12, %v2781_v24  ;;  %3068 = vrot.lane.b32.xlu1 %v3045_v28, %s9868_s19 }
 0x7e5   : > { %3079 = vst.msk [vmem:[#allocation3 + $0x8] sm:$0xff] %vm1315_vm15, %v3057_v44  ;;  %3626 = vrot.lane.b32.xlu0 %v11230_v60, %s9866_s23  ;;  %9170 = vmatmul.mubr.msk.f32.vlgmr.msra.gmra.mrb[16].mxu1 %vm2795_vm12, %v2782_v19 }
 0x7e6   : > { %2982 = vst.msk [vmem:[#allocation3] sm:$0xff] %vm1217_vm13, %v10995_v0  ;;  %v2613_v0 = vld [vmem:[%s14512_s7 + $0x48] sm:$0xff] }
 0x7e7   : > { %3030 = vst.msk [vmem:[#allocation3] sm:$0xff] %vm1266_vm14, %v3007_v18  ;;  %v3263_v30 = vpop.permute.xlu0 %3262  ;;  %v9505_v21 = vpack.c.bf16 %v2613_v0, %v2612_v31 }
 0x7e8   : > { %3078 = vst.msk [vmem:[#allocation3] sm:$0xff] %vm1315_vm15, %v3055_v27  ;;  %3276 = vrot.lane.b32.xlu1 %v11230_v60, %s9864_s26 }
 0x7e9   : > { %3674 = vrot.lane.b32.xlu0 %v3045_v28, %s9868_s19  ;;  %9506 = vmatprep.subr.bf16.mxu1 %v9505_v21 }
 0x7ea   : > { %v2708_v35 = vpop.permute.xlu1 %2707  ;;  %9508 = vmatpush3.bf16.msra.mxu1 %v9505_v21 }
 0x7eb   : > { %v3567_v34 = vpop.permute.xlu0 %3566  ;;  %9510 = vmatprep.subr.bf16.mxu1 %v9509_v48 }
 0x7ec   : > { %v3087_v36 = vld [vmem:[#allocation3 + $0x8] sm:$0xff]  ;;  %3580 = vrot.lane.b32.xlu1 %v3045_v28, %s9864_s26 }
 0x7ed   : > { %2713 = vrot.lane.b32.xlu0 %v11141_v1, %s9866_s23  ;;  %3239 = vst.msk [vmem:[#allocation3 + $0x8] sm:$0xff] %vm477_vm0, %v11009_v7 }
 0x7ee   : > { %3287 = vst.msk [vmem:[#allocation3 + $0x8] sm:$0xff] %vm1217_vm13, %v3265_v10  ;;  %v2756_v41 = vpop.permute.xlu1 %2755  ;;  %9512 = vmatpush3.bf16.msra.mxu1 %v9509_v48 }
 0x7ef   : > { %v3086_v51 = vld [vmem:[#allocation3] sm:$0xff]  ;;  %v2662_v39 = vpop.permute.xlu0 %2661 }
 0x7f0   : > { %3238 = vst.msk [vmem:[#allocation3] sm:$0xff] %vm477_vm0, %v11017_v53  ;;  %9189 = vmatprep.mubr.msk.f32.mxu0 %vm2795_vm12, %v3086_v51  ;;  %2667 = vrot.lane.b32.xlu1 %v11282_v43, %s9864_s26 }
 0x7f1   : > { %3286 = vst.msk [vmem:[#allocation3] sm:$0xff] %vm1217_vm13, %v3263_v30  ;;  %2681 = vst.msk [vmem:[#allocation3 + $0x20] sm:$0xff] %vm1217_vm13, %v2662_v39  ;;  %9190 = vmatmul.mubr.msk.f32.vlgmr.msra.gmra.mrb[24].mxu0 %vm2795_vm12, %v3087_v36  ;;  %2761 = vrot.lane.b32.xlu0 %v11282_v43, %s9868_s19 }
 0x7f2   : > { %3334 = vst.msk [vmem:[#allocation3] sm:$0xff] %vm1266_vm14, %v11196_v52  ;;  %v3013_v53 = vpop.permute.xlu1 %3012  ;;  %9516 = vmatpush3.bf16.msra.mxu0 %v9513_v58 }
 0x7f3   : > { %3382 = vst.msk [vmem:[#allocation3] sm:$0xff] %vm1315_vm15, %v11202_v29  ;;  %v11292_v7 = vpop.permute.xlu0 %2966  ;;  %9518 = vmatprep.subr.bf16.mxu0 %v9517_v54 }
 0x7f4   : > { %2972 = vrot.lane.b32.xlu1 %v2949_v57, %s9864_s26 }
 0x7f5   : > { %3018 = vrot.lane.b32.xlu0 %v11282_v43, %s9866_s23 }
 0x7f6   : > { %v3061_v42 = vpop.permute.xlu1 %3060  ;;  %9520 = vmatpush3.bf16.msra.mxu0 %v9517_v54 }
 0x7f7   : > { %v11303_v23 = vpop.permute.xlu0 %3314 }
 0x7f8   : > { %3320 = vrot.lane.b32.xlu1 %v11141_v1, %s9866_s23 }
 0x7f9   : > { %3066 = vrot.lane.b32.xlu0 %v2949_v57, %s9868_s19 }
 0x7fa   : > { %v11311_v46 = vld [vmem:[#allocation3] sm:$0xff]  ;;  %v3269_v52 = vpop.permute.xlu1 %3268 }
 0x7fb   : > { %3542 = vst.msk [vmem:[#allocation3] sm:$0xff] %vm477_vm0, %v11051_v12  ;;  %v3363_v56 = vpop.permute.xlu0 %3362 }
 0x7fc   : > { %3590 = vst.msk [vmem:[#allocation3] sm:$0xff] %vm1217_vm13, %v3567_v34  ;;  %3368 = vrot.lane.b32.xlu1 %v11282_v43, %s9868_s19 }
 0x7fd   : > { %3638 = vst.msk [vmem:[#allocation3] sm:$0xff] %vm1266_vm14, %v11208_v55  ;;  %3274 = vrot.lane.b32.xlu0 %v11282_v43, %s9864_s26 }
 0x7fe   : > { %3686 = vst.msk [vmem:[#allocation3] sm:$0xff] %vm1315_vm15, %v11215_v13  ;;  %v11329_v12 = vpop.permute.xlu1 %3572 }
 0x7ff   : > { %v11327_v44 = vpop.permute.xlu0 %3618 }
 0x800   : > { %3624 = vrot.lane.b32.xlu1 %v11282_v43, %s9866_s23 }
 0x801   : > { %3578 = vrot.lane.b32.xlu0 %v2949_v57, %s9864_s26 }
 0x802   : > { %v2660_v10 = vpop.permute.xlu1 %2659 }
 0x803   : > { %v3667_v29 = vpop.permute.xlu0 %3666  ;;  %2680 = vst.msk [vmem:[#allocation3 + $0x18] sm:$0xff] %vm1217_vm13, %v2660_v10 }
 0x804   : > { %2728 = vst.msk [vmem:[#allocation3 + $0x18] sm:$0xff] %vm1266_vm14, %v2708_v35  ;;  %3672 = vrot.lane.b32.xlu1 %v2949_v57, %s9868_s19 }
 0x805   : > { %2776 = vst.msk [vmem:[#allocation3 + $0x18] sm:$0xff] %vm1315_vm15, %v2756_v41 }
 0x806   : > { %v2965_v13 = vpop.permute.xlu1 %2964 }
 0x807   : > { %v2706_v55 = vpop.permute.xlu0 %2705 }
 0x808   : > { %2727 = vst.msk [vmem:[#allocation3 + $0x10] sm:$0xff] %vm1266_vm14, %v2706_v55 }
 0x80a   : > { %v3313_v15 = vpop.permute.xlu1 %3312 }
 0x80b   : > { %v2754_v14 = vpop.permute.xlu0 %2753  ;;  %3335 = vst.msk [vmem:[#allocation3 + $0x8] sm:$0xff] %vm1266_vm14, %v3313_v15 }
 0x80c   : > { %2775 = vst.msk [vmem:[#allocation3 + $0x10] sm:$0xff] %vm1315_vm15, %v2754_v14  ;;  %v2784_v17 = vld [vmem:[#allocation3 + $0x18] sm:$0xff] }
 0x80d   : > { %2937 = vst.msk [vmem:[#allocation3 + $0x18] sm:$0xff] %vm477_vm0, %v11125_v59 }
 0x80e   : > { %2985 = vst.msk [vmem:[#allocation3 + $0x18] sm:$0xff] %vm1217_vm13, %v2965_v13  ;;  %v3361_v19 = vpop.permute.xlu1 %3360 }
 0x80f   : > { %v3011_v18 = vpop.permute.xlu0 %3010  ;;  %3033 = vst.msk [vmem:[#allocation3 + $0x18] sm:$0xff] %vm1266_vm14, %v3013_v53 }
 0x810   : > { %3383 = vst.msk [vmem:[#allocation3 + $0x8] sm:$0xff] %vm1315_vm15, %v3361_v19  ;;  %3081 = vst.msk [vmem:[#allocation3 + $0x18] sm:$0xff] %vm1315_vm15, %v3061_v42 }
 0x812   : > { %v3617_v24 = vpop.permute.xlu1 %3616 }
 0x813   : > { %v2783_v20 = vld [vmem:[#allocation3 + $0x10] sm:$0xff]  ;;  %v3059_v22 = vpop.permute.xlu0 %3058 }
 0x814   : > { %2936 = vst.msk [vmem:[#allocation3 + $0x10] sm:$0xff] %vm477_vm0, %v11011_v45  ;;  %9172 = vmatprep.mubr.msk.f32.mxu1 %vm2795_vm12, %v2783_v20 }
 0x815   : > { %2984 = vst.msk [vmem:[#allocation3 + $0x10] sm:$0xff] %vm1217_vm13, %v11191_v38  ;;  %9173 = vmatmul.mubr.msk.f32.gmra.mrb[18].mxu1 %vm2795_vm12, %v2784_v17 }
 0x816   : > { %3032 = vst.msk [vmem:[#allocation3 + $0x10] sm:$0xff] %vm1266_vm14, %v3011_v18  ;;  %v3665_v30 = vpop.permute.xlu1 %3664 }
 0x817   : > { %3080 = vst.msk [vmem:[#allocation3 + $0x10] sm:$0xff] %vm1315_vm15, %v3059_v22  ;;  %v11355_v27 = vld [vmem:[#allocation3 + $0x8] sm:$0xff]  ;;  %v3267_v28 = vpop.permute.xlu0 %3266  ;;  %v3089_v31 = vld [vmem:[#allocation3 + $0x18] sm:$0xff] }
 0x818   : > { %3543 = vst.msk [vmem:[#allocation3 + $0x8] sm:$0xff] %vm477_vm0, %v11011_v45  ;;  %3241 = vst.msk [vmem:[#allocation3 + $0x18] sm:$0xff] %vm477_vm0, %v11083_v9 }
 0x819   : > { %3591 = vst.msk [vmem:[#allocation3 + $0x8] sm:$0xff] %vm1217_vm13, %v11213_v11  ;;  %3289 = vst.msk [vmem:[#allocation3 + $0x18] sm:$0xff] %vm1217_vm13, %v3269_v52 }
 0x81a   : > { %3639 = vst.msk [vmem:[#allocation3 + $0x8] sm:$0xff] %vm1266_vm14, %v3617_v24  ;;  %v2712_v0 = vpop.permute.xlu1 %2711 }
 0x81b   : > { %3687 = vst.msk [vmem:[#allocation3 + $0x8] sm:$0xff] %vm1315_vm15, %v3665_v30  ;;  %v3571_v38 = vpop.permute.xlu0 %3570 }
 0x81e   : > { %v3088_v21 = vld [vmem:[#allocation3 + $0x10] sm:$0xff]  ;;  %v2760_v34 = vpop.permute.xlu1 %2759 }
 0x81f   : > { %3240 = vst.msk [vmem:[#allocation3 + $0x10] sm:$0xff] %vm477_vm0, %v11088_v63  ;;  %v2666_v45 = vpop.permute.xlu0 %2665  ;;  %9192 = vmatprep.mubr.msk.f32.mxu0 %vm2795_vm12, %v3088_v21 }
 0x820   : > { %3288 = vst.msk [vmem:[#allocation3 + $0x10] sm:$0xff] %vm1217_vm13, %v3267_v28  ;;  %2683 = vst.msk [vmem:[#allocation3 + $0x30] sm:$0xff] %vm1217_vm13, %v2666_v45  ;;  %9193 = vmatmul.mubr.msk.f32.gmra.mrb[26].mxu0 %vm2795_vm12, %v3089_v31 }
 0x821   : > { %3336 = vst.msk [vmem:[#allocation3 + $0x10] sm:$0xff] %vm1266_vm14, %v11303_v23 }
 0x822   : > { %3384 = vst.msk [vmem:[#allocation3 + $0x10] sm:$0xff] %vm1315_vm15, %v3363_v56  ;;  %v3017_v11 = vpop.permute.xlu1 %3016 }
 0x823   : > { %v11375_v9 = vpop.permute.xlu0 %2970 }
 0x826   : > { %v3065_v63 = vpop.permute.xlu1 %3064 }
 0x827   : > { %v3319_v35 = vpop.permute.xlu0 %3318 }
 0x829   : > { %v11377_v36 = vld [vmem:[#allocation3 + $0x10] sm:$0xff] }
 0x82a   : > { %3544 = vst.msk [vmem:[#allocation3 + $0x10] sm:$0xff] %vm477_vm0, %v11125_v59  ;;  %v3273_v62 = vpop.permute.xlu1 %3272 }
 0x82b   : > { %3592 = vst.msk [vmem:[#allocation3 + $0x10] sm:$0xff] %vm1217_vm13, %v3571_v38  ;;  %v3367_v37 = vpop.permute.xlu0 %3366 }
 0x82c   : > { %3640 = vst.msk [vmem:[#allocation3 + $0x10] sm:$0xff] %vm1266_vm14, %v11327_v44 }
 0x82d   : > { %3688 = vst.msk [vmem:[#allocation3 + $0x10] sm:$0xff] %vm1315_vm15, %v3667_v29 }
 0x82e   : > { %v11385_v51 = vpop.permute.xlu1 %3576 }
 0x82f   : > { %v3623_v48 = vpop.permute.xlu0 %3622 }
 0x832   : > { %v2664_v41 = vpop.permute.xlu1 %2663 }
 0x833   : > { %v3671_v39 = vpop.permute.xlu0 %3670  ;;  %2682 = vst.msk [vmem:[#allocation3 + $0x28] sm:$0xff] %vm1217_vm13, %v2664_v41 }
 0x834   : > { %2730 = vst.msk [vmem:[#allocation3 + $0x28] sm:$0xff] %vm1266_vm14, %v2712_v0 }
 0x835   : > { %2778 = vst.msk [vmem:[#allocation3 + $0x28] sm:$0xff] %vm1315_vm15, %v2760_v34 }
 0x836   : > { %v2969_v53 = vpop.permute.xlu1 %2968 }
 0x837   : > { %v2710_v59 = vpop.permute.xlu0 %2709 }
 0x838   : > { %2729 = vst.msk [vmem:[#allocation3 + $0x20] sm:$0xff] %vm1266_vm14, %v2710_v59 }
 0x83a   : > { %v3317_v26 = vpop.permute.xlu1 %3316 }
 0x83b   : > { %v2758_v25 = vpop.permute.xlu0 %2757  ;;  %3337 = vst.msk [vmem:[#allocation3 + $0x18] sm:$0xff] %vm1266_vm14, %v3317_v26 }
 0x83c   : > { %2777 = vst.msk [vmem:[#allocation3 + $0x20] sm:$0xff] %vm1315_vm15, %v2758_v25  ;;  %v2786_v57 = vld [vmem:[#allocation3 + $0x28] sm:$0xff] }
 0x83d   : > { %2939 = vst.msk [vmem:[#allocation3 + $0x28] sm:$0xff] %vm477_vm0, %v11186_v6 }
 0x83e   : > { %2987 = vst.msk [vmem:[#allocation3 + $0x28] sm:$0xff] %vm1217_vm13, %v2969_v53  ;;  %v3365_v23 = vpop.permute.xlu1 %3364 }
 0x83f   : > { %v3015_v58 = vpop.permute.xlu0 %3014  ;;  %3035 = vst.msk [vmem:[#allocation3 + $0x28] sm:$0xff] %vm1266_vm14, %v3017_v11 }
 0x840   : > { %3385 = vst.msk [vmem:[#allocation3 + $0x18] sm:$0xff] %vm1315_vm15, %v3365_v23  ;;  %3083 = vst.msk [vmem:[#allocation3 + $0x28] sm:$0xff] %vm1315_vm15, %v3065_v63 }
 0x842   : > { %v3621_v5 = vpop.permute.xlu1 %3620 }
 0x843   : > { %v2785_v42 = vld [vmem:[#allocation3 + $0x20] sm:$0xff]  ;;  %v3063_v4 = vpop.permute.xlu0 %3062 }
 0x844   : > { %2938 = vst.msk [vmem:[#allocation3 + $0x20] sm:$0xff] %vm477_vm0, %v11094_v8  ;;  %9175 = vmatprep.mubr.msk.f32.mxu1 %vm2795_vm12, %v2785_v42 }
 0x845   : > { %2986 = vst.msk [vmem:[#allocation3 + $0x20] sm:$0xff] %vm1217_vm13, %v11292_v7  ;;  %9176 = vmatmul.mubr.msk.f32.gmra.mrb[20].mxu1 %vm2795_vm12, %v2786_v57 }
 0x846   : > { %3034 = vst.msk [vmem:[#allocation3 + $0x20] sm:$0xff] %vm1266_vm14, %v3015_v58  ;;  %v3669_v52 = vpop.permute.xlu1 %3668 }
 0x847   : > { %3082 = vst.msk [vmem:[#allocation3 + $0x20] sm:$0xff] %vm1315_vm15, %v3063_v4  ;;  %v11407_v54 = vld [vmem:[#allocation3 + $0x18] sm:$0xff]  ;;  %v3271_v56 = vpop.permute.xlu0 %3270  ;;  %v3091_v44 = vld [vmem:[#allocation3 + $0x28] sm:$0xff] }
 0x848   : > { %3545 = vst.msk [vmem:[#allocation3 + $0x18] sm:$0xff] %vm477_vm0, %v11094_v8  ;;  %3243 = vst.msk [vmem:[#allocation3 + $0x28] sm:$0xff] %vm477_vm0, %v11127_v61 }
 0x849   : > { %3593 = vst.msk [vmem:[#allocation3 + $0x18] sm:$0xff] %vm1217_vm13, %v11329_v12  ;;  %3291 = vst.msk [vmem:[#allocation3 + $0x28] sm:$0xff] %vm1217_vm13, %v3273_v62 }
 0x84a   : > { %3641 = vst.msk [vmem:[#allocation3 + $0x18] sm:$0xff] %vm1266_vm14, %v3621_v5  ;;  %v2716_v29 = vpop.permute.xlu1 %2715 }
 0x84b   : > { %3689 = vst.msk [vmem:[#allocation3 + $0x18] sm:$0xff] %vm1315_vm15, %v3669_v52  ;;  %v3575_v7 = vpop.permute.xlu0 %3574 }
 0x84e   : > { %v3090_v10 = vld [vmem:[#allocation3 + $0x20] sm:$0xff]  ;;  %v2764_v55 = vpop.permute.xlu1 %2763 }
 0x84f   : > { %3242 = vst.msk [vmem:[#allocation3 + $0x20] sm:$0xff] %vm477_vm0, %v11132_v32  ;;  %v3323_v8 = vpop.permute.xlu0 %3322  ;;  %9195 = vmatprep.mubr.msk.f32.mxu0 %vm2795_vm12, %v3090_v10 }
 0x850   : > { %3290 = vst.msk [vmem:[#allocation3 + $0x20] sm:$0xff] %vm1217_vm13, %v3271_v56  ;;  %9196 = vmatmul.mubr.msk.f32.gmra.mrb[28].mxu0 %vm2795_vm12, %v3091_v44 }
 0x851   : > { %3338 = vst.msk [vmem:[#allocation3 + $0x20] sm:$0xff] %vm1266_vm14, %v3319_v35 }
 0x852   : > { %3386 = vst.msk [vmem:[#allocation3 + $0x20] sm:$0xff] %vm1315_vm15, %v3367_v37  ;;  %v3021_v12 = vpop.permute.xlu1 %3020  ;;  %v3697_v11 = vld [vmem:[#allocation3 + $0x18] sm:$0xff] }
 0x853   : > { %v3371_v61 = vpop.permute.xlu0 %3370 }
 0x856   : > { %v3069_v14 = vpop.permute.xlu1 %3068 }
 0x857   : > { %v11425_v13 = vpop.permute.xlu0 %3626 }
 0x859   : > { %v3394_v15 = vld [vmem:[#allocation3 + $0x20] sm:$0xff] }
 0x85a   : > { %3546 = vst.msk [vmem:[#allocation3 + $0x20] sm:$0xff] %vm477_vm0, %v11186_v6  ;;  %v3277_v17 = vpop.permute.xlu1 %3276 }
 0x85b   : > { %3594 = vst.msk [vmem:[#allocation3 + $0x20] sm:$0xff] %vm1217_vm13, %v3575_v7  ;;  %v11430_v32 = vpop.permute.xlu0 %3674 }
 0x85c   : > { %3642 = vst.msk [vmem:[#allocation3 + $0x20] sm:$0xff] %vm1266_vm14, %v3623_v48 }
 0x85d   : > { %3690 = vst.msk [vmem:[#allocation3 + $0x20] sm:$0xff] %vm1315_vm15, %v3671_v39 }
 0x85e   : > { %v11434_v19 = vpop.permute.xlu1 %3580 }
 0x85f   : > { %v2714_v18 = vpop.permute.xlu0 %2713 }
 0x860   : > { %2731 = vst.msk [vmem:[#allocation3 + $0x30] sm:$0xff] %vm1266_vm14, %v2714_v18 }
 0x862   : > { %v2668_v22 = vpop.permute.xlu1 %2667 }
 0x863   : > { %v2762_v20 = vpop.permute.xlu0 %2761  ;;  %2684 = vst.msk [vmem:[#allocation3 + $0x38] sm:$0xff] %vm1217_vm13, %v2668_v22 }
 0x864   : > { %2779 = vst.msk [vmem:[#allocation3 + $0x30] sm:$0xff] %vm1315_vm15, %v2762_v20  ;;  %v3698_v63 = vld [vmem:[#allocation3 + $0x20] sm:$0xff] }
 0x865   : > { %2732 = vst.msk [vmem:[#allocation3 + $0x38] sm:$0xff] %vm1266_vm14, %v2716_v29 }
 0x866   : > { %2780 = vst.msk [vmem:[#allocation3 + $0x38] sm:$0xff] %vm1315_vm15, %v2764_v55  ;;  %v2973_v6 = vpop.permute.xlu1 %2972 }
 0x867   : > { %v3019_v24 = vpop.permute.xlu0 %3018 }
 0x86a   : > { %v3321_v30 = vpop.permute.xlu1 %3320 }
 0x86b   : > { %v2787_v28 = vld [vmem:[#allocation3 + $0x30] sm:$0xff]  ;;  %3339 = vst.msk [vmem:[#allocation3 + $0x28] sm:$0xff] %vm1266_vm14, %v3321_v30  ;;  %v3067_v38 = vpop.permute.xlu0 %3066 }
 0x86c   : > { %2940 = vst.msk [vmem:[#allocation3 + $0x30] sm:$0xff] %vm477_vm0, %v11162_v33  ;;  %9178 = vmatprep.mubr.msk.f32.mxu1 %vm2795_vm12, %v2787_v28 }
 0x86d   : > { %2988 = vst.msk [vmem:[#allocation3 + $0x30] sm:$0xff] %vm1217_vm13, %v11375_v9  ;;  %v2788_v31 = vld [vmem:[#allocation3 + $0x38] sm:$0xff] }
 0x86e   : > { %3036 = vst.msk [vmem:[#allocation3 + $0x30] sm:$0xff] %vm1266_vm14, %v3019_v24  ;;  %9179 = vmatmul.mubr.msk.f32.gmra.mrb[22].mxu1 %vm2795_vm12, %v2788_v31  ;;  %v3369_v0 = vpop.permute.xlu1 %3368 }
 0x86f   : > { %2941 = vst.msk [vmem:[#allocation3 + $0x38] sm:$0xff] %vm477_vm0, %v11282_v43  ;;  %9209 = vmatprep.mubr.msk.f32.mxu1 %vm2795_vm12, %v11311_v46  ;;  %v3275_v46 = vpop.permute.xlu0 %3274 }
 0x870   : > { %2989 = vst.msk [vmem:[#allocation3 + $0x38] sm:$0xff] %vm1217_vm13, %v2973_v6 }
 0x871   : > { %3084 = vst.msk [vmem:[#allocation3 + $0x30] sm:$0xff] %vm1315_vm15, %v3067_v38  ;;  %3387 = vst.msk [vmem:[#allocation3 + $0x28] sm:$0xff] %vm1315_vm15, %v3369_v0 }
 0x872   : > { %3037 = vst.msk [vmem:[#allocation3 + $0x38] sm:$0xff] %vm1266_vm14, %v3021_v12  ;;  %9210 = vmatmul.mubr.msk.f32.vlgmr.msra.gmra.mrb[24].mxu1 %vm2795_vm12, %v11355_v27  ;;  %v3625_v21 = vpop.permute.xlu1 %3624 }
 0x873   : > { %3085 = vst.msk [vmem:[#allocation3 + $0x38] sm:$0xff] %vm1315_vm15, %v3069_v14  ;;  %9212 = vmatprep.mubr.msk.f32.mxu1 %vm2795_vm12, %v11377_v36  ;;  %v3579_v36 = vpop.permute.xlu0 %3578 }
 0x876   : > { %9213 = vmatmul.mubr.msk.f32.gmra.mrb[26].mxu1 %vm2795_vm12, %v11407_v54  ;;  %v3673_v9 = vpop.permute.xlu1 %3672 }
 0x877   : > { %9215 = vmatprep.mubr.msk.f32.mxu1 %vm2795_vm12, %v3394_v15 }
 0x878   : > { %v3092_v45 = vld [vmem:[#allocation3 + $0x30] sm:$0xff]  ;;  %v3395_v34 = vld [vmem:[#allocation3 + $0x28] sm:$0xff] }
 0x879   : > { %3244 = vst.msk [vmem:[#allocation3 + $0x30] sm:$0xff] %vm477_vm0, %v11141_v1  ;;  %9198 = vmatprep.mubr.msk.f32.mxu0 %vm2795_vm12, %v3092_v45  ;;  %3547 = vst.msk [vmem:[#allocation3 + $0x28] sm:$0xff] %vm477_vm0, %v11162_v33  ;;  %v3694_v1 = vld [vmem:[#allocation3] sm:$0xff]  ;;  %v3695_v33 = vld [vmem:[#allocation3 + $0x8] sm:$0xff] }
 0x87a   : > { %3292 = vst.msk [vmem:[#allocation3 + $0x30] sm:$0xff] %vm1217_vm13, %v3275_v46  ;;  %v3093_v27 = vld [vmem:[#allocation3 + $0x38] sm:$0xff]  ;;  %3595 = vst.msk [vmem:[#allocation3 + $0x28] sm:$0xff] %vm1217_vm13, %v11385_v51  ;;  %9216 = vmatmul.mubr.msk.f32.gmra.mrb[28].mxu1 %vm2795_vm12, %v3395_v34  ;;  %v4199_v46 = vld [vmem:[%s14514_s9] sm:$0xff] }
 0x87b   : > { %3340 = vst.msk [vmem:[#allocation3 + $0x30] sm:$0xff] %vm1266_vm14, %v3323_v8  ;;  %9199 = vmatmul.mubr.msk.f32.gmra.mrb[30].mxu0 %vm2795_vm12, %v3093_v27  ;;  %3643 = vst.msk [vmem:[#allocation3 + $0x28] sm:$0xff] %vm1266_vm14, %v3625_v21  ;;  %v4200_v34 = vld [vmem:[%s14514_s9 + $0x8] sm:$0xff] }
 0x87c   : > { %3245 = vst.msk [vmem:[#allocation3 + $0x38] sm:$0xff] %vm477_vm0, %v11222_v16  ;;  %9229 = vmatprep.mubr.msk.f32.mxu0 %vm2795_vm12, %v3694_v1  ;;  %v3696_v16 = vld [vmem:[#allocation3 + $0x10] sm:$0xff]  ;;  %v9521_v27 = vpack.c.bf16 %v4200_v34, %v4199_v46 }
 0x87d   : > { %3388 = vst.msk [vmem:[#allocation3 + $0x30] sm:$0xff] %vm1315_vm15, %v3371_v61  ;;  %3691 = vst.msk [vmem:[#allocation3 + $0x28] sm:$0xff] %vm1315_vm15, %v3673_v9 }
 0x87e   : > { %3293 = vst.msk [vmem:[#allocation3 + $0x38] sm:$0xff] %vm1217_vm13, %v3277_v17  ;;  %9522 = vmatprep.subr.bf16.mxu1 %v9521_v27 }
 0x87f   : > { %3341 = vst.msk [vmem:[#allocation3 + $0x38] sm:$0xff] %vm1266_vm14, %v10987_v49  ;;  %9230 = vmatmul.mubr.msk.f32.vlgmr.msra.gmra.mrb[32].mxu0 %vm2795_vm12, %v3695_v33  ;;  %9524 = vmatpush3.bf16.msra.mxu1 %v9521_v27  ;;  %v4201_v33 = vld [vmem:[%s14514_s9 + $0x10] sm:$0xff] }
 0x880   : > { %3389 = vst.msk [vmem:[#allocation3 + $0x38] sm:$0xff] %vm1315_vm15, %v10989_v40  ;;  %9232 = vmatprep.mubr.msk.f32.mxu0 %vm2795_vm12, %v3696_v16  ;;  %v4202_v16 = vld [vmem:[%s14514_s9 + $0x18] sm:$0xff] }
 0x883   : > { %9233 = vmatmul.mubr.msk.f32.gmra.mrb[34].mxu0 %vm2795_vm12, %v3697_v11 }
 0x884   : > { %v3396_v35 = vld [vmem:[#allocation3 + $0x30] sm:$0xff]  ;;  %9235 = vmatprep.mubr.msk.f32.mxu0 %vm2795_vm12, %v3698_v63  ;;  %v3699_v40 = vld [vmem:[#allocation3 + $0x28] sm:$0xff] }
 0x885   : > { %3548 = vst.msk [vmem:[#allocation3 + $0x30] sm:$0xff] %vm477_vm0, %v11282_v43  ;;  %9218 = vmatprep.mubr.msk.f32.mxu1 %vm2795_vm12, %v3396_v35  ;;  %v9525_v35 = vpack.c.bf16 %v4202_v16, %v4201_v33 }
 0x886   : > { %3596 = vst.msk [vmem:[#allocation3 + $0x30] sm:$0xff] %vm1217_vm13, %v3579_v36 }
 0x887   : > { %v3397_v49 = vld [vmem:[#allocation3 + $0x38] sm:$0xff]  ;;  %3644 = vst.msk [vmem:[#allocation3 + $0x30] sm:$0xff] %vm1266_vm14, %v11425_v13  ;;  %9236 = vmatmul.mubr.msk.f32.gmra.mrb[36].mxu0 %vm2795_vm12, %v3699_v40  ;;  %9526 = vmatprep.subr.bf16.mxu0 %v9525_v35 }
 0x888   : > { %9219 = vmatmul.mubr.msk.f32.gmra.mrb[30].mxu1 %vm2795_vm12, %v3397_v49  ;;  %3549 = vst.msk [vmem:[#allocation3 + $0x38] sm:$0xff] %vm477_vm0, %v11230_v60  ;;  %v11511_v60 = vld [vmem:[#allocation15] ss:$0 sm:$0xff]  ;;  %vm3955_vm0 = vcmask 28676   ;;  %9528 = vmatpush3.bf16.msra.mxu0 %v9525_v35 }
 0x889   : > { %3692 = vst.msk [vmem:[#allocation3 + $0x30] sm:$0xff] %vm1315_vm15, %v11430_v32 }
 0x88a   : > { %3597 = vst.msk [vmem:[#allocation3 + $0x38] sm:$0xff] %vm1217_vm13, %v11434_v19  ;;  %vm3972_vm13 = vcmask 29701  }
 0x88b   : > { %3645 = vst.msk [vmem:[#allocation3 + $0x38] sm:$0xff] %vm1266_vm14, %v10991_v47  ;;  %vm3989_vm14 = vcmask 30726  }
 0x88c   : > { %3693 = vst.msk [vmem:[#allocation3 + $0x38] sm:$0xff] %vm1315_vm15, %v10997_v50  ;;  %vm4006_vm15 = vcmask 31751  }
 0x890   : > { %v3700_v43 = vld [vmem:[#allocation3 + $0x30] sm:$0xff] }
 0x891   : > { %9238 = vmatprep.mubr.msk.f32.mxu0 %vm2795_vm12, %v3700_v43 }
 0x893   : > { %v3701_v37 = vld [vmem:[#allocation3 + $0x38] sm:$0xff] }
 0x894   : > { %9239 = vmatmul.mubr.msk.f32.gmra.mrb[38].mxu0 %vm2795_vm12, %v3701_v37 }
 0x8b8   : > { %v9171_v62 = vpop.f32.mrb[16].mxu1 }
 0x8b9   : > { %v2892_v48 = vadd.f32 %v9171_v62, %v11511_v60  ;;  %v2886_v51 = vpop.f32.mrb[17].mxu1 }
 0x8ba   : > { %v2887_v39 = vadd.f32 %v11511_v60, %v2886_v51 }
 0x8bb   : > { %v3838_v41 = vmax.f32 %v2892_v48, 0.0 }
 0x8bc   : > { %v3837_v59 = vmax.f32 %v2887_v39, 0.0 }
 0x8bd   : > { %3846 = vst.msk [vmem:[#allocation6 + $0x10] sm:$0xff] %vm499_vm2, %v3838_v41 }
 0x8be   : > { %3845 = vst.msk [vmem:[#allocation6] sm:$0xff] %vm499_vm2, %v3837_v59 }
 0x8c4   : > { %v9191_v47 = vpop.f32.mrb[24].mxu0  ;;  %v3872_v25 = vld [vmem:[#allocation6 + $0x10] sm:$0xff] }
 0x8c5   : > { %v3196_v50 = vadd.f32 %v9191_v47, %v11511_v60  ;;  %v3190_v53 = vpop.f32.mrb[25].mxu0  ;;  %v3870_v58 = vld [vmem:[#allocation6] sm:$0xff]  ;;  %3958 = vst.msk [vmem:[#allocation4 + $0x4d] sm:$0x10] %vm3955_vm0, %v3872_v25 }
 0x8c6   : > { %v3191_v26 = vadd.f32 %v11511_v60, %v3190_v53  ;;  %3975 = vst.msk [vmem:[#allocation4 + $0x4e] sm:$0x20] %vm3972_vm13, %v3872_v25  ;;  %3973 = vst.msk [vmem:[#allocation4 + $0x1e] sm:$0x20] %vm3972_vm13, %v3870_v58 }
 0x8c7   : > { %v4024_v57 = vmax.f32 %v3196_v50, 0.0  ;;  %3992 = vst.msk [vmem:[#allocation4 + $0x4f] sm:$0x40] %vm3989_vm14, %v3872_v25  ;;  %3990 = vst.msk [vmem:[#allocation4 + $0x1f] sm:$0x40] %vm3989_vm14, %v3870_v58 }
 0x8c8   : > { %4009 = vst.msk [vmem:[#allocation4 + $0x50] sm:$0x80] %vm4006_vm15, %v3872_v25  ;;  %v4023_v23 = vmax.f32 %v3191_v26, 0.0  ;;  %4007 = vst.msk [vmem:[#allocation4 + $0x20] sm:$0x80] %vm4006_vm15, %v3870_v58 }
 0x8c9   : > { %3890 = vst.msk [vmem:[#allocation4 + $0x49] sm:$0x1] %vm3887_vm1, %v3872_v25  ;;  %3888 = vst.msk [vmem:[#allocation4 + $0x19] sm:$0x1] %vm3887_vm1, %v3870_v58 }
 0x8ca   : > { %3907 = vst.msk [vmem:[#allocation4 + $0x4a] sm:$0x2] %vm3904_vm3, %v3872_v25  ;;  %3905 = vst.msk [vmem:[#allocation4 + $0x1a] sm:$0x2] %vm3904_vm3, %v3870_v58 }
 0x8cb   : > { %3924 = vst.msk [vmem:[#allocation4 + $0x4b] sm:$0x4] %vm3921_vm7, %v3872_v25  ;;  %3922 = vst.msk [vmem:[#allocation4 + $0x1b] sm:$0x4] %vm3921_vm7, %v3870_v58 }
 0x8cc   : > { %3941 = vst.msk [vmem:[#allocation4 + $0x4c] sm:$0x8] %vm3938_vm8, %v3872_v25  ;;  %3939 = vst.msk [vmem:[#allocation4 + $0x1c] sm:$0x8] %vm3938_vm8, %v3870_v58 }
 0x8cd   : > { %3956 = vst.msk [vmem:[#allocation4 + $0x1d] sm:$0x10] %vm3955_vm0, %v3870_v58 }
 0x8ce   : > { %4032 = vst.msk [vmem:[#allocation6 + $0x10] sm:$0xff] %vm499_vm2, %v4024_v57  ;;  %4031 = vst.msk [vmem:[#allocation6] sm:$0xff] %vm499_vm2, %v4023_v23 }
 0x8d5   : > { %v4057_v42 = vld [vmem:[#allocation6 + $0x10] sm:$0xff]  ;;  %v4055_v4 = vld [vmem:[#allocation6] sm:$0xff] }
 0x8d6   : > { %4137 = vst.msk [vmem:[#allocation4 + $0x4e] sm:$0x10] %vm3955_vm0, %v4057_v42  ;;  %4135 = vst.msk [vmem:[#allocation4 + $0x1e] sm:$0x10] %vm3955_vm0, %v4055_v4 }
 0x8d7   : > { %4153 = vst.msk [vmem:[#allocation4 + $0x4f] sm:$0x20] %vm3972_vm13, %v4057_v42  ;;  %4151 = vst.msk [vmem:[#allocation4 + $0x1f] sm:$0x20] %vm3972_vm13, %v4055_v4 }
 0x8d8   : > { %4169 = vst.msk [vmem:[#allocation4 + $0x50] sm:$0x40] %vm3989_vm14, %v4057_v42  ;;  %4167 = vst.msk [vmem:[#allocation4 + $0x20] sm:$0x40] %vm3989_vm14, %v4055_v4 }
 0x8d9   : > { %4185 = vst.msk [vmem:[#allocation4 + $0x51] sm:$0x80] %vm4006_vm15, %v4057_v42  ;;  %4183 = vst.msk [vmem:[#allocation4 + $0x21] sm:$0x80] %vm4006_vm15, %v4055_v4 }
 0x8da   : > { %4073 = vst.msk [vmem:[#allocation4 + $0x4a] sm:$0x1] %vm3887_vm1, %v4057_v42  ;;  %4071 = vst.msk [vmem:[#allocation4 + $0x1a] sm:$0x1] %vm3887_vm1, %v4055_v4 }
 0x8db   : > { %4089 = vst.msk [vmem:[#allocation4 + $0x4b] sm:$0x2] %vm3904_vm3, %v4057_v42  ;;  %4087 = vst.msk [vmem:[#allocation4 + $0x1b] sm:$0x2] %vm3904_vm3, %v4055_v4 }
 0x8dc   : > { %4105 = vst.msk [vmem:[#allocation4 + $0x4c] sm:$0x4] %vm3921_vm7, %v4057_v42  ;;  %4103 = vst.msk [vmem:[#allocation4 + $0x1c] sm:$0x4] %vm3921_vm7, %v4055_v4 }
 0x8dd   : > { %4121 = vst.msk [vmem:[#allocation4 + $0x4d] sm:$0x8] %vm3938_vm8, %v4057_v42  ;;  %4119 = vst.msk [vmem:[#allocation4 + $0x1d] sm:$0x8] %vm3938_vm8, %v4055_v4 }
 0x8e0   : > { %v11553_v5 = vld [vmem:[#allocation4 + $0x51] sm:$0xff]  ;;  %v4275_v45 = vld [vmem:[#allocation4 + $0x21] sm:$0xff] }
 0x8e1   : > { %4350 = vrot.lane.b32.xlu1 %v11553_v5, %s9863_s28  ;;  %v11577_v29 = vld [vmem:[#allocation4 + $0x52] sm:$0xff]  ;;  %v5309_v9 = vld [vmem:[#allocation4 + $0x22] sm:$0xff] }
 0x8e3   : > { %v4468_v52 = vld [vmem:[#allocation4 + $0x48] sm:$0xff]  ;;  %v11562_v44 = vld [vmem:[#allocation4 + $0x18] sm:$0xff] }
 0x8e4   : > { %v11555_v54 = vld [vmem:[#allocation4 + $0x49] sm:$0xff]  ;;  %4246 = vst.msk [vmem:[#allocation5 + $0x30] sm:$0xff] %vm499_vm2, %v4468_v52  ;;  %v11565_v7 = vld [vmem:[#allocation4 + $0x20] sm:$0xff]  ;;  %4242 = vst.msk [vmem:[#allocation5 + $0x10] sm:$0xff] %vm499_vm2, %v11562_v44 }
 0x8e5   : > { %v4469_v56 = vld [vmem:[#allocation4 + $0x50] sm:$0xff]  ;;  %4348 = vrot.lane.b32.xlu0 %v11555_v54, %s9863_s28  ;;  %4243 = vst.msk [vmem:[#allocation5 + $0x18] sm:$0xff] %vm499_vm2, %v11565_v7  ;;  %v4274_v30 = vld [vmem:[#allocation4 + $0x19] sm:$0xff] }
 0x8e6   : > { %4247 = vst.msk [vmem:[#allocation5 + $0x38] sm:$0xff] %vm499_vm2, %v4469_v56  ;;  %4538 = vrot.lane.b32.xlu1 %v4469_v56, %s9864_s26  ;;  %v11579_v10 = vld [vmem:[#allocation4 + $0x4a] sm:$0xff]  ;;  %v5308_v1 = vld [vmem:[#allocation4 + $0x1a] sm:$0xff] }
 0x8e8   : > { %v9174_v8 = vpop.f32.mrb[18].mxu1 }
 0x8e9   : > { %4536 = vrot.lane.b32.xlu0 %v4468_v52, %s9864_s26  ;;  %v2902_v55 = vadd.f32 %v9174_v8, %v11511_v60  ;;  %v2896_v61 = vpop.f32.mrb[19].mxu1 }
 0x8ea   : > { %4730 = vrot.lane.b32.xlu1 %v11553_v5, %s9865_s16  ;;  %v2897_v12 = vadd.f32 %v11511_v60, %v2896_v61 }
 0x8eb   : > { %v3840_v13 = vmax.f32 %v2902_v55, 0.0 }
 0x8ec   : > { %v3839_v14 = vmax.f32 %v2897_v12, 0.0 }
 0x8ed   : > { %4728 = vrot.lane.b32.xlu0 %v11555_v54, %s9865_s16  ;;  %3848 = vst.msk [vmem:[#allocation6 + $0x30] sm:$0xff] %vm499_vm2, %v3840_v13 }
 0x8ee   : > { %5384 = vrot.lane.b32.xlu1 %v11577_v29, %s9863_s28  ;;  %3847 = vst.msk [vmem:[#allocation6 + $0x20] sm:$0xff] %vm499_vm2, %v3839_v14 }
 0x8f1   : > { %5382 = vrot.lane.b32.xlu0 %v11579_v10, %s9863_s28 }
 0x8f2   : > { %5572 = vrot.lane.b32.xlu1 %v11553_v5, %s9864_s26 }
 0x8f3   : > { %v9194_v15 = vpop.f32.mrb[26].mxu0 }
 0x8f4   : > { %v3206_v32 = vadd.f32 %v9194_v15, %v11511_v60  ;;  %v3876_v17 = vld [vmem:[#allocation6 + $0x30] sm:$0xff]  ;;  %v3200_v18 = vpop.f32.mrb[27].mxu0 }
 0x8f5   : > { %5570 = vrot.lane.b32.xlu0 %v11555_v54, %s9864_s26  ;;  %3894 = vst.msk [vmem:[#allocation4 + $0xa9] sm:$0x1] %vm3887_vm1, %v3876_v17  ;;  %v3201_v19 = vadd.f32 %v11511_v60, %v3200_v18  ;;  %v3874_v20 = vld [vmem:[#allocation6 + $0x20] sm:$0xff] }
 0x8f6   : > { %5764 = vrot.lane.b32.xlu1 %v11577_v29, %s9865_s16  ;;  %3911 = vst.msk [vmem:[#allocation4 + $0xaa] sm:$0x2] %vm3904_vm3, %v3876_v17  ;;  %v4026_v22 = vmax.f32 %v3206_v32, 0.0  ;;  %3909 = vst.msk [vmem:[#allocation4 + $0x7a] sm:$0x2] %vm3904_vm3, %v3874_v20 }
 0x8f7   : > { %3928 = vst.msk [vmem:[#allocation4 + $0xab] sm:$0x4] %vm3921_vm7, %v3876_v17  ;;  %3926 = vst.msk [vmem:[#allocation4 + $0x7b] sm:$0x4] %vm3921_vm7, %v3874_v20  ;;  %v4025_v6 = vmax.f32 %v3201_v19, 0.0 }
 0x8f8   : > { %3945 = vst.msk [vmem:[#allocation4 + $0xac] sm:$0x8] %vm3938_vm8, %v3876_v17  ;;  %3943 = vst.msk [vmem:[#allocation4 + $0x7c] sm:$0x8] %vm3938_vm8, %v3874_v20 }
 0x8f9   : > { %5762 = vrot.lane.b32.xlu0 %v11579_v10, %s9865_s16  ;;  %3962 = vst.msk [vmem:[#allocation4 + $0xad] sm:$0x10] %vm3955_vm0, %v3876_v17  ;;  %3960 = vst.msk [vmem:[#allocation4 + $0x7d] sm:$0x10] %vm3955_vm0, %v3874_v20 }
 0x8fa   : > { %6413 = vrot.lane.b32.xlu1 %v11553_v5, %s9863_s28  ;;  %3979 = vst.msk [vmem:[#allocation4 + $0xae] sm:$0x20] %vm3972_vm13, %v3876_v17  ;;  %3977 = vst.msk [vmem:[#allocation4 + $0x7e] sm:$0x20] %vm3972_vm13, %v3874_v20 }
 0x8fb   : > { %3996 = vst.msk [vmem:[#allocation4 + $0xaf] sm:$0x40] %vm3989_vm14, %v3876_v17  ;;  %3994 = vst.msk [vmem:[#allocation4 + $0x7f] sm:$0x40] %vm3989_vm14, %v3874_v20 }
 0x8fc   : > { %4013 = vst.msk [vmem:[#allocation4 + $0xb0] sm:$0x80] %vm4006_vm15, %v3876_v17  ;;  %4011 = vst.msk [vmem:[#allocation4 + $0x80] sm:$0x80] %vm4006_vm15, %v3874_v20 }
 0x8fd   : > { %6411 = vrot.lane.b32.xlu0 %v11555_v54, %s9863_s28  ;;  %3892 = vst.msk [vmem:[#allocation4 + $0x79] sm:$0x1] %vm3887_vm1, %v3874_v20 }
 0x8fe   : > { %6600 = vrot.lane.b32.xlu1 %v4468_v52, %s9864_s26  ;;  %4034 = vst.msk [vmem:[#allocation6 + $0x30] sm:$0xff] %vm499_vm2, %v4026_v22  ;;  %4033 = vst.msk [vmem:[#allocation6 + $0x20] sm:$0xff] %vm499_vm2, %v4025_v6 }
 0x901   : > { %6602 = vrot.lane.b32.xlu0 %v4469_v56, %s9864_s26 }
 0x902   : > { %6792 = vrot.lane.b32.xlu1 %v11555_v54, %s9865_s16 }
 0x905   : > { %6794 = vrot.lane.b32.xlu0 %v11553_v5, %s9865_s16  ;;  %v4061_v24 = vld [vmem:[#allocation6 + $0x30] sm:$0xff]  ;;  %v4059_v28 = vld [vmem:[#allocation6 + $0x20] sm:$0xff] }
 0x906   : > { %7633 = vrot.lane.b32.xlu1 %v11555_v54, %s9864_s26  ;;  %4077 = vst.msk [vmem:[#allocation4 + $0xaa] sm:$0x1] %vm3887_vm1, %v4061_v24  ;;  %4075 = vst.msk [vmem:[#allocation4 + $0x7a] sm:$0x1] %vm3887_vm1, %v4059_v28 }
 0x907   : > { %4093 = vst.msk [vmem:[#allocation4 + $0xab] sm:$0x2] %vm3904_vm3, %v4061_v24  ;;  %4091 = vst.msk [vmem:[#allocation4 + $0x7b] sm:$0x2] %vm3904_vm3, %v4059_v28 }
 0x908   : > { %4109 = vst.msk [vmem:[#allocation4 + $0xac] sm:$0x4] %vm3921_vm7, %v4061_v24  ;;  %4107 = vst.msk [vmem:[#allocation4 + $0x7c] sm:$0x4] %vm3921_vm7, %v4059_v28 }
 0x909   : > { %7825 = vrot.lane.b32.xlu0 %v11579_v10, %s9865_s16  ;;  %4125 = vst.msk [vmem:[#allocation4 + $0xad] sm:$0x8] %vm3938_vm8, %v4061_v24  ;;  %4123 = vst.msk [vmem:[#allocation4 + $0x7d] sm:$0x8] %vm3938_vm8, %v4059_v28 }
 0x90a   : > { %4141 = vst.msk [vmem:[#allocation4 + $0xae] sm:$0x10] %vm3955_vm0, %v4061_v24  ;;  %7635 = vrot.lane.b32.xlu1 %v11553_v5, %s9864_s26  ;;  %4139 = vst.msk [vmem:[#allocation4 + $0x7e] sm:$0x10] %vm3955_vm0, %v4059_v28 }
 0x90b   : > { %4157 = vst.msk [vmem:[#allocation4 + $0xaf] sm:$0x20] %vm3972_vm13, %v4061_v24  ;;  %4155 = vst.msk [vmem:[#allocation4 + $0x7f] sm:$0x20] %vm3972_vm13, %v4059_v28 }
 0x90c   : > { %4173 = vst.msk [vmem:[#allocation4 + $0xb0] sm:$0x40] %vm3989_vm14, %v4061_v24  ;;  %4171 = vst.msk [vmem:[#allocation4 + $0x80] sm:$0x40] %vm3989_vm14, %v4059_v28 }
 0x90d   : > { %4189 = vst.msk [vmem:[#allocation4 + $0xb1] sm:$0x80] %vm4006_vm15, %v4061_v24  ;;  %7447 = vrot.lane.b32.xlu0 %v11577_v29, %s9863_s28  ;;  %4187 = vst.msk [vmem:[#allocation4 + $0x81] sm:$0x80] %vm4006_vm15, %v4059_v28 }
 0x90e   : > { %7827 = vrot.lane.b32.xlu1 %v11577_v29, %s9865_s16 }
 0x90f   : > { %v11654_v31 = vld [vmem:[#allocation4 + $0xa8] sm:$0xff]  ;;  %v11668_v21 = vld [vmem:[#allocation4 + $0x78] sm:$0xff] }
 0x910   : > { %4254 = vst.msk [vmem:[#allocation5 + $0x70] sm:$0xff] %vm499_vm2, %v11654_v31  ;;  %4250 = vst.msk [vmem:[#allocation5 + $0x50] sm:$0xff] %vm499_vm2, %v11668_v21  ;;  %v11703_v62 = vld [vmem:[#allocation4 + $0xa9] sm:$0xff] }
 0x911   : > { %4340 = vrot.lane.b32.xlu0 %v4274_v30, %s9863_s28  ;;  %v11737_v26 = vld [vmem:[#allocation4 + $0xaa] sm:$0xff] }
 0x912   : > { %7445 = vrot.lane.b32.xlu1 %v11579_v10, %s9863_s28 }
 0x913   : > { %v11660_v38 = vld [vmem:[#allocation4 + $0xb0] sm:$0xff]  ;;  %v11664_v0 = vld [vmem:[#allocation4 + $0x80] sm:$0xff] }
 0x914   : > { %4255 = vst.msk [vmem:[#allocation5 + $0x78] sm:$0xff] %vm499_vm2, %v11660_v38  ;;  %4251 = vst.msk [vmem:[#allocation5 + $0x58] sm:$0xff] %vm499_vm2, %v11664_v0  ;;  %v11731_v53 = vld [vmem:[#allocation4 + $0xb1] sm:$0xff] }
 0x915   : > { %4528 = vrot.lane.b32.xlu0 %v11562_v44, %s9864_s26  ;;  %v11763_v58 = vld [vmem:[#allocation4 + $0xb2] sm:$0xff] }
 0x916   : > { %4342 = vrot.lane.b32.xlu1 %v4275_v45, %s9863_s28 }
 0x918   : > { %v9177_v11 = vpop.f32.mrb[20].mxu1 }
 0x919   : > { %4720 = vrot.lane.b32.xlu0 %v4274_v30, %s9865_s16  ;;  %v2912_v63 = vadd.f32 %v9177_v11, %v11511_v60  ;;  %v2906_v36 = vpop.f32.mrb[21].mxu1 }
 0x91a   : > { %4530 = vrot.lane.b32.xlu1 %v11565_v7, %s9864_s26  ;;  %v2907_v49 = vadd.f32 %v11511_v60, %v2906_v36 }
 0x91b   : > { %v3842_v40 = vmax.f32 %v2912_v63, 0.0 }
 0x91c   : > { %v3841_v43 = vmax.f32 %v2907_v49, 0.0 }
 0x91d   : > { %5374 = vrot.lane.b32.xlu0 %v5308_v1, %s9863_s28  ;;  %3850 = vst.msk [vmem:[#allocation6 + $0x50] sm:$0xff] %vm499_vm2, %v3842_v40 }
 0x91e   : > { %4722 = vrot.lane.b32.xlu1 %v4275_v45, %s9865_s16  ;;  %3849 = vst.msk [vmem:[#allocation6 + $0x40] sm:$0xff] %vm499_vm2, %v3841_v43 }
 0x921   : > { %5562 = vrot.lane.b32.xlu0 %v4274_v30, %s9864_s26 }
 0x922   : > { %5376 = vrot.lane.b32.xlu1 %v5309_v9, %s9863_s28 }
 0x923   : > { %v9197_v37 = vpop.f32.mrb[28].mxu0 }
 0x924   : > { %v3216_v48 = vadd.f32 %v9197_v37, %v11511_v60  ;;  %v3880_v51 = vld [vmem:[#allocation6 + $0x50] sm:$0xff]  ;;  %v3210_v39 = vpop.f32.mrb[29].mxu0 }
 0x925   : > { %5754 = vrot.lane.b32.xlu0 %v5308_v1, %s9865_s16  ;;  %3898 = vst.msk [vmem:[#allocation4 + $0x109] sm:$0x1] %vm3887_vm1, %v3880_v51  ;;  %v3211_v41 = vadd.f32 %v11511_v60, %v3210_v39  ;;  %v3878_v59 = vld [vmem:[#allocation6 + $0x40] sm:$0xff]  ;;  %v11872_v39 = vld [vmem:[#allocation4 + $0x81] sm:$0xff] }
 0x926   : > { %5564 = vrot.lane.b32.xlu1 %v4275_v45, %s9864_s26  ;;  %3915 = vst.msk [vmem:[#allocation4 + $0x10a] sm:$0x2] %vm3904_vm3, %v3880_v51  ;;  %v4028_v47 = vmax.f32 %v3216_v48, 0.0  ;;  %3913 = vst.msk [vmem:[#allocation4 + $0xda] sm:$0x2] %vm3904_vm3, %v3878_v59 }
 0x927   : > { %3932 = vst.msk [vmem:[#allocation4 + $0x10b] sm:$0x4] %vm3921_vm7, %v3880_v51  ;;  %3930 = vst.msk [vmem:[#allocation4 + $0xdb] sm:$0x4] %vm3921_vm7, %v3878_v59  ;;  %v4027_v50 = vmax.f32 %v3211_v41, 0.0 }
 0x928   : > { %3949 = vst.msk [vmem:[#allocation4 + $0x10c] sm:$0x8] %vm3938_vm8, %v3880_v51  ;;  %3947 = vst.msk [vmem:[#allocation4 + $0xdc] sm:$0x8] %vm3938_vm8, %v3878_v59 }
 0x929   : > { %6403 = vrot.lane.b32.xlu0 %v4274_v30, %s9863_s28  ;;  %3966 = vst.msk [vmem:[#allocation4 + $0x10d] sm:$0x10] %vm3955_vm0, %v3880_v51  ;;  %3964 = vst.msk [vmem:[#allocation4 + $0xdd] sm:$0x10] %vm3955_vm0, %v3878_v59 }
 0x92a   : > { %5756 = vrot.lane.b32.xlu1 %v5309_v9, %s9865_s16  ;;  %3983 = vst.msk [vmem:[#allocation4 + $0x10e] sm:$0x20] %vm3972_vm13, %v3880_v51  ;;  %3981 = vst.msk [vmem:[#allocation4 + $0xde] sm:$0x20] %vm3972_vm13, %v3878_v59 }
 0x92b   : > { %4000 = vst.msk [vmem:[#allocation4 + $0x10f] sm:$0x40] %vm3989_vm14, %v3880_v51  ;;  %3998 = vst.msk [vmem:[#allocation4 + $0xdf] sm:$0x40] %vm3989_vm14, %v3878_v59 }
 0x92c   : > { %4017 = vst.msk [vmem:[#allocation4 + $0x110] sm:$0x80] %vm4006_vm15, %v3880_v51  ;;  %4015 = vst.msk [vmem:[#allocation4 + $0xe0] sm:$0x80] %vm4006_vm15, %v3878_v59 }
 0x92d   : > { %7439 = vrot.lane.b32.xlu0 %v5309_v9, %s9863_s28  ;;  %3896 = vst.msk [vmem:[#allocation4 + $0xd9] sm:$0x1] %vm3887_vm1, %v3878_v59 }
 0x92e   : > { %6405 = vrot.lane.b32.xlu1 %v4275_v45, %s9863_s28  ;;  %4036 = vst.msk [vmem:[#allocation6 + $0x50] sm:$0xff] %vm499_vm2, %v4028_v47  ;;  %4035 = vst.msk [vmem:[#allocation6 + $0x40] sm:$0xff] %vm499_vm2, %v4027_v50 }
 0x931   : > { %4364 = vrot.lane.b32.xlu0 %v11703_v62, %s9863_s28 }
 0x932   : > { %7437 = vrot.lane.b32.xlu1 %v5308_v1, %s9863_s28 }
 0x935   : > { %4552 = vrot.lane.b32.xlu0 %v11654_v31, %s9864_s26  ;;  %v4065_v25 = vld [vmem:[#allocation6 + $0x50] sm:$0xff]  ;;  %v4063_v57 = vld [vmem:[#allocation6 + $0x40] sm:$0xff] }
 0x936   : > { %4366 = vrot.lane.b32.xlu1 %v11731_v53, %s9863_s28  ;;  %4081 = vst.msk [vmem:[#allocation4 + $0x10a] sm:$0x1] %vm3887_vm1, %v4065_v25  ;;  %4079 = vst.msk [vmem:[#allocation4 + $0xda] sm:$0x1] %vm3887_vm1, %v4063_v57 }
 0x937   : > { %4097 = vst.msk [vmem:[#allocation4 + $0x10b] sm:$0x2] %vm3904_vm3, %v4065_v25  ;;  %4095 = vst.msk [vmem:[#allocation4 + $0xdb] sm:$0x2] %vm3904_vm3, %v4063_v57 }
 0x938   : > { %4113 = vst.msk [vmem:[#allocation4 + $0x10c] sm:$0x4] %vm3921_vm7, %v4065_v25  ;;  %4111 = vst.msk [vmem:[#allocation4 + $0xdc] sm:$0x4] %vm3921_vm7, %v4063_v57 }
 0x939   : > { %4744 = vrot.lane.b32.xlu0 %v11703_v62, %s9865_s16  ;;  %4129 = vst.msk [vmem:[#allocation4 + $0x10d] sm:$0x8] %vm3938_vm8, %v4065_v25  ;;  %4127 = vst.msk [vmem:[#allocation4 + $0xdd] sm:$0x8] %vm3938_vm8, %v4063_v57 }
 0x93a   : > { %4145 = vst.msk [vmem:[#allocation4 + $0x10e] sm:$0x10] %vm3955_vm0, %v4065_v25  ;;  %4554 = vrot.lane.b32.xlu1 %v11660_v38, %s9864_s26  ;;  %4143 = vst.msk [vmem:[#allocation4 + $0xde] sm:$0x10] %vm3955_vm0, %v4063_v57 }
 0x93b   : > { %4161 = vst.msk [vmem:[#allocation4 + $0x10f] sm:$0x20] %vm3972_vm13, %v4065_v25  ;;  %4159 = vst.msk [vmem:[#allocation4 + $0xdf] sm:$0x20] %vm3972_vm13, %v4063_v57 }
 0x93c   : > { %4177 = vst.msk [vmem:[#allocation4 + $0x110] sm:$0x40] %vm3989_vm14, %v4065_v25  ;;  %4175 = vst.msk [vmem:[#allocation4 + $0xe0] sm:$0x40] %vm3989_vm14, %v4063_v57 }
 0x93d   : > { %4193 = vst.msk [vmem:[#allocation4 + $0x111] sm:$0x80] %vm4006_vm15, %v4065_v25  ;;  %5398 = vrot.lane.b32.xlu0 %v11737_v26, %s9863_s28  ;;  %4191 = vst.msk [vmem:[#allocation4 + $0xe1] sm:$0x80] %vm4006_vm15, %v4063_v57 }
 0x93e   : > { %4746 = vrot.lane.b32.xlu1 %v11731_v53, %s9865_s16 }
 0x93f   : > { %v11771_v42 = vld [vmem:[#allocation4 + $0x108] sm:$0xff]  ;;  %v11779_v5 = vld [vmem:[#allocation4 + $0xd8] sm:$0xff] }
 0x940   : > { %4262 = vst.msk [vmem:[#allocation5 + $0xb0] sm:$0xff] %vm499_vm2, %v11771_v42  ;;  %4258 = vst.msk [vmem:[#allocation5 + $0x90] sm:$0xff] %vm499_vm2, %v11779_v5 }
 0x941   : > { %5586 = vrot.lane.b32.xlu0 %v11703_v62, %s9864_s26  ;;  %v9180_v54 = vpop.f32.mrb[22].mxu1 }
 0x942   : > { %5400 = vrot.lane.b32.xlu1 %v11763_v58, %s9863_s28  ;;  %v2922_v56 = vadd.f32 %v9180_v54, %v11511_v60  ;;  %v2916_v52 = vpop.f32.mrb[23].mxu1 }
 0x943   : > { %v11765_v23 = vld [vmem:[#allocation4 + $0x110] sm:$0xff]  ;;  %v11775_v4 = vld [vmem:[#allocation4 + $0xe0] sm:$0xff]  ;;  %v2917_v44 = vadd.f32 %v11511_v60, %v2916_v52 }
 0x944   : > { %4263 = vst.msk [vmem:[#allocation5 + $0xb8] sm:$0xff] %vm499_vm2, %v11765_v23  ;;  %4259 = vst.msk [vmem:[#allocation5 + $0x98] sm:$0xff] %vm499_vm2, %v11775_v4  ;;  %v3844_v7 = vmax.f32 %v2922_v56, 0.0 }
 0x945   : > { %5778 = vrot.lane.b32.xlu0 %v11737_v26, %s9865_s16  ;;  %v3843_v29 = vmax.f32 %v2917_v44, 0.0  ;;  %v9211_v10 = vpop.f32.mrb[24].mxu1 }
 0x946   : > { %5588 = vrot.lane.b32.xlu1 %v11731_v53, %s9864_s26  ;;  %3852 = vst.msk [vmem:[#allocation6 + $0x70] sm:$0xff] %vm499_vm2, %v3844_v7  ;;  %v3500_v8 = vadd.f32 %v9211_v10, %v11511_v60  ;;  %v3494_v55 = vpop.f32.mrb[25].mxu1 }
 0x947   : > { %3851 = vst.msk [vmem:[#allocation6 + $0x60] sm:$0xff] %vm499_vm2, %v3843_v29  ;;  %v3495_v61 = vadd.f32 %v11511_v60, %v3494_v55 }
 0x948   : > { %v3854_v12 = vmax.f32 %v3500_v8, 0.0 }
 0x949   : > { %6427 = vrot.lane.b32.xlu0 %v11703_v62, %s9863_s28  ;;  %v3853_v13 = vmax.f32 %v3495_v61, 0.0  ;;  %v9214_v14 = vpop.f32.mrb[26].mxu1 }
 0x94a   : > { %5780 = vrot.lane.b32.xlu1 %v11763_v58, %s9865_s16  ;;  %3863 = vst.msk [vmem:[#allocation6 + $0x18] sm:$0xff] %vm499_vm2, %v3854_v12  ;;  %v3510_v15 = vadd.f32 %v9214_v14, %v11511_v60  ;;  %v3504_v18 = vpop.f32.mrb[27].mxu1 }
 0x94b   : > { %3862 = vst.msk [vmem:[#allocation6 + $0x8] sm:$0xff] %vm499_vm2, %v3853_v13  ;;  %v3505_v20 = vadd.f32 %v11511_v60, %v3504_v18 }
 0x94c   : > { %v3856_v19 = vmax.f32 %v3510_v15, 0.0 }
 0x94d   : > { %6616 = vrot.lane.b32.xlu0 %v11654_v31, %s9864_s26  ;;  %v3884_v24 = vld [vmem:[#allocation6 + $0x70] sm:$0xff]  ;;  %v9217_v30 = vpop.f32.mrb[28].mxu1  ;;  %v3855_v31 = vmax.f32 %v3505_v20, 0.0 }
 0x94e   : > { %6429 = vrot.lane.b32.xlu1 %v11731_v53, %s9863_s28  ;;  %v9200_v22 = vpop.f32.mrb[30].mxu0  ;;  %3865 = vst.msk [vmem:[#allocation6 + $0x38] sm:$0xff] %vm499_vm2, %v3856_v19  ;;  %v3882_v45 = vld [vmem:[#allocation6 + $0x60] sm:$0xff]  ;;  %v3520_v46 = vadd.f32 %v9217_v30, %v11511_v60  ;;  %v3514_v9 = vpop.f32.mrb[29].mxu1 }
 0x94f   : > { %v3226_v6 = vadd.f32 %v9200_v22, %v11511_v60  ;;  %v3220_v28 = vpop.f32.mrb[31].mxu0  ;;  %3902 = vst.msk [vmem:[#allocation4 + $0x169] sm:$0x1] %vm3887_vm1, %v3884_v24  ;;  %3900 = vst.msk [vmem:[#allocation4 + $0x139] sm:$0x1] %vm3887_vm1, %v3882_v45  ;;  %v3515_v11 = vadd.f32 %v11511_v60, %v3514_v9  ;;  %v11941_v22 = vld [vmem:[#allocation4 + $0x79] sm:$0xff] }
 0x950   : > { %3919 = vst.msk [vmem:[#allocation4 + $0x16a] sm:$0x2] %vm3904_vm3, %v3884_v24  ;;  %3917 = vst.msk [vmem:[#allocation4 + $0x13a] sm:$0x2] %vm3904_vm3, %v3882_v45  ;;  %v3858_v16 = vmax.f32 %v3520_v46, 0.0 }
 0x951   : > { %6808 = vrot.lane.b32.xlu0 %v11703_v62, %s9865_s16  ;;  %3936 = vst.msk [vmem:[#allocation4 + $0x16b] sm:$0x4] %vm3921_vm7, %v3884_v24  ;;  %v4030_v1 = vmax.f32 %v3226_v6, 0.0  ;;  %3934 = vst.msk [vmem:[#allocation4 + $0x13b] sm:$0x4] %vm3921_vm7, %v3882_v45  ;;  %v3873_v36 = vld [vmem:[#allocation6 + $0x18] sm:$0xff] }
 0x952   : > { %6618 = vrot.lane.b32.xlu1 %v11660_v38, %s9864_s26  ;;  %3953 = vst.msk [vmem:[#allocation4 + $0x16c] sm:$0x8] %vm3938_vm8, %v3884_v24  ;;  %v3221_v38 = vadd.f32 %v11511_v60, %v3220_v28  ;;  %3951 = vst.msk [vmem:[#allocation4 + $0x13c] sm:$0x8] %vm3938_vm8, %v3882_v45  ;;  %v9231_v35 = vpop.f32.mrb[32].mxu0  ;;  %v3857_v40 = vmax.f32 %v3515_v11, 0.0 }
 0x953   : > { %v4351_v32 = vpop.permute.xlu1 %4350  ;;  %3970 = vst.msk [vmem:[#allocation4 + $0x16d] sm:$0x10] %vm3955_vm0, %v3884_v24  ;;  %3968 = vst.msk [vmem:[#allocation4 + $0x13d] sm:$0x10] %vm3955_vm0, %v3882_v45  ;;  %v3804_v63 = vadd.f32 %v9231_v35, %v11511_v60  ;;  %v3798_v49 = vpop.f32.mrb[33].mxu0  ;;  %v3871_v37 = vld [vmem:[#allocation6 + $0x8] sm:$0xff] }
 0x954   : > { %4439 = vst.msk [vmem:[#allocation5 + $0x38] sm:$0xff] %vm634_vm4, %v4351_v32  ;;  %v4029_v33 = vmax.f32 %v3221_v38, 0.0  ;;  %v3799_v43 = vadd.f32 %v11511_v60, %v3798_v49  ;;  %v11979_v38 = vld [vmem:[#allocation4 + $0x82] sm:$0xff] }
 0x955   : > { %6810 = vrot.lane.b32.xlu0 %v11731_v53, %s9865_s16  ;;  %3987 = vst.msk [vmem:[#allocation4 + $0x16e] sm:$0x20] %vm3972_vm13, %v3884_v24  ;;  %3985 = vst.msk [vmem:[#allocation4 + $0x13e] sm:$0x20] %vm3972_vm13, %v3882_v45  ;;  %v4040_v51 = vmax.f32 %v3804_v63, 0.0  ;;  %v3877_v50 = vld [vmem:[#allocation6 + $0x38] sm:$0xff] }
 0x956   : > { %7649 = vrot.lane.b32.xlu1 %v11703_v62, %s9864_s26  ;;  %4004 = vst.msk [vmem:[#allocation4 + $0x16f] sm:$0x40] %vm3989_vm14, %v3884_v24  ;;  %4002 = vst.msk [vmem:[#allocation4 + $0x13f] sm:$0x40] %vm3989_vm14, %v3882_v45  ;;  %v4039_v41 = vmax.f32 %v3799_v43, 0.0  ;;  %v9234_v59 = vpop.f32.mrb[34].mxu0 }
 0x957   : > { %v4349_v17 = vpop.permute.xlu0 %4348  ;;  %4021 = vst.msk [vmem:[#allocation4 + $0x170] sm:$0x80] %vm4006_vm15, %v3884_v24  ;;  %4019 = vst.msk [vmem:[#allocation4 + $0x140] sm:$0x80] %vm4006_vm15, %v3882_v45  ;;  %v3814_v47 = vadd.f32 %v9234_v59, %v11511_v60 }
 0x958   : > { %4438 = vst.msk [vmem:[#allocation5 + $0x30] sm:$0xff] %vm634_vm4, %v4349_v17  ;;  %v11829_v34 = vpop.permute.xlu1 %4538 }
 0x959   : > { %7651 = vrot.lane.b32.xlu0 %v11731_v53, %s9864_s26  ;;  %3864 = vst.msk [vmem:[#allocation6 + $0x28] sm:$0xff] %vm499_vm2, %v3855_v31  ;;  %4038 = vst.msk [vmem:[#allocation6 + $0x70] sm:$0xff] %vm499_vm2, %v4030_v1  ;;  %v3808_v53 = vpop.f32.mrb[35].mxu0  ;;  %v4042_v54 = vmax.f32 %v3814_v47, 0.0 }
 0x95a   : > { %7841 = vrot.lane.b32.xlu1 %v11737_v26, %s9865_s16  ;;  %4037 = vst.msk [vmem:[#allocation6 + $0x60] sm:$0xff] %vm499_vm2, %v4029_v33  ;;  %3867 = vst.msk [vmem:[#allocation6 + $0x58] sm:$0xff] %vm499_vm2, %v3858_v16  ;;  %v3809_v25 = vadd.f32 %v11511_v60, %v3808_v53  ;;  %v9237_v8 = vpop.f32.mrb[36].mxu0 }
 0x95b   : > { %v11831_v27 = vpop.permute.xlu0 %4536  ;;  %3891 = vst.msk [vmem:[#allocation4 + $0x61] sm:$0x1] %vm3887_vm1, %v3873_v36  ;;  %3889 = vst.msk [vmem:[#allocation4 + $0x31] sm:$0x1] %vm3887_vm1, %v3871_v37  ;;  %v9220_v52 = vpop.f32.mrb[30].mxu1  ;;  %v3824_v61 = vadd.f32 %v9237_v8, %v11511_v60 }
 0x95c   : > { %3908 = vst.msk [vmem:[#allocation4 + $0x62] sm:$0x2] %vm3904_vm3, %v3873_v36  ;;  %v11860_v62 = vpop.permute.xlu1 %4730  ;;  %3906 = vst.msk [vmem:[#allocation4 + $0x32] sm:$0x2] %vm3904_vm3, %v3871_v37  ;;  %v4041_v7 = vmax.f32 %v3809_v25, 0.0  ;;  %v3530_v29 = vadd.f32 %v9220_v52, %v11511_v60  ;;  %v3524_v10 = vpop.f32.mrb[31].mxu1 }
 0x95d   : > { %7843 = vrot.lane.b32.xlu0 %v11763_v58, %s9865_s16  ;;  %3925 = vst.msk [vmem:[#allocation4 + $0x63] sm:$0x4] %vm3921_vm7, %v3873_v36  ;;  %3923 = vst.msk [vmem:[#allocation4 + $0x33] sm:$0x4] %vm3921_vm7, %v3871_v37  ;;  %v3818_v13 = vpop.f32.mrb[37].mxu0  ;;  %v4044_v19 = vmax.f32 %v3824_v61, 0.0 }
 0x95e   : > { %3942 = vst.msk [vmem:[#allocation4 + $0x64] sm:$0x8] %vm3938_vm8, %v3873_v36  ;;  %3940 = vst.msk [vmem:[#allocation4 + $0x34] sm:$0x8] %vm3938_vm8, %v3871_v37  ;;  %4358 = vrot.lane.b32.xlu1 %v11872_v39, %s9863_s28  ;;  %v3860_v14 = vmax.f32 %v3530_v29, 0.0  ;;  %v3819_v15 = vadd.f32 %v11511_v60, %v3818_v13 }
 0x95f   : > { %3959 = vst.msk [vmem:[#allocation4 + $0x65] sm:$0x10] %vm3955_vm0, %v3873_v36  ;;  %v11862_v48 = vpop.permute.xlu0 %4728  ;;  %3957 = vst.msk [vmem:[#allocation4 + $0x35] sm:$0x10] %vm3955_vm0, %v3871_v37 }
 0x960   : > { %3976 = vst.msk [vmem:[#allocation4 + $0x66] sm:$0x20] %vm3972_vm13, %v3873_v36  ;;  %3974 = vst.msk [vmem:[#allocation4 + $0x36] sm:$0x20] %vm3972_vm13, %v3871_v37  ;;  %v3875_v56 = vld [vmem:[#allocation6 + $0x28] sm:$0xff]  ;;  %v4069_v44 = vld [vmem:[#allocation6 + $0x70] sm:$0xff] }
 0x961   : > { %3993 = vst.msk [vmem:[#allocation4 + $0x67] sm:$0x40] %vm3989_vm14, %v3873_v36  ;;  %3991 = vst.msk [vmem:[#allocation4 + $0x37] sm:$0x40] %vm3989_vm14, %v3871_v37  ;;  %7461 = vrot.lane.b32.xlu0 %v11737_v26, %s9863_s28  ;;  %v11891_v26 = vpop.permute.xlu1 %5384  ;;  %v4067_v55 = vld [vmem:[#allocation6 + $0x60] sm:$0xff]  ;;  %v3881_v12 = vld [vmem:[#allocation6 + $0x58] sm:$0xff] }
 0x962   : > { %4010 = vst.msk [vmem:[#allocation4 + $0x68] sm:$0x80] %vm4006_vm15, %v3873_v36  ;;  %4008 = vst.msk [vmem:[#allocation4 + $0x38] sm:$0x80] %vm4006_vm15, %v3871_v37  ;;  %4546 = vrot.lane.b32.xlu1 %v11664_v0, %s9864_s26  ;;  %v4043_v24 = vmax.f32 %v3819_v15, 0.0 }
 0x963   : > { %3866 = vst.msk [vmem:[#allocation6 + $0x48] sm:$0xff] %vm499_vm2, %v3857_v40  ;;  %4048 = vst.msk [vmem:[#allocation6 + $0x18] sm:$0xff] %vm499_vm2, %v4040_v51  ;;  %v11893_v57 = vpop.permute.xlu0 %5382 }
 0x964   : > { %4047 = vst.msk [vmem:[#allocation6 + $0x8] sm:$0xff] %vm499_vm2, %v4039_v41  ;;  %4050 = vst.msk [vmem:[#allocation6 + $0x38] sm:$0xff] %vm499_vm2, %v4042_v54  ;;  %v12065_v54 = vld [vmem:[#allocation4 + $0x7a] sm:$0xff] }
 0x965   : > { %3895 = vst.msk [vmem:[#allocation4 + $0xc1] sm:$0x1] %vm3887_vm1, %v3877_v50  ;;  %3893 = vst.msk [vmem:[#allocation4 + $0x91] sm:$0x1] %vm3887_vm1, %v3875_v56  ;;  %7463 = vrot.lane.b32.xlu0 %v11763_v58, %s9863_s28  ;;  %v3525_v58 = vadd.f32 %v11511_v60, %v3524_v10  ;;  %v11937_v32 = vpop.permute.xlu1 %5572 }
 0x966   : > { %3912 = vst.msk [vmem:[#allocation4 + $0xc2] sm:$0x2] %vm3904_vm3, %v3877_v50  ;;  %3910 = vst.msk [vmem:[#allocation4 + $0x92] sm:$0x2] %vm3904_vm3, %v3875_v56  ;;  %4738 = vrot.lane.b32.xlu1 %v11872_v39, %s9865_s16 }
 0x967   : > { %3929 = vst.msk [vmem:[#allocation4 + $0xc3] sm:$0x4] %vm3921_vm7, %v3877_v50  ;;  %3927 = vst.msk [vmem:[#allocation4 + $0x93] sm:$0x4] %vm3921_vm7, %v3875_v56  ;;  %v11939_v17 = vpop.permute.xlu0 %5570  ;;  %v3859_v18 = vmax.f32 %v3525_v58, 0.0  ;;  %v9240_v9 = vpop.f32.mrb[38].mxu0 }
 0x968   : > { %3946 = vst.msk [vmem:[#allocation4 + $0xc4] sm:$0x8] %vm3938_vm8, %v3877_v50  ;;  %3944 = vst.msk [vmem:[#allocation4 + $0x94] sm:$0x8] %vm3938_vm8, %v3875_v56  ;;  %v3834_v11 = vadd.f32 %v9240_v9, %v11511_v60  ;;  %v3828_v36 = vpop.f32.mrb[39].mxu0 }
 0x969   : > { %3963 = vst.msk [vmem:[#allocation4 + $0xc5] sm:$0x10] %vm3955_vm0, %v3877_v50  ;;  %3961 = vst.msk [vmem:[#allocation4 + $0x95] sm:$0x10] %vm3955_vm0, %v3875_v56  ;;  %4356 = vrot.lane.b32.xlu0 %v11941_v22, %s9863_s28  ;;  %v11975_v30 = vpop.permute.xlu1 %5764  ;;  %v9631_v60 = vld [vmem:[#allocation15] ss:$0 sm:$0xff] }
 0x96a   : > { %3980 = vst.msk [vmem:[#allocation4 + $0xc6] sm:$0x20] %vm3972_vm13, %v3877_v50  ;;  %3978 = vst.msk [vmem:[#allocation4 + $0x96] sm:$0x20] %vm3972_vm13, %v3875_v56  ;;  %v3879_v20 = vld [vmem:[#allocation6 + $0x48] sm:$0xff]  ;;  %v4058_v6 = vld [vmem:[#allocation6 + $0x18] sm:$0xff]  ;;  %5392 = vrot.lane.b32.xlu1 %v11979_v38, %s9863_s28  ;;  %v3829_v43 = vadd.f32 %v9631_v60, %v3828_v36 }
 0x96b   : > { %3997 = vst.msk [vmem:[#allocation4 + $0xc7] sm:$0x40] %vm3989_vm14, %v3877_v50  ;;  %3995 = vst.msk [vmem:[#allocation4 + $0x97] sm:$0x40] %vm3989_vm14, %v3875_v56  ;;  %v4056_v28 = vld [vmem:[#allocation6 + $0x8] sm:$0xff]  ;;  %v11977_v31 = vpop.permute.xlu0 %5762  ;;  %v4062_v45 = vld [vmem:[#allocation6 + $0x38] sm:$0xff] }
 0x96c   : > { %4014 = vst.msk [vmem:[#allocation4 + $0xc8] sm:$0x80] %vm4006_vm15, %v3877_v50  ;;  %4012 = vst.msk [vmem:[#allocation4 + $0x98] sm:$0x80] %vm4006_vm15, %v3875_v56  ;;  %v4046_v59 = vmax.f32 %v3834_v11, 0.0  ;;  %v4045_v47 = vmax.f32 %v3829_v43, 0.0 }
 0x96d   : > { %4085 = vst.msk [vmem:[#allocation4 + $0x16a] sm:$0x1] %vm3887_vm1, %v4069_v44  ;;  %4083 = vst.msk [vmem:[#allocation4 + $0x13a] sm:$0x1] %vm3887_vm1, %v4067_v55  ;;  %4544 = vrot.lane.b32.xlu0 %v11668_v21, %s9864_s26  ;;  %v12005_v33 = vpop.permute.xlu1 %6413  ;;  %v12189_v60 = vld [vmem:[#allocation4 + $0x111] sm:$0xff] }
 0x96e   : > { %4101 = vst.msk [vmem:[#allocation4 + $0x16b] sm:$0x2] %vm3904_vm3, %v4069_v44  ;;  %4099 = vst.msk [vmem:[#allocation4 + $0x13b] sm:$0x2] %vm3904_vm3, %v4067_v55  ;;  %5580 = vrot.lane.b32.xlu1 %v11872_v39, %s9864_s26 }
 0x96f   : > { %4117 = vst.msk [vmem:[#allocation4 + $0x16c] sm:$0x4] %vm3921_vm7, %v4069_v44  ;;  %4115 = vst.msk [vmem:[#allocation4 + $0x13c] sm:$0x4] %vm3921_vm7, %v4067_v55  ;;  %v12010_v63 = vpop.permute.xlu0 %6411 }
 0x970   : > { %4133 = vst.msk [vmem:[#allocation4 + $0x16d] sm:$0x8] %vm3938_vm8, %v4069_v44  ;;  %4131 = vst.msk [vmem:[#allocation4 + $0x13d] sm:$0x8] %vm3938_vm8, %v4067_v55 }
 0x971   : > { %4149 = vst.msk [vmem:[#allocation4 + $0x16e] sm:$0x10] %vm3955_vm0, %v4069_v44  ;;  %4147 = vst.msk [vmem:[#allocation4 + $0x13e] sm:$0x10] %vm3955_vm0, %v4067_v55  ;;  %4736 = vrot.lane.b32.xlu0 %v11941_v22, %s9865_s16  ;;  %v12058_v50 = vpop.permute.xlu1 %6600 }
 0x972   : > { %4165 = vst.msk [vmem:[#allocation4 + $0x16f] sm:$0x20] %vm3972_vm13, %v4069_v44  ;;  %4163 = vst.msk [vmem:[#allocation4 + $0x13f] sm:$0x20] %vm3972_vm13, %v4067_v55  ;;  %5772 = vrot.lane.b32.xlu1 %v11979_v38, %s9865_s16 }
 0x973   : > { %4181 = vst.msk [vmem:[#allocation4 + $0x170] sm:$0x40] %vm3989_vm14, %v4069_v44  ;;  %4179 = vst.msk [vmem:[#allocation4 + $0x140] sm:$0x40] %vm3989_vm14, %v4067_v55  ;;  %v12063_v25 = vpop.permute.xlu0 %6602 }
 0x974   : > { %4197 = vst.msk [vmem:[#allocation4 + $0x171] sm:$0x80] %vm4006_vm15, %v4069_v44  ;;  %4195 = vst.msk [vmem:[#allocation4 + $0x141] sm:$0x80] %vm4006_vm15, %v4067_v55 }
 0x975   : > { %4049 = vst.msk [vmem:[#allocation6 + $0x28] sm:$0xff] %vm499_vm2, %v4041_v7  ;;  %3869 = vst.msk [vmem:[#allocation6 + $0x78] sm:$0xff] %vm499_vm2, %v3860_v14  ;;  %5390 = vrot.lane.b32.xlu0 %v12065_v54, %s9863_s28  ;;  %v12084_v7 = vpop.permute.xlu1 %6792 }
 0x976   : > { %3899 = vst.msk [vmem:[#allocation4 + $0x121] sm:$0x1] %vm3887_vm1, %v3881_v12  ;;  %3897 = vst.msk [vmem:[#allocation4 + $0xf1] sm:$0x1] %vm3887_vm1, %v3879_v20  ;;  %v12007_v16 = vld [vmem:[#allocation4 + $0x168] sm:$0xff]  ;;  %v12028_v51 = vld [vmem:[#allocation4 + $0x138] sm:$0xff]  ;;  %6421 = vrot.lane.b32.xlu1 %v11872_v39, %s9863_s28 }
 0x977   : > { %3916 = vst.msk [vmem:[#allocation4 + $0x122] sm:$0x2] %vm3904_vm3, %v3881_v12  ;;  %3914 = vst.msk [vmem:[#allocation4 + $0xf2] sm:$0x2] %vm3904_vm3, %v3879_v20  ;;  %v12090_v10 = vpop.permute.xlu0 %6794 }
 0x978   : > { %3933 = vst.msk [vmem:[#allocation4 + $0x123] sm:$0x4] %vm3921_vm7, %v3881_v12  ;;  %3931 = vst.msk [vmem:[#allocation4 + $0xf3] sm:$0x4] %vm3921_vm7, %v3879_v20 }
 0x979   : > { %3950 = vst.msk [vmem:[#allocation4 + $0x124] sm:$0x8] %vm3938_vm8, %v3881_v12  ;;  %3948 = vst.msk [vmem:[#allocation4 + $0xf4] sm:$0x8] %vm3938_vm8, %v3879_v20  ;;  %5578 = vrot.lane.b32.xlu0 %v11941_v22, %s9864_s26 }
 0x97a   : > { %3967 = vst.msk [vmem:[#allocation4 + $0x125] sm:$0x10] %vm3955_vm0, %v3881_v12  ;;  %3965 = vst.msk [vmem:[#allocation4 + $0xf5] sm:$0x10] %vm3955_vm0, %v3879_v20  ;;  %v11985_v46 = vld [vmem:[#allocation4 + $0x170] sm:$0xff]  ;;  %v12012_v49 = vld [vmem:[#allocation4 + $0x140] sm:$0xff]  ;;  %6610 = vrot.lane.b32.xlu1 %v11664_v0, %s9864_s26 }
 0x97b   : > { %3984 = vst.msk [vmem:[#allocation4 + $0x126] sm:$0x20] %vm3972_vm13, %v3881_v12  ;;  %3982 = vst.msk [vmem:[#allocation4 + $0xf6] sm:$0x20] %vm3972_vm13, %v3879_v20  ;;  %v12122_v15 = vpop.permute.xlu0 %7825 }
 0x97c   : > { %4001 = vst.msk [vmem:[#allocation4 + $0x127] sm:$0x40] %vm3989_vm14, %v3881_v12  ;;  %3999 = vst.msk [vmem:[#allocation4 + $0xf7] sm:$0x40] %vm3989_vm14, %v3879_v20  ;;  %v4060_v1 = vld [vmem:[#allocation6 + $0x28] sm:$0xff]  ;;  %v3885_v35 = vld [vmem:[#allocation6 + $0x78] sm:$0xff] }
 0x97d   : > { %4018 = vst.msk [vmem:[#allocation4 + $0x128] sm:$0x80] %vm4006_vm15, %v3881_v12  ;;  %4016 = vst.msk [vmem:[#allocation4 + $0xf8] sm:$0x80] %vm4006_vm15, %v3879_v20  ;;  %v12108_v12 = vpop.permute.xlu1 %7633  ;;  %5770 = vrot.lane.b32.xlu0 %v12065_v54, %s9865_s16 }
 0x97e   : > { %4074 = vst.msk [vmem:[#allocation4 + $0x62] sm:$0x1] %vm3887_vm1, %v4058_v6  ;;  %4072 = vst.msk [vmem:[#allocation4 + $0x32] sm:$0x1] %vm3887_vm1, %v4056_v28  ;;  %7641 = vrot.lane.b32.xlu1 %v11941_v22, %s9864_s26 }
 0x97f   : > { %4090 = vst.msk [vmem:[#allocation4 + $0x63] sm:$0x2] %vm3904_vm3, %v4058_v6  ;;  %4088 = vst.msk [vmem:[#allocation4 + $0x33] sm:$0x2] %vm3904_vm3, %v4056_v28 }
 0x980   : > { %4106 = vst.msk [vmem:[#allocation4 + $0x64] sm:$0x4] %vm3921_vm7, %v4058_v6  ;;  %4104 = vst.msk [vmem:[#allocation4 + $0x34] sm:$0x4] %vm3921_vm7, %v4056_v28 }
 0x981   : > { %4122 = vst.msk [vmem:[#allocation4 + $0x65] sm:$0x8] %vm3938_vm8, %v4058_v6  ;;  %4120 = vst.msk [vmem:[#allocation4 + $0x35] sm:$0x8] %vm3938_vm8, %v4056_v28  ;;  %v12144_v20 = vpop.permute.xlu1 %7635  ;;  %6419 = vrot.lane.b32.xlu0 %v11941_v22, %s9863_s28 }
 0x982   : > { %4138 = vst.msk [vmem:[#allocation4 + $0x66] sm:$0x10] %vm3955_vm0, %v4058_v6  ;;  %4136 = vst.msk [vmem:[#allocation4 + $0x36] sm:$0x10] %vm3955_vm0, %v4056_v28  ;;  %7643 = vrot.lane.b32.xlu1 %v11872_v39, %s9864_s26 }
 0x983   : > { %4154 = vst.msk [vmem:[#allocation4 + $0x67] sm:$0x20] %vm3972_vm13, %v4058_v6  ;;  %4152 = vst.msk [vmem:[#allocation4 + $0x37] sm:$0x20] %vm3972_vm13, %v4056_v28 }
 0x984   : > { %4170 = vst.msk [vmem:[#allocation4 + $0x68] sm:$0x40] %vm3989_vm14, %v4058_v6  ;;  %4168 = vst.msk [vmem:[#allocation4 + $0x38] sm:$0x40] %vm3989_vm14, %v4056_v28 }
 0x985   : > { %4186 = vst.msk [vmem:[#allocation4 + $0x69] sm:$0x80] %vm4006_vm15, %v4058_v6  ;;  %4184 = vst.msk [vmem:[#allocation4 + $0x39] sm:$0x80] %vm4006_vm15, %v4056_v28  ;;  %v12158_v0 = vpop.permute.xlu1 %7827  ;;  %6608 = vrot.lane.b32.xlu0 %v11668_v21, %s9864_s26 }
 0x986   : > { %3868 = vst.msk [vmem:[#allocation6 + $0x68] sm:$0xff] %vm499_vm2, %v3859_v18  ;;  %4052 = vst.msk [vmem:[#allocation6 + $0x58] sm:$0xff] %vm499_vm2, %v4044_v19  ;;  %7835 = vrot.lane.b32.xlu1 %v11979_v38, %s9865_s16 }
 0x987   : > { %4051 = vst.msk [vmem:[#allocation6 + $0x48] sm:$0xff] %vm499_vm2, %v4043_v24  ;;  %4271 = vst.msk [vmem:[#allocation5 + $0xf8] sm:$0xff] %vm499_vm2, %v11985_v46  ;;  %v12060_v53 = vld [vmem:[#allocation4 + $0x60] sm:$0xff]  ;;  %v12076_v52 = vld [vmem:[#allocation4 + $0x30] sm:$0xff]  ;;  %v12150_v24 = vpop.permute.xlu0 %7447 }
 0x988   : > { %4078 = vst.msk [vmem:[#allocation4 + $0xc2] sm:$0x1] %vm3887_vm1, %v4062_v45  ;;  %4076 = vst.msk [vmem:[#allocation4 + $0x92] sm:$0x1] %vm3887_vm1, %v4060_v1 }
 0x989   : > { %4094 = vst.msk [vmem:[#allocation4 + $0xc3] sm:$0x2] %vm3904_vm3, %v4062_v45  ;;  %4092 = vst.msk [vmem:[#allocation4 + $0x93] sm:$0x2] %vm3904_vm3, %v4060_v1  ;;  %v12171_v9 = vpop.permute.xlu1 %7445  ;;  %6800 = vrot.lane.b32.xlu0 %v11941_v22, %s9865_s16  ;;  %v5242_v22 = vld [vmem:[#allocation4 + $0x1] sm:$0xff] }
 0x98a   : > { %4110 = vst.msk [vmem:[#allocation4 + $0xc4] sm:$0x4] %vm3921_vm7, %v4062_v45  ;;  %4108 = vst.msk [vmem:[#allocation4 + $0x94] sm:$0x4] %vm3921_vm7, %v4060_v1  ;;  %7453 = vrot.lane.b32.xlu1 %v12065_v54, %s9863_s28 }
 0x98b   : > { %4126 = vst.msk [vmem:[#allocation4 + $0xc5] sm:$0x8] %vm3938_vm8, %v4062_v45  ;;  %4124 = vst.msk [vmem:[#allocation4 + $0x95] sm:$0x8] %vm3938_vm8, %v4060_v1  ;;  %v12067_v56 = vld [vmem:[#allocation4 + $0x68] sm:$0xff]  ;;  %v12080_v44 = vld [vmem:[#allocation4 + $0x38] sm:$0xff]  ;;  %v4341_v28 = vpop.permute.xlu0 %4340 }
 0x98c   : > { %4142 = vst.msk [vmem:[#allocation4 + $0xc6] sm:$0x10] %vm3955_vm0, %v4062_v45  ;;  %4140 = vst.msk [vmem:[#allocation4 + $0x96] sm:$0x10] %vm3955_vm0, %v4060_v1 }
 0x98d   : > { %4158 = vst.msk [vmem:[#allocation4 + $0xc7] sm:$0x20] %vm3972_vm13, %v4062_v45  ;;  %4156 = vst.msk [vmem:[#allocation4 + $0x97] sm:$0x20] %vm3972_vm13, %v4060_v1  ;;  %v4066_v40 = vld [vmem:[#allocation6 + $0x58] sm:$0xff]  ;;  %v3883_v37 = vld [vmem:[#allocation6 + $0x68] sm:$0xff]  ;;  %v4343_v21 = vpop.permute.xlu1 %4342  ;;  %6802 = vrot.lane.b32.xlu0 %v11872_v39, %s9865_s16 }
 0x98e   : > { %4174 = vst.msk [vmem:[#allocation4 + $0xc8] sm:$0x40] %vm3989_vm14, %v4062_v45  ;;  %4172 = vst.msk [vmem:[#allocation4 + $0x98] sm:$0x40] %vm3989_vm14, %v4060_v1  ;;  %v4064_v41 = vld [vmem:[#allocation6 + $0x48] sm:$0xff]  ;;  %4382 = vrot.lane.b32.xlu1 %v12189_v60, %s9863_s28 }
 0x98f   : > { %4190 = vst.msk [vmem:[#allocation4 + $0xc9] sm:$0x80] %vm4006_vm15, %v4062_v45  ;;  %4188 = vst.msk [vmem:[#allocation4 + $0x99] sm:$0x80] %vm4006_vm15, %v4060_v1  ;;  %v4529_v11 = vpop.permute.xlu0 %4528 }
 0x990   : > { %4270 = vst.msk [vmem:[#allocation5 + $0xf0] sm:$0xff] %vm499_vm2, %v12007_v16  ;;  %4267 = vst.msk [vmem:[#allocation5 + $0xd8] sm:$0xff] %vm499_vm2, %v12012_v49 }
 0x991   : > { %3903 = vst.msk [vmem:[#allocation4 + $0x181] sm:$0x1] %vm3887_vm1, %v3885_v35  ;;  %4082 = vst.msk [vmem:[#allocation4 + $0x122] sm:$0x1] %vm3887_vm1, %v4066_v40  ;;  %v12086_v29 = vld [vmem:[#allocation4 + $0xc0] sm:$0xff]  ;;  %v12100_v55 = vld [vmem:[#allocation4 + $0x90] sm:$0xff]  ;;  %v4531_v36 = vpop.permute.xlu1 %4530  ;;  %7833 = vrot.lane.b32.xlu0 %v12065_v54, %s9865_s16 }
 0x992   : > { %3920 = vst.msk [vmem:[#allocation4 + $0x182] sm:$0x2] %vm3904_vm3, %v3885_v35  ;;  %4098 = vst.msk [vmem:[#allocation4 + $0x123] sm:$0x2] %vm3904_vm3, %v4066_v40  ;;  %4570 = vrot.lane.b32.xlu1 %v11765_v23, %s9864_s26  ;;  %v5243_v54 = vld [vmem:[#allocation4 + $0x9] sm:$0xff] }
 0x993   : > { %3937 = vst.msk [vmem:[#allocation4 + $0x183] sm:$0x4] %vm3921_vm7, %v3885_v35  ;;  %4114 = vst.msk [vmem:[#allocation4 + $0x124] sm:$0x4] %vm3921_vm7, %v4066_v40 }
 0x994   : > { %3954 = vst.msk [vmem:[#allocation4 + $0x184] sm:$0x8] %vm3938_vm8, %v3885_v35  ;;  %4130 = vst.msk [vmem:[#allocation4 + $0x125] sm:$0x8] %vm3938_vm8, %v4066_v40 }
 0x995   : > { %3971 = vst.msk [vmem:[#allocation4 + $0x185] sm:$0x10] %vm3955_vm0, %v3885_v35  ;;  %4146 = vst.msk [vmem:[#allocation4 + $0x126] sm:$0x10] %vm3955_vm0, %v4066_v40  ;;  %v12092_v8 = vld [vmem:[#allocation4 + $0xc8] sm:$0xff]  ;;  %v12104_v58 = vld [vmem:[#allocation4 + $0x98] sm:$0xff]  ;;  %v4723_v43 = vpop.permute.xlu1 %4722  ;;  %7455 = vrot.lane.b32.xlu0 %v11979_v38, %s9863_s28 }
 0x996   : > { %3988 = vst.msk [vmem:[#allocation4 + $0x186] sm:$0x20] %vm3972_vm13, %v3885_v35  ;;  %4162 = vst.msk [vmem:[#allocation4 + $0x127] sm:$0x20] %vm3972_vm13, %v4066_v40  ;;  %4762 = vrot.lane.b32.xlu1 %v12189_v60, %s9865_s16  ;;  %v5329_v38 = vld [vmem:[#allocation4 + $0x112] sm:$0xff] }
 0x997   : > { %4005 = vst.msk [vmem:[#allocation4 + $0x187] sm:$0x40] %vm3989_vm14, %v3885_v35  ;;  %4178 = vst.msk [vmem:[#allocation4 + $0x128] sm:$0x40] %vm3989_vm14, %v4066_v40 }
 0x998   : > { %4022 = vst.msk [vmem:[#allocation4 + $0x188] sm:$0x80] %vm4006_vm15, %v3885_v35  ;;  %4194 = vst.msk [vmem:[#allocation4 + $0x129] sm:$0x80] %vm4006_vm15, %v4066_v40  ;;  %v4721_v35 = vpop.permute.xlu0 %4720 }
 0x999   : > { %3901 = vst.msk [vmem:[#allocation4 + $0x151] sm:$0x1] %vm3887_vm1, %v3883_v37  ;;  %4080 = vst.msk [vmem:[#allocation4 + $0xf2] sm:$0x1] %vm3887_vm1, %v4064_v41 }
 0x99a   : > { %3918 = vst.msk [vmem:[#allocation4 + $0x152] sm:$0x2] %vm3904_vm3, %v3883_v37  ;;  %4096 = vst.msk [vmem:[#allocation4 + $0xf3] sm:$0x2] %vm3904_vm3, %v4064_v41  ;;  %v12138_v18 = vld [vmem:[#allocation4 + $0x120] sm:$0xff]  ;;  %5416 = vrot.lane.b32.xlu1 %v5329_v38, %s9863_s28 }
 0x99b   : > { %3935 = vst.msk [vmem:[#allocation4 + $0x153] sm:$0x4] %vm3921_vm7, %v3883_v37  ;;  %4112 = vst.msk [vmem:[#allocation4 + $0xf4] sm:$0x4] %vm3921_vm7, %v4064_v41 }
 0x99c   : > { %3952 = vst.msk [vmem:[#allocation4 + $0x154] sm:$0x8] %vm3938_vm8, %v3883_v37  ;;  %4128 = vst.msk [vmem:[#allocation4 + $0xf5] sm:$0x8] %vm3938_vm8, %v4064_v41  ;;  %v12187_v40 = vpop.permute.xlu0 %5374 }
 0x99d   : > { %3969 = vst.msk [vmem:[#allocation4 + $0x155] sm:$0x10] %vm3955_vm0, %v3883_v37  ;;  %4144 = vst.msk [vmem:[#allocation4 + $0xf6] sm:$0x10] %vm3955_vm0, %v4064_v41 }
 0x99e   : > { %3986 = vst.msk [vmem:[#allocation4 + $0x156] sm:$0x20] %vm3972_vm13, %v3883_v37  ;;  %4160 = vst.msk [vmem:[#allocation4 + $0xf7] sm:$0x20] %vm3972_vm13, %v4064_v41  ;;  %v12110_v13 = vld [vmem:[#allocation4 + $0x128] sm:$0xff]  ;;  %5604 = vrot.lane.b32.xlu1 %v12189_v60, %s9864_s26 }
 0x99f   : > { %4003 = vst.msk [vmem:[#allocation4 + $0x157] sm:$0x40] %vm3989_vm14, %v3883_v37  ;;  %4176 = vst.msk [vmem:[#allocation4 + $0xf8] sm:$0x40] %vm3989_vm14, %v4064_v41 }
 0x9a0   : > { %4020 = vst.msk [vmem:[#allocation4 + $0x158] sm:$0x80] %vm4006_vm15, %v3883_v37  ;;  %4192 = vst.msk [vmem:[#allocation4 + $0xf9] sm:$0x80] %vm4006_vm15, %v4064_v41  ;;  %v5563_v39 = vpop.permute.xlu0 %5562  ;;  %v12205_v41 = vpop.permute.xlu1 %5376 }
 0x9a1   : > { %4266 = vst.msk [vmem:[#allocation5 + $0xd0] sm:$0xff] %vm499_vm2, %v12028_v51  ;;  %4054 = vst.msk [vmem:[#allocation6 + $0x78] sm:$0xff] %vm499_vm2, %v4046_v59 }
 0x9a2   : > { %4248 = vst.msk [vmem:[#allocation5 + $0x40] sm:$0xff] %vm499_vm2, %v12060_v53  ;;  %4053 = vst.msk [vmem:[#allocation6 + $0x68] sm:$0xff] %vm499_vm2, %v4045_v47  ;;  %v12146_v6 = vld [vmem:[#allocation4 + $0xf0] sm:$0xff]  ;;  %5796 = vrot.lane.b32.xlu1 %v5329_v38, %s9865_s16 }
 0x9a3   : > { %4249 = vst.msk [vmem:[#allocation5 + $0x48] sm:$0xff] %vm499_vm2, %v12067_v56  ;;  %4244 = vst.msk [vmem:[#allocation5 + $0x20] sm:$0xff] %vm499_vm2, %v12076_v52  ;;  %v4294_v47 = vld [vmem:[#allocation4 + $0x109] sm:$0xff] }
 0x9a4   : > { %4245 = vst.msk [vmem:[#allocation5 + $0x28] sm:$0xff] %vm499_vm2, %v12080_v44  ;;  %14541 = vst [vmem:[#allocation23_spill] sm:$0xff] %v12090_v10  ;;  %v5755_v59 = vpop.permute.xlu0 %5754  ;;  %4380 = vrot.lane.b32.xlu0 %v4294_v47, %s9863_s28 }
 0x9a5   : > { %4256 = vst.msk [vmem:[#allocation5 + $0x80] sm:$0xff] %vm499_vm2, %v12086_v29  ;;  %4257 = vst.msk [vmem:[#allocation5 + $0x88] sm:$0xff] %vm499_vm2, %v12092_v8 }
 0x9a6   : > { %4252 = vst.msk [vmem:[#allocation5 + $0x60] sm:$0xff] %vm499_vm2, %v12100_v55  ;;  %14542 = vst [vmem:[#allocation24_spill] sm:$0xff] %v12108_v12  ;;  %v12140_v19 = vld [vmem:[#allocation4 + $0xf8] sm:$0xff]  ;;  %6632 = vrot.lane.b32.xlu1 %v11771_v42, %s9864_s26 }
 0x9a7   : > { %4253 = vst.msk [vmem:[#allocation5 + $0x68] sm:$0xff] %vm499_vm2, %v12104_v58  ;;  %14543 = vst [vmem:[#allocation25_spill] sm:$0xff] %v12122_v15  ;;  %v5336_v15 = vld [vmem:[#allocation4 + $0x16a] sm:$0xff] }
 0x9a8   : > { %v4070_v61 = vld [vmem:[#allocation6 + $0x78] sm:$0xff]  ;;  %4265 = vst.msk [vmem:[#allocation5 + $0xc8] sm:$0xff] %vm499_vm2, %v12110_v13  ;;  %14544 = vst [vmem:[#allocation26_spill] sm:$0xff] %v12140_v19  ;;  %4568 = vrot.lane.b32.xlu0 %v11771_v42, %s9864_s26 }
 0x9a9   : > { %4086 = vst.msk [vmem:[#allocation4 + $0x182] sm:$0x1] %vm3887_vm1, %v4070_v61  ;;  %v4068_v14 = vld [vmem:[#allocation6 + $0x68] sm:$0xff]  ;;  %14545 = vst [vmem:[#allocation27_spill] sm:$0xff] %v12144_v20 }
 0x9aa   : > { %4102 = vst.msk [vmem:[#allocation4 + $0x183] sm:$0x2] %vm3904_vm3, %v4070_v61  ;;  %4100 = vst.msk [vmem:[#allocation4 + $0x153] sm:$0x2] %vm3904_vm3, %v4068_v14  ;;  %6824 = vrot.lane.b32.xlu1 %v4294_v47, %s9865_s16 }
 0x9ab   : > { %4118 = vst.msk [vmem:[#allocation4 + $0x184] sm:$0x4] %vm3921_vm7, %v4070_v61  ;;  %4116 = vst.msk [vmem:[#allocation4 + $0x154] sm:$0x4] %vm3921_vm7, %v4068_v14 }
 0x9ac   : > { %4134 = vst.msk [vmem:[#allocation4 + $0x185] sm:$0x8] %vm3938_vm8, %v4070_v61  ;;  %4132 = vst.msk [vmem:[#allocation4 + $0x155] sm:$0x8] %vm3938_vm8, %v4068_v14  ;;  %4760 = vrot.lane.b32.xlu0 %v4294_v47, %s9865_s16 }
 0x9ad   : > { %4150 = vst.msk [vmem:[#allocation4 + $0x186] sm:$0x10] %vm3955_vm0, %v4070_v61  ;;  %4148 = vst.msk [vmem:[#allocation4 + $0x156] sm:$0x10] %vm3955_vm0, %v4068_v14 }
 0x9ae   : > { %4166 = vst.msk [vmem:[#allocation4 + $0x187] sm:$0x20] %vm3972_vm13, %v4070_v61  ;;  %4164 = vst.msk [vmem:[#allocation4 + $0x157] sm:$0x20] %vm3972_vm13, %v4068_v14  ;;  %6826 = vrot.lane.b32.xlu1 %v12189_v60, %s9865_s16 }
 0x9af   : > { %4182 = vst.msk [vmem:[#allocation4 + $0x188] sm:$0x40] %vm3989_vm14, %v4070_v61  ;;  %4180 = vst.msk [vmem:[#allocation4 + $0x158] sm:$0x40] %vm3989_vm14, %v4068_v14 }
 0x9b0   : > { %4198 = vst.msk [vmem:[#allocation4 + $0x189] sm:$0x80] %vm4006_vm15, %v4070_v61  ;;  %4196 = vst.msk [vmem:[#allocation4 + $0x159] sm:$0x80] %vm4006_vm15, %v4068_v14 }
 0x9b1   : > { %4084 = vst.msk [vmem:[#allocation4 + $0x152] sm:$0x1] %vm3887_vm1, %v4068_v14  ;;  %14546 = vst [vmem:[#allocation28_spill] sm:$0xff] %v12146_v6  ;;  %v5565_v14 = vpop.permute.xlu1 %5564 }
 0x9b2   : > { %4264 = vst.msk [vmem:[#allocation5 + $0xc0] sm:$0xff] %vm499_vm2, %v12138_v18  ;;  %4261 = vst.msk [vmem:[#allocation5 + $0xa8] sm:$0xff] %vm499_vm2, %v12140_v19  ;;  %6443 = vrot.lane.b32.xlu1 %v4294_v47, %s9863_s28 }
 0x9b3   : > { %14547 = vst [vmem:[#allocation29_spill] sm:$0xff] %v12150_v24  ;;  %4260 = vst.msk [vmem:[#allocation5 + $0xa0] sm:$0xff] %vm499_vm2, %v12146_v6  ;;  %v12603_v24 = vld [vmem:[#allocation4 + $0x39] sm:$0xff] }
 0x9b4   : > { %14548 = vst [vmem:[#allocation30_spill] sm:$0xff] %v12158_v0  ;;  %4434 = vst.msk [vmem:[#allocation5 + $0x10] sm:$0xff] %vm634_vm4, %v4341_v28 }
 0x9b5   : > { %4624 = vst.msk [vmem:[#allocation5] sm:$0xff] %vm683_vm5, %v4529_v11  ;;  %4625 = vst.msk [vmem:[#allocation5 + $0x8] sm:$0xff] %vm683_vm5, %v4531_v36  ;;  %v5757_v28 = vpop.permute.xlu1 %5756 }
 0x9b6   : > { %v12165_v45 = vld [vmem:[#allocation4 + $0x158] sm:$0xff]  ;;  %4435 = vst.msk [vmem:[#allocation5 + $0x18] sm:$0xff] %vm634_vm4, %v4343_v21  ;;  %7665 = vrot.lane.b32.xlu1 %v4294_v47, %s9864_s26 }
 0x9b7   : > { %14549 = vst [vmem:[#allocation31_spill] sm:$0xff] %v12165_v45  ;;  %4269 = vst.msk [vmem:[#allocation5 + $0xe8] sm:$0xff] %vm499_vm2, %v12165_v45  ;;  %v6275_v21 = vld [vmem:[#allocation4 + $0x18] sm:$0xff] }
 0x9b8   : > { %v12167_v1 = vld [vmem:[#allocation4 + $0x150] sm:$0xff]  ;;  %4816 = vst.msk [vmem:[#allocation5] sm:$0xff] %vm732_vm6, %v4721_v35  ;;  %4817 = vst.msk [vmem:[#allocation5 + $0x8] sm:$0xff] %vm732_vm6, %v4723_v43  ;;  %v4290_v45 = vld [vmem:[#allocation4 + $0xd9] sm:$0xff] }
 0x9b9   : > { %14550 = vst [vmem:[#allocation32_spill] sm:$0xff] %v12167_v1  ;;  %4268 = vst.msk [vmem:[#allocation5 + $0xe0] sm:$0xff] %vm499_vm2, %v12167_v1 }
 0x9bf   : > { %v4848_v37 = vld [vmem:[#allocation5] sm:$0xff]  ;;  %v4849_v61 = vld [vmem:[#allocation5 + $0x8] sm:$0xff] }
 0x9c0   : > { %5274 = vst.msk [vmem:[#allocation5] sm:$0xff] %vm499_vm2, %v5242_v22  ;;  %9245 = vmatprep.mubr.msk.f32.mxu1 %vm4886_vm9, %v4848_v37  ;;  %5275 = vst.msk [vmem:[#allocation5 + $0x8] sm:$0xff] %vm499_vm2, %v5243_v54  ;;  %v5328_v22 = vld [vmem:[#allocation4 + $0x10a] sm:$0xff]  ;;  %v6276_v37 = vld [vmem:[#allocation4 + $0x20] sm:$0xff] }
 0x9c1   : > { %5466 = vst.msk [vmem:[#allocation5] sm:$0xff] %vm634_vm4, %v11178_v2  ;;  %v6404_v2 = vpop.permute.xlu0 %6403  ;;  %9246 = vmatmul.mubr.msk.f32.vlgmr.msra.gmra.mrb[32].mxu1 %vm4886_vm9, %v4849_v61  ;;  %5467 = vst.msk [vmem:[#allocation5 + $0x8] sm:$0xff] %vm634_vm4, %v11180_v3  ;;  %v6406_v3 = vpop.permute.xlu1 %6405  ;;  %5414 = vrot.lane.b32.xlu0 %v5328_v22, %s9863_s28 }
 0x9c2   : > { %5658 = vst.msk [vmem:[#allocation5] sm:$0xff] %vm683_vm5, %v5563_v39  ;;  %5659 = vst.msk [vmem:[#allocation5 + $0x8] sm:$0xff] %vm683_vm5, %v5565_v14  ;;  %7857 = vrot.lane.b32.xlu1 %v5328_v22, %s9865_s16 }
 0x9c3   : > { %5850 = vst.msk [vmem:[#allocation5] sm:$0xff] %vm732_vm6, %v5755_v59  ;;  %5851 = vst.msk [vmem:[#allocation5 + $0x8] sm:$0xff] %vm732_vm6, %v5757_v28 }
 0x9c5   : > { %v12220_v35 = vpop.permute.xlu0 %7439  ;;  %v12231_v39 = vpop.permute.xlu1 %7437  ;;  %5602 = vrot.lane.b32.xlu0 %v4294_v47, %s9864_s26 }
 0x9c6   : > { %14551 = vst [vmem:[#allocation33_spill] sm:$0xff] %v12231_v39 }
 0x9c9   : > { %v4365_v36 = vpop.permute.xlu0 %4364  ;;  %v4367_v54 = vpop.permute.xlu1 %4366  ;;  %5794 = vrot.lane.b32.xlu0 %v5328_v22, %s9865_s16 }
 0x9ca   : > { %v5882_v11 = vld [vmem:[#allocation5] sm:$0xff]  ;;  %4446 = vst.msk [vmem:[#allocation5 + $0x70] sm:$0xff] %vm634_vm4, %v4365_v36  ;;  %v5883_v43 = vld [vmem:[#allocation5 + $0x8] sm:$0xff]  ;;  %4447 = vst.msk [vmem:[#allocation5 + $0x78] sm:$0xff] %vm634_vm4, %v4367_v54 }
 0x9cb   : > { %6307 = vst.msk [vmem:[#allocation5] sm:$0xff] %vm499_vm2, %v6275_v21  ;;  %9297 = vmatprep.mubr.msk.f32.mxu0 %vm4886_vm9, %v5882_v11  ;;  %6308 = vst.msk [vmem:[#allocation5 + $0x8] sm:$0xff] %vm499_vm2, %v6276_v37  ;;  %v4291_v37 = vld [vmem:[#allocation4 + $0xe1] sm:$0xff] }
 0x9cc   : > { %6499 = vst.msk [vmem:[#allocation5] sm:$0xff] %vm634_vm4, %v6404_v2  ;;  %9298 = vmatmul.mubr.msk.f32.vlgmr.msra.gmra.mrb[40].mxu0 %vm4886_vm9, %v5883_v43  ;;  %6500 = vst.msk [vmem:[#allocation5 + $0x8] sm:$0xff] %vm634_vm4, %v6406_v3  ;;  %4374 = vrot.lane.b32.xlu1 %v4291_v37, %s9863_s28 }
 0x9cd   : > { %v12234_v59 = vpop.permute.xlu0 %4552  ;;  %v12246_v14 = vpop.permute.xlu1 %4554  ;;  %6634 = vrot.lane.b32.xlu0 %v11765_v23, %s9864_s26 }
 0x9ce   : > { %14552 = vst [vmem:[#allocation34_spill] sm:$0xff] %v12234_v59  ;;  %14554 = vst [vmem:[#allocation36_spill] sm:$0xff] %v12246_v14  ;;  %v4302_v14 = vld [vmem:[#allocation4 + $0x169] sm:$0xff]  ;;  %v5337_v59 = vld [vmem:[#allocation4 + $0x172] sm:$0xff] }
 0x9d0   : > { %4562 = vrot.lane.b32.xlu1 %v11775_v4, %s9864_s26 }
 0x9d1   : > { %v12242_v61 = vpop.permute.xlu0 %4744  ;;  %v12254_v42 = vpop.permute.xlu1 %4746  ;;  %6445 = vrot.lane.b32.xlu0 %v12189_v60, %s9863_s28 }
 0x9d2   : > { %14553 = vst [vmem:[#allocation35_spill] sm:$0xff] %v12242_v61  ;;  %14556 = vst [vmem:[#allocation38_spill] sm:$0xff] %v12254_v42 }
 0x9d4   : > { %4754 = vrot.lane.b32.xlu1 %v4291_v37, %s9865_s16 }
 0x9d5   : > { %v12248_v2 = vpop.permute.xlu0 %5398  ;;  %v12261_v11 = vpop.permute.xlu1 %5400  ;;  %7667 = vrot.lane.b32.xlu0 %v12189_v60, %s9864_s26 }
 0x9d6   : > { %14555 = vst [vmem:[#allocation37_spill] sm:$0xff] %v12248_v2  ;;  %14558 = vst [vmem:[#allocation40_spill] sm:$0xff] %v12261_v11 }
 0x9d9   : > { %v12256_v28 = vpop.permute.xlu0 %5586  ;;  %v12268_v3 = vpop.permute.xlu1 %5588  ;;  %7859 = vrot.lane.b32.xlu0 %v5329_v38, %s9865_s16 }
 0x9da   : > { %14557 = vst [vmem:[#allocation39_spill] sm:$0xff] %v12256_v28  ;;  %14560 = vst [vmem:[#allocation42_spill] sm:$0xff] %v12268_v3  ;;  %v4303_v28 = vld [vmem:[#allocation4 + $0x171] sm:$0xff] }
 0x9dd   : > { %v12263_v21 = vpop.permute.xlu0 %5778  ;;  %v12274_v36 = vpop.permute.xlu1 %5780  ;;  %7477 = vrot.lane.b32.xlu0 %v5328_v22, %s9863_s28 }
 0x9de   : > { %14559 = vst [vmem:[#allocation41_spill] sm:$0xff] %v12263_v21  ;;  %14562 = vst [vmem:[#allocation44_spill] sm:$0xff] %v12274_v36 }
 0x9e1   : > { %v12270_v23 = vpop.permute.xlu0 %6427  ;;  %v12280_v47 = vpop.permute.xlu1 %6429  ;;  %7479 = vrot.lane.b32.xlu0 %v5329_v38, %s9863_s28 }
 0x9e2   : > { %14561 = vst [vmem:[#allocation43_spill] sm:$0xff] %v12270_v23  ;;  %14564 = vst [vmem:[#allocation46_spill] sm:$0xff] %v12280_v47  ;;  %v5325_v47 = vld [vmem:[#allocation4 + $0xe2] sm:$0xff] }
 0x9e3   : > { %5408 = vrot.lane.b32.xlu1 %v5325_v47, %s9863_s28 }
 0x9e5   : > { %v12276_v43 = vpop.permute.xlu0 %6616  ;;  %v12287_v54 = vpop.permute.xlu1 %6618  ;;  %4372 = vrot.lane.b32.xlu0 %v4290_v45, %s9863_s28 }
 0x9e6   : > { %14563 = vst [vmem:[#allocation45_spill] sm:$0xff] %v12276_v43  ;;  %14566 = vst [vmem:[#allocation48_spill] sm:$0xff] %v12287_v54 }
 0x9e7   : > { %5596 = vrot.lane.b32.xlu1 %v4291_v37, %s9864_s26 }
 0x9e9   : > { %v12282_v60 = vpop.permute.xlu0 %6808  ;;  %v12293_v43 = vpop.permute.xlu1 %7649  ;;  %4560 = vrot.lane.b32.xlu0 %v11779_v5, %s9864_s26 }
 0x9ea   : > { %14565 = vst [vmem:[#allocation47_spill] sm:$0xff] %v12282_v60  ;;  %14568 = vst [vmem:[#allocation50_spill] sm:$0xff] %v12293_v43 }
 0x9eb   : > { %5788 = vrot.lane.b32.xlu1 %v5325_v47, %s9865_s16 }
 0x9ed   : > { %v12289_v1 = vpop.permute.xlu0 %6810  ;;  %v12300_v38 = vpop.permute.xlu1 %7841  ;;  %4752 = vrot.lane.b32.xlu0 %v4290_v45, %s9865_s16 }
 0x9ee   : > { %14567 = vst [vmem:[#allocation49_spill] sm:$0xff] %v12289_v1  ;;  %14570 = vst [vmem:[#allocation52_spill] sm:$0xff] %v12300_v38 }
 0x9ef   : > { %6624 = vrot.lane.b32.xlu1 %v11779_v5, %s9864_s26 }
 0x9f1   : > { %v12295_v22 = vpop.permute.xlu0 %7651  ;;  %v4359_v1 = vpop.permute.xlu1 %4358 }
 0x9f2   : > { %14569 = vst [vmem:[#allocation51_spill] sm:$0xff] %v12295_v22  ;;  %4443 = vst.msk [vmem:[#allocation5 + $0x58] sm:$0xff] %vm634_vm4, %v4359_v1  ;;  %v5324_v22 = vld [vmem:[#allocation4 + $0xda] sm:$0xff] }
 0x9f3   : > { %5406 = vrot.lane.b32.xlu0 %v5324_v22, %s9863_s28  ;;  %6816 = vrot.lane.b32.xlu1 %v4290_v45, %s9865_s16 }
 0x9f5   : > { %v12302_v54 = vpop.permute.xlu0 %7843  ;;  %v12311_v60 = vpop.permute.xlu1 %4546 }
 0x9f6   : > { %14571 = vst [vmem:[#allocation53_spill] sm:$0xff] %v12302_v54 }
 0x9f7   : > { %5594 = vrot.lane.b32.xlu0 %v4290_v45, %s9864_s26  ;;  %6818 = vrot.lane.b32.xlu1 %v4291_v37, %s9865_s16 }
 0x9f9   : > { %v12307_v43 = vpop.permute.xlu0 %7461  ;;  %v12318_v54 = vpop.permute.xlu1 %4738 }
 0x9fa   : > { %14572 = vst [vmem:[#allocation54_spill] sm:$0xff] %v12307_v43 }
 0x9fb   : > { %5786 = vrot.lane.b32.xlu0 %v5324_v22, %s9865_s16  ;;  %6435 = vrot.lane.b32.xlu1 %v4290_v45, %s9863_s28 }
 0x9fd   : > { %v12313_v23 = vpop.permute.xlu0 %7463  ;;  %v12323_v1 = vpop.permute.xlu1 %5392 }
 0x9fe   : > { %14573 = vst [vmem:[#allocation55_spill] sm:$0xff] %v12313_v23  ;;  %14574 = vst [vmem:[#allocation56_spill] sm:$0xff] %v12323_v1 }
 0x9ff   : > { %6626 = vrot.lane.b32.xlu0 %v11775_v4, %s9864_s26  ;;  %7657 = vrot.lane.b32.xlu1 %v4290_v45, %s9864_s26 }
 0xa01   : > { %v4357_v38 = vpop.permute.xlu0 %4356  ;;  %v12330_v5 = vpop.permute.xlu1 %5580 }
 0xa02   : > { %4442 = vst.msk [vmem:[#allocation5 + $0x50] sm:$0xff] %vm634_vm4, %v4357_v38 }
 0xa03   : > { %6437 = vrot.lane.b32.xlu0 %v4291_v37, %s9863_s28  ;;  %7849 = vrot.lane.b32.xlu1 %v5324_v22, %s9865_s16 }
 0xa05   : > { %v12325_v43 = vpop.permute.xlu0 %4544  ;;  %v12336_v38 = vpop.permute.xlu1 %5772 }
 0xa07   : > { %7659 = vrot.lane.b32.xlu0 %v4291_v37, %s9864_s26  ;;  %4398 = vrot.lane.b32.xlu1 %v4303_v28, %s9863_s28 }
 0xa09   : > { %v12332_v23 = vpop.permute.xlu0 %4736  ;;  %v12342_v1 = vpop.permute.xlu1 %6421 }
 0xa0b   : > { %7851 = vrot.lane.b32.xlu0 %v5325_v47, %s9865_s16  ;;  %4586 = vrot.lane.b32.xlu1 %v11985_v46, %s9864_s26 }
 0xa0d   : > { %v12338_v36 = vpop.permute.xlu0 %5390  ;;  %v12348_v4 = vpop.permute.xlu1 %6610 }
 0xa0e   : > { %14575 = vst [vmem:[#allocation57_spill] sm:$0xff] %v12338_v36 }
 0xa0f   : > { %7469 = vrot.lane.b32.xlu0 %v5324_v22, %s9863_s28  ;;  %4778 = vrot.lane.b32.xlu1 %v4303_v28, %s9865_s16 }
 0xa11   : > { %v12344_v3 = vpop.permute.xlu0 %5578  ;;  %v12354_v45 = vpop.permute.xlu1 %7641 }
 0xa13   : > { %7471 = vrot.lane.b32.xlu0 %v5325_v47, %s9863_s28  ;;  %5432 = vrot.lane.b32.xlu1 %v5337_v59, %s9863_s28 }
 0xa15   : > { %v12350_v21 = vpop.permute.xlu0 %5770  ;;  %v12361_v36 = vpop.permute.xlu1 %7643 }
 0xa17   : > { %4396 = vrot.lane.b32.xlu0 %v4302_v14, %s9863_s28  ;;  %5620 = vrot.lane.b32.xlu1 %v4303_v28, %s9864_s26 }
 0xa19   : > { %v12356_v37 = vpop.permute.xlu0 %6419  ;;  %v12367_v61 = vpop.permute.xlu1 %7835 }
 0xa1b   : > { %4584 = vrot.lane.b32.xlu0 %v12007_v16, %s9864_s26  ;;  %5812 = vrot.lane.b32.xlu1 %v5337_v59, %s9865_s16 }
 0xa1d   : > { %v12363_v42 = vpop.permute.xlu0 %6608  ;;  %v12374_v47 = vpop.permute.xlu1 %7453 }
 0xa1e   : > { %14576 = vst [vmem:[#allocation58_spill] sm:$0xff] %v12374_v47 }
 0xa1f   : > { %4776 = vrot.lane.b32.xlu0 %v4302_v14, %s9865_s16  ;;  %6648 = vrot.lane.b32.xlu1 %v12007_v16, %s9864_s26 }
 0xa21   : > { %v12369_v22 = vpop.permute.xlu0 %6800  ;;  %v4383_v11 = vpop.permute.xlu1 %4382 }
 0xa22   : > { %4455 = vst.msk [vmem:[#allocation5 + $0xb8] sm:$0xff] %vm634_vm4, %v4383_v11 }
 0xa23   : > { %5430 = vrot.lane.b32.xlu0 %v5336_v15, %s9863_s28  ;;  %6840 = vrot.lane.b32.xlu1 %v4302_v14, %s9865_s16 }
 0xa25   : > { %v12376_v6 = vpop.permute.xlu0 %6802  ;;  %v12385_v12 = vpop.permute.xlu1 %4570 }
 0xa26   : > { %14577 = vst [vmem:[#allocation59_spill] sm:$0xff] %v12385_v12 }
 0xa27   : > { %5618 = vrot.lane.b32.xlu0 %v4302_v14, %s9864_s26  ;;  %6842 = vrot.lane.b32.xlu1 %v4303_v28, %s9865_s16 }
 0xa29   : > { %v12381_v19 = vpop.permute.xlu0 %7833  ;;  %v12392_v47 = vpop.permute.xlu1 %4762 }
 0xa2a   : > { %14579 = vst [vmem:[#allocation61_spill] sm:$0xff] %v12392_v47  ;;  %v4299_v47 = vld [vmem:[#allocation4 + $0x141] sm:$0xff] }
 0xa2b   : > { %5810 = vrot.lane.b32.xlu0 %v5336_v15, %s9865_s16  ;;  %6459 = vrot.lane.b32.xlu1 %v4302_v14, %s9863_s28 }
 0xa2d   : > { %v12387_v0 = vpop.permute.xlu0 %7455  ;;  %v12397_v59 = vpop.permute.xlu1 %5416 }
 0xa2e   : > { %14578 = vst [vmem:[#allocation60_spill] sm:$0xff] %v12387_v0  ;;  %14580 = vst [vmem:[#allocation62_spill] sm:$0xff] %v12397_v59 }
 0xa2f   : > { %6650 = vrot.lane.b32.xlu0 %v11985_v46, %s9864_s26  ;;  %4390 = vrot.lane.b32.xlu1 %v4299_v47, %s9863_s28 }
 0xa31   : > { %v4381_v2 = vpop.permute.xlu0 %4380  ;;  %v12404_v16 = vpop.permute.xlu1 %5604 }
 0xa32   : > { %4454 = vst.msk [vmem:[#allocation5 + $0xb0] sm:$0xff] %vm634_vm4, %v4381_v2  ;;  %14582 = vst [vmem:[#allocation64_spill] sm:$0xff] %v12404_v16 }
 0xa33   : > { %6461 = vrot.lane.b32.xlu0 %v4303_v28, %s9863_s28  ;;  %4578 = vrot.lane.b32.xlu1 %v12012_v49, %s9864_s26 }
 0xa35   : > { %v12399_v11 = vpop.permute.xlu0 %4568  ;;  %v12410_v2 = vpop.permute.xlu1 %5796 }
 0xa36   : > { %14581 = vst [vmem:[#allocation63_spill] sm:$0xff] %v12399_v11  ;;  %14584 = vst [vmem:[#allocation66_spill] sm:$0xff] %v12410_v2  ;;  %v4298_v11 = vld [vmem:[#allocation4 + $0x139] sm:$0xff] }
 0xa37   : > { %4388 = vrot.lane.b32.xlu0 %v4298_v11, %s9863_s28  ;;  %4770 = vrot.lane.b32.xlu1 %v4299_v47, %s9865_s16 }
 0xa39   : > { %v12406_v12 = vpop.permute.xlu0 %4760  ;;  %v12416_v59 = vpop.permute.xlu1 %6632 }
 0xa3a   : > { %14583 = vst [vmem:[#allocation65_spill] sm:$0xff] %v12406_v12  ;;  %14586 = vst [vmem:[#allocation68_spill] sm:$0xff] %v12416_v59  ;;  %v5333_v59 = vld [vmem:[#allocation4 + $0x142] sm:$0xff] }
 0xa3b   : > { %4576 = vrot.lane.b32.xlu0 %v12028_v51, %s9864_s26  ;;  %5424 = vrot.lane.b32.xlu1 %v5333_v59, %s9863_s28 }
 0xa3d   : > { %v12412_v15 = vpop.permute.xlu0 %5414  ;;  %v12424_v14 = vpop.permute.xlu1 %6824 }
 0xa3e   : > { %14585 = vst [vmem:[#allocation67_spill] sm:$0xff] %v12412_v15  ;;  %14588 = vst [vmem:[#allocation70_spill] sm:$0xff] %v12424_v14 }
 0xa3f   : > { %4768 = vrot.lane.b32.xlu0 %v4298_v11, %s9865_s16  ;;  %5612 = vrot.lane.b32.xlu1 %v4299_v47, %s9864_s26 }
 0xa41   : > { %v12418_v46 = vpop.permute.xlu0 %5602  ;;  %v12430_v12 = vpop.permute.xlu1 %6826 }
 0xa42   : > { %14587 = vst [vmem:[#allocation69_spill] sm:$0xff] %v12418_v46  ;;  %14590 = vst [vmem:[#allocation72_spill] sm:$0xff] %v12430_v12  ;;  %v5332_v46 = vld [vmem:[#allocation4 + $0x13a] sm:$0xff] }
 0xa43   : > { %5422 = vrot.lane.b32.xlu0 %v5332_v46, %s9863_s28  ;;  %5804 = vrot.lane.b32.xlu1 %v5333_v59, %s9865_s16 }
 0xa45   : > { %v12426_v28 = vpop.permute.xlu0 %5794  ;;  %v12436_v16 = vpop.permute.xlu1 %6443 }
 0xa46   : > { %14589 = vst [vmem:[#allocation71_spill] sm:$0xff] %v12426_v28  ;;  %14592 = vst [vmem:[#allocation74_spill] sm:$0xff] %v12436_v16 }
 0xa47   : > { %5610 = vrot.lane.b32.xlu0 %v4298_v11, %s9864_s26  ;;  %6640 = vrot.lane.b32.xlu1 %v12028_v51, %s9864_s26 }
 0xa49   : > { %v12432_v2 = vpop.permute.xlu0 %6634  ;;  %v12442_v14 = vpop.permute.xlu1 %7665 }
 0xa4a   : > { %14591 = vst [vmem:[#allocation73_spill] sm:$0xff] %v12432_v2  ;;  %14594 = vst [vmem:[#allocation76_spill] sm:$0xff] %v12442_v14 }
 0xa4b   : > { %5802 = vrot.lane.b32.xlu0 %v5332_v46, %s9865_s16  ;;  %6832 = vrot.lane.b32.xlu1 %v4298_v11, %s9865_s16 }
 0xa4d   : > { %v12438_v15 = vpop.permute.xlu0 %6445  ;;  %v12448_v12 = vpop.permute.xlu1 %7857 }
 0xa4e   : > { %14593 = vst [vmem:[#allocation75_spill] sm:$0xff] %v12438_v15  ;;  %14596 = vst [vmem:[#allocation78_spill] sm:$0xff] %v12448_v12  ;;  %v12493_v15 = vld [vmem:[#allocation4 + $0x69] sm:$0xff] }
 0xa4f   : > { %6642 = vrot.lane.b32.xlu0 %v12012_v49, %s9864_s26  ;;  %6834 = vrot.lane.b32.xlu1 %v4299_v47, %s9865_s16 }
 0xa51   : > { %v12444_v28 = vpop.permute.xlu0 %7667  ;;  %v4375_v16 = vpop.permute.xlu1 %4374 }
 0xa52   : > { %14595 = vst [vmem:[#allocation77_spill] sm:$0xff] %v12444_v28  ;;  %4451 = vst.msk [vmem:[#allocation5 + $0x98] sm:$0xff] %vm634_vm4, %v4375_v16  ;;  %v12471_v16 = vld [vmem:[#allocation4 + $0x61] sm:$0xff] }
 0xa53   : > { %6453 = vrot.lane.b32.xlu0 %v4299_v47, %s9863_s28  ;;  %6451 = vrot.lane.b32.xlu1 %v4298_v11, %s9863_s28 }
 0xa55   : > { %v12450_v2 = vpop.permute.xlu0 %7859  ;;  %v12461_v59 = vpop.permute.xlu1 %4562 }
 0xa56   : > { %14597 = vst [vmem:[#allocation79_spill] sm:$0xff] %v12450_v2  ;;  %14599 = vst [vmem:[#allocation81_spill] sm:$0xff] %v12461_v59 }
 0xa57   : > { %7675 = vrot.lane.b32.xlu0 %v4299_v47, %s9864_s26  ;;  %7673 = vrot.lane.b32.xlu1 %v4298_v11, %s9864_s26  ;;  %v5314_v11 = vld [vmem:[#allocation4 + $0x62] sm:$0xff] }
 0xa59   : > { %v12457_v14 = vpop.permute.xlu0 %7477  ;;  %v12467_v51 = vpop.permute.xlu1 %4754 }
 0xa5a   : > { %14598 = vst [vmem:[#allocation80_spill] sm:$0xff] %v12457_v14  ;;  %14601 = vst [vmem:[#allocation83_spill] sm:$0xff] %v12467_v51 }
 0xa5b   : > { %4352 = vrot.lane.b32.xlu0 %v12471_v16, %s9863_s28  ;;  %7865 = vrot.lane.b32.xlu1 %v5332_v46, %s9865_s16 }
 0xa5d   : > { %v12463_v28 = vpop.permute.xlu0 %7479  ;;  %v12475_v2 = vpop.permute.xlu1 %5408 }
 0xa5e   : > { %14600 = vst [vmem:[#allocation82_spill] sm:$0xff] %v12463_v28  ;;  %14602 = vst [vmem:[#allocation84_spill] sm:$0xff] %v12475_v2 }
 0xa5f   : > { %4540 = vrot.lane.b32.xlu0 %v12060_v53, %s9864_s26  ;;  %4354 = vrot.lane.b32.xlu1 %v12493_v15, %s9863_s28 }
 0xa61   : > { %v4373_v49 = vpop.permute.xlu0 %4372  ;;  %v12482_v47 = vpop.permute.xlu1 %5596 }
 0xa62   : > { %4450 = vst.msk [vmem:[#allocation5 + $0x90] sm:$0xff] %vm634_vm4, %v4373_v49  ;;  %14603 = vst [vmem:[#allocation85_spill] sm:$0xff] %v12482_v47 }
 0xa63   : > { %4732 = vrot.lane.b32.xlu0 %v12471_v16, %s9865_s16  ;;  %4542 = vrot.lane.b32.xlu1 %v12067_v56, %s9864_s26 }
 0xa65   : > { %v12477_v12 = vpop.permute.xlu0 %4560  ;;  %v12489_v49 = vpop.permute.xlu1 %5788 }
 0xa66   : > { %14604 = vst [vmem:[#allocation86_spill] sm:$0xff] %v12489_v49 }
 0xa67   : > { %5386 = vrot.lane.b32.xlu0 %v5314_v11, %s9863_s28  ;;  %4734 = vrot.lane.b32.xlu1 %v12493_v15, %s9865_s16 }
 0xa69   : > { %v12484_v14 = vpop.permute.xlu0 %4752  ;;  %v12498_v2 = vpop.permute.xlu1 %6624 }
 0xa6a   : > { %14606 = vst [vmem:[#allocation88_spill] sm:$0xff] %v12498_v2  ;;  %v5315_v2 = vld [vmem:[#allocation4 + $0x6a] sm:$0xff] }
 0xa6b   : > { %5574 = vrot.lane.b32.xlu0 %v12471_v16, %s9864_s26  ;;  %5388 = vrot.lane.b32.xlu1 %v5315_v2, %s9863_s28 }
 0xa6d   : > { %v12491_v28 = vpop.permute.xlu0 %5406  ;;  %v12506_v46 = vpop.permute.xlu1 %6816 }
 0xa6e   : > { %14605 = vst [vmem:[#allocation87_spill] sm:$0xff] %v12491_v28  ;;  %14608 = vst [vmem:[#allocation90_spill] sm:$0xff] %v12506_v46 }
 0xa6f   : > { %5766 = vrot.lane.b32.xlu0 %v5314_v11, %s9865_s16  ;;  %5576 = vrot.lane.b32.xlu1 %v12493_v15, %s9864_s26 }
 0xa71   : > { %v12500_v0 = vpop.permute.xlu0 %5594  ;;  %v12513_v49 = vpop.permute.xlu1 %6818 }
 0xa72   : > { %14607 = vst [vmem:[#allocation89_spill] sm:$0xff] %v12500_v0  ;;  %14610 = vst [vmem:[#allocation92_spill] sm:$0xff] %v12513_v49 }
 0xa73   : > { %6415 = vrot.lane.b32.xlu0 %v12471_v16, %s9863_s28  ;;  %5768 = vrot.lane.b32.xlu1 %v5315_v2, %s9865_s16 }
 0xa75   : > { %v12508_v28 = vpop.permute.xlu0 %5786  ;;  %v12520_v51 = vpop.permute.xlu1 %6435 }
 0xa76   : > { %14609 = vst [vmem:[#allocation91_spill] sm:$0xff] %v12508_v28  ;;  %14612 = vst [vmem:[#allocation94_spill] sm:$0xff] %v12520_v51 }
 0xa77   : > { %6606 = vrot.lane.b32.xlu0 %v12067_v56, %s9864_s26  ;;  %6417 = vrot.lane.b32.xlu1 %v12493_v15, %s9863_s28 }
 0xa79   : > { %v12515_v47 = vpop.permute.xlu0 %6626  ;;  %v12528_v59 = vpop.permute.xlu1 %7657 }
 0xa7a   : > { %14611 = vst [vmem:[#allocation93_spill] sm:$0xff] %v12515_v47  ;;  %14614 = vst [vmem:[#allocation96_spill] sm:$0xff] %v12528_v59 }
 0xa7b   : > { %6798 = vrot.lane.b32.xlu0 %v12493_v15, %s9865_s16  ;;  %6604 = vrot.lane.b32.xlu1 %v12060_v53, %s9864_s26 }
 0xa7d   : > { %v12522_v46 = vpop.permute.xlu0 %6437  ;;  %v12535_v47 = vpop.permute.xlu1 %7849 }
 0xa7e   : > { %14613 = vst [vmem:[#allocation95_spill] sm:$0xff] %v12522_v46  ;;  %14616 = vst [vmem:[#allocation98_spill] sm:$0xff] %v12535_v47 }
 0xa7f   : > { %7829 = vrot.lane.b32.xlu0 %v5314_v11, %s9865_s16  ;;  %6796 = vrot.lane.b32.xlu1 %v12471_v16, %s9865_s16 }
 0xa81   : > { %v12530_v49 = vpop.permute.xlu0 %7659  ;;  %v4399_v46 = vpop.permute.xlu1 %4398 }
 0xa82   : > { %14615 = vst [vmem:[#allocation97_spill] sm:$0xff] %v12530_v49  ;;  %4463 = vst.msk [vmem:[#allocation5 + $0xf8] sm:$0xff] %vm634_vm4, %v4399_v46 }
 0xa83   : > { %7451 = vrot.lane.b32.xlu0 %v5315_v2, %s9863_s28  ;;  %7637 = vrot.lane.b32.xlu1 %v12471_v16, %s9864_s26 }
 0xa85   : > { %v12537_v51 = vpop.permute.xlu0 %7851  ;;  %v12548_v49 = vpop.permute.xlu1 %4586 }
 0xa86   : > { %14617 = vst [vmem:[#allocation99_spill] sm:$0xff] %v12537_v51  ;;  %14619 = vst [vmem:[#allocation101_spill] sm:$0xff] %v12548_v49  ;;  %v12554_v51 = vld [vmem:[#allocation4 + $0x31] sm:$0xff]  ;;  %v8570_v49 = vld [vmem:[#allocation17] ss:$0 sm:$0xff] }
 0xa87   : > { %4344 = vrot.lane.b32.xlu0 %v12554_v51, %s9863_s28  ;;  %7639 = vrot.lane.b32.xlu1 %v12493_v15, %s9864_s26 }
 0xa89   : > { %v12543_v59 = vpop.permute.xlu0 %7469  ;;  %v12558_v46 = vpop.permute.xlu1 %4778 }
 0xa8a   : > { %14618 = vst [vmem:[#allocation100_spill] sm:$0xff] %v12543_v59  ;;  %14621 = vst [vmem:[#allocation103_spill] sm:$0xff] %v12558_v46 }
 0xa8b   : > { %4532 = vrot.lane.b32.xlu0 %v12076_v52, %s9864_s26  ;;  %7831 = vrot.lane.b32.xlu1 %v5315_v2, %s9865_s16 }
 0xa8d   : > { %v12550_v47 = vpop.permute.xlu0 %7471 }
 0xa8e   : > { %14620 = vst [vmem:[#allocation102_spill] sm:$0xff] %v12550_v47  ;;  %v12571_v47 = vpop.permute.xlu1 %5432 }
 0xa8f   : > { %14622 = vst [vmem:[#allocation104_spill] sm:$0xff] %v12571_v47  ;;  %4724 = vrot.lane.b32.xlu0 %v12554_v51, %s9865_s16  ;;  %7449 = vrot.lane.b32.xlu1 %v5314_v11, %s9863_s28 }
 0xa91   : > { %v4397_v59 = vpop.permute.xlu0 %4396 }
 0xa92   : > { %4462 = vst.msk [vmem:[#allocation5 + $0xf0] sm:$0xff] %vm634_vm4, %v4397_v59  ;;  %v12583_v0 = vpop.permute.xlu1 %5620 }
 0xa93   : > { %14624 = vst [vmem:[#allocation106_spill] sm:$0xff] %v12583_v0  ;;  %4346 = vrot.lane.b32.xlu1 %v12603_v24, %s9863_s28 }
 0xa94   : > { %v9247_v46 = vpop.f32.mrb[32].mxu1 }
 0xa95   : > { %v5055_v20 = vadd.f32 %v9247_v46, %v8570_v49  ;;  %v12573_v59 = vpop.permute.xlu0 %4584  ;;  %v5049_v39 = vpop.f32.mrb[33].mxu1  ;;  %v12588_v46 = vld [vmem:[#allocation4 + $0x32] sm:$0xff] }
 0xa96   : > { %14623 = vst [vmem:[#allocation105_spill] sm:$0xff] %v12573_v59  ;;  %v5050_v28 = vadd.f32 %v8570_v49, %v5049_v39  ;;  %5378 = vrot.lane.b32.xlu0 %v12588_v46, %s9863_s28  ;;  %v12592_v39 = vpop.permute.xlu1 %5812 }
 0xa97   : > { %5210 = vst.msk [vmem:[%s12569_s12 + $0x8] sm:$0xff] %vm5208_vm10, %v5055_v20  ;;  %14626 = vst [vmem:[#allocation108_spill] sm:$0xff] %v12592_v39  ;;  %4534 = vrot.lane.b32.xlu1 %v12080_v44, %s9864_s26 }
 0xa98   : > { %5209 = vst.msk [vmem:[%s12569_s12] sm:$0xff] %vm5208_vm10, %v5050_v28 }
 0xa99   : > { %v12585_v47 = vpop.permute.xlu0 %4776 }
 0xa9a   : > { %14625 = vst [vmem:[#allocation107_spill] sm:$0xff] %v12585_v47  ;;  %5566 = vrot.lane.b32.xlu0 %v12554_v51, %s9864_s26  ;;  %v12599_v28 = vpop.permute.xlu1 %6648 }
 0xa9b   : > { %14628 = vst [vmem:[#allocation110_spill] sm:$0xff] %v12599_v28  ;;  %4726 = vrot.lane.b32.xlu1 %v12603_v24, %s9865_s16 }
 0xa9d   : > { %v12594_v20 = vpop.permute.xlu0 %5430 }
 0xa9e   : > { %14627 = vst [vmem:[#allocation109_spill] sm:$0xff] %v12594_v20  ;;  %5758 = vrot.lane.b32.xlu0 %v12588_v46, %s9865_s16  ;;  %v12613_v11 = vpop.permute.xlu1 %6840 }
 0xa9f   : > { %v9299_v0 = vpop.f32.mrb[40].mxu0  ;;  %14630 = vst [vmem:[#allocation112_spill] sm:$0xff] %v12613_v11 }
 0xaa0   : > { %v6088_v47 = vadd.f32 %v9299_v0, %v8570_v49  ;;  %v6082_v59 = vpop.f32.mrb[41].mxu0 }
 0xaa1   : > { %v12601_v2 = vpop.permute.xlu0 %5618  ;;  %v6083_v10 = vadd.f32 %v8570_v49, %v6082_v59  ;;  %v5311_v59 = vld [vmem:[#allocation4 + $0x3a] sm:$0xff] }
 0xaa2   : > { %14629 = vst [vmem:[#allocation111_spill] sm:$0xff] %v12601_v2  ;;  %8637 = vst.msk [vmem:[%s12569_s12 + $0x108] sm:$0xff] %vm5208_vm10, %v6088_v47  ;;  %6407 = vrot.lane.b32.xlu0 %v12554_v51, %s9863_s28  ;;  %v12621_v0 = vpop.permute.xlu1 %6842  ;;  %5380 = vrot.lane.b32.xlu1 %v5311_v59, %s9863_s28 }
 0xaa3   : > { %8636 = vst.msk [vmem:[%s12569_s12 + $0x100] sm:$0xff] %vm5208_vm10, %v6083_v10  ;;  %14632 = vst [vmem:[#allocation114_spill] sm:$0xff] %v12621_v0 }
 0xaa5   : > { %v12615_v28 = vpop.permute.xlu0 %5810 }
 0xaa6   : > { %14631 = vst [vmem:[#allocation113_spill] sm:$0xff] %v12615_v28  ;;  %6598 = vrot.lane.b32.xlu0 %v12080_v44, %s9864_s26  ;;  %v12629_v10 = vpop.permute.xlu1 %6459  ;;  %5568 = vrot.lane.b32.xlu1 %v12603_v24, %s9864_s26 }
 0xaa7   : > { %14634 = vst [vmem:[#allocation116_spill] sm:$0xff] %v12629_v10 }
 0xaa9   : > { %v12623_v49 = vpop.permute.xlu0 %6650 }
 0xaaa   : > { %14633 = vst [vmem:[#allocation115_spill] sm:$0xff] %v12623_v49  ;;  %6790 = vrot.lane.b32.xlu0 %v12603_v24, %s9865_s16  ;;  %v4391_v11 = vpop.permute.xlu1 %4390  ;;  %5760 = vrot.lane.b32.xlu1 %v5311_v59, %s9865_s16 }
 0xaab   : > { %4459 = vst.msk [vmem:[#allocation5 + $0xd8] sm:$0xff] %vm634_vm4, %v4391_v11 }
 0xaad   : > { %v12631_v47 = vpop.permute.xlu0 %6461 }
 0xaae   : > { %14635 = vst [vmem:[#allocation117_spill] sm:$0xff] %v12631_v47  ;;  %7821 = vrot.lane.b32.xlu0 %v12588_v46, %s9865_s16  ;;  %v12642_v49 = vpop.permute.xlu1 %4578  ;;  %6409 = vrot.lane.b32.xlu1 %v12603_v24, %s9863_s28 }
 0xab1   : > { %v4389_v0 = vpop.permute.xlu0 %4388 }
 0xab2   : > { %4458 = vst.msk [vmem:[#allocation5 + $0xd0] sm:$0xff] %vm634_vm4, %v4389_v0  ;;  %7443 = vrot.lane.b32.xlu0 %v5311_v59, %s9863_s28  ;;  %v12648_v28 = vpop.permute.xlu1 %4770  ;;  %v12654_v0 = vld [vmem:[#allocation4 + $0xc1] sm:$0xff]  ;;  %6596 = vrot.lane.b32.xlu1 %v12076_v52, %s9864_s26 }
 0xab3   : > { %14637 = vst [vmem:[#allocation119_spill] sm:$0xff] %v12648_v28  ;;  %v12709_v28 = vld [vmem:[#allocation4 + $0xc9] sm:$0xff] }
 0xab5   : > { %v12644_v10 = vpop.permute.xlu0 %4576 }
 0xab6   : > { %14636 = vst [vmem:[#allocation118_spill] sm:$0xff] %v12644_v10  ;;  %4368 = vrot.lane.b32.xlu0 %v12654_v0, %s9863_s28  ;;  %v12658_v47 = vpop.permute.xlu1 %5424  ;;  %6788 = vrot.lane.b32.xlu1 %v12554_v51, %s9865_s16 }
 0xab7   : > { %14639 = vst [vmem:[#allocation121_spill] sm:$0xff] %v12658_v47 }
 0xab9   : > { %v12650_v11 = vpop.permute.xlu0 %4768 }
 0xaba   : > { %14638 = vst [vmem:[#allocation120_spill] sm:$0xff] %v12650_v11  ;;  %4556 = vrot.lane.b32.xlu0 %v12086_v29, %s9864_s26  ;;  %v12666_v39 = vpop.permute.xlu1 %5612  ;;  %7629 = vrot.lane.b32.xlu1 %v12554_v51, %s9864_s26 }
 0xabb   : > { %14641 = vst [vmem:[#allocation123_spill] sm:$0xff] %v12666_v39 }
 0xabd   : > { %v12660_v2 = vpop.permute.xlu0 %5422 }
 0xabe   : > { %14640 = vst [vmem:[#allocation122_spill] sm:$0xff] %v12660_v2  ;;  %4748 = vrot.lane.b32.xlu0 %v12654_v0, %s9865_s16  ;;  %v12674_v11 = vpop.permute.xlu1 %5804  ;;  %v12680_v2 = vld [vmem:[#allocation4 + $0xc2] sm:$0xff]  ;;  %7631 = vrot.lane.b32.xlu1 %v12603_v24, %s9864_s26 }
 0xabf   : > { %14643 = vst [vmem:[#allocation125_spill] sm:$0xff] %v12674_v11 }
 0xac1   : > { %v12668_v20 = vpop.permute.xlu0 %5610 }
 0xac2   : > { %14642 = vst [vmem:[#allocation124_spill] sm:$0xff] %v12668_v20  ;;  %5402 = vrot.lane.b32.xlu0 %v12680_v2, %s9863_s28  ;;  %v12684_v10 = vpop.permute.xlu1 %6640  ;;  %7823 = vrot.lane.b32.xlu1 %v5311_v59, %s9865_s16 }
 0xac3   : > { %14645 = vst [vmem:[#allocation127_spill] sm:$0xff] %v12684_v10 }
 0xac5   : > { %v12676_v47 = vpop.permute.xlu0 %5802 }
 0xac6   : > { %14644 = vst [vmem:[#allocation126_spill] sm:$0xff] %v12676_v47  ;;  %5590 = vrot.lane.b32.xlu0 %v12654_v0, %s9864_s26  ;;  %v12692_v11 = vpop.permute.xlu1 %6832  ;;  %7441 = vrot.lane.b32.xlu1 %v12588_v46, %s9863_s28 }
 0xac7   : > { %14647 = vst [vmem:[#allocation129_spill] sm:$0xff] %v12692_v11 }
 0xac9   : > { %v12686_v20 = vpop.permute.xlu0 %6642 }
 0xaca   : > { %14646 = vst [vmem:[#allocation128_spill] sm:$0xff] %v12686_v20  ;;  %5782 = vrot.lane.b32.xlu0 %v12680_v2, %s9865_s16  ;;  %v12699_v39 = vpop.permute.xlu1 %6834  ;;  %4370 = vrot.lane.b32.xlu1 %v12709_v28, %s9863_s28 }
 0xacd   : > { %v12694_v47 = vpop.permute.xlu0 %6453 }
 0xace   : > { %6431 = vrot.lane.b32.xlu0 %v12654_v0, %s9863_s28  ;;  %v12707_v20 = vpop.permute.xlu1 %6451  ;;  %4558 = vrot.lane.b32.xlu1 %v12092_v8, %s9864_s26 }
 0xad1   : > { %v12701_v10 = vpop.permute.xlu0 %7675 }
 0xad2   : > { %14648 = vst [vmem:[#allocation130_spill] sm:$0xff] %v12701_v10  ;;  %6620 = vrot.lane.b32.xlu0 %v12086_v29, %s9864_s26  ;;  %v12720_v46 = vpop.permute.xlu1 %7673  ;;  %4750 = vrot.lane.b32.xlu1 %v12709_v28, %s9865_s16 }
 0xad3   : > { %14649 = vst [vmem:[#allocation131_spill] sm:$0xff] %v12720_v46  ;;  %v5323_v46 = vld [vmem:[#allocation4 + $0xca] sm:$0xff] }
 0xad5   : > { %v4353_v11 = vpop.permute.xlu0 %4352 }
 0xad6   : > { %4440 = vst.msk [vmem:[#allocation5 + $0x40] sm:$0xff] %vm634_vm4, %v4353_v11  ;;  %6812 = vrot.lane.b32.xlu0 %v12654_v0, %s9865_s16  ;;  %v12727_v11 = vpop.permute.xlu1 %7865  ;;  %5404 = vrot.lane.b32.xlu1 %v5323_v46, %s9863_s28 }
 0xad7   : > { %4632 = vst.msk [vmem:[#allocation5 + $0x40] sm:$0xff] %vm683_vm5, %v12325_v43 }
 0xad8   : > { %4824 = vst.msk [vmem:[#allocation5 + $0x40] sm:$0xff] %vm732_vm6, %v12332_v23 }
 0xad9   : > { %v4541_v59 = vpop.permute.xlu0 %4540 }
 0xada   : > { %4630 = vst.msk [vmem:[#allocation5 + $0x30] sm:$0xff] %vm683_vm5, %v4541_v59  ;;  %6814 = vrot.lane.b32.xlu0 %v12709_v28, %s9865_s16  ;;  %v4355_v59 = vpop.permute.xlu1 %4354  ;;  %5592 = vrot.lane.b32.xlu1 %v12709_v28, %s9864_s26 }
 0xadb   : > { %4441 = vst.msk [vmem:[#allocation5 + $0x48] sm:$0xff] %vm634_vm4, %v4355_v59 }
 0xadc   : > { %4633 = vst.msk [vmem:[#allocation5 + $0x48] sm:$0xff] %vm683_vm5, %v12311_v60 }
 0xadd   : > { %v4733_v43 = vpop.permute.xlu0 %4732  ;;  %4825 = vst.msk [vmem:[#allocation5 + $0x48] sm:$0xff] %vm732_vm6, %v12318_v54 }
 0xade   : > { %4822 = vst.msk [vmem:[#allocation5 + $0x30] sm:$0xff] %vm732_vm6, %v4733_v43  ;;  %6433 = vrot.lane.b32.xlu0 %v12709_v28, %s9863_s28  ;;  %v4543_v43 = vpop.permute.xlu1 %4542  ;;  %5784 = vrot.lane.b32.xlu1 %v5323_v46, %s9865_s16 }
 0xadf   : > { %v12734_v23 = vld [vmem:[#allocation5 + $0x40] sm:$0xff]  ;;  %4631 = vst.msk [vmem:[#allocation5 + $0x38] sm:$0xff] %vm683_vm5, %v4543_v43  ;;  %v6283_v43 = vld [vmem:[#allocation4 + $0x78] sm:$0xff] }
 0xae0   : > { %5282 = vst.msk [vmem:[#allocation5 + $0x40] sm:$0xff] %vm499_vm2, %v12471_v16 }
 0xae1   : > { %v5387_v10 = vpop.permute.xlu0 %5386 }
 0xae2   : > { %5474 = vst.msk [vmem:[#allocation5 + $0x40] sm:$0xff] %vm634_vm4, %v5387_v10  ;;  %v5248_v10 = vld [vmem:[#allocation4 + $0x49] sm:$0xff]  ;;  %7655 = vrot.lane.b32.xlu0 %v12709_v28, %s9864_s26  ;;  %6622 = vrot.lane.b32.xlu1 %v12092_v8, %s9864_s26 }
 0xae3   : > { %5666 = vst.msk [vmem:[#allocation5 + $0x40] sm:$0xff] %vm683_vm5, %v12344_v3 }
 0xae4   : > { %5858 = vst.msk [vmem:[#allocation5 + $0x40] sm:$0xff] %vm732_vm6, %v12350_v21  ;;  %v4735_v21 = vpop.permute.xlu1 %4734  ;;  %v12765_v54 = vld [vmem:[#allocation5 + $0x48] sm:$0xff] }
 0xae5   : > { %v12752_v60 = vld [vmem:[#allocation5 + $0x30] sm:$0xff]  ;;  %v5575_v59 = vpop.permute.xlu0 %5574  ;;  %4823 = vst.msk [vmem:[#allocation5 + $0x38] sm:$0xff] %vm732_vm6, %v4735_v21 }
 0xae6   : > { %5280 = vst.msk [vmem:[#allocation5 + $0x30] sm:$0xff] %vm499_vm2, %v5248_v10  ;;  %7847 = vrot.lane.b32.xlu0 %v5323_v46, %s9865_s16  ;;  %5283 = vst.msk [vmem:[#allocation5 + $0x48] sm:$0xff] %vm499_vm2, %v12493_v15  ;;  %7653 = vrot.lane.b32.xlu1 %v12654_v0, %s9864_s26 }
 0xae7   : > { %5472 = vst.msk [vmem:[#allocation5 + $0x30] sm:$0xff] %vm634_vm4, %v11893_v57 }
 0xae8   : > { %5664 = vst.msk [vmem:[#allocation5 + $0x30] sm:$0xff] %vm683_vm5, %v5575_v59  ;;  %v5389_v10 = vpop.permute.xlu1 %5388 }
 0xae9   : > { %v5767_v3 = vpop.permute.xlu0 %5766  ;;  %5475 = vst.msk [vmem:[#allocation5 + $0x48] sm:$0xff] %vm634_vm4, %v5389_v10 }
 0xaea   : > { %5856 = vst.msk [vmem:[#allocation5 + $0x30] sm:$0xff] %vm732_vm6, %v5767_v3  ;;  %7465 = vrot.lane.b32.xlu0 %v12680_v2, %s9863_s28  ;;  %v5249_v3 = vld [vmem:[#allocation4 + $0x51] sm:$0xff]  ;;  %7845 = vrot.lane.b32.xlu1 %v12680_v2, %s9865_s16 }
 0xaeb   : > { %v12770_v57 = vld [vmem:[#allocation5 + $0x40] sm:$0xff]  ;;  %5667 = vst.msk [vmem:[#allocation5 + $0x48] sm:$0xff] %vm683_vm5, %v12330_v5 }
 0xaec   : > { %6315 = vst.msk [vmem:[#allocation5 + $0x40] sm:$0xff] %vm499_vm2, %v6283_v43  ;;  %v12784_v21 = vld [vmem:[#allocation5 + $0x38] sm:$0xff]  ;;  %v5577_v43 = vpop.permute.xlu1 %5576 }
 0xaed   : > { %v6416_v59 = vpop.permute.xlu0 %6415  ;;  %6507 = vst.msk [vmem:[#allocation5 + $0x40] sm:$0xff] %vm634_vm4, %v12356_v37 }
 0xaee   : > { %5859 = vst.msk [vmem:[#allocation5 + $0x48] sm:$0xff] %vm732_vm6, %v12336_v38  ;;  %7467 = vrot.lane.b32.xlu0 %v5323_v46, %s9863_s28  ;;  %v12820_v46 = vld [vmem:[#allocation4 + $0x99] sm:$0xff] }
 0xaef   : > { %5281 = vst.msk [vmem:[#allocation5 + $0x38] sm:$0xff] %vm499_vm2, %v5249_v3  ;;  %4362 = vrot.lane.b32.xlu1 %v12820_v46, %s9863_s28 }
 0xaf0   : > { %5473 = vst.msk [vmem:[#allocation5 + $0x38] sm:$0xff] %vm634_vm4, %v11891_v26  ;;  %v5769_v5 = vpop.permute.xlu1 %5768  ;;  %v12809_v26 = vld [vmem:[#allocation4 + $0x91] sm:$0xff] }
 0xaf1   : > { %v12786_v10 = vld [vmem:[#allocation5 + $0x30] sm:$0xff]  ;;  %v12789_v37 = vpop.permute.xlu0 %6606  ;;  %5665 = vst.msk [vmem:[#allocation5 + $0x38] sm:$0xff] %vm683_vm5, %v5577_v43 }
 0xaf2   : > { %6313 = vst.msk [vmem:[#allocation5 + $0x30] sm:$0xff] %vm499_vm2, %v12060_v53  ;;  %4360 = vrot.lane.b32.xlu0 %v12809_v26, %s9863_s28 }
 0xaf3   : > { %6505 = vst.msk [vmem:[#allocation5 + $0x30] sm:$0xff] %vm634_vm4, %v6416_v59  ;;  %v6284_v59 = vld [vmem:[#allocation4 + $0x80] sm:$0xff]  ;;  %4550 = vrot.lane.b32.xlu1 %v12104_v58, %s9864_s26 }
 0xaf4   : > { %6698 = vst.msk [vmem:[#allocation5 + $0x30] sm:$0xff] %vm683_vm5, %v12363_v42  ;;  %v6418_v42 = vpop.permute.xlu1 %6417 }
 0xaf5   : > { %6890 = vst.msk [vmem:[#allocation5 + $0x30] sm:$0xff] %vm732_vm6, %v12369_v22  ;;  %5857 = vst.msk [vmem:[#allocation5 + $0x38] sm:$0xff] %vm732_vm6, %v5769_v5  ;;  %v12805_v53 = vpop.permute.xlu0 %6798  ;;  %v12811_v38 = vld [vmem:[#allocation5 + $0x48] sm:$0xff] }
 0xaf6   : > { %6316 = vst.msk [vmem:[#allocation5 + $0x48] sm:$0xff] %vm499_vm2, %v6284_v59  ;;  %4548 = vrot.lane.b32.xlu0 %v12100_v55, %s9864_s26  ;;  %v12860_v59 = vld [vmem:[#allocation4 + $0x9a] sm:$0xff] }
 0xaf7   : > { %6508 = vst.msk [vmem:[#allocation5 + $0x48] sm:$0xff] %vm634_vm4, %v12342_v1  ;;  %4742 = vrot.lane.b32.xlu1 %v12820_v46, %s9865_s16 }
 0xaf8   : > { %v12828_v3 = vpop.permute.xlu1 %6604 }
 0xaf9   : > { %v12818_v22 = vpop.permute.xlu0 %7829 }
 0xafa   : > { %4740 = vrot.lane.b32.xlu0 %v12809_v26, %s9865_s16 }
 0xafb   : > { %5396 = vrot.lane.b32.xlu1 %v12860_v59, %s9863_s28 }
 0xafc   : > { %v12826_v2 = vld [vmem:[#allocation5 + $0x38] sm:$0xff]  ;;  %v12830_v43 = vld [vmem:[#allocation5 + $0x30] sm:$0xff]  ;;  %v12845_v5 = vpop.permute.xlu1 %6796 }
 0xafd   : > { %6314 = vst.msk [vmem:[#allocation5 + $0x38] sm:$0xff] %vm499_vm2, %v12067_v56  ;;  %v7452_v1 = vpop.permute.xlu0 %7451  ;;  %7347 = vst.msk [vmem:[#allocation5 + $0x30] sm:$0xff] %vm499_vm2, %v12471_v16  ;;  %v12850_v16 = vld [vmem:[#allocation4 + $0x92] sm:$0xff] }
 0xafe   : > { %6506 = vst.msk [vmem:[#allocation5 + $0x38] sm:$0xff] %vm634_vm4, %v6418_v42  ;;  %5394 = vrot.lane.b32.xlu0 %v12850_v16, %s9863_s28 }
 0xaff   : > { %6699 = vst.msk [vmem:[#allocation5 + $0x38] sm:$0xff] %vm683_vm5, %v12348_v4  ;;  %5584 = vrot.lane.b32.xlu1 %v12820_v46, %s9864_s26 }
 0xb00   : > { %6891 = vst.msk [vmem:[#allocation5 + $0x38] sm:$0xff] %vm732_vm6, %v12376_v6  ;;  %v12858_v6 = vpop.permute.xlu1 %7637 }
 0xb01   : > { %v4345_v56 = vpop.permute.xlu0 %4344 }
 0xb02   : > { %4436 = vst.msk [vmem:[#allocation5 + $0x20] sm:$0xff] %vm634_vm4, %v4345_v56  ;;  %5582 = vrot.lane.b32.xlu0 %v12809_v26, %s9864_s26 }
 0xb03   : > { %4628 = vst.msk [vmem:[#allocation5 + $0x20] sm:$0xff] %vm683_vm5, %v11831_v27  ;;  %5776 = vrot.lane.b32.xlu1 %v12860_v59, %s9865_s16 }
 0xb04   : > { %4820 = vst.msk [vmem:[#allocation5 + $0x20] sm:$0xff] %vm732_vm6, %v11862_v48  ;;  %v12871_v27 = vpop.permute.xlu1 %7639 }
 0xb05   : > { %v4533_v4 = vpop.permute.xlu0 %4532 }
 0xb06   : > { %4626 = vst.msk [vmem:[#allocation5 + $0x10] sm:$0xff] %vm683_vm5, %v4533_v4  ;;  %5774 = vrot.lane.b32.xlu0 %v12850_v16, %s9865_s16 }
 0xb07   : > { %v12865_v42 = vld [vmem:[#allocation5 + $0x38] sm:$0xff]  ;;  %6425 = vrot.lane.b32.xlu1 %v12820_v46, %s9863_s28 }
 0xb08   : > { %7348 = vst.msk [vmem:[#allocation5 + $0x38] sm:$0xff] %vm499_vm2, %v12493_v15  ;;  %v12885_v56 = vpop.permute.xlu1 %7831 }
 0xb09   : > { %7540 = vst.msk [vmem:[#allocation5 + $0x38] sm:$0xff] %vm634_vm4, %v7452_v1  ;;  %v4725_v48 = vpop.permute.xlu0 %4724 }
 0xb0a   : > { %7732 = vst.msk [vmem:[#allocation5 + $0x38] sm:$0xff] %vm683_vm5, %v12361_v36  ;;  %6423 = vrot.lane.b32.xlu0 %v12809_v26, %s9863_s28  ;;  %v12899_v36 = vld [vmem:[#allocation4 + $0x19] sm:$0xff] }
 0xb0b   : > { %4818 = vst.msk [vmem:[#allocation5 + $0x10] sm:$0xff] %vm732_vm6, %v4725_v48  ;;  %7924 = vst.msk [vmem:[#allocation5 + $0x38] sm:$0xff] %vm732_vm6, %v12367_v61  ;;  %v12883_v15 = vld [vmem:[#allocation5 + $0x20] sm:$0xff]  ;;  %6614 = vrot.lane.b32.xlu1 %v12104_v58, %s9864_s26 }
 0xb0c   : > { %5278 = vst.msk [vmem:[#allocation5 + $0x20] sm:$0xff] %vm499_vm2, %v12554_v51  ;;  %v7450_v61 = vpop.permute.xlu1 %7449 }
 0xb0d   : > { %v5379_v1 = vpop.permute.xlu0 %5378  ;;  %7539 = vst.msk [vmem:[#allocation5 + $0x30] sm:$0xff] %vm634_vm4, %v7450_v61 }
 0xb0e   : > { %5470 = vst.msk [vmem:[#allocation5 + $0x20] sm:$0xff] %vm634_vm4, %v5379_v1  ;;  %6612 = vrot.lane.b32.xlu0 %v12100_v55, %s9864_s26 }
 0xb0f   : > { %5662 = vst.msk [vmem:[#allocation5 + $0x20] sm:$0xff] %vm683_vm5, %v11939_v17  ;;  %7731 = vst.msk [vmem:[#allocation5 + $0x30] sm:$0xff] %vm683_vm5, %v12354_v45  ;;  %7645 = vrot.lane.b32.xlu1 %v12809_v26, %s9864_s26 }
 0xb10   : > { %5854 = vst.msk [vmem:[#allocation5 + $0x20] sm:$0xff] %vm732_vm6, %v11977_v31  ;;  %7923 = vst.msk [vmem:[#allocation5 + $0x30] sm:$0xff] %vm732_vm6, %v12381_v19  ;;  %v4347_v17 = vpop.permute.xlu1 %4346 }
 0xb11   : > { %v5567_v4 = vpop.permute.xlu0 %5566  ;;  %4437 = vst.msk [vmem:[#allocation5 + $0x28] sm:$0xff] %vm634_vm4, %v4347_v17 }
 0xb12   : > { %v4850_v48 = vld [vmem:[#allocation5 + $0x10] sm:$0xff]  ;;  %4629 = vst.msk [vmem:[#allocation5 + $0x28] sm:$0xff] %vm683_vm5, %v11829_v34  ;;  %6804 = vrot.lane.b32.xlu0 %v12809_v26, %s9865_s16 }
 0xb13   : > { %5276 = vst.msk [vmem:[#allocation5 + $0x10] sm:$0xff] %vm499_vm2, %v12899_v36  ;;  %9248 = vmatprep.mubr.msk.f32.mxu1 %vm4886_vm9, %v4850_v48  ;;  %7837 = vrot.lane.b32.xlu1 %v12850_v16, %s9865_s16 }
 0xb14   : > { %5468 = vst.msk [vmem:[#allocation5 + $0x10] sm:$0xff] %vm634_vm4, %v12187_v40  ;;  %v6279_v40 = vld [vmem:[#allocation4 + $0x48] sm:$0xff]  ;;  %v4535_v45 = vpop.permute.xlu1 %4534 }
 0xb15   : > { %5660 = vst.msk [vmem:[#allocation5 + $0x10] sm:$0xff] %vm683_vm5, %v5567_v4  ;;  %v5759_v31 = vpop.permute.xlu0 %5758  ;;  %4627 = vst.msk [vmem:[#allocation5 + $0x18] sm:$0xff] %vm683_vm5, %v4535_v45  ;;  %v5245_v4 = vld [vmem:[#allocation4 + $0x21] sm:$0xff]  ;;  %v5256_v45 = vld [vmem:[#allocation4 + $0xa9] sm:$0xff] }
 0xb16   : > { %5852 = vst.msk [vmem:[#allocation5 + $0x10] sm:$0xff] %vm732_vm6, %v5759_v31  ;;  %4821 = vst.msk [vmem:[#allocation5 + $0x28] sm:$0xff] %vm732_vm6, %v11860_v62  ;;  %6806 = vrot.lane.b32.xlu0 %v12820_v46, %s9865_s16  ;;  %v14652_v31 = vld [vmem:[#allocation89_spill] sm:$0xff] }
 0xb17   : > { %v12925_v19 = vld [vmem:[#allocation5 + $0x20] sm:$0xff] }
 0xb18   : > { %6311 = vst.msk [vmem:[#allocation5 + $0x20] sm:$0xff] %vm499_vm2, %v6279_v40  ;;  %v4727_v62 = vpop.permute.xlu1 %4726 }
 0xb19   : > { %v6408_v34 = vpop.permute.xlu0 %6407  ;;  %6503 = vst.msk [vmem:[#allocation5 + $0x20] sm:$0xff] %vm634_vm4, %v12010_v63 }
 0xb1a   : > { %6696 = vst.msk [vmem:[#allocation5 + $0x20] sm:$0xff] %vm683_vm5, %v12828_v3  ;;  %7647 = vrot.lane.b32.xlu0 %v12820_v46, %s9864_s26 }
 0xb1b   : > { %6888 = vst.msk [vmem:[#allocation5 + $0x20] sm:$0xff] %vm732_vm6, %v12845_v5  ;;  %4819 = vst.msk [vmem:[#allocation5 + $0x18] sm:$0xff] %vm732_vm6, %v4727_v62  ;;  %v12956_v5 = vld [vmem:[#allocation4 + $0x129] sm:$0xff]  ;;  %v14654_v62 = vld [vmem:[#allocation33_spill] sm:$0xff] }
 0xb1c   : > { %4386 = vrot.lane.b32.xlu1 %v12956_v5, %s9863_s28 }
 0xb1d   : > { %v5884_v1 = vld [vmem:[#allocation5 + $0x10] sm:$0xff]  ;;  %v6599_v61 = vpop.permute.xlu0 %6598  ;;  %v4853_v63 = vld [vmem:[#allocation5 + $0x28] sm:$0xff] }
 0xb1e   : > { %6309 = vst.msk [vmem:[#allocation5 + $0x10] sm:$0xff] %vm499_vm2, %v12076_v52  ;;  %9300 = vmatprep.mubr.msk.f32.mxu0 %vm4886_vm9, %v5884_v1  ;;  %5279 = vst.msk [vmem:[#allocation5 + $0x28] sm:$0xff] %vm499_vm2, %v12603_v24  ;;  %v5381_v52 = vpop.permute.xlu1 %5380  ;;  %7839 = vrot.lane.b32.xlu0 %v12860_v59, %s9865_s16  ;;  %v14656_v1 = vld [vmem:[#allocation37_spill] sm:$0xff] }
 0xb1f   : > { %6693 = vst.msk [vmem:[#allocation5 + $0x8] sm:$0xff] %vm683_vm5, %v6599_v61 }
 0xb20   : > { %6501 = vst.msk [vmem:[#allocation5 + $0x10] sm:$0xff] %vm634_vm4, %v6408_v34  ;;  %5471 = vst.msk [vmem:[#allocation5 + $0x28] sm:$0xff] %vm634_vm4, %v5381_v52  ;;  %4574 = vrot.lane.b32.xlu1 %v12110_v13, %s9864_s26 }
 0xb21   : > { %6694 = vst.msk [vmem:[#allocation5 + $0x10] sm:$0xff] %vm683_vm5, %v12058_v50  ;;  %v6791_v3 = vpop.permute.xlu0 %6790  ;;  %5663 = vst.msk [vmem:[#allocation5 + $0x28] sm:$0xff] %vm683_vm5, %v11937_v32  ;;  %v7313_v50 = vld [vmem:[#allocation4 + $0x49] sm:$0xff] }
 0xb22   : > { %6886 = vst.msk [vmem:[#allocation5 + $0x10] sm:$0xff] %vm732_vm6, %v12084_v7  ;;  %6885 = vst.msk [vmem:[#allocation5 + $0x8] sm:$0xff] %vm732_vm6, %v6791_v3  ;;  %v12963_v24 = vld [vmem:[#allocation5 + $0x20] sm:$0xff]  ;;  %v4851_v7 = vld [vmem:[#allocation5 + $0x18] sm:$0xff]  ;;  %v5569_v48 = vpop.permute.xlu1 %5568  ;;  %7457 = vrot.lane.b32.xlu0 %v12850_v16, %s9863_s28 }
 0xb23   : > { %5855 = vst.msk [vmem:[#allocation5 + $0x28] sm:$0xff] %vm732_vm6, %v11975_v30  ;;  %9249 = vmatmul.mubr.msk.f32.gmra.mrb[34].mxu1 %vm4886_vm9, %v4851_v7  ;;  %v6280_v16 = vld [vmem:[#allocation4 + $0x50] sm:$0xff]  ;;  %v6291_v3 = vld [vmem:[#allocation4 + $0xd8] sm:$0xff] }
 0xb24   : > { %7345 = vst.msk [vmem:[#allocation5 + $0x20] sm:$0xff] %vm499_vm2, %v7313_v50  ;;  %5277 = vst.msk [vmem:[#allocation5 + $0x18] sm:$0xff] %vm499_vm2, %v5245_v4  ;;  %9251 = vmatprep.mubr.msk.f32.mxu1 %vm4886_vm9, %v12883_v15  ;;  %4766 = vrot.lane.b32.xlu1 %v12956_v5, %s9865_s16 }
 0xb25   : > { %7537 = vst.msk [vmem:[#allocation5 + $0x20] sm:$0xff] %vm634_vm4, %v12171_v9  ;;  %v12973_v32 = vpop.permute.xlu0 %7821  ;;  %5469 = vst.msk [vmem:[#allocation5 + $0x18] sm:$0xff] %vm634_vm4, %v12205_v41 }
 0xb26   : > { %7729 = vst.msk [vmem:[#allocation5 + $0x20] sm:$0xff] %vm683_vm5, %v12858_v6  ;;  %5661 = vst.msk [vmem:[#allocation5 + $0x18] sm:$0xff] %vm683_vm5, %v5569_v48  ;;  %v5761_v30 = vpop.permute.xlu1 %5760  ;;  %7459 = vrot.lane.b32.xlu0 %v12860_v59, %s9863_s28  ;;  %v13020_v59 = vld [vmem:[#allocation4 + $0x121] sm:$0xff]  ;;  %v14659_v48 = vld [vmem:[#allocation24_spill] sm:$0xff] }
 0xb27   : > { %7921 = vst.msk [vmem:[#allocation5 + $0x20] sm:$0xff] %vm732_vm6, %v12818_v22  ;;  %5853 = vst.msk [vmem:[#allocation5 + $0x18] sm:$0xff] %vm732_vm6, %v5761_v30  ;;  %9252 = vmatmul.mubr.msk.f32.gmra.mrb[36].mxu1 %vm4886_vm9, %v4853_v63 }
 0xb28   : > { %9254 = vmatprep.mubr.msk.f32.mxu1 %vm4886_vm9, %v12752_v60  ;;  %v13013_v60 = vld [vmem:[#allocation4 + $0x12a] sm:$0xff] }
 0xb29   : > { %v12989_v9 = vld [vmem:[#allocation5 + $0x10] sm:$0xff]  ;;  %v12992_v41 = vpop.permute.xlu0 %7443  ;;  %v12995_v6 = vld [vmem:[#allocation5 + $0x8] sm:$0xff]  ;;  %5420 = vrot.lane.b32.xlu1 %v13013_v60, %s9863_s28 }
 0xb2a   : > { %7343 = vst.msk [vmem:[#allocation5 + $0x10] sm:$0xff] %vm499_vm2, %v12554_v51  ;;  %v5887_v22 = vld [vmem:[#allocation5 + $0x28] sm:$0xff]  ;;  %7342 = vst.msk [vmem:[#allocation5 + $0x8] sm:$0xff] %vm499_vm2, %v5245_v4  ;;  %v6410_v15 = vpop.permute.xlu1 %6409  ;;  %4384 = vrot.lane.b32.xlu0 %v13020_v59, %s9863_s28  ;;  %v14658_v4 = vld [vmem:[#allocation94_spill] sm:$0xff] }
 0xb2b   : > { %6312 = vst.msk [vmem:[#allocation5 + $0x28] sm:$0xff] %vm499_vm2, %v6280_v16  ;;  %9255 = vmatmul.mubr.msk.f32.gmra.mrb[38].mxu1 %vm4886_vm9, %v12784_v21  ;;  %v7314_v21 = vld [vmem:[#allocation4 + $0x51] sm:$0xff]  ;;  %v14661_v16 = vld [vmem:[#allocation81_spill] sm:$0xff] }
 0xb2c   : > { %7534 = vst.msk [vmem:[#allocation5 + $0x8] sm:$0xff] %vm634_vm4, %v12220_v35  ;;  %6504 = vst.msk [vmem:[#allocation5 + $0x28] sm:$0xff] %vm634_vm4, %v12005_v33  ;;  %9257 = vmatprep.mubr.msk.f32.mxu1 %vm4886_vm9, %v12734_v23 }
 0xb2d   : > { %v4369_v51 = vpop.permute.xlu0 %4368  ;;  %6697 = vst.msk [vmem:[#allocation5 + $0x28] sm:$0xff] %vm683_vm5, %v12789_v37  ;;  %5608 = vrot.lane.b32.xlu1 %v12956_v5, %s9864_s26  ;;  %v14651_v37 = vld [vmem:[#allocation29_spill] sm:$0xff] }
 0xb2e   : > { %4448 = vst.msk [vmem:[#allocation5 + $0x80] sm:$0xff] %vm634_vm4, %v4369_v51  ;;  %v5885_v33 = vld [vmem:[#allocation5 + $0x18] sm:$0xff]  ;;  %v6597_v35 = vpop.permute.xlu1 %6596  ;;  %4572 = vrot.lane.b32.xlu0 %v12138_v18, %s9864_s26  ;;  %v14663_v51 = vld [vmem:[#allocation88_spill] sm:$0xff] }
 0xb2f   : > { %6889 = vst.msk [vmem:[#allocation5 + $0x28] sm:$0xff] %vm732_vm6, %v12805_v53  ;;  %9258 = vmatmul.mubr.msk.f32.gmra.mrb[40].mxu1 %vm4886_vm9, %v12765_v54  ;;  %9301 = vmatmul.mubr.msk.f32.gmra.mrb[42].mxu0 %vm4886_vm9, %v5885_v33 }
 0xb30   : > { %4640 = vst.msk [vmem:[#allocation5 + $0x80] sm:$0xff] %vm683_vm5, %v12477_v12  ;;  %6692 = vst.msk [vmem:[#allocation5] sm:$0xff] %vm683_vm5, %v6597_v35  ;;  %9303 = vmatprep.mubr.msk.f32.mxu0 %vm4886_vm9, %v12925_v19  ;;  %v14653_v19 = vld [vmem:[#allocation91_spill] sm:$0xff]  ;;  %v14664_v35 = vld [vmem:[#allocation90_spill] sm:$0xff] }
 0xb31   : > { %4832 = vst.msk [vmem:[#allocation5 + $0x80] sm:$0xff] %vm732_vm6, %v12484_v14  ;;  %v4557_v23 = vpop.permute.xlu0 %4556  ;;  %5800 = vrot.lane.b32.xlu1 %v13013_v60, %s9865_s16 }
 0xb32   : > { %6310 = vst.msk [vmem:[#allocation5 + $0x18] sm:$0xff] %vm499_vm2, %v12080_v44  ;;  %v14650_v44 = vld [vmem:[#allocation23_spill] sm:$0xff]  ;;  %v6789_v12 = vpop.permute.xlu1 %6788  ;;  %4764 = vrot.lane.b32.xlu0 %v13020_v59, %s9865_s16 }
 0xb33   : > { %6502 = vst.msk [vmem:[#allocation5 + $0x18] sm:$0xff] %vm634_vm4, %v6410_v15  ;;  %9304 = vmatmul.mubr.msk.f32.gmra.mrb[44].mxu0 %vm4886_vm9, %v5887_v22  ;;  %v14662_v15 = vld [vmem:[#allocation83_spill] sm:$0xff] }
 0xb34   : > { %4638 = vst.msk [vmem:[#allocation5 + $0x70] sm:$0xff] %vm683_vm5, %v4557_v23  ;;  %6695 = vst.msk [vmem:[#allocation5 + $0x18] sm:$0xff] %vm683_vm5, %v12063_v25  ;;  %9306 = vmatprep.mubr.msk.f32.mxu0 %vm4886_vm9, %v12786_v10  ;;  %v13077_v10 = vld [vmem:[#allocation4 + $0x122] sm:$0xff] }
 0xb35   : > { %6887 = vst.msk [vmem:[#allocation5 + $0x18] sm:$0xff] %vm732_vm6, %v14650_v44  ;;  %6884 = vst.msk [vmem:[#allocation5] sm:$0xff] %vm732_vm6, %v6789_v12  ;;  %v4749_v14 = vpop.permute.xlu0 %4748  ;;  %6636 = vrot.lane.b32.xlu1 %v12138_v18, %s9864_s26  ;;  %v13168_v12 = vld [vmem:[#allocation4 + $0xf9] sm:$0xff] }
 0xb36   : > { %v13052_v54 = vld [vmem:[#allocation5 + $0x28] sm:$0xff]  ;;  %4830 = vst.msk [vmem:[#allocation5 + $0x70] sm:$0xff] %vm732_vm6, %v4749_v14  ;;  %v7630_v53 = vpop.permute.xlu1 %7629  ;;  %5418 = vrot.lane.b32.xlu0 %v13077_v10, %s9863_s28 }
 0xb37   : > { %7346 = vst.msk [vmem:[#allocation5 + $0x28] sm:$0xff] %vm499_vm2, %v7314_v21  ;;  %9307 = vmatmul.mubr.msk.f32.gmra.mrb[46].mxu0 %vm4886_vm9, %v12826_v2 }
 0xb38   : > { %v13062_v25 = vld [vmem:[#allocation5 + $0x80] sm:$0xff]  ;;  %7538 = vst.msk [vmem:[#allocation5 + $0x28] sm:$0xff] %vm634_vm4, %v14651_v37  ;;  %9309 = vmatprep.mubr.msk.f32.mxu0 %vm4886_vm9, %v12770_v57 }
 0xb39   : > { %5290 = vst.msk [vmem:[#allocation5 + $0x80] sm:$0xff] %vm499_vm2, %v12654_v0  ;;  %v5403_v17 = vpop.permute.xlu0 %5402  ;;  %6828 = vrot.lane.b32.xlu1 %v13020_v59, %s9865_s16 }
 0xb3a   : > { %7730 = vst.msk [vmem:[#allocation5 + $0x28] sm:$0xff] %vm683_vm5, %v12871_v27  ;;  %v7312_v27 = vld [vmem:[#allocation4 + $0x39] sm:$0xff]  ;;  %v7632_v40 = vpop.permute.xlu1 %7631  ;;  %5606 = vrot.lane.b32.xlu0 %v13020_v59, %s9864_s26 }
 0xb3b   : > { %7922 = vst.msk [vmem:[#allocation5 + $0x28] sm:$0xff] %vm732_vm6, %v12885_v56  ;;  %9310 = vmatmul.mubr.msk.f32.gmra.mrb[48].mxu0 %vm4886_vm9, %v12811_v38  ;;  %v14657_v38 = vld [vmem:[#allocation30_spill] sm:$0xff] }
 0xb3c   : > { %5482 = vst.msk [vmem:[#allocation5 + $0x80] sm:$0xff] %vm634_vm4, %v5403_v17  ;;  %v13085_v2 = vld [vmem:[#allocation5 + $0x18] sm:$0xff]  ;;  %v13087_v56 = vld [vmem:[#allocation5] sm:$0xff]  ;;  %v14665_v17 = vld [vmem:[#allocation85_spill] sm:$0xff] }
 0xb3d   : > { %5674 = vst.msk [vmem:[#allocation5 + $0x80] sm:$0xff] %vm683_vm5, %v14652_v31  ;;  %7726 = vst.msk [vmem:[#allocation5 + $0x8] sm:$0xff] %vm683_vm5, %v7632_v40  ;;  %v13095_v57 = vld [vmem:[#allocation5 + $0x70] sm:$0xff]  ;;  %v5591_v34 = vpop.permute.xlu0 %5590  ;;  %6830 = vrot.lane.b32.xlu1 %v12956_v5, %s9865_s16  ;;  %v5257_v40 = vld [vmem:[#allocation4 + $0xb1] sm:$0xff] }
 0xb3e   : > { %5866 = vst.msk [vmem:[#allocation5 + $0x80] sm:$0xff] %vm732_vm6, %v14653_v19  ;;  %v7824_v61 = vpop.permute.xlu1 %7823  ;;  %5798 = vrot.lane.b32.xlu0 %v13077_v10, %s9865_s16  ;;  %v14666_v31 = vld [vmem:[#allocation26_spill] sm:$0xff] }
 0xb3f   : > { %7344 = vst.msk [vmem:[#allocation5 + $0x18] sm:$0xff] %vm499_vm2, %v7312_v27  ;;  %7341 = vst.msk [vmem:[#allocation5] sm:$0xff] %vm499_vm2, %v12899_v36  ;;  %v14655_v36 = vld [vmem:[#allocation27_spill] sm:$0xff]  ;;  %v14667_v27 = vld [vmem:[#allocation86_spill] sm:$0xff] }
 0xb40   : > { %7536 = vst.msk [vmem:[#allocation5 + $0x18] sm:$0xff] %vm634_vm4, %v12992_v41  ;;  %7533 = vst.msk [vmem:[#allocation5] sm:$0xff] %vm634_vm4, %v14654_v62 }
 0xb41   : > { %5288 = vst.msk [vmem:[#allocation5 + $0x70] sm:$0xff] %vm499_vm2, %v5256_v45  ;;  %v5783_v63 = vpop.permute.xlu0 %5782  ;;  %6447 = vrot.lane.b32.xlu1 %v13020_v59, %s9863_s28 }
 0xb42   : > { %7728 = vst.msk [vmem:[#allocation5 + $0x18] sm:$0xff] %vm683_vm5, %v14655_v36  ;;  %7725 = vst.msk [vmem:[#allocation5] sm:$0xff] %vm683_vm5, %v7630_v53  ;;  %v7442_v50 = vpop.permute.xlu1 %7441  ;;  %6638 = vrot.lane.b32.xlu0 %v12110_v13, %s9864_s26  ;;  %v13206_v36 = vld [vmem:[#allocation4 + $0xfa] sm:$0xff] }
 0xb43   : > { %5480 = vst.msk [vmem:[#allocation5 + $0x70] sm:$0xff] %vm634_vm4, %v14656_v1  ;;  %7535 = vst.msk [vmem:[#allocation5 + $0x10] sm:$0xff] %vm634_vm4, %v7442_v50  ;;  %v13210_v1 = vld [vmem:[#allocation4 + $0xf1] sm:$0xff] }
 0xb44   : > { %7920 = vst.msk [vmem:[#allocation5 + $0x18] sm:$0xff] %vm732_vm6, %v14657_v38  ;;  %7917 = vst.msk [vmem:[#allocation5] sm:$0xff] %vm732_vm6, %v12973_v32  ;;  %v14660_v32 = vld [vmem:[#allocation25_spill] sm:$0xff]  ;;  %v14670_v50 = vld [vmem:[#allocation96_spill] sm:$0xff] }
 0xb45   : > { %5672 = vst.msk [vmem:[#allocation5 + $0x70] sm:$0xff] %vm683_vm5, %v5591_v34  ;;  %v13124_v52 = vld [vmem:[#allocation5 + $0x80] sm:$0xff]  ;;  %v6432_v7 = vpop.permute.xlu0 %6431  ;;  %7727 = vst.msk [vmem:[#allocation5 + $0x10] sm:$0xff] %vm683_vm5, %v14659_v48  ;;  %7669 = vrot.lane.b32.xlu1 %v13020_v59, %s9864_s26 }
 0xb46   : > { %7918 = vst.msk [vmem:[#allocation5 + $0x8] sm:$0xff] %vm732_vm6, %v7824_v61  ;;  %5864 = vst.msk [vmem:[#allocation5 + $0x70] sm:$0xff] %vm732_vm6, %v5783_v63  ;;  %v4371_v30 = vpop.permute.xlu1 %4370  ;;  %6449 = vrot.lane.b32.xlu0 %v12956_v5, %s9863_s28  ;;  %v6292_v61 = vld [vmem:[#allocation4 + $0xe0] sm:$0xff]  ;;  %v14669_v63 = vld [vmem:[#allocation95_spill] sm:$0xff] }
 0xb47   : > { %6323 = vst.msk [vmem:[#allocation5 + $0x80] sm:$0xff] %vm499_vm2, %v6291_v3 }
 0xb48   : > { %6515 = vst.msk [vmem:[#allocation5 + $0x80] sm:$0xff] %vm634_vm4, %v14658_v4  ;;  %4449 = vst.msk [vmem:[#allocation5 + $0x88] sm:$0xff] %vm634_vm4, %v4371_v30  ;;  %v14672_v4 = vld [vmem:[#allocation98_spill] sm:$0xff] }
 0xb49   : > { %7919 = vst.msk [vmem:[#allocation5 + $0x10] sm:$0xff] %vm732_vm6, %v14660_v32  ;;  %v13141_v22 = vpop.permute.xlu0 %6620  ;;  %7861 = vrot.lane.b32.xlu1 %v13077_v10, %s9865_s16 }
 0xb4a   : > { %4641 = vst.msk [vmem:[#allocation5 + $0x88] sm:$0xff] %vm683_vm5, %v14661_v16  ;;  %v4559_v33 = vpop.permute.xlu1 %4558  ;;  %7671 = vrot.lane.b32.xlu0 %v12956_v5, %s9864_s26  ;;  %v14673_v16 = vld [vmem:[#allocation93_spill] sm:$0xff] }
 0xb4b   : > { %4833 = vst.msk [vmem:[#allocation5 + $0x88] sm:$0xff] %vm732_vm6, %v14662_v15  ;;  %v14674_v15 = vld [vmem:[#allocation92_spill] sm:$0xff] }
 0xb4c   : > { %4639 = vst.msk [vmem:[#allocation5 + $0x78] sm:$0xff] %vm683_vm5, %v4559_v33 }
 0xb4d   : > { %v13138_v41 = vld [vmem:[#allocation5 + $0x70] sm:$0xff]  ;;  %4378 = vrot.lane.b32.xlu1 %v13168_v12, %s9863_s28 }
 0xb4e   : > { %6321 = vst.msk [vmem:[#allocation5 + $0x70] sm:$0xff] %vm499_vm2, %v12086_v29  ;;  %v13159_v29 = vpop.permute.xlu0 %6812  ;;  %v4751_v23 = vpop.permute.xlu1 %4750  ;;  %7863 = vrot.lane.b32.xlu0 %v13013_v60, %s9865_s16 }
 0xb4f   : > { %6513 = vst.msk [vmem:[#allocation5 + $0x70] sm:$0xff] %vm634_vm4, %v6432_v7  ;;  %v14671_v7 = vld [vmem:[#allocation28_spill] sm:$0xff] }
 0xb50   : > { %6706 = vst.msk [vmem:[#allocation5 + $0x70] sm:$0xff] %vm683_vm5, %v14663_v51 }
 0xb51   : > { %6898 = vst.msk [vmem:[#allocation5 + $0x70] sm:$0xff] %vm732_vm6, %v14664_v35  ;;  %4831 = vst.msk [vmem:[#allocation5 + $0x78] sm:$0xff] %vm732_vm6, %v4751_v23  ;;  %4566 = vrot.lane.b32.xlu1 %v14666_v31, %s9864_s26  ;;  %v14675_v35 = vld [vmem:[#allocation34_spill] sm:$0xff]  ;;  %v14676_v23 = vld [vmem:[#allocation35_spill] sm:$0xff] }
 0xb52   : > { %v13166_v44 = vpop.permute.xlu0 %6814  ;;  %v13172_v14 = vld [vmem:[#allocation5 + $0x88] sm:$0xff]  ;;  %v5405_v21 = vpop.permute.xlu1 %5404  ;;  %7481 = vrot.lane.b32.xlu0 %v13077_v10, %s9863_s28 }
 0xb53   : > { %5291 = vst.msk [vmem:[#allocation5 + $0x88] sm:$0xff] %vm499_vm2, %v12709_v28 }
 0xb54   : > { %5483 = vst.msk [vmem:[#allocation5 + $0x88] sm:$0xff] %vm634_vm4, %v5405_v21 }
 0xb55   : > { %5675 = vst.msk [vmem:[#allocation5 + $0x88] sm:$0xff] %vm683_vm5, %v14665_v17  ;;  %4758 = vrot.lane.b32.xlu1 %v13168_v12, %s9865_s16  ;;  %v14677_v17 = vld [vmem:[#allocation36_spill] sm:$0xff] }
 0xb56   : > { %v6434_v53 = vpop.permute.xlu0 %6433  ;;  %5867 = vst.msk [vmem:[#allocation5 + $0x88] sm:$0xff] %vm732_vm6, %v14667_v27  ;;  %v5593_v45 = vpop.permute.xlu1 %5592  ;;  %7483 = vrot.lane.b32.xlu0 %v13013_v60, %s9863_s28 }
 0xb58   : > { %v13178_v37 = vld [vmem:[#allocation5 + $0x70] sm:$0xff]  ;;  %v13191_v19 = vld [vmem:[#allocation5 + $0x78] sm:$0xff] }
 0xb59   : > { %7355 = vst.msk [vmem:[#allocation5 + $0x70] sm:$0xff] %vm499_vm2, %v12654_v0  ;;  %5289 = vst.msk [vmem:[#allocation5 + $0x78] sm:$0xff] %vm499_vm2, %v5257_v40  ;;  %v14668_v0 = vld [vmem:[#allocation40_spill] sm:$0xff]  ;;  %5412 = vrot.lane.b32.xlu1 %v13206_v36, %s9863_s28  ;;  %v14678_v40 = vld [vmem:[#allocation38_spill] sm:$0xff] }
 0xb5a   : > { %v13194_v34 = vpop.permute.xlu0 %7655  ;;  %5481 = vst.msk [vmem:[#allocation5 + $0x78] sm:$0xff] %vm634_vm4, %v14668_v0  ;;  %v5785_v10 = vpop.permute.xlu1 %5784  ;;  %4376 = vrot.lane.b32.xlu0 %v13210_v1, %s9863_s28 }
 0xb5b   : > { %5673 = vst.msk [vmem:[#allocation5 + $0x78] sm:$0xff] %vm683_vm5, %v5593_v45 }
 0xb5c   : > { %5865 = vst.msk [vmem:[#allocation5 + $0x78] sm:$0xff] %vm732_vm6, %v5785_v10  ;;  %v14679_v10 = vld [vmem:[#allocation97_spill] sm:$0xff] }
 0xb5d   : > { %v13212_v38 = vld [vmem:[#allocation5 + $0x88] sm:$0xff]  ;;  %5600 = vrot.lane.b32.xlu1 %v13168_v12, %s9864_s26 }
 0xb5e   : > { %v13204_v62 = vpop.permute.xlu0 %7847  ;;  %6324 = vst.msk [vmem:[#allocation5 + $0x88] sm:$0xff] %vm499_vm2, %v6292_v61  ;;  %v13217_v60 = vpop.permute.xlu1 %6622  ;;  %4564 = vrot.lane.b32.xlu0 %v14671_v7, %s9864_s26  ;;  %v14680_v61 = vld [vmem:[#allocation99_spill] sm:$0xff] }
 0xb5f   : > { %6516 = vst.msk [vmem:[#allocation5 + $0x88] sm:$0xff] %vm634_vm4, %v14669_v63 }
 0xb61   : > { %5792 = vrot.lane.b32.xlu1 %v13206_v36, %s9865_s16 }
 0xb62   : > { %v7466_v3 = vpop.permute.xlu0 %7465  ;;  %v13230_v48 = vpop.permute.xlu1 %7653  ;;  %4756 = vrot.lane.b32.xlu0 %v13210_v1, %s9865_s16 }
 0xb63   : > { %7547 = vst.msk [vmem:[#allocation5 + $0x70] sm:$0xff] %vm634_vm4, %v7466_v3  ;;  %v13232_v32 = vld [vmem:[#allocation5 + $0x78] sm:$0xff] }
 0xb64   : > { %7739 = vst.msk [vmem:[#allocation5 + $0x70] sm:$0xff] %vm683_vm5, %v14670_v50 }
 0xb65   : > { %7931 = vst.msk [vmem:[#allocation5 + $0x70] sm:$0xff] %vm732_vm6, %v14672_v4  ;;  %6628 = vrot.lane.b32.xlu1 %v14671_v7, %s9864_s26  ;;  %v14681_v4 = vld [vmem:[#allocation39_spill] sm:$0xff] }
 0xb66   : > { %6322 = vst.msk [vmem:[#allocation5 + $0x78] sm:$0xff] %vm499_vm2, %v12092_v8  ;;  %v7468_v30 = vpop.permute.xlu0 %7467  ;;  %v13245_v51 = vpop.permute.xlu1 %7845  ;;  %v13250_v8 = vld [vmem:[#allocation4 + $0xf2] sm:$0xff] }
 0xb67   : > { %6514 = vst.msk [vmem:[#allocation5 + $0x78] sm:$0xff] %vm634_vm4, %v6434_v53  ;;  %5410 = vrot.lane.b32.xlu0 %v13250_v8, %s9863_s28 }
 0xb68   : > { %6707 = vst.msk [vmem:[#allocation5 + $0x78] sm:$0xff] %vm683_vm5, %v14673_v16 }
 0xb69   : > { %6899 = vst.msk [vmem:[#allocation5 + $0x78] sm:$0xff] %vm732_vm6, %v14674_v15  ;;  %6820 = vrot.lane.b32.xlu1 %v13210_v1, %s9865_s16  ;;  %v13298_v15 = vld [vmem:[#allocation4 + $0x79] sm:$0xff] }
 0xb6a   : > { %v4361_v33 = vpop.permute.xlu0 %4360  ;;  %v4363_v21 = vpop.permute.xlu1 %4362 }
 0xb6b   : > { %4444 = vst.msk [vmem:[#allocation5 + $0x60] sm:$0xff] %vm634_vm4, %v4361_v33  ;;  %4445 = vst.msk [vmem:[#allocation5 + $0x68] sm:$0xff] %vm634_vm4, %v4363_v21  ;;  %5598 = vrot.lane.b32.xlu0 %v13210_v1, %s9864_s26 }
 0xb6c   : > { %4636 = vst.msk [vmem:[#allocation5 + $0x60] sm:$0xff] %vm683_vm5, %v14675_v35  ;;  %4637 = vst.msk [vmem:[#allocation5 + $0x68] sm:$0xff] %vm683_vm5, %v14677_v17  ;;  %v14683_v35 = vld [vmem:[#allocation42_spill] sm:$0xff] }
 0xb6d   : > { %4828 = vst.msk [vmem:[#allocation5 + $0x60] sm:$0xff] %vm732_vm6, %v14676_v23  ;;  %4829 = vst.msk [vmem:[#allocation5 + $0x68] sm:$0xff] %vm732_vm6, %v14678_v40  ;;  %6822 = vrot.lane.b32.xlu1 %v13168_v12, %s9865_s16  ;;  %v14685_v23 = vld [vmem:[#allocation57_spill] sm:$0xff] }
 0xb6e   : > { %v4549_v53 = vpop.permute.xlu0 %4548  ;;  %v4551_v45 = vpop.permute.xlu1 %4550 }
 0xb6f   : > { %4634 = vst.msk [vmem:[#allocation5 + $0x50] sm:$0xff] %vm683_vm5, %v4549_v53  ;;  %4635 = vst.msk [vmem:[#allocation5 + $0x58] sm:$0xff] %vm683_vm5, %v4551_v45  ;;  %5790 = vrot.lane.b32.xlu0 %v13250_v8, %s9865_s16  ;;  %v13314_v53 = vld [vmem:[#allocation4 + $0x81] sm:$0xff]  ;;  %v14686_v45 = vld [vmem:[#allocation56_spill] sm:$0xff] }
 0xb70   : > { %v13264_v27 = vld [vmem:[#allocation5 + $0x78] sm:$0xff] }
 0xb71   : > { %7356 = vst.msk [vmem:[#allocation5 + $0x78] sm:$0xff] %vm499_vm2, %v12709_v28  ;;  %6439 = vrot.lane.b32.xlu1 %v13210_v1, %s9863_s28 }
 0xb72   : > { %7548 = vst.msk [vmem:[#allocation5 + $0x78] sm:$0xff] %vm634_vm4, %v7468_v30  ;;  %v4741_v0 = vpop.permute.xlu0 %4740  ;;  %v4743_v63 = vpop.permute.xlu1 %4742  ;;  %v14682_v30 = vld [vmem:[#allocation41_spill] sm:$0xff] }
 0xb73   : > { %7740 = vst.msk [vmem:[#allocation5 + $0x78] sm:$0xff] %vm683_vm5, %v14679_v10  ;;  %6630 = vrot.lane.b32.xlu0 %v14666_v31, %s9864_s26  ;;  %v6287_v10 = vld [vmem:[#allocation4 + $0xa8] sm:$0xff] }
 0xb74   : > { %4826 = vst.msk [vmem:[#allocation5 + $0x50] sm:$0xff] %vm732_vm6, %v4741_v0  ;;  %7932 = vst.msk [vmem:[#allocation5 + $0x78] sm:$0xff] %vm732_vm6, %v14680_v61  ;;  %v4860_v28 = vld [vmem:[#allocation5 + $0x60] sm:$0xff]  ;;  %v4861_v50 = vld [vmem:[#allocation5 + $0x68] sm:$0xff] }
 0xb75   : > { %5286 = vst.msk [vmem:[#allocation5 + $0x60] sm:$0xff] %vm499_vm2, %v12809_v26  ;;  %5287 = vst.msk [vmem:[#allocation5 + $0x68] sm:$0xff] %vm499_vm2, %v12820_v46  ;;  %7661 = vrot.lane.b32.xlu1 %v13210_v1, %s9864_s26  ;;  %v14684_v46 = vld [vmem:[#allocation44_spill] sm:$0xff] }
 0xb76   : > { %4827 = vst.msk [vmem:[#allocation5 + $0x58] sm:$0xff] %vm732_vm6, %v4743_v63  ;;  %v5395_v3 = vpop.permute.xlu0 %5394  ;;  %v5397_v26 = vpop.permute.xlu1 %5396 }
 0xb77   : > { %5478 = vst.msk [vmem:[#allocation5 + $0x60] sm:$0xff] %vm634_vm4, %v5395_v3  ;;  %5479 = vst.msk [vmem:[#allocation5 + $0x68] sm:$0xff] %vm634_vm4, %v5397_v26  ;;  %6441 = vrot.lane.b32.xlu0 %v13168_v12, %s9863_s28  ;;  %v13331_v3 = vld [vmem:[#allocation4 + $0x188] sm:$0xff] }
 0xb78   : > { %5670 = vst.msk [vmem:[#allocation5 + $0x60] sm:$0xff] %vm683_vm5, %v14681_v4  ;;  %5671 = vst.msk [vmem:[#allocation5 + $0x68] sm:$0xff] %vm683_vm5, %v14683_v35  ;;  %v14687_v4 = vld [vmem:[#allocation43_spill] sm:$0xff] }
 0xb79   : > { %5862 = vst.msk [vmem:[#allocation5 + $0x60] sm:$0xff] %vm732_vm6, %v14682_v30  ;;  %5863 = vst.msk [vmem:[#allocation5 + $0x68] sm:$0xff] %vm732_vm6, %v14684_v46  ;;  %7853 = vrot.lane.b32.xlu1 %v13250_v8, %s9865_s16  ;;  %v6288_v30 = vld [vmem:[#allocation4 + $0xb0] sm:$0xff] }
 0xb7a   : > { %v5583_v33 = vpop.permute.xlu0 %5582  ;;  %v5585_v17 = vpop.permute.xlu1 %5584 }
 0xb7b   : > { %v4858_v16 = vld [vmem:[#allocation5 + $0x50] sm:$0xff]  ;;  %7663 = vrot.lane.b32.xlu0 %v13168_v12, %s9864_s26 }
 0xb7c   : > { %5284 = vst.msk [vmem:[#allocation5 + $0x50] sm:$0xff] %vm499_vm2, %v13298_v15  ;;  %9260 = vmatprep.mubr.msk.f32.mxu1 %vm4886_vm9, %v4858_v16  ;;  %v14688_v16 = vld [vmem:[#allocation46_spill] sm:$0xff] }
 0xb7d   : > { %5476 = vst.msk [vmem:[#allocation5 + $0x50] sm:$0xff] %vm634_vm4, %v14685_v23  ;;  %v4859_v21 = vld [vmem:[#allocation5 + $0x58] sm:$0xff]  ;;  %4590 = vrot.lane.b32.xlu1 %v13331_v3, %s9864_s26 }
 0xb7e   : > { %5668 = vst.msk [vmem:[#allocation5 + $0x50] sm:$0xff] %vm683_vm5, %v5583_v33  ;;  %v5775_v40 = vpop.permute.xlu0 %5774  ;;  %9261 = vmatmul.mubr.msk.f32.gmra.mrb[42].mxu1 %vm4886_vm9, %v4859_v21  ;;  %v5777_v61 = vpop.permute.xlu1 %5776  ;;  %v13362_v23 = vld [vmem:[#allocation4 + $0x189] sm:$0xff] }
 0xb7f   : > { %5285 = vst.msk [vmem:[#allocation5 + $0x58] sm:$0xff] %vm499_vm2, %v13314_v53  ;;  %9263 = vmatprep.mubr.msk.f32.mxu1 %vm4886_vm9, %v4860_v28  ;;  %7855 = vrot.lane.b32.xlu0 %v13206_v36, %s9865_s16 }
 0xb80   : > { %5477 = vst.msk [vmem:[#allocation5 + $0x58] sm:$0xff] %vm634_vm4, %v14686_v45  ;;  %v5894_v0 = vld [vmem:[#allocation5 + $0x60] sm:$0xff]  ;;  %v5895_v28 = vld [vmem:[#allocation5 + $0x68] sm:$0xff]  ;;  %v14693_v45 = vld [vmem:[#allocation54_spill] sm:$0xff] }
 0xb81   : > { %5860 = vst.msk [vmem:[#allocation5 + $0x50] sm:$0xff] %vm732_vm6, %v5775_v40  ;;  %4782 = vrot.lane.b32.xlu1 %v13362_v23, %s9865_s16 }
 0xb82   : > { %5669 = vst.msk [vmem:[#allocation5 + $0x58] sm:$0xff] %vm683_vm5, %v5585_v17  ;;  %v6424_v63 = vpop.permute.xlu0 %6423  ;;  %9264 = vmatmul.mubr.msk.f32.gmra.mrb[44].mxu1 %vm4886_vm9, %v4861_v50  ;;  %v4203_v50 = vld [vmem:[%s14514_s9 + $0x20] sm:$0xff]  ;;  %v6426_v26 = vpop.permute.xlu1 %6425  ;;  %v14690_v17 = vld [vmem:[#allocation47_spill] sm:$0xff] }
 0xb83   : > { %6319 = vst.msk [vmem:[#allocation5 + $0x60] sm:$0xff] %vm499_vm2, %v6287_v10  ;;  %9266 = vmatprep.mubr.msk.f32.mxu1 %vm4886_vm9, %v13095_v57  ;;  %6320 = vst.msk [vmem:[#allocation5 + $0x68] sm:$0xff] %vm499_vm2, %v6288_v30  ;;  %v4204_v57 = vld [vmem:[%s14514_s9 + $0x28] sm:$0xff]  ;;  %7473 = vrot.lane.b32.xlu0 %v13250_v8, %s9863_s28  ;;  %v14691_v8 = vld [vmem:[#allocation48_spill] sm:$0xff] }
 0xb84   : > { %5861 = vst.msk [vmem:[#allocation5 + $0x58] sm:$0xff] %vm732_vm6, %v5777_v61  ;;  %v9529_v33 = vpack.c.bf16 %v4204_v57, %v4203_v50  ;;  %v13406_v10 = vld [vmem:[#allocation4 + $0x18a] sm:$0xff] }
 0xb85   : > { %6511 = vst.msk [vmem:[#allocation5 + $0x60] sm:$0xff] %vm634_vm4, %v14687_v4  ;;  %6512 = vst.msk [vmem:[#allocation5 + $0x68] sm:$0xff] %vm634_vm4, %v14688_v16  ;;  %5624 = vrot.lane.b32.xlu1 %v13362_v23, %s9864_s26  ;;  %v7322_v61 = vld [vmem:[#allocation4 + $0xb1] sm:$0xff]  ;;  %v13479_v16 = vld [vmem:[#allocation4 + $0x182] sm:$0xff] }
 0xb86   : > { %6704 = vst.msk [vmem:[#allocation5 + $0x60] sm:$0xff] %vm683_vm5, %v13141_v22  ;;  %v4205_v22 = vld [vmem:[%s14514_s9 + $0x30] sm:$0xff]  ;;  %v6613_v46 = vpop.permute.xlu0 %6612  ;;  %9267 = vmatmul.mubr.msk.f32.gmra.mrb[46].mxu1 %vm4886_vm9, %v13191_v19  ;;  %6705 = vst.msk [vmem:[#allocation5 + $0x68] sm:$0xff] %vm683_vm5, %v13217_v60  ;;  %v14689_v19 = vld [vmem:[#allocation45_spill] sm:$0xff]  ;;  %v6615_v60 = vpop.permute.xlu1 %6614  ;;  %9530 = vmatprep.subr.bf16.mxu1 %v9529_v33 }
 0xb87   : > { %6896 = vst.msk [vmem:[#allocation5 + $0x60] sm:$0xff] %vm732_vm6, %v13159_v29  ;;  %v4206_v29 = vld [vmem:[%s14514_s9 + $0x38] sm:$0xff]  ;;  %6897 = vst.msk [vmem:[#allocation5 + $0x68] sm:$0xff] %vm732_vm6, %v13166_v44  ;;  %9269 = vmatprep.mubr.msk.f32.mxu1 %vm4886_vm9, %v13062_v25  ;;  %7475 = vrot.lane.b32.xlu0 %v13206_v36, %s9863_s28 }
 0xb88   : > { %v5892_v35 = vld [vmem:[#allocation5 + $0x50] sm:$0xff]  ;;  %v9533_v21 = vpack.c.bf16 %v4206_v29, %v4205_v22  ;;  %6700 = vst.msk [vmem:[#allocation5 + $0x40] sm:$0xff] %vm683_vm5, %v6613_v46  ;;  %6701 = vst.msk [vmem:[#allocation5 + $0x48] sm:$0xff] %vm683_vm5, %v6615_v60  ;;  %9532 = vmatpush3.bf16.msra.mxu1 %v9529_v33  ;;  %v7319_v30 = vld [vmem:[#allocation4 + $0x91] sm:$0xff] }
 0xb89   : > { %6317 = vst.msk [vmem:[#allocation5 + $0x50] sm:$0xff] %vm499_vm2, %v12100_v55  ;;  %9312 = vmatprep.mubr.msk.f32.mxu0 %vm4886_vm9, %v5892_v35  ;;  %5816 = vrot.lane.b32.xlu1 %v13406_v10, %s9865_s16  ;;  %v14696_v22 = vld [vmem:[#allocation60_spill] sm:$0xff]  ;;  %v14698_v33 = vld [vmem:[#allocation50_spill] sm:$0xff]  ;;  %v14702_v60 = vld [vmem:[#allocation53_spill] sm:$0xff] }
 0xb8a   : > { %6509 = vst.msk [vmem:[#allocation5 + $0x50] sm:$0xff] %vm634_vm4, %v6424_v63  ;;  %9534 = vmatprep.subr.bf16.mxu0 %v9533_v21  ;;  %v6805_v44 = vpop.permute.xlu0 %6804  ;;  %9270 = vmatmul.mubr.msk.f32.gmra.mrb[48].mxu1 %vm4886_vm9, %v13172_v14  ;;  %v14692_v14 = vld [vmem:[#allocation49_spill] sm:$0xff]  ;;  %v7646_v40 = vpop.permute.xlu1 %7645  ;;  %v14699_v29 = vld [vmem:[#allocation52_spill] sm:$0xff] }
 0xb8b   : > { %6702 = vst.msk [vmem:[#allocation5 + $0x50] sm:$0xff] %vm683_vm5, %v14689_v19  ;;  %v5893_v55 = vld [vmem:[#allocation5 + $0x58] sm:$0xff]  ;;  %9536 = vmatpush3.bf16.msra.mxu0 %v9533_v21  ;;  %v13415_v63 = vld [vmem:[#allocation4 + $0x180] sm:$0xff] }
 0xb8c   : > { %6894 = vst.msk [vmem:[#allocation5 + $0x50] sm:$0xff] %vm732_vm6, %v14690_v17  ;;  %9313 = vmatmul.mubr.msk.f32.gmra.mrb[50].mxu0 %vm4886_vm9, %v5893_v55  ;;  %6892 = vst.msk [vmem:[#allocation5 + $0x40] sm:$0xff] %vm732_vm6, %v6805_v44  ;;  %4588 = vrot.lane.b32.xlu0 %v13415_v63, %s9864_s26  ;;  %v14700_v21 = vld [vmem:[#allocation31_spill] sm:$0xff] }
 0xb8d   : > { %6318 = vst.msk [vmem:[#allocation5 + $0x58] sm:$0xff] %vm499_vm2, %v12104_v58  ;;  %9315 = vmatprep.mubr.msk.f32.mxu0 %vm4886_vm9, %v5894_v0  ;;  %v7321_v58 = vld [vmem:[#allocation4 + $0xa9] sm:$0xff]  ;;  %6652 = vrot.lane.b32.xlu1 %v13415_v63, %s9864_s26 }
 0xb8e   : > { %6510 = vst.msk [vmem:[#allocation5 + $0x58] sm:$0xff] %vm634_vm4, %v6426_v26  ;;  %v13394_v25 = vld [vmem:[#allocation5 + $0x60] sm:$0xff]  ;;  %v6807_v0 = vpop.permute.xlu0 %6806  ;;  %v13410_v36 = vld [vmem:[#allocation5 + $0x68] sm:$0xff]  ;;  %v7838_v4 = vpop.permute.xlu1 %7837 }
 0xb8f   : > { %6703 = vst.msk [vmem:[#allocation5 + $0x58] sm:$0xff] %vm683_vm5, %v14691_v8  ;;  %v14697_v26 = vld [vmem:[#allocation119_spill] sm:$0xff] }
 0xb90   : > { %7353 = vst.msk [vmem:[#allocation5 + $0x60] sm:$0xff] %vm499_vm2, %v7321_v58  ;;  %9316 = vmatmul.mubr.msk.f32.gmra.mrb[52].mxu0 %vm4886_vm9, %v5895_v28  ;;  %7354 = vst.msk [vmem:[#allocation5 + $0x68] sm:$0xff] %vm499_vm2, %v7322_v61  ;;  %v14701_v55 = vld [vmem:[#allocation51_spill] sm:$0xff] }
 0xb91   : > { %6895 = vst.msk [vmem:[#allocation5 + $0x58] sm:$0xff] %vm732_vm6, %v14692_v14  ;;  %6893 = vst.msk [vmem:[#allocation5 + $0x48] sm:$0xff] %vm732_vm6, %v6807_v0  ;;  %9318 = vmatprep.mubr.msk.f32.mxu0 %vm4886_vm9, %v13138_v41  ;;  %v14703_v58 = vld [vmem:[#allocation123_spill] sm:$0xff]  ;;  %v14706_v14 = vld [vmem:[#allocation120_spill] sm:$0xff] }
 0xb92   : > { %7545 = vst.msk [vmem:[#allocation5 + $0x60] sm:$0xff] %vm634_vm4, %v14693_v45  ;;  %v7648_v41 = vpop.permute.xlu0 %7647  ;;  %v13507_v8 = vld [vmem:[#allocation4 + $0x151] sm:$0xff] }
 0xb93   : > { %7737 = vst.msk [vmem:[#allocation5 + $0x60] sm:$0xff] %vm683_vm5, %v13230_v48  ;;  %v14694_v48 = vld [vmem:[#allocation55_spill] sm:$0xff]  ;;  %v13426_v28 = vld [vmem:[#allocation5 + $0x50] sm:$0xff] }
 0xb94   : > { %7929 = vst.msk [vmem:[#allocation5 + $0x60] sm:$0xff] %vm732_vm6, %v13245_v51  ;;  %v13430_v50 = vld [vmem:[#allocation5 + $0x40] sm:$0xff]  ;;  %9319 = vmatmul.mubr.msk.f32.gmra.mrb[54].mxu0 %vm4886_vm9, %v13232_v32  ;;  %v13441_v51 = vld [vmem:[#allocation4 + $0x181] sm:$0xff] }
 0xb95   : > { %7546 = vst.msk [vmem:[#allocation5 + $0x68] sm:$0xff] %vm634_vm4, %v14694_v48  ;;  %9321 = vmatprep.mubr.msk.f32.mxu0 %vm4886_vm9, %v13124_v52  ;;  %4780 = vrot.lane.b32.xlu0 %v13441_v51, %s9865_s16  ;;  %v5265_v45 = vld [vmem:[#allocation4 + $0x111] sm:$0xff]  ;;  %v13520_v48 = vld [vmem:[#allocation4 + $0x15a] sm:$0xff] }
 0xb96   : > { %7738 = vst.msk [vmem:[#allocation5 + $0x68] sm:$0xff] %vm683_vm5, %v13194_v34  ;;  %v14695_v34 = vld [vmem:[#allocation58_spill] sm:$0xff]  ;;  %v7840_v52 = vpop.permute.xlu0 %7839  ;;  %6844 = vrot.lane.b32.xlu1 %v13441_v51, %s9865_s16 }
 0xb97   : > { %7351 = vst.msk [vmem:[#allocation5 + $0x50] sm:$0xff] %vm499_vm2, %v7319_v30  ;;  %7349 = vst.msk [vmem:[#allocation5 + $0x40] sm:$0xff] %vm499_vm2, %v13298_v15  ;;  %v4387_v15 = vpop.permute.xlu1 %4386  ;;  %v14708_v30 = vld [vmem:[#allocation32_spill] sm:$0xff] }
 0xb98   : > { %7930 = vst.msk [vmem:[#allocation5 + $0x68] sm:$0xff] %vm732_vm6, %v13204_v62  ;;  %v13449_v32 = vld [vmem:[#allocation5 + $0x58] sm:$0xff]  ;;  %v7320_v62 = vld [vmem:[#allocation4 + $0x99] sm:$0xff]  ;;  %9322 = vmatmul.mubr.msk.f32.gmra.mrb[56].mxu0 %vm4886_vm9, %v13212_v38 }
 0xb99   : > { %7541 = vst.msk [vmem:[#allocation5 + $0x40] sm:$0xff] %vm634_vm4, %v14695_v34  ;;  %v13454_v57 = vld [vmem:[#allocation5 + $0x48] sm:$0xff]  ;;  %4457 = vst.msk [vmem:[#allocation5 + $0xc8] sm:$0xff] %vm634_vm4, %v4387_v15  ;;  %5622 = vrot.lane.b32.xlu0 %v13441_v51, %s9864_s26  ;;  %v6300_v15 = vld [vmem:[#allocation4 + $0x140] sm:$0xff] }
 0xb9a   : > { %7733 = vst.msk [vmem:[#allocation5 + $0x40] sm:$0xff] %vm683_vm5, %v7646_v40  ;;  %4649 = vst.msk [vmem:[#allocation5 + $0xc8] sm:$0xff] %vm683_vm5, %v12642_v49  ;;  %v7458_v49 = vpop.permute.xlu0 %7457 }
 0xb9b   : > { %7352 = vst.msk [vmem:[#allocation5 + $0x58] sm:$0xff] %vm499_vm2, %v7320_v62  ;;  %7350 = vst.msk [vmem:[#allocation5 + $0x48] sm:$0xff] %vm499_vm2, %v13314_v53  ;;  %v4575_v38 = vpop.permute.xlu1 %4574  ;;  %v13474_v53 = vld [vmem:[#allocation4 + $0x159] sm:$0xff] }
 0xb9c   : > { %7925 = vst.msk [vmem:[#allocation5 + $0x40] sm:$0xff] %vm732_vm6, %v7838_v4  ;;  %4841 = vst.msk [vmem:[#allocation5 + $0xc8] sm:$0xff] %vm732_vm6, %v14697_v26  ;;  %4394 = vrot.lane.b32.xlu1 %v13474_v53, %s9863_s28  ;;  %v14707_v4 = vld [vmem:[#allocation62_spill] sm:$0xff] }
 0xb9d   : > { %7542 = vst.msk [vmem:[#allocation5 + $0x48] sm:$0xff] %vm634_vm4, %v14696_v22  ;;  %7543 = vst.msk [vmem:[#allocation5 + $0x50] sm:$0xff] %vm634_vm4, %v7458_v49  ;;  %5814 = vrot.lane.b32.xlu0 %v13479_v16, %s9865_s16  ;;  %v14709_v49 = vld [vmem:[#allocation124_spill] sm:$0xff] }
 0xb9e   : > { %7734 = vst.msk [vmem:[#allocation5 + $0x48] sm:$0xff] %vm683_vm5, %v7648_v41  ;;  %4647 = vst.msk [vmem:[#allocation5 + $0xb8] sm:$0xff] %vm683_vm5, %v4575_v38  ;;  %v7460_v46 = vpop.permute.xlu0 %7459  ;;  %v13550_v38 = vld [vmem:[#allocation4 + $0x152] sm:$0xff] }
 0xb9f   : > { %7926 = vst.msk [vmem:[#allocation5 + $0x48] sm:$0xff] %vm732_vm6, %v7840_v52  ;;  %v4767_v35 = vpop.permute.xlu1 %4766 }
 0xba0   : > { %7735 = vst.msk [vmem:[#allocation5 + $0x50] sm:$0xff] %vm683_vm5, %v14698_v33  ;;  %4582 = vrot.lane.b32.xlu1 %v14700_v21, %s9864_s26  ;;  %v14710_v33 = vld [vmem:[#allocation126_spill] sm:$0xff] }
 0xba1   : > { %7927 = vst.msk [vmem:[#allocation5 + $0x50] sm:$0xff] %vm732_vm6, %v14699_v29  ;;  %4839 = vst.msk [vmem:[#allocation5 + $0xb8] sm:$0xff] %vm732_vm6, %v4767_v35  ;;  %6654 = vrot.lane.b32.xlu0 %v13331_v3, %s9864_s26  ;;  %v14704_v3 = vld [vmem:[#allocation125_spill] sm:$0xff] }
 0xba2   : > { %7544 = vst.msk [vmem:[#allocation5 + $0x58] sm:$0xff] %vm634_vm4, %v7460_v46  ;;  %v4385_v44 = vpop.permute.xlu0 %4384  ;;  %v5264_v46 = vld [vmem:[#allocation4 + $0x109] sm:$0xff] }
 0xba3   : > { %v13491_v19 = vld [vmem:[#allocation5 + $0xc8] sm:$0xff]  ;;  %7736 = vst.msk [vmem:[#allocation5 + $0x58] sm:$0xff] %vm683_vm5, %v14701_v55  ;;  %v5421_v17 = vpop.permute.xlu1 %5420 }
 0xba4   : > { %5299 = vst.msk [vmem:[#allocation5 + $0xc8] sm:$0xff] %vm499_vm2, %v12956_v5  ;;  %4774 = vrot.lane.b32.xlu1 %v13474_v53, %s9865_s16  ;;  %v14705_v5 = vld [vmem:[#allocation118_spill] sm:$0xff] }
 0xba5   : > { %7928 = vst.msk [vmem:[#allocation5 + $0x58] sm:$0xff] %vm732_vm6, %v14702_v60  ;;  %4392 = vrot.lane.b32.xlu0 %v13507_v8, %s9863_s28  ;;  %v14711_v60 = vld [vmem:[#allocation67_spill] sm:$0xff] }
 0xba6   : > { %5491 = vst.msk [vmem:[#allocation5 + $0xc8] sm:$0xff] %vm634_vm4, %v5421_v17  ;;  %4456 = vst.msk [vmem:[#allocation5 + $0xc0] sm:$0xff] %vm634_vm4, %v4385_v44  ;;  %v4573_v61 = vpop.permute.xlu0 %4572 }
 0xba7   : > { %5683 = vst.msk [vmem:[#allocation5 + $0xc8] sm:$0xff] %vm683_vm5, %v14703_v58  ;;  %4648 = vst.msk [vmem:[#allocation5 + $0xc0] sm:$0xff] %vm683_vm5, %v14705_v5  ;;  %v5609_v0 = vpop.permute.xlu1 %5608 }
 0xba8   : > { %5875 = vst.msk [vmem:[#allocation5 + $0xc8] sm:$0xff] %vm732_vm6, %v14704_v3  ;;  %4840 = vst.msk [vmem:[#allocation5 + $0xc0] sm:$0xff] %vm732_vm6, %v14706_v14  ;;  %v13517_v40 = vld [vmem:[#allocation5 + $0xb8] sm:$0xff]  ;;  %5428 = vrot.lane.b32.xlu1 %v13520_v48, %s9863_s28  ;;  %v6299_v3 = vld [vmem:[#allocation4 + $0x138] sm:$0xff] }
 0xba9   : > { %5297 = vst.msk [vmem:[#allocation5 + $0xb8] sm:$0xff] %vm499_vm2, %v5265_v45  ;;  %4580 = vrot.lane.b32.xlu0 %v14708_v30, %s9864_s26  ;;  %v7780_v45 = vld [vmem:[#allocation4 + $0x142] sm:$0xff] }
 0xbaa   : > { %5489 = vst.msk [vmem:[#allocation5 + $0xb8] sm:$0xff] %vm634_vm4, %v14707_v4  ;;  %v4765_v34 = vpop.permute.xlu0 %4764 }
 0xbab   : > { %4646 = vst.msk [vmem:[#allocation5 + $0xb0] sm:$0xff] %vm683_vm5, %v4573_v61  ;;  %5681 = vst.msk [vmem:[#allocation5 + $0xb8] sm:$0xff] %vm683_vm5, %v5609_v0  ;;  %v5801_v41 = vpop.permute.xlu1 %5800  ;;  %v13590_v0 = vld [vmem:[#allocation4 + $0x199] sm:$0xff] }
 0xbac   : > { %5873 = vst.msk [vmem:[#allocation5 + $0xb8] sm:$0xff] %vm732_vm6, %v5801_v41  ;;  %4838 = vst.msk [vmem:[#allocation5 + $0xb0] sm:$0xff] %vm732_vm6, %v4765_v34  ;;  %5616 = vrot.lane.b32.xlu1 %v13474_v53, %s9864_s26  ;;  %v14712_v34 = vld [vmem:[#allocation128_spill] sm:$0xff] }
 0xbad   : > { %4772 = vrot.lane.b32.xlu0 %v13507_v8, %s9865_s16 }
 0xbae   : > { %v5419_v26 = vpop.permute.xlu0 %5418 }
 0xbaf   : > { %v13534_v62 = vld [vmem:[#allocation5 + $0xc8] sm:$0xff]  ;;  %v13538_v52 = vld [vmem:[#allocation5 + $0xc0] sm:$0xff]  ;;  %v13541_v22 = vpop.permute.xlu1 %6636 }
 0xbb0   : > { %6332 = vst.msk [vmem:[#allocation5 + $0xc8] sm:$0xff] %vm499_vm2, %v6300_v15  ;;  %5298 = vst.msk [vmem:[#allocation5 + $0xc0] sm:$0xff] %vm499_vm2, %v13020_v59  ;;  %6846 = vrot.lane.b32.xlu1 %v13362_v23, %s9865_s16  ;;  %v13605_v15 = vld [vmem:[#allocation4 + $0x1a1] sm:$0xff] }
 0xbb1   : > { %6524 = vst.msk [vmem:[#allocation5 + $0xc8] sm:$0xff] %vm634_vm4, %v12694_v47  ;;  %5490 = vst.msk [vmem:[#allocation5 + $0xc0] sm:$0xff] %vm634_vm4, %v5419_v26  ;;  %5426 = vrot.lane.b32.xlu0 %v13550_v38, %s9863_s28  ;;  %v14713_v26 = vld [vmem:[#allocation127_spill] sm:$0xff] }
 0xbb2   : > { %5682 = vst.msk [vmem:[#allocation5 + $0xc0] sm:$0xff] %vm683_vm5, %v14709_v49  ;;  %v5607_v55 = vpop.permute.xlu0 %5606  ;;  %v14714_v49 = vld [vmem:[#allocation129_spill] sm:$0xff] }
 0xbb3   : > { %5874 = vst.msk [vmem:[#allocation5 + $0xc0] sm:$0xff] %vm732_vm6, %v14710_v33  ;;  %v13558_v29 = vpop.permute.xlu1 %6828  ;;  %v13560_v47 = vld [vmem:[#allocation5 + $0xb8] sm:$0xff]  ;;  %v13562_v35 = vld [vmem:[#allocation5 + $0xb0] sm:$0xff] }
 0xbb4   : > { %6330 = vst.msk [vmem:[#allocation5 + $0xb8] sm:$0xff] %vm499_vm2, %v12110_v13  ;;  %5296 = vst.msk [vmem:[#allocation5 + $0xb0] sm:$0xff] %vm499_vm2, %v5264_v46  ;;  %6463 = vrot.lane.b32.xlu1 %v13441_v51, %s9863_s28  ;;  %v6562_v13 = vld [vmem:[#allocation4 + $0x198] sm:$0xff] }
 0xbb5   : > { %5488 = vst.msk [vmem:[#allocation5 + $0xb0] sm:$0xff] %vm634_vm4, %v14711_v60  ;;  %5614 = vrot.lane.b32.xlu0 %v13507_v8, %s9864_s26  ;;  %v13623_v60 = vld [vmem:[#allocation4 + $0x171] sm:$0xff] }
 0xbb6   : > { %5680 = vst.msk [vmem:[#allocation5 + $0xb0] sm:$0xff] %vm683_vm5, %v5607_v55  ;;  %v5799_v44 = vpop.permute.xlu0 %5798 }
 0xbb7   : > { %v13574_v17 = vpop.permute.xlu1 %6830  ;;  %5872 = vst.msk [vmem:[#allocation5 + $0xb0] sm:$0xff] %vm732_vm6, %v5799_v44  ;;  %v14716_v44 = vld [vmem:[#allocation61_spill] sm:$0xff] }
 0xbb8   : > { %5808 = vrot.lane.b32.xlu1 %v13520_v48, %s9865_s16 }
 0xbb9   : > { %5806 = vrot.lane.b32.xlu0 %v13550_v38, %s9865_s16 }
 0xbba   : > { %v13581_v58 = vld [vmem:[#allocation5 + $0xc0] sm:$0xff]  ;;  %v13584_v14 = vpop.permute.xlu0 %6638 }
 0xbbb   : > { %v6448_v5 = vpop.permute.xlu1 %6447  ;;  %6331 = vst.msk [vmem:[#allocation5 + $0xc0] sm:$0xff] %vm499_vm2, %v6299_v3  ;;  %v7332_v3 = vld [vmem:[#allocation4 + $0x129] sm:$0xff] }
 0xbbc   : > { %6523 = vst.msk [vmem:[#allocation5 + $0xc0] sm:$0xff] %vm634_vm4, %v12707_v20  ;;  %6656 = vrot.lane.b32.xlu1 %v6562_v13, %s9864_s26  ;;  %v7397_v20 = vld [vmem:[#allocation4 + $0x13a] sm:$0xff] }
 0xbbd   : > { %7867 = vrot.lane.b32.xlu0 %v7780_v45, %s9865_s16 }
 0xbbe   : > { %v13594_v4 = vld [vmem:[#allocation5 + $0xb0] sm:$0xff]  ;;  %v6450_v41 = vpop.permute.xlu0 %6449 }
 0xbbf   : > { %v13592_v61 = vpop.permute.xlu1 %7669  ;;  %6329 = vst.msk [vmem:[#allocation5 + $0xb0] sm:$0xff] %vm499_vm2, %v12138_v18 }
 0xbc0   : > { %6522 = vst.msk [vmem:[#allocation5 + $0xb8] sm:$0xff] %vm634_vm4, %v6450_v41  ;;  %6848 = vrot.lane.b32.xlu1 %v13590_v0, %s9865_s16  ;;  %6521 = vst.msk [vmem:[#allocation5 + $0xb0] sm:$0xff] %vm634_vm4, %v6448_v5  ;;  %v6563_v41 = vld [vmem:[#allocation4 + $0x1a0] sm:$0xff] }
 0xbc1   : > { %6715 = vst.msk [vmem:[#allocation5 + $0xb8] sm:$0xff] %vm683_vm5, %v14712_v34  ;;  %7485 = vrot.lane.b32.xlu0 %v7397_v20, %s9863_s28  ;;  %6714 = vst.msk [vmem:[#allocation5 + $0xb0] sm:$0xff] %vm683_vm5, %v14713_v26  ;;  %v7784_v34 = vld [vmem:[#allocation4 + $0x172] sm:$0xff]  ;;  %v14717_v26 = vld [vmem:[#allocation131_spill] sm:$0xff] }
 0xbc2   : > { %6907 = vst.msk [vmem:[#allocation5 + $0xb8] sm:$0xff] %vm732_vm6, %v12699_v39  ;;  %6906 = vst.msk [vmem:[#allocation5 + $0xb0] sm:$0xff] %vm732_vm6, %v14714_v49  ;;  %v13615_v33 = vpop.permute.xlu0 %7671  ;;  %v14715_v39 = vld [vmem:[#allocation59_spill] sm:$0xff] }
 0xbc3   : > { %v13611_v18 = vpop.permute.xlu1 %7861 }
 0xbc4   : > { %6850 = vrot.lane.b32.xlu1 %v13605_v15, %s9865_s16 }
 0xbc5   : > { %7487 = vrot.lane.b32.xlu0 %v7780_v45, %s9863_s28 }
 0xbc6   : > { %v13621_v55 = vpop.permute.xlu0 %7863 }
 0xbc7   : > { %v4379_v46 = vpop.permute.xlu1 %4378 }
 0xbc8   : > { %4453 = vst.msk [vmem:[#allocation5 + $0xa8] sm:$0xff] %vm634_vm4, %v4379_v46  ;;  %7683 = vrot.lane.b32.xlu1 %v13623_v60, %s9864_s26 }
 0xbc9   : > { %4645 = vst.msk [vmem:[#allocation5 + $0xa8] sm:$0xff] %vm683_vm5, %v14715_v39  ;;  %6465 = vrot.lane.b32.xlu0 %v13362_v23, %s9863_s28  ;;  %v13633_v13 = vld [vmem:[#allocation5 + $0xb8] sm:$0xff]  ;;  %v13635_v45 = vld [vmem:[#allocation5 + $0xb0] sm:$0xff] }
 0xbca   : > { %4837 = vst.msk [vmem:[#allocation5 + $0xa8] sm:$0xff] %vm732_vm6, %v14716_v44  ;;  %v7482_v20 = vpop.permute.xlu0 %7481  ;;  %v14718_v44 = vld [vmem:[#allocation130_spill] sm:$0xff] }
 0xbcb   : > { %v4567_v5 = vpop.permute.xlu1 %4566  ;;  %7364 = vst.msk [vmem:[#allocation5 + $0xb8] sm:$0xff] %vm499_vm2, %v7332_v3  ;;  %7363 = vst.msk [vmem:[#allocation5 + $0xb0] sm:$0xff] %vm499_vm2, %v13020_v59  ;;  %v13651_v59 = vld [vmem:[#allocation4 + $0x169] sm:$0xff] }
 0xbcc   : > { %4643 = vst.msk [vmem:[#allocation5 + $0x98] sm:$0xff] %vm683_vm5, %v4567_v5  ;;  %7875 = vrot.lane.b32.xlu1 %v7784_v34, %s9865_s16  ;;  %v14719_v5 = vld [vmem:[#allocation64_spill] sm:$0xff] }
 0xbcd   : > { %7555 = vst.msk [vmem:[#allocation5 + $0xb0] sm:$0xff] %vm634_vm4, %v7482_v20  ;;  %6658 = vrot.lane.b32.xlu0 %v6563_v41, %s9864_s26  ;;  %v7783_v41 = vld [vmem:[#allocation4 + $0x16a] sm:$0xff]  ;;  %v14720_v20 = vld [vmem:[#allocation66_spill] sm:$0xff] }
 0xbce   : > { %7747 = vst.msk [vmem:[#allocation5 + $0xb0] sm:$0xff] %vm683_vm5, %v14717_v26  ;;  %v7484_v46 = vpop.permute.xlu0 %7483 }
 0xbcf   : > { %7939 = vst.msk [vmem:[#allocation5 + $0xb0] sm:$0xff] %vm732_vm6, %v12727_v11  ;;  %v4759_v49 = vpop.permute.xlu1 %4758 }
 0xbd0   : > { %4835 = vst.msk [vmem:[#allocation5 + $0x98] sm:$0xff] %vm732_vm6, %v4759_v49  ;;  %7495 = vrot.lane.b32.xlu1 %v7784_v34, %s9863_s28  ;;  %v14721_v34 = vld [vmem:[#allocation63_spill] sm:$0xff]  ;;  %v13674_v49 = vld [vmem:[#allocation4 + $0xe1] sm:$0xff] }
 0xbd1   : > { %7556 = vst.msk [vmem:[#allocation5 + $0xb8] sm:$0xff] %vm634_vm4, %v7484_v46  ;;  %v13653_v39 = vld [vmem:[#allocation5 + $0xa8] sm:$0xff]  ;;  %7681 = vrot.lane.b32.xlu0 %v13651_v59, %s9864_s26 }
 0xbd2   : > { %7748 = vst.msk [vmem:[#allocation5 + $0xb8] sm:$0xff] %vm683_vm5, %v14718_v44  ;;  %v4377_v3 = vpop.permute.xlu0 %4376  ;;  %v14723_v44 = vld [vmem:[#allocation84_spill] sm:$0xff] }
 0xbd3   : > { %5295 = vst.msk [vmem:[#allocation5 + $0xa8] sm:$0xff] %vm499_vm2, %v13168_v12  ;;  %v5413_v11 = vpop.permute.xlu1 %5412  ;;  %v14722_v12 = vld [vmem:[#allocation65_spill] sm:$0xff] }
 0xbd4   : > { %5487 = vst.msk [vmem:[#allocation5 + $0xa8] sm:$0xff] %vm634_vm4, %v5413_v11  ;;  %4452 = vst.msk [vmem:[#allocation5 + $0xa0] sm:$0xff] %vm634_vm4, %v4377_v3  ;;  %7687 = vrot.lane.b32.xlu1 %v13362_v23, %s9864_s26 }
 0xbd5   : > { %5679 = vst.msk [vmem:[#allocation5 + $0xa8] sm:$0xff] %vm683_vm5, %v14719_v5  ;;  %4644 = vst.msk [vmem:[#allocation5 + $0xa0] sm:$0xff] %vm683_vm5, %v14721_v34  ;;  %7873 = vrot.lane.b32.xlu0 %v7783_v41, %s9865_s16 }
 0xbd6   : > { %5871 = vst.msk [vmem:[#allocation5 + $0xa8] sm:$0xff] %vm732_vm6, %v14720_v20  ;;  %4836 = vst.msk [vmem:[#allocation5 + $0xa0] sm:$0xff] %vm732_vm6, %v14722_v12  ;;  %v4565_v23 = vpop.permute.xlu0 %4564  ;;  %v6296_v20 = vld [vmem:[#allocation4 + $0x110] sm:$0xff] }
 0xbd7   : > { %v4867_v26 = vld [vmem:[#allocation5 + $0x98] sm:$0xff]  ;;  %v5601_v46 = vpop.permute.xlu1 %5600  ;;  %4642 = vst.msk [vmem:[#allocation5 + $0x90] sm:$0xff] %vm683_vm5, %v4565_v23 }
 0xbd8   : > { %5293 = vst.msk [vmem:[#allocation5 + $0x98] sm:$0xff] %vm499_vm2, %v13674_v49  ;;  %7879 = vrot.lane.b32.xlu1 %v13406_v10, %s9865_s16 }
 0xbd9   : > { %5485 = vst.msk [vmem:[#allocation5 + $0x98] sm:$0xff] %vm634_vm4, %v14723_v44  ;;  %7493 = vrot.lane.b32.xlu0 %v7783_v41, %s9863_s28  ;;  %v14724_v41 = vld [vmem:[#allocation75_spill] sm:$0xff]  ;;  %v5260_v44 = vld [vmem:[#allocation4 + $0xd9] sm:$0xff] }
 0xbda   : > { %5677 = vst.msk [vmem:[#allocation5 + $0x98] sm:$0xff] %vm683_vm5, %v5601_v46  ;;  %v4757_v3 = vpop.permute.xlu0 %4756 }
 0xbdb   : > { %v5793_v11 = vpop.permute.xlu1 %5792  ;;  %4834 = vst.msk [vmem:[#allocation5 + $0x90] sm:$0xff] %vm732_vm6, %v4757_v3 }
 0xbdc   : > { %5869 = vst.msk [vmem:[#allocation5 + $0x98] sm:$0xff] %vm732_vm6, %v5793_v11  ;;  %6644 = vrot.lane.b32.xlu1 %v14708_v30, %s9864_s26 }
 0xbdd   : > { %v13689_v5 = vld [vmem:[#allocation5 + $0xa8] sm:$0xff]  ;;  %7685 = vrot.lane.b32.xlu0 %v13441_v51, %s9864_s26  ;;  %v4868_v34 = vld [vmem:[#allocation5 + $0xa0] sm:$0xff] }
 0xbde   : > { %6328 = vst.msk [vmem:[#allocation5 + $0xa8] sm:$0xff] %vm499_vm2, %v6296_v20  ;;  %5294 = vst.msk [vmem:[#allocation5 + $0xa0] sm:$0xff] %vm499_vm2, %v13210_v1  ;;  %v5411_v46 = vpop.permute.xlu0 %5410  ;;  %v14725_v51 = vld [vmem:[#allocation69_spill] sm:$0xff]  ;;  %v14726_v1 = vld [vmem:[#allocation71_spill] sm:$0xff] }
 0xbdf   : > { %v6629_v12 = vpop.permute.xlu1 %6628  ;;  %6520 = vst.msk [vmem:[#allocation5 + $0xa8] sm:$0xff] %vm634_vm4, %v14724_v41  ;;  %5486 = vst.msk [vmem:[#allocation5 + $0xa0] sm:$0xff] %vm634_vm4, %v5411_v46 }
 0xbe0   : > { %6708 = vst.msk [vmem:[#allocation5 + $0x80] sm:$0xff] %vm683_vm5, %v6629_v12  ;;  %6713 = vst.msk [vmem:[#allocation5 + $0xa8] sm:$0xff] %vm683_vm5, %v13584_v14  ;;  %6836 = vrot.lane.b32.xlu1 %v13507_v8, %s9865_s16  ;;  %v7330_v12 = vld [vmem:[#allocation4 + $0x111] sm:$0xff] }
 0xbe1   : > { %6905 = vst.msk [vmem:[#allocation5 + $0xa8] sm:$0xff] %vm732_vm6, %v13574_v17  ;;  %7877 = vrot.lane.b32.xlu0 %v13479_v16, %s9865_s16  ;;  %v14727_v17 = vld [vmem:[#allocation87_spill] sm:$0xff] }
 0xbe2   : > { %5678 = vst.msk [vmem:[#allocation5 + $0xa0] sm:$0xff] %vm683_vm5, %v14725_v51  ;;  %v4866_v14 = vld [vmem:[#allocation5 + $0x90] sm:$0xff]  ;;  %v5599_v11 = vpop.permute.xlu0 %5598 }
 0xbe3   : > { %5870 = vst.msk [vmem:[#allocation5 + $0xa0] sm:$0xff] %vm732_vm6, %v14726_v1  ;;  %v6821_v30 = vpop.permute.xlu1 %6820  ;;  %v5901_v23 = vld [vmem:[#allocation5 + $0x98] sm:$0xff]  ;;  %9272 = vmatprep.mubr.msk.f32.mxu1 %vm4886_vm9, %v4866_v14 }
 0xbe4   : > { %6900 = vst.msk [vmem:[#allocation5 + $0x80] sm:$0xff] %vm732_vm6, %v6821_v30  ;;  %6838 = vrot.lane.b32.xlu1 %v13474_v53, %s9865_s16  ;;  %9273 = vmatmul.mubr.msk.f32.gmra.mrb[50].mxu1 %vm4886_vm9, %v4867_v26  ;;  %v6295_v26 = vld [vmem:[#allocation4 + $0x108] sm:$0xff] }
 0xbe5   : > { %6326 = vst.msk [vmem:[#allocation5 + $0x98] sm:$0xff] %vm499_vm2, %v14666_v31  ;;  %5292 = vst.msk [vmem:[#allocation5 + $0x90] sm:$0xff] %vm499_vm2, %v5260_v44  ;;  %6646 = vrot.lane.b32.xlu0 %v14700_v21, %s9864_s26  ;;  %9275 = vmatprep.mubr.msk.f32.mxu1 %vm4886_vm9, %v4868_v34  ;;  %v14728_v34 = vld [vmem:[#allocation82_spill] sm:$0xff] }
 0xbe6   : > { %5484 = vst.msk [vmem:[#allocation5 + $0x90] sm:$0xff] %vm634_vm4, %v14727_v17  ;;  %v5791_v3 = vpop.permute.xlu0 %5790  ;;  %v14736_v17 = vld [vmem:[#allocation80_spill] sm:$0xff] }
 0xbe7   : > { %5676 = vst.msk [vmem:[#allocation5 + $0x90] sm:$0xff] %vm683_vm5, %v5599_v11  ;;  %v6823_v31 = vpop.permute.xlu1 %6822 }
 0xbe8   : > { %v13726_v20 = vld [vmem:[#allocation5 + $0xa8] sm:$0xff]  ;;  %5868 = vst.msk [vmem:[#allocation5 + $0x90] sm:$0xff] %vm732_vm6, %v5791_v3  ;;  %6455 = vrot.lane.b32.xlu1 %v13507_v8, %s9863_s28  ;;  %9276 = vmatmul.mubr.msk.f32.gmra.mrb[52].mxu1 %vm4886_vm9, %v13653_v39  ;;  %v14729_v39 = vld [vmem:[#allocation74_spill] sm:$0xff] }
 0xbe9   : > { %7362 = vst.msk [vmem:[#allocation5 + $0xa8] sm:$0xff] %vm499_vm2, %v7330_v12  ;;  %6457 = vrot.lane.b32.xlu0 %v13474_v53, %s9863_s28  ;;  %9278 = vmatprep.mubr.msk.f32.mxu1 %vm4886_vm9, %v13562_v35  ;;  %v14730_v35 = vld [vmem:[#allocation100_spill] sm:$0xff] }
 0xbea   : > { %v5902_v21 = vld [vmem:[#allocation5 + $0xa0] sm:$0xff]  ;;  %7554 = vst.msk [vmem:[#allocation5 + $0xa8] sm:$0xff] %vm634_vm4, %v14728_v34  ;;  %v6631_v51 = vpop.permute.xlu0 %6630  ;;  %v7787_v34 = vld [vmem:[#allocation4 + $0x19a] sm:$0xff] }
 0xbeb   : > { %v6440_v41 = vpop.permute.xlu1 %6439  ;;  %v13740_v46 = vld [vmem:[#allocation5 + $0x80] sm:$0xff]  ;;  %6327 = vst.msk [vmem:[#allocation5 + $0xa0] sm:$0xff] %vm499_vm2, %v6295_v26 }
 0xbec   : > { %7746 = vst.msk [vmem:[#allocation5 + $0xa8] sm:$0xff] %vm683_vm5, %v13615_v33  ;;  %6709 = vst.msk [vmem:[#allocation5 + $0x88] sm:$0xff] %vm683_vm5, %v6631_v51  ;;  %7677 = vrot.lane.b32.xlu1 %v13507_v8, %s9864_s26  ;;  %9279 = vmatmul.mubr.msk.f32.gmra.mrb[54].mxu1 %vm4886_vm9, %v13517_v40  ;;  %v14731_v40 = vld [vmem:[#allocation73_spill] sm:$0xff]  ;;  %v14737_v12 = vld [vmem:[#allocation76_spill] sm:$0xff] }
 0xbed   : > { %7357 = vst.msk [vmem:[#allocation5 + $0x80] sm:$0xff] %vm499_vm2, %v5260_v44  ;;  %7679 = vrot.lane.b32.xlu0 %v13474_v53, %s9864_s26  ;;  %9281 = vmatprep.mubr.msk.f32.mxu1 %vm4886_vm9, %v13538_v52  ;;  %v14732_v52 = vld [vmem:[#allocation68_spill] sm:$0xff]  ;;  %v7329_v44 = vld [vmem:[#allocation4 + $0x109] sm:$0xff] }
 0xbee   : > { %6519 = vst.msk [vmem:[#allocation5 + $0xa0] sm:$0xff] %vm634_vm4, %v14729_v39  ;;  %7549 = vst.msk [vmem:[#allocation5 + $0x80] sm:$0xff] %vm634_vm4, %v14730_v35  ;;  %v6442_v1 = vpop.permute.xlu0 %6441  ;;  %v14739_v35 = vld [vmem:[#allocation77_spill] sm:$0xff] }
 0xbef   : > { %7938 = vst.msk [vmem:[#allocation5 + $0xa8] sm:$0xff] %vm732_vm6, %v13621_v55  ;;  %6901 = vst.msk [vmem:[#allocation5 + $0x88] sm:$0xff] %vm732_vm6, %v6823_v31  ;;  %v7662_v33 = vpop.permute.xlu1 %7661  ;;  %v5900_v55 = vld [vmem:[#allocation5 + $0x90] sm:$0xff] }
 0xbf0   : > { %6712 = vst.msk [vmem:[#allocation5 + $0xa0] sm:$0xff] %vm683_vm5, %v13541_v22  ;;  %7741 = vst.msk [vmem:[#allocation5 + $0x80] sm:$0xff] %vm683_vm5, %v7662_v33  ;;  %9324 = vmatprep.mubr.msk.f32.mxu0 %vm4886_vm9, %v5900_v55  ;;  %7869 = vrot.lane.b32.xlu1 %v13550_v38, %s9865_s16  ;;  %v14740_v33 = vld [vmem:[#allocation79_spill] sm:$0xff] }
 0xbf1   : > { %6904 = vst.msk [vmem:[#allocation5 + $0xa0] sm:$0xff] %vm732_vm6, %v13558_v29  ;;  %7871 = vrot.lane.b32.xlu0 %v13520_v48, %s9865_s16  ;;  %9282 = vmatmul.mubr.msk.f32.gmra.mrb[56].mxu1 %vm4886_vm9, %v13491_v19  ;;  %v14734_v29 = vld [vmem:[#allocation70_spill] sm:$0xff] }
 0xbf2   : > { %6325 = vst.msk [vmem:[#allocation5 + $0x90] sm:$0xff] %vm499_vm2, %v14671_v7  ;;  %v14733_v7 = vld [vmem:[#allocation72_spill] sm:$0xff]  ;;  %9325 = vmatmul.mubr.msk.f32.gmra.mrb[58].mxu0 %vm4886_vm9, %v5901_v23  ;;  %v7664_v30 = vpop.permute.xlu0 %7663  ;;  %v14735_v23 = vld [vmem:[#allocation102_spill] sm:$0xff] }
 0xbf3   : > { %6518 = vst.msk [vmem:[#allocation5 + $0x98] sm:$0xff] %vm634_vm4, %v6442_v1  ;;  %6517 = vst.msk [vmem:[#allocation5 + $0x90] sm:$0xff] %vm634_vm4, %v6440_v41  ;;  %v7854_v22 = vpop.permute.xlu1 %7853  ;;  %9327 = vmatprep.mubr.msk.f32.mxu0 %vm4886_vm9, %v5902_v21  ;;  %v14738_v21 = vld [vmem:[#allocation78_spill] sm:$0xff] }
 0xbf4   : > { %6711 = vst.msk [vmem:[#allocation5 + $0x98] sm:$0xff] %vm683_vm5, %v14731_v40  ;;  %6710 = vst.msk [vmem:[#allocation5 + $0x90] sm:$0xff] %vm683_vm5, %v14732_v52  ;;  %7491 = vrot.lane.b32.xlu1 %v13520_v48, %s9863_s28 }
 0xbf5   : > { %6903 = vst.msk [vmem:[#allocation5 + $0x98] sm:$0xff] %vm732_vm6, %v14733_v7  ;;  %6902 = vst.msk [vmem:[#allocation5 + $0x90] sm:$0xff] %vm732_vm6, %v14734_v29  ;;  %7489 = vrot.lane.b32.xlu0 %v13550_v38, %s9863_s28 }
 0xbf6   : > { %7933 = vst.msk [vmem:[#allocation5 + $0x80] sm:$0xff] %vm732_vm6, %v7854_v22  ;;  %v13789_v14 = vld [vmem:[#allocation5 + $0x88] sm:$0xff]  ;;  %9328 = vmatmul.mubr.msk.f32.gmra.mrb[60].mxu0 %vm4886_vm9, %v13689_v5  ;;  %v7856_v48 = vpop.permute.xlu0 %7855  ;;  %v9250_v31 = vpop.f32.mrb[34].mxu1 }
 0xbf7   : > { %7358 = vst.msk [vmem:[#allocation5 + $0x88] sm:$0xff] %vm499_vm2, %v13674_v49  ;;  %v4591_v11 = vpop.permute.xlu1 %4590  ;;  %9330 = vmatprep.mubr.msk.f32.mxu0 %vm4886_vm9, %v13594_v4  ;;  %v7328_v4 = vld [vmem:[#allocation4 + $0xf9] sm:$0xff]  ;;  %v7327_v5 = vld [vmem:[#allocation4 + $0xf1] sm:$0xff] }
 0xbf8   : > { %v13793_v19 = vld [vmem:[#allocation5 + $0xa0] sm:$0xff]  ;;  %7550 = vst.msk [vmem:[#allocation5 + $0x88] sm:$0xff] %vm634_vm4, %v14735_v23  ;;  %7499 = vrot.lane.b32.xlu1 %v13406_v10, %s9863_s28 }
 0xbf9   : > { %7361 = vst.msk [vmem:[#allocation5 + $0xa0] sm:$0xff] %vm499_vm2, %v7329_v44  ;;  %7497 = vrot.lane.b32.xlu0 %v13479_v16, %s9863_s28  ;;  %v13830_v16 = vld [vmem:[#allocation17] ss:$0 sm:$0xff]  ;;  %v14741_v22 = vld [vmem:[#allocation104_spill] sm:$0xff] }
 0xbfa   : > { %7553 = vst.msk [vmem:[#allocation5 + $0xa0] sm:$0xff] %vm634_vm4, %v14736_v17  ;;  %9331 = vmatmul.mubr.msk.f32.gmra.mrb[62].mxu0 %vm4886_vm9, %v13560_v47  ;;  %v7474_v10 = vpop.permute.xlu0 %7473  ;;  %v5065_v47 = vadd.f32 %v13830_v16, %v9250_v31 }
 0xbfb   : > { %7742 = vst.msk [vmem:[#allocation5 + $0x88] sm:$0xff] %vm683_vm5, %v7664_v30  ;;  %4655 = vst.msk [vmem:[#allocation5 + $0xf8] sm:$0xff] %vm683_vm5, %v4591_v11  ;;  %v4783_v49 = vpop.permute.xlu1 %4782  ;;  %9333 = vmatprep.mubr.msk.f32.mxu0 %vm4886_vm9, %v13581_v58  ;;  %v7788_v58 = vld [vmem:[#allocation4 + $0x1a2] sm:$0xff] }
 0xbfc   : > { %7745 = vst.msk [vmem:[#allocation5 + $0xa0] sm:$0xff] %vm683_vm5, %v13592_v61  ;;  %v13819_v38 = vld [vmem:[#allocation5 + $0x98] sm:$0xff]  ;;  %v13823_v61 = vld [vmem:[#allocation5 + $0x90] sm:$0xff]  ;;  %7691 = vrot.lane.b32.xlu1 %v13605_v15, %s9864_s26 }
 0xbfd   : > { %7934 = vst.msk [vmem:[#allocation5 + $0x88] sm:$0xff] %vm732_vm6, %v7856_v48  ;;  %7937 = vst.msk [vmem:[#allocation5 + $0xa0] sm:$0xff] %vm732_vm6, %v13611_v18  ;;  %v5059_v18 = vpop.f32.mrb[35].mxu1  ;;  %7689 = vrot.lane.b32.xlu0 %v13590_v0, %s9864_s26 }
 0xbfe   : > { %7360 = vst.msk [vmem:[#allocation5 + $0x98] sm:$0xff] %vm499_vm2, %v7328_v4  ;;  %7359 = vst.msk [vmem:[#allocation5 + $0x90] sm:$0xff] %vm499_vm2, %v7327_v5  ;;  %v5060_v3 = vadd.f32 %v13830_v16, %v5059_v18  ;;  %9334 = vmatmul.mubr.msk.f32.gmra.mrb[64].mxu0 %vm4886_vm9, %v13534_v62  ;;  %v9253_v26 = vpop.f32.mrb[36].mxu1  ;;  %v7476_v41 = vpop.permute.xlu0 %7475 }
 0xbff   : > { %4847 = vst.msk [vmem:[#allocation5 + $0xf8] sm:$0xff] %vm732_vm6, %v4783_v49  ;;  %v5625_v15 = vpop.permute.xlu1 %5624  ;;  %v5075_v51 = vadd.f32 %v13830_v16, %v9253_v26  ;;  %v5069_v39 = vpop.f32.mrb[37].mxu1 }
 0xc00   : > { %7551 = vst.msk [vmem:[#allocation5 + $0x90] sm:$0xff] %vm634_vm4, %v7474_v10  ;;  %7552 = vst.msk [vmem:[#allocation5 + $0x98] sm:$0xff] %vm634_vm4, %v7476_v41  ;;  %v5070_v0 = vadd.f32 %v13830_v16, %v5069_v39  ;;  %7883 = vrot.lane.b32.xlu1 %v7788_v58, %s9865_s16  ;;  %v9256_v1 = vpop.f32.mrb[38].mxu1 }
 0xc01   : > { %7743 = vst.msk [vmem:[#allocation5 + $0x90] sm:$0xff] %vm683_vm5, %v14737_v12  ;;  %7744 = vst.msk [vmem:[#allocation5 + $0x98] sm:$0xff] %vm683_vm5, %v14739_v35  ;;  %7881 = vrot.lane.b32.xlu0 %v7787_v34, %s9865_s16  ;;  %v5085_v52 = vadd.f32 %v13830_v16, %v9256_v1  ;;  %v5079_v7 = vpop.f32.mrb[39].mxu1  ;;  %v14742_v35 = vld [vmem:[#allocation101_spill] sm:$0xff]  ;;  %v14744_v1 = vld [vmem:[#allocation103_spill] sm:$0xff] }
 0xc02   : > { %5212 = vst.msk [vmem:[%s12569_s12 + $0x18] sm:$0xff] %vm5208_vm10, %v5065_v47  ;;  %5211 = vst.msk [vmem:[%s12569_s12 + $0x10] sm:$0xff] %vm5208_vm10, %v5060_v3  ;;  %v4589_v40 = vpop.permute.xlu0 %4588  ;;  %v5080_v29 = vadd.f32 %v13830_v16, %v5079_v7  ;;  %v9259_v44 = vpop.f32.mrb[40].mxu1 }
 0xc03   : > { %7935 = vst.msk [vmem:[#allocation5 + $0x90] sm:$0xff] %vm732_vm6, %v14738_v21  ;;  %7936 = vst.msk [vmem:[#allocation5 + $0x98] sm:$0xff] %vm732_vm6, %v14740_v33  ;;  %v5817_v55 = vpop.permute.xlu1 %5816  ;;  %v5095_v11 = vadd.f32 %v13830_v16, %v9259_v44  ;;  %v9302_v17 = vpop.f32.mrb[42].mxu0 }
 0xc04   : > { %5214 = vst.msk [vmem:[%s12569_s12 + $0x28] sm:$0xff] %vm5208_vm10, %v5075_v51  ;;  %5213 = vst.msk [vmem:[%s12569_s12 + $0x20] sm:$0xff] %vm5208_vm10, %v5070_v0  ;;  %v6098_v48 = vadd.f32 %v13830_v16, %v9302_v17  ;;  %v5089_v4 = vpop.f32.mrb[41].mxu1  ;;  %v6092_v49 = vpop.f32.mrb[43].mxu0 }
 0xc05   : > { %4654 = vst.msk [vmem:[#allocation5 + $0xf0] sm:$0xff] %vm683_vm5, %v4589_v40  ;;  %v5090_v5 = vadd.f32 %v13830_v16, %v5089_v4  ;;  %v6093_v31 = vadd.f32 %v13830_v16, %v6092_v49  ;;  %v14746_v4 = vld [vmem:[#allocation107_spill] sm:$0xff] }
 0xc06   : > { %v13858_v62 = vld [vmem:[#allocation5 + $0xf8] sm:$0xff]  ;;  %5216 = vst.msk [vmem:[%s12569_s12 + $0x38] sm:$0xff] %vm5208_vm10, %v5085_v52  ;;  %5215 = vst.msk [vmem:[%s12569_s12 + $0x30] sm:$0xff] %vm5208_vm10, %v5080_v29  ;;  %v9305_v47 = vpop.f32.mrb[44].mxu0 }
 0xc07   : > { %5305 = vst.msk [vmem:[#allocation5 + $0xf8] sm:$0xff] %vm499_vm2, %v13623_v60  ;;  %v13877_v30 = vpop.permute.xlu1 %6652  ;;  %v4781_v23 = vpop.permute.xlu0 %4780  ;;  %v6108_v3 = vadd.f32 %v13830_v16, %v9305_v47  ;;  %v14747_v47 = vld [vmem:[#allocation106_spill] sm:$0xff] }
 0xc08   : > { %5497 = vst.msk [vmem:[#allocation5 + $0xf8] sm:$0xff] %vm634_vm4, %v14741_v22  ;;  %v6102_v12 = vpop.f32.mrb[45].mxu0 }
 0xc09   : > { %5689 = vst.msk [vmem:[#allocation5 + $0xf8] sm:$0xff] %vm683_vm5, %v5625_v15  ;;  %v6103_v58 = vadd.f32 %v13830_v16, %v6102_v12  ;;  %v6306_v15 = vld [vmem:[#allocation4 + $0x188] sm:$0xff] }
 0xc0a   : > { %5881 = vst.msk [vmem:[#allocation5 + $0xf8] sm:$0xff] %vm732_vm6, %v5817_v55  ;;  %4846 = vst.msk [vmem:[#allocation5 + $0xf0] sm:$0xff] %vm732_vm6, %v4781_v23  ;;  %v9308_v34 = vpop.f32.mrb[46].mxu0  ;;  %v14743_v55 = vld [vmem:[#allocation109_spill] sm:$0xff] }
 0xc0b   : > { %5218 = vst.msk [vmem:[%s12569_s12 + $0x48] sm:$0xff] %vm5208_vm10, %v5095_v11  ;;  %8639 = vst.msk [vmem:[%s12569_s12 + $0x118] sm:$0xff] %vm5208_vm10, %v6098_v48  ;;  %v13888_v10 = vpop.permute.xlu1 %6844  ;;  %v5623_v18 = vpop.permute.xlu0 %5622  ;;  %v6118_v39 = vadd.f32 %v13830_v16, %v9308_v34  ;;  %v14745_v48 = vld [vmem:[#allocation105_spill] sm:$0xff] }
 0xc0c   : > { %5217 = vst.msk [vmem:[%s12569_s12 + $0x40] sm:$0xff] %vm5208_vm10, %v5090_v5  ;;  %8638 = vst.msk [vmem:[%s12569_s12 + $0x110] sm:$0xff] %vm5208_vm10, %v6093_v31  ;;  %v6112_v0 = vpop.f32.mrb[47].mxu0 }
 0xc0d   : > { %8641 = vst.msk [vmem:[%s12569_s12 + $0x128] sm:$0xff] %vm5208_vm10, %v6108_v3  ;;  %8640 = vst.msk [vmem:[%s12569_s12 + $0x120] sm:$0xff] %vm5208_vm10, %v6103_v58  ;;  %v6113_v33 = vadd.f32 %v13830_v16, %v6112_v0  ;;  %v13947_v3 = vld [vmem:[#allocation4 + $0x141] sm:$0xff]  ;;  %v14750_v0 = vld [vmem:[#allocation111_spill] sm:$0xff] }
 0xc0e   : > { %8643 = vst.msk [vmem:[%s12569_s12 + $0x138] sm:$0xff] %vm5208_vm10, %v6118_v39  ;;  %v9311_v52 = vpop.f32.mrb[48].mxu0  ;;  %v6304_v39 = vld [vmem:[#allocation4 + $0x170] sm:$0xff] }
 0xc0f   : > { %v4395_v26 = vpop.permute.xlu1 %4394  ;;  %v5815_v51 = vpop.permute.xlu0 %5814  ;;  %8642 = vst.msk [vmem:[%s12569_s12 + $0x130] sm:$0xff] %vm5208_vm10, %v6113_v33  ;;  %v6128_v22 = vadd.f32 %v13830_v16, %v9311_v52  ;;  %v14752_v33 = vld [vmem:[#allocation113_spill] sm:$0xff]  ;;  %v14753_v52 = vld [vmem:[#allocation122_spill] sm:$0xff] }
 0xc10   : > { %4461 = vst.msk [vmem:[#allocation5 + $0xe8] sm:$0xff] %vm634_vm4, %v4395_v26  ;;  %v6122_v29 = vpop.f32.mrb[49].mxu0 }
 0xc11   : > { %v13898_v21 = vld [vmem:[#allocation5 + $0xf8] sm:$0xff]  ;;  %v13903_v41 = vld [vmem:[#allocation5 + $0xf0] sm:$0xff]  ;;  %4653 = vst.msk [vmem:[#allocation5 + $0xe8] sm:$0xff] %vm683_vm5, %v14742_v35  ;;  %v6123_v44 = vadd.f32 %v13830_v16, %v6122_v29 }
 0xc12   : > { %6338 = vst.msk [vmem:[#allocation5 + $0xf8] sm:$0xff] %vm499_vm2, %v6306_v15  ;;  %5304 = vst.msk [vmem:[#allocation5 + $0xf0] sm:$0xff] %vm499_vm2, %v13651_v59  ;;  %v14749_v15 = vld [vmem:[#allocation121_spill] sm:$0xff] }
 0xc13   : > { %5496 = vst.msk [vmem:[#allocation5 + $0xf0] sm:$0xff] %vm634_vm4, %v14743_v55  ;;  %v4583_v40 = vpop.permute.xlu1 %4582  ;;  %v6655_v7 = vpop.permute.xlu0 %6654  ;;  %v14751_v35 = vld [vmem:[#allocation117_spill] sm:$0xff] }
 0xc14   : > { %4845 = vst.msk [vmem:[#allocation5 + $0xe8] sm:$0xff] %vm732_vm6, %v14744_v1  ;;  %v13967_v1 = vld [vmem:[#allocation4 + $0x139] sm:$0xff] }
 0xc15   : > { %5688 = vst.msk [vmem:[#allocation5 + $0xf0] sm:$0xff] %vm683_vm5, %v5623_v18  ;;  %4651 = vst.msk [vmem:[#allocation5 + $0xd8] sm:$0xff] %vm683_vm5, %v4583_v40  ;;  %v14748_v18 = vld [vmem:[#allocation108_spill] sm:$0xff] }
 0xc16   : > { %5880 = vst.msk [vmem:[#allocation5 + $0xf0] sm:$0xff] %vm732_vm6, %v5815_v51 }
 0xc17   : > { %8645 = vst.msk [vmem:[%s12569_s12 + $0x148] sm:$0xff] %vm5208_vm10, %v6128_v22  ;;  %8644 = vst.msk [vmem:[%s12569_s12 + $0x140] sm:$0xff] %vm5208_vm10, %v6123_v44  ;;  %v4775_v23 = vpop.permute.xlu1 %4774  ;;  %v4393_v11 = vpop.permute.xlu0 %4392  ;;  %v6303_v44 = vld [vmem:[#allocation4 + $0x168] sm:$0xff] }
 0xc18   : > { %4843 = vst.msk [vmem:[#allocation5 + $0xd8] sm:$0xff] %vm732_vm6, %v4775_v23 }
 0xc19   : > { %4460 = vst.msk [vmem:[#allocation5 + $0xe0] sm:$0xff] %vm634_vm4, %v4393_v11 }
 0xc1a   : > { %4652 = vst.msk [vmem:[#allocation5 + $0xe0] sm:$0xff] %vm683_vm5, %v14745_v48  ;;  %v14754_v48 = vld [vmem:[#allocation116_spill] sm:$0xff] }
 0xc1b   : > { %v4877_v17 = vld [vmem:[#allocation5 + $0xe8] sm:$0xff]  ;;  %4844 = vst.msk [vmem:[#allocation5 + $0xe0] sm:$0xff] %vm732_vm6, %v14746_v4  ;;  %v5429_v49 = vpop.permute.xlu1 %5428  ;;  %v4581_v31 = vpop.permute.xlu0 %4580 }
 0xc1c   : > { %5303 = vst.msk [vmem:[#allocation5 + $0xe8] sm:$0xff] %vm499_vm2, %v13474_v53 }
 0xc1d   : > { %v13937_v5 = vld [vmem:[#allocation5 + $0xf0] sm:$0xff]  ;;  %5495 = vst.msk [vmem:[#allocation5 + $0xe8] sm:$0xff] %vm634_vm4, %v5429_v49  ;;  %v6302_v49 = vld [vmem:[#allocation4 + $0x158] sm:$0xff] }
 0xc1e   : > { %6337 = vst.msk [vmem:[#allocation5 + $0xf0] sm:$0xff] %vm499_vm2, %v13415_v63 }
 0xc1f   : > { %5687 = vst.msk [vmem:[#allocation5 + $0xe8] sm:$0xff] %vm683_vm5, %v14747_v47  ;;  %4650 = vst.msk [vmem:[#allocation5 + $0xd0] sm:$0xff] %vm683_vm5, %v4581_v31  ;;  %v4875_v53 = vld [vmem:[#allocation5 + $0xd8] sm:$0xff]  ;;  %v5617_v12 = vpop.permute.xlu1 %5616  ;;  %v4773_v58 = vpop.permute.xlu0 %4772  ;;  %v6301_v47 = vld [vmem:[#allocation4 + $0x150] sm:$0xff] }
 0xc20   : > { %5879 = vst.msk [vmem:[#allocation5 + $0xe8] sm:$0xff] %vm732_vm6, %v14748_v18  ;;  %4842 = vst.msk [vmem:[#allocation5 + $0xd0] sm:$0xff] %vm732_vm6, %v4773_v58  ;;  %v7954_v58 = vld [vmem:[#allocation5 + $0x28] sm:$0xff] }
 0xc21   : > { %5301 = vst.msk [vmem:[#allocation5 + $0xd8] sm:$0xff] %vm499_vm2, %v13947_v3 }
 0xc22   : > { %5493 = vst.msk [vmem:[#allocation5 + $0xd8] sm:$0xff] %vm634_vm4, %v14749_v15  ;;  %v4876_v63 = vld [vmem:[#allocation5 + $0xe0] sm:$0xff] }
 0xc23   : > { %5685 = vst.msk [vmem:[#allocation5 + $0xd8] sm:$0xff] %vm683_vm5, %v5617_v12  ;;  %v6847_v26 = vpop.permute.xlu1 %6846  ;;  %v5427_v34 = vpop.permute.xlu0 %5426  ;;  %v7340_v15 = vld [vmem:[#allocation4 + $0x189] sm:$0xff] }
 0xc24   : > { %5302 = vst.msk [vmem:[#allocation5 + $0xe0] sm:$0xff] %vm499_vm2, %v13507_v8 }
 0xc25   : > { %5494 = vst.msk [vmem:[#allocation5 + $0xe0] sm:$0xff] %vm634_vm4, %v5427_v34  ;;  %v7956_v34 = vld [vmem:[#allocation5 + $0x38] sm:$0xff] }
 0xc26   : > { %5686 = vst.msk [vmem:[#allocation5 + $0xe0] sm:$0xff] %vm683_vm5, %v14750_v0 }
 0xc27   : > { %v5911_v51 = vld [vmem:[#allocation5 + $0xe8] sm:$0xff]  ;;  %5878 = vst.msk [vmem:[#allocation5 + $0xe0] sm:$0xff] %vm732_vm6, %v14752_v33  ;;  %v6464_v55 = vpop.permute.xlu1 %6463  ;;  %v4874_v8 = vld [vmem:[#allocation5 + $0xd0] sm:$0xff]  ;;  %v5615_v40 = vpop.permute.xlu0 %5614 }
 0xc28   : > { %6336 = vst.msk [vmem:[#allocation5 + $0xe8] sm:$0xff] %vm499_vm2, %v6304_v39  ;;  %5300 = vst.msk [vmem:[#allocation5 + $0xd0] sm:$0xff] %vm499_vm2, %v13967_v1  ;;  %9284 = vmatprep.mubr.msk.f32.mxu1 %vm4886_vm9, %v4874_v8  ;;  %v7958_v39 = vld [vmem:[#allocation5 + $0x48] sm:$0xff]  ;;  %v7960_v8 = vld [vmem:[#allocation5 + $0x58] sm:$0xff] }
 0xc29   : > { %6528 = vst.msk [vmem:[#allocation5 + $0xe8] sm:$0xff] %vm634_vm4, %v14751_v35  ;;  %6529 = vst.msk [vmem:[#allocation5 + $0xf0] sm:$0xff] %vm634_vm4, %v6464_v55  ;;  %9285 = vmatmul.mubr.msk.f32.gmra.mrb[58].mxu1 %vm4886_vm9, %v4875_v53  ;;  %v7952_v53 = vld [vmem:[#allocation5 + $0x18] sm:$0xff] }
 0xc2a   : > { %6721 = vst.msk [vmem:[#allocation5 + $0xe8] sm:$0xff] %vm683_vm5, %v6655_v7  ;;  %9287 = vmatprep.mubr.msk.f32.mxu1 %vm4886_vm9, %v4876_v63 }
 0xc2b   : > { %6913 = vst.msk [vmem:[#allocation5 + $0xe8] sm:$0xff] %vm732_vm6, %v6847_v26  ;;  %v5809_v7 = vpop.permute.xlu1 %5808  ;;  %v5807_v22 = vpop.permute.xlu0 %5806 }
 0xc2c   : > { %5492 = vst.msk [vmem:[#allocation5 + $0xd0] sm:$0xff] %vm634_vm4, %v14753_v52 }
 0xc2d   : > { %5684 = vst.msk [vmem:[#allocation5 + $0xd0] sm:$0xff] %vm683_vm5, %v5615_v40  ;;  %9288 = vmatmul.mubr.msk.f32.gmra.mrb[60].mxu1 %vm4886_vm9, %v4877_v17 }
 0xc2e   : > { %5877 = vst.msk [vmem:[#allocation5 + $0xd8] sm:$0xff] %vm732_vm6, %v5809_v7  ;;  %5876 = vst.msk [vmem:[#allocation5 + $0xd0] sm:$0xff] %vm732_vm6, %v5807_v22  ;;  %v5910_v29 = vld [vmem:[#allocation5 + $0xe0] sm:$0xff]  ;;  %9290 = vmatprep.mubr.msk.f32.mxu1 %vm4886_vm9, %v13903_v41 }
 0xc2f   : > { %v6657_v23 = vpop.permute.xlu1 %6656  ;;  %6335 = vst.msk [vmem:[#allocation5 + $0xe0] sm:$0xff] %vm499_vm2, %v6303_v44  ;;  %v7868_v11 = vpop.permute.xlu0 %7867  ;;  %v7962_v44 = vld [vmem:[#allocation5 + $0x68] sm:$0xff] }
 0xc30   : > { %6722 = vst.msk [vmem:[#allocation5 + $0xf0] sm:$0xff] %vm683_vm5, %v6657_v23 }
 0xc31   : > { %6527 = vst.msk [vmem:[#allocation5 + $0xe0] sm:$0xff] %vm634_vm4, %v14754_v48  ;;  %9291 = vmatmul.mubr.msk.f32.gmra.mrb[62].mxu1 %vm4886_vm9, %v13858_v62 }
 0xc32   : > { %v13987_v4 = vld [vmem:[#allocation5 + $0xe8] sm:$0xff]  ;;  %7940 = vst.msk [vmem:[#allocation5 + $0xb8] sm:$0xff] %vm732_vm6, %v7868_v11  ;;  %9349 = vmatprep.mubr.msk.f32.mxu1 %vm4886_vm9, %v13087_v56 }
 0xc33   : > { %6720 = vst.msk [vmem:[#allocation5 + $0xe0] sm:$0xff] %vm683_vm5, %v13877_v30  ;;  %v6849_v41 = vpop.permute.xlu1 %6848  ;;  %v14001_v31 = vpop.permute.xlu0 %7485 }
 0xc34   : > { %7370 = vst.msk [vmem:[#allocation5 + $0xe8] sm:$0xff] %vm499_vm2, %v13623_v60 }
 0xc35   : > { %6912 = vst.msk [vmem:[#allocation5 + $0xe0] sm:$0xff] %vm732_vm6, %v13888_v10  ;;  %v5909_v17 = vld [vmem:[#allocation5 + $0xd8] sm:$0xff]  ;;  %6914 = vst.msk [vmem:[#allocation5 + $0xf0] sm:$0xff] %vm732_vm6, %v6849_v41  ;;  %v5908_v30 = vld [vmem:[#allocation5 + $0xd0] sm:$0xff]  ;;  %9350 = vmatmul.mubr.msk.f32.vlgmr.msra.gmra.mrb[64].mxu1 %vm4886_vm9, %v12995_v6 }
 0xc36   : > { %6334 = vst.msk [vmem:[#allocation5 + $0xd8] sm:$0xff] %vm499_vm2, %v6302_v49  ;;  %9336 = vmatprep.mubr.msk.f32.mxu0 %vm4886_vm9, %v5908_v30  ;;  %6333 = vst.msk [vmem:[#allocation5 + $0xd0] sm:$0xff] %vm499_vm2, %v6301_v47  ;;  %9352 = vmatprep.mubr.msk.f32.mxu1 %vm4886_vm9, %v12989_v9  ;;  %v7339_v10 = vld [vmem:[#allocation4 + $0x181] sm:$0xff]  ;;  %v14756_v47 = vld [vmem:[#allocation112_spill] sm:$0xff] }
 0xc37   : > { %9337 = vmatmul.mubr.msk.f32.gmra.mrb[66].mxu0 %vm4886_vm9, %v5909_v17  ;;  %v6851_v56 = vpop.permute.xlu1 %6850  ;;  %v14012_v60 = vpop.permute.xlu0 %7487  ;;  %v14755_v49 = vld [vmem:[#allocation110_spill] sm:$0xff] }
 0xc38   : > { %9339 = vmatprep.mubr.msk.f32.mxu0 %vm4886_vm9, %v5910_v29  ;;  %v7964_v30 = vld [vmem:[#allocation5 + $0x78] sm:$0xff] }
 0xc39   : > { %9353 = vmatmul.mubr.msk.f32.gmra.mrb[66].mxu1 %vm4886_vm9, %v13085_v2  ;;  %v7949_v2 = vld [vmem:[#allocation5] sm:$0xff] }
 0xc3a   : > { %9355 = vmatprep.mubr.msk.f32.mxu1 %vm4886_vm9, %v12963_v24 }
 0xc3b   : > { %9340 = vmatmul.mubr.msk.f32.gmra.mrb[68].mxu0 %vm4886_vm9, %v5911_v51  ;;  %v14025_v9 = vpop.permute.xlu1 %7683  ;;  %v6466_v18 = vpop.permute.xlu0 %6465 }
 0xc3c   : > { %v14014_v62 = vld [vmem:[#allocation5 + $0xe0] sm:$0xff]  ;;  %9342 = vmatprep.mubr.msk.f32.mxu0 %vm4886_vm9, %v13937_v5  ;;  %v14027_v6 = vld [vmem:[#allocation5 + $0xf0] sm:$0xff]  ;;  %6530 = vst.msk [vmem:[#allocation5 + $0xf8] sm:$0xff] %vm634_vm4, %v6466_v18  ;;  %v7950_v5 = vld [vmem:[#allocation5 + $0x8] sm:$0xff] }
 0xc3d   : > { %7369 = vst.msk [vmem:[#allocation5 + $0xe0] sm:$0xff] %vm499_vm2, %v13651_v59  ;;  %7371 = vst.msk [vmem:[#allocation5 + $0xf0] sm:$0xff] %vm499_vm2, %v7339_v10  ;;  %9356 = vmatmul.mubr.msk.f32.gmra.mrb[68].mxu1 %vm4886_vm9, %v13052_v54  ;;  %v7951_v54 = vld [vmem:[#allocation5 + $0x10] sm:$0xff] }
 0xc3e   : > { %9358 = vmatprep.mubr.msk.f32.mxu1 %vm4886_vm9, %v12830_v43  ;;  %v14758_v10 = vld [vmem:[#allocation114_spill] sm:$0xff] }
 0xc3f   : > { %9343 = vmatmul.mubr.msk.f32.gmra.mrb[70].mxu0 %vm4886_vm9, %v13898_v21  ;;  %v14038_v24 = vpop.permute.xlu1 %7875  ;;  %v6659_v59 = vpop.permute.xlu0 %6658 }
 0xc40   : > { %9401 = vmatprep.mubr.msk.f32.mxu0 %vm4886_vm9, %v7949_v2  ;;  %6723 = vst.msk [vmem:[#allocation5 + $0xf8] sm:$0xff] %vm683_vm5, %v6659_v59 }
 0xc41   : > { %6915 = vst.msk [vmem:[#allocation5 + $0xf8] sm:$0xff] %vm732_vm6, %v6851_v56  ;;  %9359 = vmatmul.mubr.msk.f32.gmra.mrb[70].mxu1 %vm4886_vm9, %v12865_v42  ;;  %v7953_v42 = vld [vmem:[#allocation5 + $0x20] sm:$0xff] }
 0xc42   : > { %9361 = vmatprep.mubr.msk.f32.mxu1 %vm4886_vm9, %v13430_v50  ;;  %v14757_v56 = vld [vmem:[#allocation115_spill] sm:$0xff] }
 0xc43   : > { %9402 = vmatmul.mubr.msk.f32.vlgmr.msra.gmra.mrb[72].mxu0 %vm4886_vm9, %v7950_v5  ;;  %v7496_v43 = vpop.permute.xlu1 %7495  ;;  %v14049_v21 = vpop.permute.xlu0 %7681 }
 0xc44   : > { %9404 = vmatprep.mubr.msk.f32.mxu0 %vm4886_vm9, %v7951_v54  ;;  %7562 = vst.msk [vmem:[#allocation5 + $0xe8] sm:$0xff] %vm634_vm4, %v7496_v43 }
 0xc45   : > { %9362 = vmatmul.mubr.msk.f32.gmra.mrb[72].mxu1 %vm4886_vm9, %v13454_v57  ;;  %v7955_v57 = vld [vmem:[#allocation5 + $0x30] sm:$0xff] }
 0xc46   : > { %9364 = vmatprep.mubr.msk.f32.mxu1 %vm4886_vm9, %v13426_v28 }
 0xc47   : > { %9405 = vmatmul.mubr.msk.f32.gmra.mrb[74].mxu0 %vm4886_vm9, %v7952_v53  ;;  %v7688_v50 = vpop.permute.xlu1 %7687  ;;  %v14058_v12 = vpop.permute.xlu0 %7873 }
 0xc48   : > { %9407 = vmatprep.mubr.msk.f32.mxu0 %vm4886_vm9, %v7953_v42  ;;  %7754 = vst.msk [vmem:[#allocation5 + $0xe8] sm:$0xff] %vm683_vm5, %v7688_v50  ;;  %v14060_v63 = vld [vmem:[#allocation5 + $0xf8] sm:$0xff]  ;;  %v7966_v42 = vld [vmem:[#allocation5 + $0x88] sm:$0xff] }
 0xc49   : > { %9365 = vmatmul.mubr.msk.f32.gmra.mrb[74].mxu1 %vm4886_vm9, %v13449_v32  ;;  %7372 = vst.msk [vmem:[#allocation5 + $0xf8] sm:$0xff] %vm499_vm2, %v7340_v15  ;;  %v7957_v32 = vld [vmem:[#allocation5 + $0x40] sm:$0xff] }
 0xc4a   : > { %9367 = vmatprep.mubr.msk.f32.mxu1 %vm4886_vm9, %v13394_v25 }
 0xc4b   : > { %9408 = vmatmul.mubr.msk.f32.gmra.mrb[76].mxu0 %vm4886_vm9, %v7954_v58  ;;  %v7880_v28 = vpop.permute.xlu1 %7879  ;;  %v7494_v26 = vpop.permute.xlu0 %7493  ;;  %v7967_v58 = vld [vmem:[#allocation5 + $0x90] sm:$0xff] }
 0xc4c   : > { %9410 = vmatprep.mubr.msk.f32.mxu0 %vm4886_vm9, %v7955_v57  ;;  %7946 = vst.msk [vmem:[#allocation5 + $0xe8] sm:$0xff] %vm732_vm6, %v7880_v28 }
 0xc4d   : > { %7561 = vst.msk [vmem:[#allocation5 + $0xe0] sm:$0xff] %vm634_vm4, %v7494_v26  ;;  %9368 = vmatmul.mubr.msk.f32.gmra.mrb[76].mxu1 %vm4886_vm9, %v13410_v36  ;;  %v7959_v36 = vld [vmem:[#allocation5 + $0x50] sm:$0xff]  ;;  %v7968_v26 = vld [vmem:[#allocation5 + $0x98] sm:$0xff] }
 0xc4e   : > { %9370 = vmatprep.mubr.msk.f32.mxu1 %vm4886_vm9, %v13178_v37 }
 0xc4f   : > { %9411 = vmatmul.mubr.msk.f32.gmra.mrb[78].mxu0 %vm4886_vm9, %v7956_v34  ;;  %v6645_v25 = vpop.permute.xlu1 %6644  ;;  %v7686_v51 = vpop.permute.xlu0 %7685 }
 0xc50   : > { %9413 = vmatprep.mubr.msk.f32.mxu0 %vm4886_vm9, %v7957_v32  ;;  %6716 = vst.msk [vmem:[#allocation5 + $0xc0] sm:$0xff] %vm683_vm5, %v6645_v25  ;;  %7753 = vst.msk [vmem:[#allocation5 + $0xe0] sm:$0xff] %vm683_vm5, %v7686_v51  ;;  %v7335_v32 = vld [vmem:[#allocation4 + $0x151] sm:$0xff]  ;;  %v7336_v51 = vld [vmem:[#allocation4 + $0x159] sm:$0xff] }
 0xc51   : > { %9371 = vmatmul.mubr.msk.f32.gmra.mrb[78].mxu1 %vm4886_vm9, %v13264_v27  ;;  %v9262_v0 = vpop.f32.mrb[42].mxu1  ;;  %v7969_v25 = vld [vmem:[#allocation5 + $0xa0] sm:$0xff] }
 0xc52   : > { %9373 = vmatprep.mubr.msk.f32.mxu1 %vm4886_vm9, %v13740_v46  ;;  %v5105_v33 = vadd.f32 %v13830_v16, %v9262_v0  ;;  %v5099_v55 = vpop.f32.mrb[43].mxu1  ;;  %v7961_v46 = vld [vmem:[#allocation5 + $0x60] sm:$0xff] }
 0xc53   : > { %9414 = vmatmul.mubr.msk.f32.gmra.mrb[80].mxu0 %vm4886_vm9, %v7958_v39  ;;  %v6837_v37 = vpop.permute.xlu1 %6836  ;;  %v7878_v35 = vpop.permute.xlu0 %7877  ;;  %v5100_v27 = vadd.f32 %v13830_v16, %v5099_v55 }
 0xc54   : > { %9416 = vmatprep.mubr.msk.f32.mxu0 %vm4886_vm9, %v7959_v36  ;;  %6908 = vst.msk [vmem:[#allocation5 + $0xc0] sm:$0xff] %vm732_vm6, %v6837_v37  ;;  %7945 = vst.msk [vmem:[#allocation5 + $0xe0] sm:$0xff] %vm732_vm6, %v7878_v35 }
 0xc55   : > { %5220 = vst.msk [vmem:[%s12569_s12 + $0x58] sm:$0xff] %vm5208_vm10, %v5105_v33  ;;  %9374 = vmatmul.mubr.msk.f32.gmra.mrb[80].mxu1 %vm4886_vm9, %v13789_v14  ;;  %5219 = vst.msk [vmem:[%s12569_s12 + $0x50] sm:$0xff] %vm5208_vm10, %v5100_v27  ;;  %v9265_v52 = vpop.f32.mrb[44].mxu1  ;;  %v7970_v27 = vld [vmem:[#allocation5 + $0xa8] sm:$0xff] }
 0xc56   : > { %9376 = vmatprep.mubr.msk.f32.mxu1 %vm4886_vm9, %v13823_v61  ;;  %v5115_v22 = vadd.f32 %v13830_v16, %v9265_v52  ;;  %v5109_v29 = vpop.f32.mrb[45].mxu1  ;;  %v7963_v61 = vld [vmem:[#allocation5 + $0x70] sm:$0xff]  ;;  %v7972_v52 = vld [vmem:[#allocation5 + $0xb8] sm:$0xff] }
 0xc57   : > { %9417 = vmatmul.mubr.msk.f32.gmra.mrb[82].mxu0 %vm4886_vm9, %v7960_v8  ;;  %v6839_v40 = vpop.permute.xlu1 %6838  ;;  %v6647_v7 = vpop.permute.xlu0 %6646  ;;  %v5110_v14 = vadd.f32 %v13830_v16, %v5109_v29  ;;  %v7971_v8 = vld [vmem:[#allocation5 + $0xb0] sm:$0xff] }
 0xc58   : > { %9419 = vmatprep.mubr.msk.f32.mxu0 %vm4886_vm9, %v7961_v46  ;;  %6717 = vst.msk [vmem:[#allocation5 + $0xc8] sm:$0xff] %vm683_vm5, %v6647_v7 }
 0xc59   : > { %6909 = vst.msk [vmem:[#allocation5 + $0xc8] sm:$0xff] %vm732_vm6, %v6839_v40  ;;  %9377 = vmatmul.mubr.msk.f32.gmra.mrb[82].mxu1 %vm4886_vm9, %v13819_v38  ;;  %v9268_v11 = vpop.f32.mrb[46].mxu1 }
 0xc5a   : > { %5222 = vst.msk [vmem:[%s12569_s12 + $0x68] sm:$0xff] %vm5208_vm10, %v5115_v22  ;;  %5221 = vst.msk [vmem:[%s12569_s12 + $0x60] sm:$0xff] %vm5208_vm10, %v5110_v14  ;;  %9379 = vmatprep.mubr.msk.f32.mxu1 %vm4886_vm9, %v13793_v19  ;;  %v5125_v38 = vadd.f32 %v13830_v16, %v9268_v11  ;;  %v5119_v17 = vpop.f32.mrb[47].mxu1 }
 0xc5b   : > { %9420 = vmatmul.mubr.msk.f32.gmra.mrb[84].mxu0 %vm4886_vm9, %v7962_v44  ;;  %v6456_v23 = vpop.permute.xlu1 %6455  ;;  %v6940_v48 = vld [vmem:[#allocation5 + $0xc0] sm:$0xff]  ;;  %v6458_v41 = vpop.permute.xlu0 %6457  ;;  %v5120_v19 = vadd.f32 %v13830_v16, %v5119_v17 }
 0xc5c   : > { %9422 = vmatprep.mubr.msk.f32.mxu0 %vm4886_vm9, %v7963_v61  ;;  %6525 = vst.msk [vmem:[#allocation5 + $0xd0] sm:$0xff] %vm634_vm4, %v6456_v23  ;;  %6526 = vst.msk [vmem:[#allocation5 + $0xd8] sm:$0xff] %vm634_vm4, %v6458_v41  ;;  %v7977_v61 = vld [vmem:[#allocation5 + $0xe0] sm:$0xff] }
 0xc5d   : > { %7365 = vst.msk [vmem:[#allocation5 + $0xc0] sm:$0xff] %vm499_vm2, %v13967_v1  ;;  %9380 = vmatmul.mubr.msk.f32.gmra.mrb[84].mxu1 %vm4886_vm9, %v13726_v20  ;;  %v7965_v1 = vld [vmem:[#allocation5 + $0x80] sm:$0xff]  ;;  %v9271_v18 = vpop.f32.mrb[48].mxu1 }
 0xc5e   : > { %6718 = vst.msk [vmem:[#allocation5 + $0xd0] sm:$0xff] %vm683_vm5, %v14755_v49  ;;  %6719 = vst.msk [vmem:[#allocation5 + $0xd8] sm:$0xff] %vm683_vm5, %v14757_v56  ;;  %9382 = vmatprep.mubr.msk.f32.mxu1 %vm4886_vm9, %v13635_v45  ;;  %v5135_v20 = vadd.f32 %v13830_v16, %v9271_v18  ;;  %v5129_v43 = vpop.f32.mrb[49].mxu1 }
 0xc5f   : > { %7557 = vst.msk [vmem:[#allocation5 + $0xc0] sm:$0xff] %vm634_vm4, %v14001_v31  ;;  %9423 = vmatmul.mubr.msk.f32.gmra.mrb[86].mxu0 %vm4886_vm9, %v7964_v30  ;;  %v7678_v31 = vpop.permute.xlu1 %7677  ;;  %v7680_v2 = vpop.permute.xlu0 %7679  ;;  %v5130_v45 = vadd.f32 %v13830_v16, %v5129_v43 }
 0xc60   : > { %6910 = vst.msk [vmem:[#allocation5 + $0xd0] sm:$0xff] %vm732_vm6, %v14756_v47  ;;  %6911 = vst.msk [vmem:[#allocation5 + $0xd8] sm:$0xff] %vm732_vm6, %v14758_v10  ;;  %9425 = vmatprep.mubr.msk.f32.mxu0 %vm4886_vm9, %v7965_v1  ;;  %v9314_v59 = vpop.f32.mrb[50].mxu0  ;;  %v6941_v5 = vld [vmem:[#allocation5 + $0xc8] sm:$0xff] }
 0xc61   : > { %5224 = vst.msk [vmem:[%s12569_s12 + $0x78] sm:$0xff] %vm5208_vm10, %v5125_v38  ;;  %5223 = vst.msk [vmem:[%s12569_s12 + $0x70] sm:$0xff] %vm5208_vm10, %v5120_v19  ;;  %v6138_v54 = vadd.f32 %v13830_v16, %v9314_v59  ;;  %v6132_v53 = vpop.f32.mrb[51].mxu0  ;;  %9383 = vmatmul.mubr.msk.f32.gmra.mrb[86].mxu1 %vm4886_vm9, %v13633_v13 }
 0xc62   : > { %7749 = vst.msk [vmem:[#allocation5 + $0xc0] sm:$0xff] %vm683_vm5, %v7678_v31  ;;  %v6133_v50 = vadd.f32 %v13830_v16, %v6132_v53  ;;  %9385 = vmatprep.mubr.msk.f32.mxu1 %vm4886_vm9, %v6940_v48 }
 0xc63   : > { %7366 = vst.msk [vmem:[#allocation5 + $0xc8] sm:$0xff] %vm499_vm2, %v13947_v3  ;;  %9426 = vmatmul.mubr.msk.f32.gmra.mrb[88].mxu0 %vm4886_vm9, %v7966_v42  ;;  %v7870_v3 = vpop.permute.xlu1 %7869  ;;  %v9317_v15 = vpop.f32.mrb[52].mxu0 }
 0xc64   : > { %5226 = vst.msk [vmem:[%s12569_s12 + $0x88] sm:$0xff] %vm5208_vm10, %v5135_v20  ;;  %8647 = vst.msk [vmem:[%s12569_s12 + $0x158] sm:$0xff] %vm5208_vm10, %v6138_v54  ;;  %9428 = vmatprep.mubr.msk.f32.mxu0 %vm4886_vm9, %v7967_v58  ;;  %v7872_v13 = vpop.permute.xlu0 %7871  ;;  %v6142_v57 = vpop.f32.mrb[53].mxu0 }
 0xc65   : > { %7558 = vst.msk [vmem:[#allocation5 + $0xc8] sm:$0xff] %vm634_vm4, %v14012_v60  ;;  %v6148_v60 = vadd.f32 %v13830_v16, %v9317_v15  ;;  %v6143_v28 = vadd.f32 %v13830_v16, %v6142_v57  ;;  %9386 = vmatmul.mubr.msk.f32.gmra.mrb[88].mxu1 %vm4886_vm9, %v6941_v5 }
 0xc66   : > { %7750 = vst.msk [vmem:[#allocation5 + $0xc8] sm:$0xff] %vm683_vm5, %v7680_v2 }
 0xc67   : > { %5225 = vst.msk [vmem:[%s12569_s12 + $0x80] sm:$0xff] %vm5208_vm10, %v5130_v45  ;;  %8646 = vst.msk [vmem:[%s12569_s12 + $0x150] sm:$0xff] %vm5208_vm10, %v6133_v50  ;;  %v6942_v34 = vld [vmem:[#allocation5 + $0xd0] sm:$0xff]  ;;  %9429 = vmatmul.mubr.msk.f32.gmra.mrb[90].mxu0 %vm4886_vm9, %v7968_v26  ;;  %v6943_v39 = vld [vmem:[#allocation5 + $0xd8] sm:$0xff]  ;;  %v7492_v36 = vpop.permute.xlu1 %7491  ;;  %v9320_v37 = vpop.f32.mrb[54].mxu0 }
 0xc68   : > { %7941 = vst.msk [vmem:[#allocation5 + $0xc0] sm:$0xff] %vm732_vm6, %v7870_v3  ;;  %7942 = vst.msk [vmem:[#allocation5 + $0xc8] sm:$0xff] %vm732_vm6, %v7872_v13  ;;  %9388 = vmatprep.mubr.msk.f32.mxu1 %vm4886_vm9, %v6942_v34  ;;  %9431 = vmatprep.mubr.msk.f32.mxu0 %vm4886_vm9, %v7969_v25  ;;  %v7490_v0 = vpop.permute.xlu0 %7489  ;;  %v6158_v35 = vadd.f32 %v13830_v16, %v9320_v37  ;;  %v6152_v33 = vpop.f32.mrb[55].mxu0 }
 0xc69   : > { %8649 = vst.msk [vmem:[%s12569_s12 + $0x168] sm:$0xff] %vm5208_vm10, %v6148_v60  ;;  %8648 = vst.msk [vmem:[%s12569_s12 + $0x160] sm:$0xff] %vm5208_vm10, %v6143_v28  ;;  %v6153_v55 = vadd.f32 %v13830_v16, %v6152_v33  ;;  %9389 = vmatmul.mubr.msk.f32.gmra.mrb[90].mxu1 %vm4886_vm9, %v6943_v39 }
 0xc6a   : > { %7367 = vst.msk [vmem:[#allocation5 + $0xd0] sm:$0xff] %vm499_vm2, %v7335_v32  ;;  %7368 = vst.msk [vmem:[#allocation5 + $0xd8] sm:$0xff] %vm499_vm2, %v7336_v51  ;;  %9391 = vmatprep.mubr.msk.f32.mxu1 %vm4886_vm9, %v14014_v62 }
 0xc6b   : > { %7560 = vst.msk [vmem:[#allocation5 + $0xd8] sm:$0xff] %vm634_vm4, %v7492_v36  ;;  %7559 = vst.msk [vmem:[#allocation5 + $0xd0] sm:$0xff] %vm634_vm4, %v7490_v0  ;;  %9432 = vmatmul.mubr.msk.f32.gmra.mrb[92].mxu0 %vm4886_vm9, %v7970_v27 }
 0xc6c   : > { %7752 = vst.msk [vmem:[#allocation5 + $0xd8] sm:$0xff] %vm683_vm5, %v14025_v9  ;;  %7751 = vst.msk [vmem:[#allocation5 + $0xd0] sm:$0xff] %vm683_vm5, %v14049_v21  ;;  %9434 = vmatprep.mubr.msk.f32.mxu0 %vm4886_vm9, %v7971_v8  ;;  %v7500_v9 = vpop.permute.xlu1 %7499  ;;  %v7498_v21 = vpop.permute.xlu0 %7497 }
 0xc6d   : > { %7944 = vst.msk [vmem:[#allocation5 + $0xd8] sm:$0xff] %vm732_vm6, %v14038_v24  ;;  %7943 = vst.msk [vmem:[#allocation5 + $0xd0] sm:$0xff] %vm732_vm6, %v14058_v12  ;;  %v9323_v24 = vpop.f32.mrb[56].mxu0  ;;  %9392 = vmatmul.mubr.msk.f32.gmra.mrb[92].mxu1 %vm4886_vm9, %v13987_v4 }
 0xc6e   : > { %8651 = vst.msk [vmem:[%s12569_s12 + $0x178] sm:$0xff] %vm5208_vm10, %v6158_v35  ;;  %8650 = vst.msk [vmem:[%s12569_s12 + $0x170] sm:$0xff] %vm5208_vm10, %v6153_v55  ;;  %v6168_v46 = vadd.f32 %v13830_v16, %v9323_v24  ;;  %v6162_v40 = vpop.f32.mrb[57].mxu0  ;;  %9394 = vmatprep.mubr.msk.f32.mxu1 %vm4886_vm9, %v14027_v6 }
 0xc6f   : > { %7564 = vst.msk [vmem:[#allocation5 + $0xf8] sm:$0xff] %vm634_vm4, %v7500_v9  ;;  %7563 = vst.msk [vmem:[#allocation5 + $0xf0] sm:$0xff] %vm634_vm4, %v7498_v21  ;;  %v6163_v12 = vadd.f32 %v13830_v16, %v6162_v40  ;;  %9435 = vmatmul.mubr.msk.f32.gmra.mrb[94].mxu0 %vm4886_vm9, %v7972_v52  ;;  %v7973_v62 = vld [vmem:[#allocation5 + $0xc0] sm:$0xff]  ;;  %v7974_v29 = vld [vmem:[#allocation5 + $0xc8] sm:$0xff] }
 0xc70   : > { %8653 = vst.msk [vmem:[%s12569_s12 + $0x188] sm:$0xff] %vm5208_vm10, %v6168_v46  ;;  %9437 = vmatprep.mubr.msk.f32.mxu0 %vm4886_vm9, %v7973_v62  ;;  %v7692_v7 = vpop.permute.xlu1 %7691  ;;  %v7690_v22 = vpop.permute.xlu0 %7689  ;;  %v14286_v9 = vld [vmem:[#allocation17] ss:$0 sm:$0xff] }
 0xc71   : > { %8652 = vst.msk [vmem:[%s12569_s12 + $0x180] sm:$0xff] %vm5208_vm10, %v6163_v12  ;;  %9395 = vmatmul.mubr.msk.f32.gmra.mrb[94].mxu1 %vm4886_vm9, %v14060_v63  ;;  %v7978_v63 = vld [vmem:[#allocation5 + $0xe8] sm:$0xff] }
 0xc72   : > { %7756 = vst.msk [vmem:[#allocation5 + $0xf8] sm:$0xff] %vm683_vm5, %v7692_v7  ;;  %7755 = vst.msk [vmem:[#allocation5 + $0xf0] sm:$0xff] %vm683_vm5, %v7690_v22 }
 0xc73   : > { %9438 = vmatmul.mubr.msk.f32.gmra.mrb[96].mxu0 %vm4886_vm9, %v7974_v29 }
 0xc74   : > { %v7975_v4 = vld [vmem:[#allocation5 + $0xd0] sm:$0xff]  ;;  %v7884_v14 = vpop.permute.xlu1 %7883  ;;  %v7882_v44 = vpop.permute.xlu0 %7881  ;;  %v7976_v6 = vld [vmem:[#allocation5 + $0xd8] sm:$0xff] }
 0xc75   : > { %9440 = vmatprep.mubr.msk.f32.mxu0 %vm4886_vm9, %v7975_v4  ;;  %7948 = vst.msk [vmem:[#allocation5 + $0xf8] sm:$0xff] %vm732_vm6, %v7884_v14  ;;  %7947 = vst.msk [vmem:[#allocation5 + $0xf0] sm:$0xff] %vm732_vm6, %v7882_v44 }
 0xc77   : > { %9441 = vmatmul.mubr.msk.f32.gmra.mrb[98].mxu0 %vm4886_vm9, %v7976_v6 }
 0xc78   : > { %9443 = vmatprep.mubr.msk.f32.mxu0 %vm4886_vm9, %v7977_v61 }
 0xc7b   : > { %9444 = vmatmul.mubr.msk.f32.gmra.mrb[100].mxu0 %vm4886_vm9, %v7978_v63 }
 0xc7c   : > { %v7980_v23 = vld [vmem:[#allocation5 + $0xf8] sm:$0xff]  ;;  %v7979_v11 = vld [vmem:[#allocation5 + $0xf0] sm:$0xff] }
 0xc7d   : > { %9446 = vmatprep.mubr.msk.f32.mxu0 %vm4886_vm9, %v7979_v11 }
 0xc7f   : > { %9447 = vmatmul.mubr.msk.f32.gmra.mrb[102].mxu0 %vm4886_vm9, %v7980_v23 }
 0xcb7   : > { %v9274_v48 = vpop.f32.mrb[50].mxu1 }
 0xcb8   : > { %v5145_v41 = vadd.f32 %v13830_v16, %v9274_v48  ;;  %v5139_v38 = vpop.f32.mrb[51].mxu1 }
 0xcb9   : > { %v5140_v17 = vadd.f32 %v13830_v16, %v5139_v38 }
 0xcba   : > { %5228 = vst.msk [vmem:[%s12569_s12 + $0x98] sm:$0xff] %vm5208_vm10, %v5145_v41 }
 0xcbb   : > { %5227 = vst.msk [vmem:[%s12569_s12 + $0x90] sm:$0xff] %vm5208_vm10, %v5140_v17  ;;  %v9277_v49 = vpop.f32.mrb[52].mxu1 }
 0xcbc   : > { %v5155_v19 = vadd.f32 %v13830_v16, %v9277_v49  ;;  %v5149_v30 = vpop.f32.mrb[53].mxu1 }
 0xcbd   : > { %v5150_v47 = vadd.f32 %v13830_v16, %v5149_v30 }
 0xcbe   : > { %5230 = vst.msk [vmem:[%s12569_s12 + $0xa8] sm:$0xff] %vm5208_vm10, %v5155_v19 }
 0xcbf   : > { %5229 = vst.msk [vmem:[%s12569_s12 + $0xa0] sm:$0xff] %vm5208_vm10, %v5150_v47  ;;  %v9280_v56 = vpop.f32.mrb[54].mxu1 }
 0xcc0   : > { %v5165_v1 = vadd.f32 %v13830_v16, %v9280_v56  ;;  %v5159_v10 = vpop.f32.mrb[55].mxu1 }
 0xcc1   : > { %v5160_v31 = vadd.f32 %v13830_v16, %v5159_v10 }
 0xcc2   : > { %5232 = vst.msk [vmem:[%s12569_s12 + $0xb8] sm:$0xff] %vm5208_vm10, %v5165_v1 }
 0xcc3   : > { %5231 = vst.msk [vmem:[%s12569_s12 + $0xb0] sm:$0xff] %vm5208_vm10, %v5160_v31 }
 0xcc4   : > { %v9283_v18 = vpop.f32.mrb[56].mxu1 }
 0xcc5   : > { %v5175_v2 = vadd.f32 %v13830_v16, %v9283_v18  ;;  %v9326_v20 = vpop.f32.mrb[58].mxu0  ;;  %v5169_v59 = vpop.f32.mrb[57].mxu1 }
 0xcc6   : > { %v6178_v5 = vadd.f32 %v13830_v16, %v9326_v20  ;;  %v5170_v54 = vadd.f32 %v13830_v16, %v5169_v59  ;;  %v6172_v43 = vpop.f32.mrb[59].mxu0 }
 0xcc7   : > { %5234 = vst.msk [vmem:[%s12569_s12 + $0xc8] sm:$0xff] %vm5208_vm10, %v5175_v2  ;;  %v6173_v53 = vadd.f32 %v13830_v16, %v6172_v43 }
 0xcc8   : > { %8655 = vst.msk [vmem:[%s12569_s12 + $0x198] sm:$0xff] %vm5208_vm10, %v6178_v5  ;;  %5233 = vst.msk [vmem:[%s12569_s12 + $0xc0] sm:$0xff] %vm5208_vm10, %v5170_v54 }
 0xcc9   : > { %8654 = vst.msk [vmem:[%s12569_s12 + $0x190] sm:$0xff] %vm5208_vm10, %v6173_v53  ;;  %v9329_v42 = vpop.f32.mrb[60].mxu0 }
 0xcca   : > { %v6188_v45 = vadd.f32 %v13830_v16, %v9329_v42  ;;  %v6182_v50 = vpop.f32.mrb[61].mxu0 }
 0xccb   : > { %v6183_v58 = vadd.f32 %v13830_v16, %v6182_v50 }
 0xccc   : > { %8657 = vst.msk [vmem:[%s12569_s12 + $0x1a8] sm:$0xff] %vm5208_vm10, %v6188_v45 }
 0xccd   : > { %8656 = vst.msk [vmem:[%s12569_s12 + $0x1a0] sm:$0xff] %vm5208_vm10, %v6183_v58  ;;  %v9332_v3 = vpop.f32.mrb[62].mxu0 }
 0xcce   : > { %v6198_v15 = vadd.f32 %v13830_v16, %v9332_v3  ;;  %v6192_v13 = vpop.f32.mrb[63].mxu0 }
 0xccf   : > { %v6193_v60 = vadd.f32 %v13830_v16, %v6192_v13 }
 0xcd0   : > { %8659 = vst.msk [vmem:[%s12569_s12 + $0x1b8] sm:$0xff] %vm5208_vm10, %v6198_v15 }
 0xcd1   : > { %8658 = vst.msk [vmem:[%s12569_s12 + $0x1b0] sm:$0xff] %vm5208_vm10, %v6193_v60  ;;  %v9335_v57 = vpop.f32.mrb[64].mxu0 }
 0xcd2   : > { %v6208_v28 = vadd.f32 %v13830_v16, %v9335_v57  ;;  %v6202_v26 = vpop.f32.mrb[65].mxu0 }
 0xcd3   : > { %v6203_v34 = vadd.f32 %v13830_v16, %v6202_v26 }
 0xcd4   : > { %8661 = vst.msk [vmem:[%s12569_s12 + $0x1c8] sm:$0xff] %vm5208_vm10, %v6208_v28 }
 0xcd5   : > { %8660 = vst.msk [vmem:[%s12569_s12 + $0x1c0] sm:$0xff] %vm5208_vm10, %v6203_v34 }
 0xcfc   : > { %v9286_v32 = vpop.f32.mrb[58].mxu1 }
 0xcfd   : > { %v5185_v25 = vadd.f32 %v13830_v16, %v9286_v32  ;;  %v5179_v51 = vpop.f32.mrb[59].mxu1 }
 0xcfe   : > { %v5180_v39 = vadd.f32 %v13830_v16, %v5179_v51 }
 0xcff   : > { %5236 = vst.msk [vmem:[%s12569_s12 + $0xd8] sm:$0xff] %vm5208_vm10, %v5185_v25 }
 0xd00   : > { %5235 = vst.msk [vmem:[%s12569_s12 + $0xd0] sm:$0xff] %vm5208_vm10, %v5180_v39  ;;  %v9289_v36 = vpop.f32.mrb[60].mxu1 }
 0xd01   : > { %v5195_v37 = vadd.f32 %v13830_v16, %v9289_v36  ;;  %v5189_v0 = vpop.f32.mrb[61].mxu1 }
 0xd02   : > { %v5190_v35 = vadd.f32 %v13830_v16, %v5189_v0 }
 0xd03   : > { %5238 = vst.msk [vmem:[%s12569_s12 + $0xe8] sm:$0xff] %vm5208_vm10, %v5195_v37 }
 0xd04   : > { %5237 = vst.msk [vmem:[%s12569_s12 + $0xe0] sm:$0xff] %vm5208_vm10, %v5190_v35  ;;  %v9292_v33 = vpop.f32.mrb[62].mxu1 }
 0xd05   : > { %v5205_v55 = vadd.f32 %v13830_v16, %v9292_v33  ;;  %v5199_v27 = vpop.f32.mrb[63].mxu1 }
 0xd06   : > { %v5200_v8 = vadd.f32 %v13830_v16, %v5199_v27 }
 0xd07   : > { %5240 = vst.msk [vmem:[%s12569_s12 + $0xf8] sm:$0xff] %vm5208_vm10, %v5205_v55 }
 0xd08   : > { %5239 = vst.msk [vmem:[%s12569_s12 + $0xf0] sm:$0xff] %vm5208_vm10, %v5200_v8  ;;  %v9351_v21 = vpop.f32.mrb[64].mxu1 }
 0xd09   : > { %v7122_v40 = vadd.f32 %v9351_v21, %v14286_v9  ;;  %v7116_v52 = vpop.f32.mrb[65].mxu1 }
 0xd0a   : > { %v9338_v24 = vpop.f32.mrb[66].mxu0  ;;  %v7117_v7 = vadd.f32 %v14286_v9, %v7116_v52 }
 0xd0b   : > { %v6218_v46 = vadd.f32 %v13830_v16, %v9338_v24  ;;  %v6212_v12 = vpop.f32.mrb[67].mxu0  ;;  %8702 = vst.msk [vmem:[%s12569_s12 + $0x208] sm:$0xff] %vm5208_vm10, %v7122_v40 }
 0xd0c   : > { %v6213_v62 = vadd.f32 %v13830_v16, %v6212_v12  ;;  %8701 = vst.msk [vmem:[%s12569_s12 + $0x200] sm:$0xff] %vm5208_vm10, %v7117_v7  ;;  %v9354_v29 = vpop.f32.mrb[66].mxu1 }
 0xd0d   : > { %8663 = vst.msk [vmem:[%s12569_s12 + $0x1d8] sm:$0xff] %vm5208_vm10, %v6218_v46  ;;  %v7132_v14 = vadd.f32 %v9354_v29, %v14286_v9  ;;  %v7126_v6 = vpop.f32.mrb[67].mxu1 }
 0xd0e   : > { %8662 = vst.msk [vmem:[%s12569_s12 + $0x1d0] sm:$0xff] %vm5208_vm10, %v6213_v62  ;;  %v9341_v22 = vpop.f32.mrb[68].mxu0  ;;  %v7127_v63 = vadd.f32 %v14286_v9, %v7126_v6 }
 0xd0f   : > { %v6228_v4 = vadd.f32 %v13830_v16, %v9341_v22  ;;  %v6222_v44 = vpop.f32.mrb[69].mxu0  ;;  %8704 = vst.msk [vmem:[%s12569_s12 + $0x218] sm:$0xff] %vm5208_vm10, %v7132_v14 }
 0xd10   : > { %v6223_v61 = vadd.f32 %v13830_v16, %v6222_v44  ;;  %8703 = vst.msk [vmem:[%s12569_s12 + $0x210] sm:$0xff] %vm5208_vm10, %v7127_v63  ;;  %v9357_v11 = vpop.f32.mrb[68].mxu1 }
 0xd11   : > { %8665 = vst.msk [vmem:[%s12569_s12 + $0x1e8] sm:$0xff] %vm5208_vm10, %v6228_v4  ;;  %v7142_v41 = vadd.f32 %v9357_v11, %v14286_v9  ;;  %v7136_v17 = vpop.f32.mrb[69].mxu1 }
 0xd12   : > { %8664 = vst.msk [vmem:[%s12569_s12 + $0x1e0] sm:$0xff] %vm5208_vm10, %v6223_v61  ;;  %v9344_v23 = vpop.f32.mrb[70].mxu0  ;;  %v7137_v19 = vadd.f32 %v14286_v9, %v7136_v17 }
 0xd13   : > { %v6238_v48 = vadd.f32 %v13830_v16, %v9344_v23  ;;  %v6232_v38 = vpop.f32.mrb[71].mxu0  ;;  %8706 = vst.msk [vmem:[%s12569_s12 + $0x228] sm:$0xff] %vm5208_vm10, %v7142_v41 }
 0xd14   : > { %v6233_v49 = vadd.f32 %v13830_v16, %v6232_v38  ;;  %8705 = vst.msk [vmem:[%s12569_s12 + $0x220] sm:$0xff] %vm5208_vm10, %v7137_v19  ;;  %v9360_v30 = vpop.f32.mrb[70].mxu1 }
 0xd15   : > { %8667 = vst.msk [vmem:[%s12569_s12 + $0x1f8] sm:$0xff] %vm5208_vm10, %v6238_v48  ;;  %v7152_v56 = vadd.f32 %v9360_v30, %v14286_v9  ;;  %v7146_v10 = vpop.f32.mrb[71].mxu1 }
 0xd16   : > { %8666 = vst.msk [vmem:[%s12569_s12 + $0x1f0] sm:$0xff] %vm5208_vm10, %v6233_v49  ;;  %v9403_v47 = vpop.f32.mrb[72].mxu0  ;;  %v7147_v31 = vadd.f32 %v14286_v9, %v7146_v10 }
 0xd17   : > { %v8155_v1 = vadd.f32 %v9403_v47, %v14286_v9  ;;  %v8149_v16 = vpop.f32.mrb[73].mxu0  ;;  %8708 = vst.msk [vmem:[%s12569_s12 + $0x238] sm:$0xff] %vm5208_vm10, %v7152_v56 }
 0xd18   : > { %v8150_v18 = vadd.f32 %v14286_v9, %v8149_v16  ;;  %8707 = vst.msk [vmem:[%s12569_s12 + $0x230] sm:$0xff] %vm5208_vm10, %v7147_v31  ;;  %v9363_v2 = vpop.f32.mrb[72].mxu1 }
 0xd19   : > { %8767 = vst.msk [vmem:[%s12569_s12 + $0x308] sm:$0xff] %vm5208_vm10, %v8155_v1  ;;  %v7162_v59 = vadd.f32 %v9363_v2, %v14286_v9  ;;  %v7156_v54 = vpop.f32.mrb[73].mxu1 }
 0xd1a   : > { %8766 = vst.msk [vmem:[%s12569_s12 + $0x300] sm:$0xff] %vm5208_vm10, %v8150_v18  ;;  %v9406_v20 = vpop.f32.mrb[74].mxu0  ;;  %v7157_v53 = vadd.f32 %v14286_v9, %v7156_v54 }
 0xd1b   : > { %v8165_v5 = vadd.f32 %v9406_v20, %v14286_v9  ;;  %v8159_v43 = vpop.f32.mrb[75].mxu0  ;;  %8710 = vst.msk [vmem:[%s12569_s12 + $0x248] sm:$0xff] %vm5208_vm10, %v7162_v59 }
 0xd1c   : > { %v8160_v42 = vadd.f32 %v14286_v9, %v8159_v43  ;;  %8709 = vst.msk [vmem:[%s12569_s12 + $0x240] sm:$0xff] %vm5208_vm10, %v7157_v53  ;;  %v9366_v45 = vpop.f32.mrb[74].mxu1 }
 0xd1d   : > { %8769 = vst.msk [vmem:[%s12569_s12 + $0x318] sm:$0xff] %vm5208_vm10, %v8165_v5  ;;  %v7172_v58 = vadd.f32 %v9366_v45, %v14286_v9  ;;  %v7166_v15 = vpop.f32.mrb[75].mxu1 }
 0xd1e   : > { %8768 = vst.msk [vmem:[%s12569_s12 + $0x310] sm:$0xff] %vm5208_vm10, %v8160_v42  ;;  %v9409_v50 = vpop.f32.mrb[76].mxu0  ;;  %v7167_v60 = vadd.f32 %v14286_v9, %v7166_v15 }
 0xd1f   : > { %v8175_v3 = vadd.f32 %v9409_v50, %v14286_v9  ;;  %v8169_v13 = vpop.f32.mrb[77].mxu0  ;;  %8712 = vst.msk [vmem:[%s12569_s12 + $0x258] sm:$0xff] %vm5208_vm10, %v7172_v58 }
 0xd20   : > { %v8170_v57 = vadd.f32 %v14286_v9, %v8169_v13  ;;  %8711 = vst.msk [vmem:[%s12569_s12 + $0x250] sm:$0xff] %vm5208_vm10, %v7167_v60  ;;  %v9369_v28 = vpop.f32.mrb[76].mxu1 }
 0xd21   : > { %8771 = vst.msk [vmem:[%s12569_s12 + $0x328] sm:$0xff] %vm5208_vm10, %v8175_v3  ;;  %v7182_v34 = vadd.f32 %v9369_v28, %v14286_v9  ;;  %v7176_v25 = vpop.f32.mrb[77].mxu1 }
 0xd22   : > { %8770 = vst.msk [vmem:[%s12569_s12 + $0x320] sm:$0xff] %vm5208_vm10, %v8170_v57  ;;  %v9412_v26 = vpop.f32.mrb[78].mxu0  ;;  %v7177_v39 = vadd.f32 %v14286_v9, %v7176_v25 }
 0xd23   : > { %v8185_v32 = vadd.f32 %v9412_v26, %v14286_v9  ;;  %v8179_v51 = vpop.f32.mrb[79].mxu0  ;;  %8714 = vst.msk [vmem:[%s12569_s12 + $0x268] sm:$0xff] %vm5208_vm10, %v7182_v34 }
 0xd24   : > { %v8180_v36 = vadd.f32 %v14286_v9, %v8179_v51  ;;  %8713 = vst.msk [vmem:[%s12569_s12 + $0x260] sm:$0xff] %vm5208_vm10, %v7177_v39  ;;  %v9372_v37 = vpop.f32.mrb[78].mxu1 }
 0xd25   : > { %8773 = vst.msk [vmem:[%s12569_s12 + $0x338] sm:$0xff] %vm5208_vm10, %v8185_v32  ;;  %v7192_v35 = vadd.f32 %v9372_v37, %v14286_v9  ;;  %v7186_v55 = vpop.f32.mrb[79].mxu1 }
 0xd26   : > { %8772 = vst.msk [vmem:[%s12569_s12 + $0x330] sm:$0xff] %vm5208_vm10, %v8180_v36  ;;  %v9415_v0 = vpop.f32.mrb[80].mxu0  ;;  %v7187_v8 = vadd.f32 %v14286_v9, %v7186_v55 }
 0xd27   : > { %v8195_v33 = vadd.f32 %v9415_v0, %v14286_v9  ;;  %v8189_v27 = vpop.f32.mrb[81].mxu0  ;;  %8716 = vst.msk [vmem:[%s12569_s12 + $0x278] sm:$0xff] %vm5208_vm10, %v7192_v35 }
 0xd28   : > { %v8190_v24 = vadd.f32 %v14286_v9, %v8189_v27  ;;  %8715 = vst.msk [vmem:[%s12569_s12 + $0x270] sm:$0xff] %vm5208_vm10, %v7187_v8  ;;  %v9375_v21 = vpop.f32.mrb[80].mxu1 }
 0xd29   : > { %8775 = vst.msk [vmem:[%s12569_s12 + $0x348] sm:$0xff] %vm5208_vm10, %v8195_v33  ;;  %v7202_v40 = vadd.f32 %v9375_v21, %v14286_v9  ;;  %v7196_v52 = vpop.f32.mrb[81].mxu1 }
 0xd2a   : > { %8774 = vst.msk [vmem:[%s12569_s12 + $0x340] sm:$0xff] %vm5208_vm10, %v8190_v24  ;;  %v9418_v46 = vpop.f32.mrb[82].mxu0  ;;  %v7197_v7 = vadd.f32 %v14286_v9, %v7196_v52 }
 0xd2b   : > { %v8205_v12 = vadd.f32 %v9418_v46, %v14286_v9  ;;  %v8199_v62 = vpop.f32.mrb[83].mxu0  ;;  %8718 = vst.msk [vmem:[%s12569_s12 + $0x288] sm:$0xff] %vm5208_vm10, %v7202_v40 }
 0xd2c   : > { %v8200_v22 = vadd.f32 %v14286_v9, %v8199_v62  ;;  %8717 = vst.msk [vmem:[%s12569_s12 + $0x280] sm:$0xff] %vm5208_vm10, %v7197_v7  ;;  %v9378_v29 = vpop.f32.mrb[82].mxu1 }
 0xd2d   : > { %8777 = vst.msk [vmem:[%s12569_s12 + $0x358] sm:$0xff] %vm5208_vm10, %v8205_v12  ;;  %v7212_v14 = vadd.f32 %v9378_v29, %v14286_v9  ;;  %v7206_v6 = vpop.f32.mrb[83].mxu1 }
 0xd2e   : > { %8776 = vst.msk [vmem:[%s12569_s12 + $0x350] sm:$0xff] %vm5208_vm10, %v8200_v22  ;;  %v9421_v4 = vpop.f32.mrb[84].mxu0  ;;  %v7207_v63 = vadd.f32 %v14286_v9, %v7206_v6 }
 0xd2f   : > { %v8215_v44 = vadd.f32 %v9421_v4, %v14286_v9  ;;  %v8209_v61 = vpop.f32.mrb[85].mxu0  ;;  %8720 = vst.msk [vmem:[%s12569_s12 + $0x298] sm:$0xff] %vm5208_vm10, %v7212_v14 }
 0xd30   : > { %v8210_v23 = vadd.f32 %v14286_v9, %v8209_v61  ;;  %8719 = vst.msk [vmem:[%s12569_s12 + $0x290] sm:$0xff] %vm5208_vm10, %v7207_v63  ;;  %v9381_v11 = vpop.f32.mrb[84].mxu1 }
 0xd31   : > { %8779 = vst.msk [vmem:[%s12569_s12 + $0x368] sm:$0xff] %vm5208_vm10, %v8215_v44  ;;  %v7222_v41 = vadd.f32 %v9381_v11, %v14286_v9  ;;  %v7216_v17 = vpop.f32.mrb[85].mxu1 }
 0xd32   : > { %8778 = vst.msk [vmem:[%s12569_s12 + $0x360] sm:$0xff] %vm5208_vm10, %v8210_v23  ;;  %v9424_v48 = vpop.f32.mrb[86].mxu0  ;;  %v7217_v19 = vadd.f32 %v14286_v9, %v7216_v17 }
 0xd33   : > { %v8225_v38 = vadd.f32 %v9424_v48, %v14286_v9  ;;  %v8219_v49 = vpop.f32.mrb[87].mxu0  ;;  %8722 = vst.msk [vmem:[%s12569_s12 + $0x2a8] sm:$0xff] %vm5208_vm10, %v7222_v41 }
 0xd34   : > { %v8220_v30 = vadd.f32 %v14286_v9, %v8219_v49  ;;  %8721 = vst.msk [vmem:[%s12569_s12 + $0x2a0] sm:$0xff] %vm5208_vm10, %v7217_v19  ;;  %v9384_v47 = vpop.f32.mrb[86].mxu1 }
 0xd35   : > { %8781 = vst.msk [vmem:[%s12569_s12 + $0x378] sm:$0xff] %vm5208_vm10, %v8225_v38  ;;  %v7232_v1 = vadd.f32 %v9384_v47, %v14286_v9  ;;  %v7226_v16 = vpop.f32.mrb[87].mxu1 }
 0xd36   : > { %8780 = vst.msk [vmem:[%s12569_s12 + $0x370] sm:$0xff] %vm5208_vm10, %v8220_v30  ;;  %v9427_v56 = vpop.f32.mrb[88].mxu0  ;;  %v7227_v18 = vadd.f32 %v14286_v9, %v7226_v16 }
 0xd37   : > { %v8235_v10 = vadd.f32 %v9427_v56, %v14286_v9  ;;  %v8229_v31 = vpop.f32.mrb[89].mxu0  ;;  %8724 = vst.msk [vmem:[%s12569_s12 + $0x2b8] sm:$0xff] %vm5208_vm10, %v7232_v1 }
 0xd38   : > { %v8230_v2 = vadd.f32 %v14286_v9, %v8229_v31  ;;  %8723 = vst.msk [vmem:[%s12569_s12 + $0x2b0] sm:$0xff] %vm5208_vm10, %v7227_v18  ;;  %v9387_v20 = vpop.f32.mrb[88].mxu1 }
 0xd39   : > { %8783 = vst.msk [vmem:[%s12569_s12 + $0x388] sm:$0xff] %vm5208_vm10, %v8235_v10  ;;  %v7242_v5 = vadd.f32 %v9387_v20, %v14286_v9  ;;  %v7236_v43 = vpop.f32.mrb[89].mxu1 }
 0xd3a   : > { %8782 = vst.msk [vmem:[%s12569_s12 + $0x380] sm:$0xff] %vm5208_vm10, %v8230_v2  ;;  %v9430_v59 = vpop.f32.mrb[90].mxu0  ;;  %v7237_v42 = vadd.f32 %v14286_v9, %v7236_v43 }
 0xd3b   : > { %v8245_v54 = vadd.f32 %v9430_v59, %v14286_v9  ;;  %v8239_v53 = vpop.f32.mrb[91].mxu0  ;;  %8726 = vst.msk [vmem:[%s12569_s12 + $0x2c8] sm:$0xff] %vm5208_vm10, %v7242_v5 }
 0xd3c   : > { %v8240_v45 = vadd.f32 %v14286_v9, %v8239_v53  ;;  %8725 = vst.msk [vmem:[%s12569_s12 + $0x2c0] sm:$0xff] %vm5208_vm10, %v7237_v42  ;;  %v9390_v50 = vpop.f32.mrb[90].mxu1 }
 0xd3d   : > { %8785 = vst.msk [vmem:[%s12569_s12 + $0x398] sm:$0xff] %vm5208_vm10, %v8245_v54  ;;  %v7252_v3 = vadd.f32 %v9390_v50, %v14286_v9  ;;  %v7246_v13 = vpop.f32.mrb[91].mxu1 }
 0xd3e   : > { %8784 = vst.msk [vmem:[%s12569_s12 + $0x390] sm:$0xff] %vm5208_vm10, %v8240_v45  ;;  %v9433_v58 = vpop.f32.mrb[92].mxu0  ;;  %v7247_v57 = vadd.f32 %v14286_v9, %v7246_v13 }
 0xd3f   : > { %v8255_v15 = vadd.f32 %v9433_v58, %v14286_v9  ;;  %v8249_v60 = vpop.f32.mrb[93].mxu0  ;;  %8728 = vst.msk [vmem:[%s12569_s12 + $0x2d8] sm:$0xff] %vm5208_vm10, %v7252_v3 }
 0xd40   : > { %v8250_v28 = vadd.f32 %v14286_v9, %v8249_v60  ;;  %8727 = vst.msk [vmem:[%s12569_s12 + $0x2d0] sm:$0xff] %vm5208_vm10, %v7247_v57  ;;  %v9393_v26 = vpop.f32.mrb[92].mxu1 }
 0xd41   : > { %8787 = vst.msk [vmem:[%s12569_s12 + $0x3a8] sm:$0xff] %vm5208_vm10, %v8255_v15  ;;  %v7262_v32 = vadd.f32 %v9393_v26, %v14286_v9  ;;  %v7256_v51 = vpop.f32.mrb[93].mxu1 }
 0xd42   : > { %8786 = vst.msk [vmem:[%s12569_s12 + $0x3a0] sm:$0xff] %vm5208_vm10, %v8250_v28  ;;  %v9436_v34 = vpop.f32.mrb[94].mxu0  ;;  %v7257_v36 = vadd.f32 %v14286_v9, %v7256_v51 }
 0xd43   : > { %v8265_v25 = vadd.f32 %v9436_v34, %v14286_v9  ;;  %v8259_v39 = vpop.f32.mrb[95].mxu0  ;;  %8730 = vst.msk [vmem:[%s12569_s12 + $0x2e8] sm:$0xff] %vm5208_vm10, %v7262_v32 }
 0xd44   : > { %v8260_v37 = vadd.f32 %v14286_v9, %v8259_v39  ;;  %8729 = vst.msk [vmem:[%s12569_s12 + $0x2e0] sm:$0xff] %vm5208_vm10, %v7257_v36  ;;  %v9396_v0 = vpop.f32.mrb[94].mxu1 }
 0xd45   : > { %8789 = vst.msk [vmem:[%s12569_s12 + $0x3b8] sm:$0xff] %vm5208_vm10, %v8265_v25  ;;  %v7272_v33 = vadd.f32 %v9396_v0, %v14286_v9  ;;  %v7266_v27 = vpop.f32.mrb[95].mxu1 }
 0xd46   : > { %8788 = vst.msk [vmem:[%s12569_s12 + $0x3b0] sm:$0xff] %vm5208_vm10, %v8260_v37  ;;  %v9439_v35 = vpop.f32.mrb[96].mxu0  ;;  %v7267_v24 = vadd.f32 %v14286_v9, %v7266_v27 }
 0xd47   : > { %v8275_v55 = vadd.f32 %v9439_v35, %v14286_v9  ;;  %v8269_v8 = vpop.f32.mrb[97].mxu0  ;;  %8732 = vst.msk [vmem:[%s12569_s12 + $0x2f8] sm:$0xff] %vm5208_vm10, %v7272_v33 }
 0xd48   : > { %v8270_v21 = vadd.f32 %v14286_v9, %v8269_v8  ;;  %8731 = vst.msk [vmem:[%s12569_s12 + $0x2f0] sm:$0xff] %vm5208_vm10, %v7267_v24 }
 0xd49   : > { %8791 = vst.msk [vmem:[%s12569_s12 + $0x3c8] sm:$0xff] %vm5208_vm10, %v8275_v55 }
 0xd4a   : > { %8790 = vst.msk [vmem:[%s12569_s12 + $0x3c0] sm:$0xff] %vm5208_vm10, %v8270_v21  ;;  %v9442_v46 = vpop.f32.mrb[98].mxu0 }
 0xd4b   : > { %v8285_v40 = vadd.f32 %v9442_v46, %v14286_v9  ;;  %v8279_v12 = vpop.f32.mrb[99].mxu0 }
 0xd4c   : > { %v8280_v52 = vadd.f32 %v14286_v9, %v8279_v12 }
 0xd4d   : > { %8793 = vst.msk [vmem:[%s12569_s12 + $0x3d8] sm:$0xff] %vm5208_vm10, %v8285_v40 }
 0xd4e   : > { %8792 = vst.msk [vmem:[%s12569_s12 + $0x3d0] sm:$0xff] %vm5208_vm10, %v8280_v52  ;;  %v9445_v62 = vpop.f32.mrb[100].mxu0 }
 0xd4f   : > { %v8295_v7 = vadd.f32 %v9445_v62, %v14286_v9  ;;  %v8289_v22 = vpop.f32.mrb[101].mxu0 }
 0xd50   : > { %v8290_v29 = vadd.f32 %v14286_v9, %v8289_v22 }
 0xd51   : > { %8795 = vst.msk [vmem:[%s12569_s12 + $0x3e8] sm:$0xff] %vm5208_vm10, %v8295_v7 }
 0xd52   : > { %8794 = vst.msk [vmem:[%s12569_s12 + $0x3e0] sm:$0xff] %vm5208_vm10, %v8290_v29  ;;  %v9448_v4 = vpop.f32.mrb[102].mxu0 }
 0xd53   : > { %v8305_v14 = vadd.f32 %v9448_v4, %v14286_v9  ;;  %v8299_v44 = vpop.f32.mrb[103].mxu0 }
 0xd54   : > { %v8300_v6 = vadd.f32 %v14286_v9, %v8299_v44 }
 0xd55   : > { %8797 = vst.msk [vmem:[%s12569_s12 + $0x3f8] sm:$0xff] %vm5208_vm10, %v8305_v14 }
 0xd56   : > { %8796 = vst.msk [vmem:[%s12569_s12 + $0x3f0] sm:$0xff] %vm5208_vm10, %v8300_v6 }
 0xd57 PF: > { %s14759_s28 = sld [smem:[#allocation22_spill]] }
 0xd5d   : > { %s25_s17 = sadd.s32 1, %s14759_s28  }
 0xd5e   : > { %p22_p9 = scmp.ge.s32.totalorder %s25_s17, 4  }
 0xd60   :  { %24 = sbr.rel (!%p22_p9) target bundleno = 4 (0x4), region = 131 }
 0xd67   :  { %8362 = vsyncpa [#allocation8], 1 }
 0xd68   :  { %8364 = vsyncpa [#allocation8 + $0x1], 1 }
 0xd69   :  { %8365 = vsyncpa [#allocation10], 1 }
 0xd6a   :  { %8366 = vsyncpa [#allocation13], 1 }
 0xd6b   :  { %8367 = vsyncpa [#allocation16], 1 }

</bundles_post_ra>
